<compile_context>
chip_gen: v7x
topology: tpu7x:2x2x1
jax: 0.10.0
libtpu: 0.0.40
codegen_flags: <defaults>
</compile_context>

<pallas_src>
import functools

import jax
import jax.numpy as jnp
from jax.experimental import pallas as pl
from jax.experimental.pallas import tpu as pltpu

# --- module hyper-parameters (PyTorch defaults) -----------------------------
EPSILON = 0.05
NUM_SK_ITERS = 3
NUM_OUTER_ITERS = 10
LR_W = 0.01
SGD_MOMENTUM = 0.9
NUM_UNLABEL = 3
GAMMA = 0.05        # torch default `gamma=None` would crash; use gamma_bound=0.05
CLIP_NORM = 1.0
CONV_TOL = 1e-4

_NEG = -1e30        # "minus infinity" for masked lanes (exp() underflows to 0)


# ---------------------------------------------------------------------------
# Fused kernel: normalise + matmul + full outer optimisation loop
# ---------------------------------------------------------------------------
def _fused_kernel(f_ref, h_ref, st_ref, q_ref, out_ref, *,
                  b_valid, c_valid, epsilon, num_sk_iters, num_outer_iters,
                  gamma, lr_w, sgd_momentum):
    """Everything-in-VMEM forward of Balanced_sinkhorn_ce.

    st_ref rows : 0 = w, 1 = w0, 2 = SGD momentum buffer (lanes >= c_valid pad).
    out_ref rows: 0 = new w, 1 = new momentum, 2 = [loss, reg, 0, ...].
    """
    # TODO(synk): torch upcasts logits to float64 inside the sinkhorn; TPU
    # Pallas has no f64 support, so the whole path runs in float32.
    f32 = jnp.float32
    Bp = f_ref.shape[0]
    Cp = h_ref.shape[1]

    def recip(x):                                   # EUP reciprocal (review item)
        return pl.reciprocal(x, approx=True)

    # ---- masks for padded batch rows / class lanes -------------------------
    lane = jax.lax.broadcasted_iota(jnp.int32, (1, Cp), 1)
    row_id = jax.lax.broadcasted_iota(jnp.int32, (Bp, 1), 0)
    cmask = lane < c_valid                          # (1, Cp)
    rmask = row_id < b_valid                        # (Bp, 1)
    valid = jnp.logical_and(cmask, rmask)           # (Bp, Cp)

    # ---- L2-normalise + logits = f @ h (previously a separate kernel) ------
    f = f_ref[...]
    f = f / jnp.maximum(jnp.sqrt(jnp.sum(f * f, axis=1, keepdims=True)), 1e-12)
    h = h_ref[...]
    h = h / jnp.maximum(jnp.sqrt(jnp.sum(h * h, axis=0, keepdims=True)), 1e-12)
    # TODO(synk): single-block matmul; tile it (and shard over v7x's 2 TCs)
    # if B/D/C ever grow beyond a few hundred.
    logits = jnp.dot(f, h, preferred_element_type=f32)           # (Bp, Cp)

    # ---- w-independent quantities, hoisted out of the outer loop -----------
    # q0 = exp(logits/eps) / sum(...)  (max-subtracted; mathematically exact)
    z = jnp.where(valid, logits, _NEG) * (1.0 / epsilon)
    zmax = jnp.max(jnp.max(z, axis=1, keepdims=True), axis=0, keepdims=True)
    ez = jnp.exp(z - zmax)                                       # padding -> 0
    q0 = ez * recip(jnp.sum(jnp.sum(ez, axis=1, keepdims=True),
                            axis=0, keepdims=True))

    # log softmax(logits / 0.1) over the real classes, zeroed on padding
    s = jnp.where(cmask, logits, _NEG) * 10.0
    smax = jnp.max(s, axis=1, keepdims=True)
    logp = (s - smax) - jnp.log(jnp.sum(jnp.exp(s - smax), axis=1, keepdims=True))
    logp = jnp.where(valid, logp, 0.0)

    st = st_ref[...]
    w = st[0:1, :]
    w0 = st[1:2, :]
    mom = st[2:3, :]

    # target distribution t = softmax(w0) (constant across iterations)
    w0m = jnp.where(cmask, w0, _NEG)
    w0max = jnp.max(w0m, axis=1, keepdims=True)
    e0 = jnp.exp(w0m - w0max)
    se0 = jnp.sum(e0, axis=1, keepdims=True)
    tgt = e0 / se0
    log_tgt = jnp.where(cmask, (w0m - w0max) - jnp.log(se0), 0.0)

    # ---- optimisation loop (fully unrolled; early-exit via a "done" flag) --
    done = jnp.zeros((1, 1), f32)
    last_k2 = jnp.zeros((1, Cp), f32)
    q_out = jnp.zeros((Bp, Cp), f32)
    loss = jnp.zeros((1, 1), f32)
    reg = jnp.zeros((1, 1), f32)

    for _ in range(num_outer_iters):
        # K2 = softmax(w)
        wm = jnp.where(cmask, w, _NEG)
        wmax = jnp.max(wm, axis=1, keepdims=True)
        ew = jnp.exp(wm - wmax)
        sew = jnp.sum(ew, axis=1, keepdims=True)
        k2 = ew * recip(sew)
        log_sm_w = jnp.where(cmask, (wm - wmax) - jnp.log(sew), 0.0)

        # Sinkhorn-Knopp (intermediates kept for the analytic backward).
        q = q0
        saved = []
        for tt in range(num_sk_iters):
            col = jnp.sum(q, axis=0, keepdims=True)              # "sum_of_rows"
            inv_col = recip(jnp.where(cmask, col, 1.0))
            a = q * inv_col                                      # Q /= sum_of_rows
            b = a * k2                                           # (Q.T * K2).T
            row = jnp.where(rmask, jnp.sum(b, axis=1, keepdims=True), 1.0)
            inv_row = (1.0 / row) if tt == num_sk_iters - 1 else recip(row)
            q = b * inv_row                                      # Q /= col sums
            saved.append((a, inv_col, inv_row, q))

        # loss = -mean_b sum_c Q * log softmax(logits/0.1)
        it_loss = -jnp.sum(jnp.sum(q * logp, axis=1, keepdims=True),
                           axis=0, keepdims=True) * (1.0 / b_valid)
        # reg = KLDivLoss(batchmean)(log_softmax(w).T, softmax(w0).T)
        kl = jnp.where(cmask, tgt * (log_tgt - log_sm_w), 0.0)
        it_reg = jnp.sum(kl, axis=1, keepdims=True) * (1.0 / c_valid)

        # ---- analytic grad of (loss + gamma*reg) w.r.t. w -------------------
        g = logp * (-1.0 / b_valid)                              # dLoss/dQ
        dk2 = jnp.zeros((1, Cp), f32)
        for tt in reversed(range(num_sk_iters)):
            a, inv_col, inv_row, qt = saved[tt]
            # through q = b / rowsum(b)
            db = (g - jnp.sum(g * qt, axis=1, keepdims=True)) * inv_row
            # through b = a * k2
            dk2 = dk2 + jnp.sum(db * a, axis=0, keepdims=True)
            da = db * k2
            # through a = q_prev / colsum(q_prev)
            g = (da - jnp.sum(da * a, axis=0, keepdims=True)) * inv_col
        # softmax backward for k2 = softmax(w), plus the KL term
        grad_w = k2 * (dk2 - jnp.sum(k2 * dk2, axis=1, keepdims=True))
        grad_w = grad_w + gamma * (k2 - tgt) * (1.0 / c_valid)
        grad_w = jnp.where(cmask, grad_w, 0.0)

        # clip_grad_norm_(1.0) + SGD(lr_w, momentum)
        gnorm = jnp.sqrt(jnp.sum(grad_w * grad_w, axis=1, keepdims=True))
        grad_w = grad_w * jnp.minimum(1.0, CLIP_NORM / (gnorm + 1e-6))
        new_mom = sgd_momentum * mom + grad_w
        new_w = w - lr_w * new_mom

        # on-device convergence test (was a blocking host sync per iteration)
        dk = k2 - last_k2
        dist = jnp.sqrt(jnp.sum(dk * dk, axis=1, keepdims=True))
        converged = (dist < CONV_TOL).astype(f32)

        # commit this iteration only if not already converged
        keep = done
        upd = 1.0 - done
        q_out = keep * q_out + upd * q
        loss = keep * loss + upd * it_loss
        reg = keep * reg + upd * it_reg
        w = keep * w + upd * new_w
        mom = keep * mom + upd * new_mom
        last_k2 = keep * last_k2 + upd * k2
        done = jnp.maximum(done, converged)

    # ---- lane-dense outputs -------------------------------------------------
    q_ref[...] = q_out
    stats = jnp.where(lane == 0, loss, 0.0) + jnp.where(lane == 1, reg, 0.0)
    orow = jax.lax.broadcasted_iota(jnp.int32, (8, Cp), 0)
    out_ref[...] = jnp.where(orow == 0, w,
                             jnp.where(orow == 1, mom,
                                       jnp.where(orow == 2, stats, 0.0)))


# ---------------------------------------------------------------------------
# Cached pallas_call + jitted wrapper (built once per shape / hyper-params)
# ---------------------------------------------------------------------------
def _round_up(x, m):
    return ((x + m - 1) // m) * m


@functools.lru_cache(maxsize=None)
def _build_forward(b, d, c, num_sk_iters, num_outer_iters, epsilon, lr_w,
                   sgd_momentum, gamma):
    bp = _round_up(max(b, 8), 8)
    cp = _round_up(max(c, 128), 128)

    kernel = functools.partial(
        _fused_kernel, b_valid=b, c_valid=c, epsilon=epsilon,
        num_sk_iters=num_sk_iters, num_outer_iters=num_outer_iters,
        gamma=gamma, lr_w=lr_w, sgd_momentum=sgd_momentum)

    call = pl.pallas_call(
        kernel,
        grid=(1,),
        in_specs=[pl.BlockSpec((bp, d), lambda i: (0, 0)),
                  pl.BlockSpec((d, cp), lambda i: (0, 0)),
                  pl.BlockSpec((8, cp), lambda i: (0, 0))],
        out_specs=(pl.BlockSpec((bp, cp), lambda i: (0, 0)),
                   pl.BlockSpec((8, cp), lambda i: (0, 0))),
        out_shape=(jax.ShapeDtypeStruct((bp, cp), jnp.float32),
                   jax.ShapeDtypeStruct((8, cp), jnp.float32)),
        compiler_params=pltpu.CompilerParams(
            dimension_semantics=("arbitrary",)),
    )

    @jax.jit
    def fwd(features, head, w, w0, mom):
        features = features.astype(jnp.float32)
        head = head.astype(jnp.float32)
        fpad = jnp.zeros((bp, d), jnp.float32).at[:b, :].set(features)
        hpad = jnp.zeros((d, cp), jnp.float32).at[:, :c].set(head)
        state = (jnp.zeros((8, cp), jnp.float32)
                 .at[0, :c].set(w[0].astype(jnp.float32))
                 .at[1, :c].set(w0[0].astype(jnp.float32))
                 .at[2, :c].set(mom[0].astype(jnp.float32)))
        q_pad, out = call(fpad, hpad, state)
        return (q_pad[:b, :c], out[0:1, :c], out[1:2, :c], out[2, 0], out[2, 1])

    return fwd


# ---------------------------------------------------------------------------
# Balanced_sinkhorn_ce.forward (training-inside-forward) port
# ---------------------------------------------------------------------------
class BalancedSinkhornCE:
    def __init__(self, split=0, num_iters=NUM_SK_ITERS, epsilon=EPSILON,
                 lr_w=LR_W, num_outer_iters=NUM_OUTER_ITERS,
                 num_unlabel=NUM_UNLABEL, gamma=GAMMA):
        del split
        self.num_iters = num_iters
        self.epsilon = epsilon
        self.lr_w = lr_w
        self.num_outer_iters = num_outer_iters
        self.gamma = gamma
        self.num_unlabel = num_unlabel
        # torch.nn.Parameter(torch.ones(1, C) / C) and its SGD momentum buffer
        # (both persist across forward calls, like the torch optimizer state).
        self.w = jnp.ones((1, num_unlabel), jnp.float32) / num_unlabel
        self.w0 = jnp.ones((1, num_unlabel), jnp.float32) / num_unlabel
        self.momentum_buf = jnp.zeros((1, num_unlabel), jnp.float32)

    def forward(self, features, head, epoch=0):
        del epoch  # unused by the reference forward
        b, d = features.shape
        c = self.num_unlabel
        fwd = _build_forward(b, d, c, self.num_iters, self.num_outer_iters,
                             self.epsilon, self.lr_w, SGD_MOMENTUM, self.gamma)
        q, w_new, mom_new, loss, reg = fwd(features, head, self.w, self.w0,
                                           self.momentum_buf)
        self.w = w_new
        self.momentum_buf = mom_new
        # single host sync at the very end (matches loss.item() / reg.item())
        return q, float(loss), float(reg)


if __name__ == "__main__":
    key = jax.random.PRNGKey(0)
    kf, kh = jax.random.split(key)
    B, D, C = 8, 32, NUM_UNLABEL
    features = jax.random.normal(kf, (B, D), jnp.float32)
    head = jax.random.normal(kh, (D, C), jnp.float32)

    model = BalancedSinkhornCE()
    Q, loss, reg = model.forward(features, head, epoch=0)
    Q = jax.block_until_ready(Q)

    assert Q.shape == (B, C)
    assert bool(jnp.all(jnp.isfinite(Q)))
    # every row of the returned Q is a distribution over the C classes
    assert float(jnp.max(jnp.abs(jnp.sum(Q, axis=1) - 1.0))) < 1e-3
    assert jnp.isfinite(jnp.float32(loss)) and jnp.isfinite(jnp.float32(reg))
    print("KERNEL_OK")
</pallas_src>

<mosaic_0001>
module attributes {stable_mosaic.version = 11 : i64} {
  func.func @_fused_kernel(%arg0: i32, %arg1: memref<8x32xf32, #tpu.memory_space<vmem>>, %arg2: memref<32x128xf32, #tpu.memory_space<vmem>>, %arg3: memref<8x128xf32, #tpu.memory_space<vmem>>, %arg4: memref<8x128xf32, #tpu.memory_space<vmem>>, %arg5: memref<8x128xf32, #tpu.memory_space<vmem>>) attributes {dimension_semantics = [#tpu.dimension_semantics<arbitrary>], iteration_bounds = array<i64: 1>, scalar_prefetch = 0 : i64, scratch_operands = 0 : i64, tpu.core_type = #tpu.core_type<tc>, window_params = [{pipeline_mode = #tpu.pipeline_mode<synchronous>, transform_indices = @transform_0, window_bounds = array<i64: 8, 32>}, {pipeline_mode = #tpu.pipeline_mode<synchronous>, transform_indices = @transform_1, window_bounds = array<i64: 32, 128>}, {pipeline_mode = #tpu.pipeline_mode<synchronous>, transform_indices = @transform_2, window_bounds = array<i64: 8, 128>}, {pipeline_mode = #tpu.pipeline_mode<synchronous>, transform_indices = @transform_3, window_bounds = array<i64: 8, 128>}, {pipeline_mode = #tpu.pipeline_mode<synchronous>, transform_indices = @transform_4, window_bounds = array<i64: 8, 128>}]} {
    %0 = tpu.iota {dimensions = array<i32: 1>} : vector<1x128xi32>
    %1 = tpu.iota {dimensions = array<i32: 0>} : vector<8x1xi32>
    %c3_i32 = arith.constant 3 : i32
    %2 = vector.broadcast %c3_i32 : i32 to vector<1x128xi32>
    %3 = arith.cmpi slt, %0, %2 : vector<1x128xi32>
    %c8_i32 = arith.constant 8 : i32
    %4 = vector.broadcast %c8_i32 : i32 to vector<8x1xi32>
    %5 = arith.cmpi slt, %1, %4 : vector<8x1xi32>
    %6 = vector.broadcast %3 : vector<1x128xi1> to vector<8x128xi1>
    %7 = vector.broadcast %5 : vector<8x1xi1> to vector<8x128xi1>
    %8 = arith.andi %6, %7 : vector<8x128xi1>
    %c0 = arith.constant 0 : index
    %c0_0 = arith.constant 0 : index
    %9 = vector.load %arg1[%c0, %c0_0] : memref<8x32xf32, #tpu.memory_space<vmem>>, vector<8x32xf32>
    %10 = arith.mulf %9, %9 : vector<8x32xf32>
    %cst = arith.constant dense<0.000000e+00> : vector<8xf32>
    %11 = vector.multi_reduction <add>, %10, %cst [1] : vector<8x32xf32> to vector<8xf32>
    %12 = vector.shape_cast %11 : vector<8xf32> to vector<8x1xf32>
    %13 = math.sqrt %12 : vector<8x1xf32>
    %cst_1 = arith.constant 9.99999996E-13 : f32
    %14 = vector.broadcast %cst_1 : f32 to vector<8x1xf32>
    %15 = arith.maximumf %13, %14 : vector<8x1xf32>
    %16 = vector.broadcast %15 : vector<8x1xf32> to vector<8x32xf32>
    %17 = arith.divf %9, %16 : vector<8x32xf32>
    %c0_2 = arith.constant 0 : index
    %c0_3 = arith.constant 0 : index
    %18 = vector.load %arg2[%c0_2, %c0_3] : memref<32x128xf32, #tpu.memory_space<vmem>>, vector<32x128xf32>
    %19 = arith.mulf %18, %18 : vector<32x128xf32>
    %cst_4 = arith.constant dense<0.000000e+00> : vector<128xf32>
    %20 = vector.multi_reduction <add>, %19, %cst_4 [0] : vector<32x128xf32> to vector<128xf32>
    %21 = vector.shape_cast %20 : vector<128xf32> to vector<1x128xf32>
    %22 = math.sqrt %21 : vector<1x128xf32>
    %cst_5 = arith.constant 9.99999996E-13 : f32
    %23 = vector.broadcast %cst_5 : f32 to vector<1x128xf32>
    %24 = arith.maximumf %22, %23 : vector<1x128xf32>
    %25 = vector.broadcast %24 : vector<1x128xf32> to vector<32x128xf32>
    %26 = arith.divf %18, %25 : vector<32x128xf32>
    %cst_6 = arith.constant dense<0.000000e+00> : vector<8x128xf32>
    %27 = tpu.matmul %17, %26, %cst_6 {dimension_numbers = #tpu.dot_dimension_numbers<[1], [0], [0], [1], [0, 0, 1, 1], [], []>} : vector<8x32xf32>, vector<32x128xf32>, vector<8x128xf32> -> vector<8x128xf32>
    %cst_7 = arith.constant -1.000000e+30 : f32
    %28 = vector.broadcast %cst_7 : f32 to vector<8x128xf32>
    %29 = arith.select %8, %27, %28 : vector<8x128xi1>, vector<8x128xf32>
    %cst_8 = arith.constant 2.000000e+01 : f32
    %30 = vector.broadcast %cst_8 : f32 to vector<8x128xf32>
    %31 = arith.mulf %29, %30 : vector<8x128xf32>
    %cst_9 = arith.constant dense<0xFF800000> : vector<8xf32>
    %32 = vector.multi_reduction <maximumf>, %31, %cst_9 [1] : vector<8x128xf32> to vector<8xf32>
    %33 = vector.shape_cast %32 : vector<8xf32> to vector<8x1xf32>
    %cst_10 = arith.constant dense<0xFF800000> : vector<1xf32>
    %34 = vector.multi_reduction <maximumf>, %33, %cst_10 [0] : vector<8x1xf32> to vector<1xf32>
    %35 = vector.shape_cast %34 : vector<1xf32> to vector<1x1xf32>
    %36 = vector.broadcast %35 : vector<1x1xf32> to vector<8x128xf32>
    %37 = arith.subf %31, %36 : vector<8x128xf32>
    %38 = math.exp %37 : vector<8x128xf32>
    %cst_11 = arith.constant dense<0.000000e+00> : vector<8xf32>
    %39 = vector.multi_reduction <add>, %38, %cst_11 [1] : vector<8x128xf32> to vector<8xf32>
    %40 = vector.shape_cast %39 : vector<8xf32> to vector<8x1xf32>
    %cst_12 = arith.constant dense<0.000000e+00> : vector<1xf32>
    %41 = vector.multi_reduction <add>, %40, %cst_12 [0] : vector<8x1xf32> to vector<1xf32>
    %42 = vector.shape_cast %41 : vector<1xf32> to vector<1x1xf32>
    %43 = tpu.reciprocal %42 {approx = true} : vector<1x1xf32> -> vector<1x1xf32>
    %44 = vector.broadcast %43 : vector<1x1xf32> to vector<8x128xf32>
    %45 = arith.mulf %38, %44 : vector<8x128xf32>
    %cst_13 = arith.constant -1.000000e+30 : f32
    %46 = vector.shape_cast %3 : vector<1x128xi1> to vector<1x128xi1>
    %47 = vector.broadcast %46 : vector<1x128xi1> to vector<8x128xi1>
    %48 = vector.broadcast %cst_13 : f32 to vector<8x128xf32>
    %49 = arith.select %47, %27, %48 : vector<8x128xi1>, vector<8x128xf32>
    %cst_14 = arith.constant 1.000000e+01 : f32
    %50 = vector.broadcast %cst_14 : f32 to vector<8x128xf32>
    %51 = arith.mulf %49, %50 : vector<8x128xf32>
    %cst_15 = arith.constant dense<0xFF800000> : vector<8xf32>
    %52 = vector.multi_reduction <maximumf>, %51, %cst_15 [1] : vector<8x128xf32> to vector<8xf32>
    %53 = vector.shape_cast %52 : vector<8xf32> to vector<8x1xf32>
    %54 = vector.broadcast %53 : vector<8x1xf32> to vector<8x128xf32>
    %55 = arith.subf %51, %54 : vector<8x128xf32>
    %56 = vector.broadcast %53 : vector<8x1xf32> to vector<8x128xf32>
    %57 = arith.subf %51, %56 : vector<8x128xf32>
    %58 = math.exp %57 : vector<8x128xf32>
    %cst_16 = arith.constant dense<0.000000e+00> : vector<8xf32>
    %59 = vector.multi_reduction <add>, %58, %cst_16 [1] : vector<8x128xf32> to vector<8xf32>
    %60 = vector.shape_cast %59 : vector<8xf32> to vector<8x1xf32>
    %61 = math.log %60 : vector<8x1xf32>
    %62 = vector.broadcast %61 : vector<8x1xf32> to vector<8x128xf32>
    %63 = arith.subf %55, %62 : vector<8x128xf32>
    %cst_17 = arith.constant 0.000000e+00 : f32
    %64 = vector.broadcast %cst_17 : f32 to vector<8x128xf32>
    %65 = arith.select %8, %63, %64 : vector<8x128xi1>, vector<8x128xf32>
    %c0_18 = arith.constant 0 : index
    %c0_19 = arith.constant 0 : index
    %66 = vector.load %arg3[%c0_18, %c0_19] : memref<8x128xf32, #tpu.memory_space<vmem>>, vector<8x128xf32>
    %67 = vector.extract_strided_slice %66 {offsets = [0, 0], sizes = [1, 128], strides = [1, 1]} : vector<8x128xf32> to vector<1x128xf32>
    %68 = vector.extract_strided_slice %66 {offsets = [1, 0], sizes = [1, 128], strides = [1, 1]} : vector<8x128xf32> to vector<1x128xf32>
    %69 = vector.extract_strided_slice %66 {offsets = [2, 0], sizes = [1, 128], strides = [1, 1]} : vector<8x128xf32> to vector<1x128xf32>
    %cst_20 = arith.constant -1.000000e+30 : f32
    %70 = vector.broadcast %cst_20 : f32 to vector<1x128xf32>
    %71 = arith.select %3, %68, %70 : vector<1x128xi1>, vector<1x128xf32>
    %cst_21 = arith.constant dense<0xFF800000> : vector<1xf32>
    %72 = vector.multi_reduction <maximumf>, %71, %cst_21 [1] : vector<1x128xf32> to vector<1xf32>
    %73 = vector.shape_cast %72 : vector<1xf32> to vector<1x1xf32>
    %74 = vector.broadcast %73 : vector<1x1xf32> to vector<1x128xf32>
    %75 = arith.subf %71, %74 : vector<1x128xf32>
    %76 = math.exp %75 : vector<1x128xf32>
    %cst_22 = arith.constant dense<0.000000e+00> : vector<1xf32>
    %77 = vector.multi_reduction <add>, %76, %cst_22 [1] : vector<1x128xf32> to vector<1xf32>
    %78 = vector.shape_cast %77 : vector<1xf32> to vector<1x1xf32>
    %79 = vector.broadcast %78 : vector<1x1xf32> to vector<1x128xf32>
    %80 = arith.divf %76, %79 : vector<1x128xf32>
    %81 = vector.broadcast %73 : vector<1x1xf32> to vector<1x128xf32>
    %82 = arith.subf %71, %81 : vector<1x128xf32>
    %83 = math.log %78 : vector<1x1xf32>
    %84 = vector.broadcast %83 : vector<1x1xf32> to vector<1x128xf32>
    %85 = arith.subf %82, %84 : vector<1x128xf32>
    %cst_23 = arith.constant 0.000000e+00 : f32
    %86 = vector.broadcast %cst_23 : f32 to vector<1x128xf32>
    %87 = arith.select %3, %85, %86 : vector<1x128xi1>, vector<1x128xf32>
    %cst_24 = arith.constant 0.000000e+00 : f32
    %88 = vector.broadcast %cst_24 : f32 to vector<1x1xf32>
    %cst_25 = arith.constant 0.000000e+00 : f32
    %89 = vector.broadcast %cst_25 : f32 to vector<1x128xf32>
    %cst_26 = arith.constant 0.000000e+00 : f32
    %90 = vector.broadcast %cst_26 : f32 to vector<8x128xf32>
    %cst_27 = arith.constant 0.000000e+00 : f32
    %91 = vector.broadcast %cst_27 : f32 to vector<1x1xf32>
    %cst_28 = arith.constant 0.000000e+00 : f32
    %92 = vector.broadcast %cst_28 : f32 to vector<1x1xf32>
    %cst_29 = arith.constant -1.000000e+30 : f32
    %93 = vector.broadcast %cst_29 : f32 to vector<1x128xf32>
    %94 = arith.select %3, %67, %93 : vector<1x128xi1>, vector<1x128xf32>
    %cst_30 = arith.constant dense<0xFF800000> : vector<1xf32>
    %95 = vector.multi_reduction <maximumf>, %94, %cst_30 [1] : vector<1x128xf32> to vector<1xf32>
    %96 = vector.shape_cast %95 : vector<1xf32> to vector<1x1xf32>
    %97 = vector.broadcast %96 : vector<1x1xf32> to vector<1x128xf32>
    %98 = arith.subf %94, %97 : vector<1x128xf32>
    %99 = math.exp %98 : vector<1x128xf32>
    %cst_31 = arith.constant dense<0.000000e+00> : vector<1xf32>
    %100 = vector.multi_reduction <add>, %99, %cst_31 [1] : vector<1x128xf32> to vector<1xf32>
    %101 = vector.shape_cast %100 : vector<1xf32> to vector<1x1xf32>
    %102 = tpu.reciprocal %101 {approx = true} : vector<1x1xf32> -> vector<1x1xf32>
    %103 = vector.broadcast %102 : vector<1x1xf32> to vector<1x128xf32>
    %104 = arith.mulf %99, %103 : vector<1x128xf32>
    %105 = vector.broadcast %96 : vector<1x1xf32> to vector<1x128xf32>
    %106 = arith.subf %94, %105 : vector<1x128xf32>
    %107 = math.log %101 : vector<1x1xf32>
    %108 = vector.broadcast %107 : vector<1x1xf32> to vector<1x128xf32>
    %109 = arith.subf %106, %108 : vector<1x128xf32>
    %cst_32 = arith.constant 0.000000e+00 : f32
    %110 = vector.broadcast %cst_32 : f32 to vector<1x128xf32>
    %111 = arith.select %3, %109, %110 : vector<1x128xi1>, vector<1x128xf32>
    %cst_33 = arith.constant dense<0.000000e+00> : vector<128xf32>
    %112 = vector.multi_reduction <add>, %45, %cst_33 [0] : vector<8x128xf32> to vector<128xf32>
    %113 = vector.shape_cast %112 : vector<128xf32> to vector<1x128xf32>
    %cst_34 = arith.constant 1.000000e+00 : f32
    %114 = vector.broadcast %cst_34 : f32 to vector<1x128xf32>
    %115 = arith.select %3, %113, %114 : vector<1x128xi1>, vector<1x128xf32>
    %116 = tpu.reciprocal %115 {approx = true} : vector<1x128xf32> -> vector<1x128xf32>
    %117 = vector.broadcast %116 : vector<1x128xf32> to vector<8x128xf32>
    %118 = arith.mulf %45, %117 : vector<8x128xf32>
    %119 = vector.broadcast %104 : vector<1x128xf32> to vector<8x128xf32>
    %120 = arith.mulf %118, %119 : vector<8x128xf32>
    %cst_35 = arith.constant dense<0.000000e+00> : vector<8xf32>
    %121 = vector.multi_reduction <add>, %120, %cst_35 [1] : vector<8x128xf32> to vector<8xf32>
    %122 = vector.shape_cast %121 : vector<8xf32> to vector<8x1xf32>
    %cst_36 = arith.constant 1.000000e+00 : f32
    %123 = vector.broadcast %cst_36 : f32 to vector<8x1xf32>
    %124 = arith.select %5, %122, %123 : vector<8x1xi1>, vector<8x1xf32>
    %125 = tpu.reciprocal %124 {approx = true} : vector<8x1xf32> -> vector<8x1xf32>
    %126 = vector.broadcast %125 : vector<8x1xf32> to vector<8x128xf32>
    %127 = arith.mulf %120, %126 : vector<8x128xf32>
    %cst_37 = arith.constant dense<0.000000e+00> : vector<128xf32>
    %128 = vector.multi_reduction <add>, %127, %cst_37 [0] : vector<8x128xf32> to vector<128xf32>
    %129 = vector.shape_cast %128 : vector<128xf32> to vector<1x128xf32>
    %cst_38 = arith.constant 1.000000e+00 : f32
    %130 = vector.broadcast %cst_38 : f32 to vector<1x128xf32>
    %131 = arith.select %3, %129, %130 : vector<1x128xi1>, vector<1x128xf32>
    %132 = tpu.reciprocal %131 {approx = true} : vector<1x128xf32> -> vector<1x128xf32>
    %133 = vector.broadcast %132 : vector<1x128xf32> to vector<8x128xf32>
    %134 = arith.mulf %127, %133 : vector<8x128xf32>
    %135 = vector.broadcast %104 : vector<1x128xf32> to vector<8x128xf32>
    %136 = arith.mulf %134, %135 : vector<8x128xf32>
    %cst_39 = arith.constant dense<0.000000e+00> : vector<8xf32>
    %137 = vector.multi_reduction <add>, %136, %cst_39 [1] : vector<8x128xf32> to vector<8xf32>
    %138 = vector.shape_cast %137 : vector<8xf32> to vector<8x1xf32>
    %cst_40 = arith.constant 1.000000e+00 : f32
    %139 = vector.broadcast %cst_40 : f32 to vector<8x1xf32>
    %140 = arith.select %5, %138, %139 : vector<8x1xi1>, vector<8x1xf32>
    %141 = tpu.reciprocal %140 {approx = true} : vector<8x1xf32> -> vector<8x1xf32>
    %142 = vector.broadcast %141 : vector<8x1xf32> to vector<8x128xf32>
    %143 = arith.mulf %136, %142 : vector<8x128xf32>
    %cst_41 = arith.constant dense<0.000000e+00> : vector<128xf32>
    %144 = vector.multi_reduction <add>, %143, %cst_41 [0] : vector<8x128xf32> to vector<128xf32>
    %145 = vector.shape_cast %144 : vector<128xf32> to vector<1x128xf32>
    %cst_42 = arith.constant 1.000000e+00 : f32
    %146 = vector.broadcast %cst_42 : f32 to vector<1x128xf32>
    %147 = arith.select %3, %145, %146 : vector<1x128xi1>, vector<1x128xf32>
    %148 = tpu.reciprocal %147 {approx = true} : vector<1x128xf32> -> vector<1x128xf32>
    %149 = vector.broadcast %148 : vector<1x128xf32> to vector<8x128xf32>
    %150 = arith.mulf %143, %149 : vector<8x128xf32>
    %151 = vector.broadcast %104 : vector<1x128xf32> to vector<8x128xf32>
    %152 = arith.mulf %150, %151 : vector<8x128xf32>
    %cst_43 = arith.constant dense<0.000000e+00> : vector<8xf32>
    %153 = vector.multi_reduction <add>, %152, %cst_43 [1] : vector<8x128xf32> to vector<8xf32>
    %154 = vector.shape_cast %153 : vector<8xf32> to vector<8x1xf32>
    %cst_44 = arith.constant 1.000000e+00 : f32
    %155 = vector.broadcast %cst_44 : f32 to vector<8x1xf32>
    %156 = arith.select %5, %154, %155 : vector<8x1xi1>, vector<8x1xf32>
    %cst_45 = arith.constant 1.000000e+00 : f32
    %157 = vector.broadcast %cst_45 : f32 to vector<8x1xf32>
    %158 = arith.divf %157, %156 : vector<8x1xf32>
    %159 = vector.broadcast %158 : vector<8x1xf32> to vector<8x128xf32>
    %160 = arith.mulf %152, %159 : vector<8x128xf32>
    %161 = arith.mulf %160, %65 : vector<8x128xf32>
    %cst_46 = arith.constant dense<0.000000e+00> : vector<8xf32>
    %162 = vector.multi_reduction <add>, %161, %cst_46 [1] : vector<8x128xf32> to vector<8xf32>
    %163 = vector.shape_cast %162 : vector<8xf32> to vector<8x1xf32>
    %cst_47 = arith.constant dense<0.000000e+00> : vector<1xf32>
    %164 = vector.multi_reduction <add>, %163, %cst_47 [0] : vector<8x1xf32> to vector<1xf32>
    %165 = vector.shape_cast %164 : vector<1xf32> to vector<1x1xf32>
    %cst_48 = arith.constant 0.000000e+00 : f32
    %166 = vector.broadcast %cst_48 : f32 to vector<1x1xf32>
    %167 = arith.subf %166, %165 : vector<1x1xf32>
    %cst_49 = arith.constant 1.250000e-01 : f32
    %168 = vector.broadcast %cst_49 : f32 to vector<1x1xf32>
    %169 = arith.mulf %167, %168 : vector<1x1xf32>
    %170 = arith.subf %87, %111 : vector<1x128xf32>
    %171 = arith.mulf %80, %170 : vector<1x128xf32>
    %cst_50 = arith.constant 0.000000e+00 : f32
    %172 = vector.broadcast %cst_50 : f32 to vector<1x128xf32>
    %173 = arith.select %3, %171, %172 : vector<1x128xi1>, vector<1x128xf32>
    %cst_51 = arith.constant dense<0.000000e+00> : vector<1xf32>
    %174 = vector.multi_reduction <add>, %173, %cst_51 [1] : vector<1x128xf32> to vector<1xf32>
    %175 = vector.shape_cast %174 : vector<1xf32> to vector<1x1xf32>
    %cst_52 = arith.constant 0.333333343 : f32
    %176 = vector.broadcast %cst_52 : f32 to vector<1x1xf32>
    %177 = arith.mulf %175, %176 : vector<1x1xf32>
    %cst_53 = arith.constant -1.250000e-01 : f32
    %178 = vector.broadcast %cst_53 : f32 to vector<8x128xf32>
    %179 = arith.mulf %65, %178 : vector<8x128xf32>
    %cst_54 = arith.constant 0.000000e+00 : f32
    %180 = vector.broadcast %cst_54 : f32 to vector<1x128xf32>
    %181 = arith.mulf %179, %160 : vector<8x128xf32>
    %cst_55 = arith.constant dense<0.000000e+00> : vector<8xf32>
    %182 = vector.multi_reduction <add>, %181, %cst_55 [1] : vector<8x128xf32> to vector<8xf32>
    %183 = vector.shape_cast %182 : vector<8xf32> to vector<8x1xf32>
    %184 = vector.broadcast %183 : vector<8x1xf32> to vector<8x128xf32>
    %185 = arith.subf %179, %184 : vector<8x128xf32>
    %186 = vector.broadcast %158 : vector<8x1xf32> to vector<8x128xf32>
    %187 = arith.mulf %185, %186 : vector<8x128xf32>
    %188 = arith.mulf %187, %150 : vector<8x128xf32>
    %cst_56 = arith.constant dense<0.000000e+00> : vector<128xf32>
    %189 = vector.multi_reduction <add>, %188, %cst_56 [0] : vector<8x128xf32> to vector<128xf32>
    %190 = vector.shape_cast %189 : vector<128xf32> to vector<1x128xf32>
    %191 = arith.addf %180, %190 : vector<1x128xf32>
    %192 = vector.broadcast %104 : vector<1x128xf32> to vector<8x128xf32>
    %193 = arith.mulf %187, %192 : vector<8x128xf32>
    %194 = arith.mulf %193, %150 : vector<8x128xf32>
    %cst_57 = arith.constant dense<0.000000e+00> : vector<128xf32>
    %195 = vector.multi_reduction <add>, %194, %cst_57 [0] : vector<8x128xf32> to vector<128xf32>
    %196 = vector.shape_cast %195 : vector<128xf32> to vector<1x128xf32>
    %197 = vector.broadcast %196 : vector<1x128xf32> to vector<8x128xf32>
    %198 = arith.subf %193, %197 : vector<8x128xf32>
    %199 = vector.broadcast %148 : vector<1x128xf32> to vector<8x128xf32>
    %200 = arith.mulf %198, %199 : vector<8x128xf32>
    %201 = arith.mulf %200, %143 : vector<8x128xf32>
    %cst_58 = arith.constant dense<0.000000e+00> : vector<8xf32>
    %202 = vector.multi_reduction <add>, %201, %cst_58 [1] : vector<8x128xf32> to vector<8xf32>
    %203 = vector.shape_cast %202 : vector<8xf32> to vector<8x1xf32>
    %204 = vector.broadcast %203 : vector<8x1xf32> to vector<8x128xf32>
    %205 = arith.subf %200, %204 : vector<8x128xf32>
    %206 = vector.broadcast %141 : vector<8x1xf32> to vector<8x128xf32>
    %207 = arith.mulf %205, %206 : vector<8x128xf32>
    %208 = arith.mulf %207, %134 : vector<8x128xf32>
    %cst_59 = arith.constant dense<0.000000e+00> : vector<128xf32>
    %209 = vector.multi_reduction <add>, %208, %cst_59 [0] : vector<8x128xf32> to vector<128xf32>
    %210 = vector.shape_cast %209 : vector<128xf32> to vector<1x128xf32>
    %211 = arith.addf %191, %210 : vector<1x128xf32>
    %212 = vector.broadcast %104 : vector<1x128xf32> to vector<8x128xf32>
    %213 = arith.mulf %207, %212 : vector<8x128xf32>
    %214 = arith.mulf %213, %134 : vector<8x128xf32>
    %cst_60 = arith.constant dense<0.000000e+00> : vector<128xf32>
    %215 = vector.multi_reduction <add>, %214, %cst_60 [0] : vector<8x128xf32> to vector<128xf32>
    %216 = vector.shape_cast %215 : vector<128xf32> to vector<1x128xf32>
    %217 = vector.broadcast %216 : vector<1x128xf32> to vector<8x128xf32>
    %218 = arith.subf %213, %217 : vector<8x128xf32>
    %219 = vector.broadcast %132 : vector<1x128xf32> to vector<8x128xf32>
    %220 = arith.mulf %218, %219 : vector<8x128xf32>
    %221 = arith.mulf %220, %127 : vector<8x128xf32>
    %cst_61 = arith.constant dense<0.000000e+00> : vector<8xf32>
    %222 = vector.multi_reduction <add>, %221, %cst_61 [1] : vector<8x128xf32> to vector<8xf32>
    %223 = vector.shape_cast %222 : vector<8xf32> to vector<8x1xf32>
    %224 = vector.broadcast %223 : vector<8x1xf32> to vector<8x128xf32>
    %225 = arith.subf %220, %224 : vector<8x128xf32>
    %226 = vector.broadcast %125 : vector<8x1xf32> to vector<8x128xf32>
    %227 = arith.mulf %225, %226 : vector<8x128xf32>
    %228 = arith.mulf %227, %118 : vector<8x128xf32>
    %cst_62 = arith.constant dense<0.000000e+00> : vector<128xf32>
    %229 = vector.multi_reduction <add>, %228, %cst_62 [0] : vector<8x128xf32> to vector<128xf32>
    %230 = vector.shape_cast %229 : vector<128xf32> to vector<1x128xf32>
    %231 = arith.addf %211, %230 : vector<1x128xf32>
    %232 = arith.mulf %104, %231 : vector<1x128xf32>
    %cst_63 = arith.constant dense<0.000000e+00> : vector<1xf32>
    %233 = vector.multi_reduction <add>, %232, %cst_63 [1] : vector<1x128xf32> to vector<1xf32>
    %234 = vector.shape_cast %233 : vector<1xf32> to vector<1x1xf32>
    %235 = vector.broadcast %234 : vector<1x1xf32> to vector<1x128xf32>
    %236 = arith.subf %231, %235 : vector<1x128xf32>
    %237 = arith.mulf %104, %236 : vector<1x128xf32>
    %238 = arith.subf %104, %80 : vector<1x128xf32>
    %cst_64 = arith.constant 5.000000e-02 : f32
    %239 = vector.broadcast %cst_64 : f32 to vector<1x128xf32>
    %240 = arith.mulf %239, %238 : vector<1x128xf32>
    %cst_65 = arith.constant 0.333333343 : f32
    %241 = vector.broadcast %cst_65 : f32 to vector<1x128xf32>
    %242 = arith.mulf %240, %241 : vector<1x128xf32>
    %243 = arith.addf %237, %242 : vector<1x128xf32>
    %cst_66 = arith.constant 0.000000e+00 : f32
    %244 = vector.broadcast %cst_66 : f32 to vector<1x128xf32>
    %245 = arith.select %3, %243, %244 : vector<1x128xi1>, vector<1x128xf32>
    %246 = arith.mulf %245, %245 : vector<1x128xf32>
    %cst_67 = arith.constant dense<0.000000e+00> : vector<1xf32>
    %247 = vector.multi_reduction <add>, %246, %cst_67 [1] : vector<1x128xf32> to vector<1xf32>
    %248 = vector.shape_cast %247 : vector<1xf32> to vector<1x1xf32>
    %249 = math.sqrt %248 : vector<1x1xf32>
    %cst_68 = arith.constant 9.99999997E-7 : f32
    %250 = vector.broadcast %cst_68 : f32 to vector<1x1xf32>
    %251 = arith.addf %249, %250 : vector<1x1xf32>
    %cst_69 = arith.constant 1.000000e+00 : f32
    %252 = vector.broadcast %cst_69 : f32 to vector<1x1xf32>
    %253 = arith.divf %252, %251 : vector<1x1xf32>
    %cst_70 = arith.constant 1.000000e+00 : f32
    %254 = vector.broadcast %cst_70 : f32 to vector<1x1xf32>
    %255 = arith.minimumf %254, %253 : vector<1x1xf32>
    %256 = vector.broadcast %255 : vector<1x1xf32> to vector<1x128xf32>
    %257 = arith.mulf %245, %256 : vector<1x128xf32>
    %cst_71 = arith.constant 0.899999976 : f32
    %258 = vector.broadcast %cst_71 : f32 to vector<1x128xf32>
    %259 = arith.mulf %258, %69 : vector<1x128xf32>
    %260 = arith.addf %259, %257 : vector<1x128xf32>
    %cst_72 = arith.constant 0.00999999977 : f32
    %261 = vector.broadcast %cst_72 : f32 to vector<1x128xf32>
    %262 = arith.mulf %261, %260 : vector<1x128xf32>
    %263 = arith.subf %67, %262 : vector<1x128xf32>
    %264 = arith.subf %104, %89 : vector<1x128xf32>
    %265 = arith.mulf %264, %264 : vector<1x128xf32>
    %cst_73 = arith.constant dense<0.000000e+00> : vector<1xf32>
    %266 = vector.multi_reduction <add>, %265, %cst_73 [1] : vector<1x128xf32> to vector<1xf32>
    %267 = vector.shape_cast %266 : vector<1xf32> to vector<1x1xf32>
    %268 = math.sqrt %267 : vector<1x1xf32>
    %cst_74 = arith.constant 9.99999974E-5 : f32
    %269 = vector.broadcast %cst_74 : f32 to vector<1x1xf32>
    %270 = arith.cmpf olt, %268, %269 : vector<1x1xf32>
    %271 = arith.extui %270 : vector<1x1xi1> to vector<1x1xi32>
    %272 = arith.sitofp %271 : vector<1x1xi32> to vector<1x1xf32>
    %cst_75 = arith.constant 1.000000e+00 : f32
    %273 = vector.broadcast %cst_75 : f32 to vector<1x1xf32>
    %274 = arith.subf %273, %88 : vector<1x1xf32>
    %275 = vector.broadcast %88 : vector<1x1xf32> to vector<8x128xf32>
    %276 = arith.mulf %275, %90 : vector<8x128xf32>
    %277 = vector.broadcast %274 : vector<1x1xf32> to vector<8x128xf32>
    %278 = arith.mulf %277, %160 : vector<8x128xf32>
    %279 = arith.addf %276, %278 : vector<8x128xf32>
    %280 = arith.mulf %88, %91 : vector<1x1xf32>
    %281 = arith.mulf %274, %169 : vector<1x1xf32>
    %282 = arith.addf %280, %281 : vector<1x1xf32>
    %283 = arith.mulf %88, %92 : vector<1x1xf32>
    %284 = arith.mulf %274, %177 : vector<1x1xf32>
    %285 = arith.addf %283, %284 : vector<1x1xf32>
    %286 = vector.broadcast %88 : vector<1x1xf32> to vector<1x128xf32>
    %287 = arith.mulf %286, %67 : vector<1x128xf32>
    %288 = vector.broadcast %274 : vector<1x1xf32> to vector<1x128xf32>
    %289 = arith.mulf %288, %263 : vector<1x128xf32>
    %290 = arith.addf %287, %289 : vector<1x128xf32>
    %291 = vector.broadcast %88 : vector<1x1xf32> to vector<1x128xf32>
    %292 = arith.mulf %291, %69 : vector<1x128xf32>
    %293 = vector.broadcast %274 : vector<1x1xf32> to vector<1x128xf32>
    %294 = arith.mulf %293, %260 : vector<1x128xf32>
    %295 = arith.addf %292, %294 : vector<1x128xf32>
    %296 = vector.broadcast %88 : vector<1x1xf32> to vector<1x128xf32>
    %297 = arith.mulf %296, %89 : vector<1x128xf32>
    %298 = vector.broadcast %274 : vector<1x1xf32> to vector<1x128xf32>
    %299 = arith.mulf %298, %104 : vector<1x128xf32>
    %300 = arith.addf %297, %299 : vector<1x128xf32>
    %301 = arith.maximumf %88, %272 : vector<1x1xf32>
    %cst_76 = arith.constant -1.000000e+30 : f32
    %302 = vector.broadcast %cst_76 : f32 to vector<1x128xf32>
    %303 = arith.select %3, %290, %302 : vector<1x128xi1>, vector<1x128xf32>
    %cst_77 = arith.constant dense<0xFF800000> : vector<1xf32>
    %304 = vector.multi_reduction <maximumf>, %303, %cst_77 [1] : vector<1x128xf32> to vector<1xf32>
    %305 = vector.shape_cast %304 : vector<1xf32> to vector<1x1xf32>
    %306 = vector.broadcast %305 : vector<1x1xf32> to vector<1x128xf32>
    %307 = arith.subf %303, %306 : vector<1x128xf32>
    %308 = math.exp %307 : vector<1x128xf32>
    %cst_78 = arith.constant dense<0.000000e+00> : vector<1xf32>
    %309 = vector.multi_reduction <add>, %308, %cst_78 [1] : vector<1x128xf32> to vector<1xf32>
    %310 = vector.shape_cast %309 : vector<1xf32> to vector<1x1xf32>
    %311 = tpu.reciprocal %310 {approx = true} : vector<1x1xf32> -> vector<1x1xf32>
    %312 = vector.broadcast %311 : vector<1x1xf32> to vector<1x128xf32>
    %313 = arith.mulf %308, %312 : vector<1x128xf32>
    %314 = vector.broadcast %305 : vector<1x1xf32> to vector<1x128xf32>
    %315 = arith.subf %303, %314 : vector<1x128xf32>
    %316 = math.log %310 : vector<1x1xf32>
    %317 = vector.broadcast %316 : vector<1x1xf32> to vector<1x128xf32>
    %318 = arith.subf %315, %317 : vector<1x128xf32>
    %cst_79 = arith.constant 0.000000e+00 : f32
    %319 = vector.broadcast %cst_79 : f32 to vector<1x128xf32>
    %320 = arith.select %3, %318, %319 : vector<1x128xi1>, vector<1x128xf32>
    %cst_80 = arith.constant dense<0.000000e+00> : vector<128xf32>
    %321 = vector.multi_reduction <add>, %45, %cst_80 [0] : vector<8x128xf32> to vector<128xf32>
    %322 = vector.shape_cast %321 : vector<128xf32> to vector<1x128xf32>
    %cst_81 = arith.constant 1.000000e+00 : f32
    %323 = vector.broadcast %cst_81 : f32 to vector<1x128xf32>
    %324 = arith.select %3, %322, %323 : vector<1x128xi1>, vector<1x128xf32>
    %325 = tpu.reciprocal %324 {approx = true} : vector<1x128xf32> -> vector<1x128xf32>
    %326 = vector.broadcast %325 : vector<1x128xf32> to vector<8x128xf32>
    %327 = arith.mulf %45, %326 : vector<8x128xf32>
    %328 = vector.broadcast %313 : vector<1x128xf32> to vector<8x128xf32>
    %329 = arith.mulf %327, %328 : vector<8x128xf32>
    %cst_82 = arith.constant dense<0.000000e+00> : vector<8xf32>
    %330 = vector.multi_reduction <add>, %329, %cst_82 [1] : vector<8x128xf32> to vector<8xf32>
    %331 = vector.shape_cast %330 : vector<8xf32> to vector<8x1xf32>
    %cst_83 = arith.constant 1.000000e+00 : f32
    %332 = vector.broadcast %cst_83 : f32 to vector<8x1xf32>
    %333 = arith.select %5, %331, %332 : vector<8x1xi1>, vector<8x1xf32>
    %334 = tpu.reciprocal %333 {approx = true} : vector<8x1xf32> -> vector<8x1xf32>
    %335 = vector.broadcast %334 : vector<8x1xf32> to vector<8x128xf32>
    %336 = arith.mulf %329, %335 : vector<8x128xf32>
    %cst_84 = arith.constant dense<0.000000e+00> : vector<128xf32>
    %337 = vector.multi_reduction <add>, %336, %cst_84 [0] : vector<8x128xf32> to vector<128xf32>
    %338 = vector.shape_cast %337 : vector<128xf32> to vector<1x128xf32>
    %cst_85 = arith.constant 1.000000e+00 : f32
    %339 = vector.broadcast %cst_85 : f32 to vector<1x128xf32>
    %340 = arith.select %3, %338, %339 : vector<1x128xi1>, vector<1x128xf32>
    %341 = tpu.reciprocal %340 {approx = true} : vector<1x128xf32> -> vector<1x128xf32>
    %342 = vector.broadcast %341 : vector<1x128xf32> to vector<8x128xf32>
    %343 = arith.mulf %336, %342 : vector<8x128xf32>
    %344 = vector.broadcast %313 : vector<1x128xf32> to vector<8x128xf32>
    %345 = arith.mulf %343, %344 : vector<8x128xf32>
    %cst_86 = arith.constant dense<0.000000e+00> : vector<8xf32>
    %346 = vector.multi_reduction <add>, %345, %cst_86 [1] : vector<8x128xf32> to vector<8xf32>
    %347 = vector.shape_cast %346 : vector<8xf32> to vector<8x1xf32>
    %cst_87 = arith.constant 1.000000e+00 : f32
    %348 = vector.broadcast %cst_87 : f32 to vector<8x1xf32>
    %349 = arith.select %5, %347, %348 : vector<8x1xi1>, vector<8x1xf32>
    %350 = tpu.reciprocal %349 {approx = true} : vector<8x1xf32> -> vector<8x1xf32>
    %351 = vector.broadcast %350 : vector<8x1xf32> to vector<8x128xf32>
    %352 = arith.mulf %345, %351 : vector<8x128xf32>
    %cst_88 = arith.constant dense<0.000000e+00> : vector<128xf32>
    %353 = vector.multi_reduction <add>, %352, %cst_88 [0] : vector<8x128xf32> to vector<128xf32>
    %354 = vector.shape_cast %353 : vector<128xf32> to vector<1x128xf32>
    %cst_89 = arith.constant 1.000000e+00 : f32
    %355 = vector.broadcast %cst_89 : f32 to vector<1x128xf32>
    %356 = arith.select %3, %354, %355 : vector<1x128xi1>, vector<1x128xf32>
    %357 = tpu.reciprocal %356 {approx = true} : vector<1x128xf32> -> vector<1x128xf32>
    %358 = vector.broadcast %357 : vector<1x128xf32> to vector<8x128xf32>
    %359 = arith.mulf %352, %358 : vector<8x128xf32>
    %360 = vector.broadcast %313 : vector<1x128xf32> to vector<8x128xf32>
    %361 = arith.mulf %359, %360 : vector<8x128xf32>
    %cst_90 = arith.constant dense<0.000000e+00> : vector<8xf32>
    %362 = vector.multi_reduction <add>, %361, %cst_90 [1] : vector<8x128xf32> to vector<8xf32>
    %363 = vector.shape_cast %362 : vector<8xf32> to vector<8x1xf32>
    %cst_91 = arith.constant 1.000000e+00 : f32
    %364 = vector.broadcast %cst_91 : f32 to vector<8x1xf32>
    %365 = arith.select %5, %363, %364 : vector<8x1xi1>, vector<8x1xf32>
    %cst_92 = arith.constant 1.000000e+00 : f32
    %366 = vector.broadcast %cst_92 : f32 to vector<8x1xf32>
    %367 = arith.divf %366, %365 : vector<8x1xf32>
    %368 = vector.broadcast %367 : vector<8x1xf32> to vector<8x128xf32>
    %369 = arith.mulf %361, %368 : vector<8x128xf32>
    %370 = arith.mulf %369, %65 : vector<8x128xf32>
    %cst_93 = arith.constant dense<0.000000e+00> : vector<8xf32>
    %371 = vector.multi_reduction <add>, %370, %cst_93 [1] : vector<8x128xf32> to vector<8xf32>
    %372 = vector.shape_cast %371 : vector<8xf32> to vector<8x1xf32>
    %cst_94 = arith.constant dense<0.000000e+00> : vector<1xf32>
    %373 = vector.multi_reduction <add>, %372, %cst_94 [0] : vector<8x1xf32> to vector<1xf32>
    %374 = vector.shape_cast %373 : vector<1xf32> to vector<1x1xf32>
    %cst_95 = arith.constant 0.000000e+00 : f32
    %375 = vector.broadcast %cst_95 : f32 to vector<1x1xf32>
    %376 = arith.subf %375, %374 : vector<1x1xf32>
    %cst_96 = arith.constant 1.250000e-01 : f32
    %377 = vector.broadcast %cst_96 : f32 to vector<1x1xf32>
    %378 = arith.mulf %376, %377 : vector<1x1xf32>
    %379 = arith.subf %87, %320 : vector<1x128xf32>
    %380 = arith.mulf %80, %379 : vector<1x128xf32>
    %cst_97 = arith.constant 0.000000e+00 : f32
    %381 = vector.broadcast %cst_97 : f32 to vector<1x128xf32>
    %382 = arith.select %3, %380, %381 : vector<1x128xi1>, vector<1x128xf32>
    %cst_98 = arith.constant dense<0.000000e+00> : vector<1xf32>
    %383 = vector.multi_reduction <add>, %382, %cst_98 [1] : vector<1x128xf32> to vector<1xf32>
    %384 = vector.shape_cast %383 : vector<1xf32> to vector<1x1xf32>
    %cst_99 = arith.constant 0.333333343 : f32
    %385 = vector.broadcast %cst_99 : f32 to vector<1x1xf32>
    %386 = arith.mulf %384, %385 : vector<1x1xf32>
    %cst_100 = arith.constant -1.250000e-01 : f32
    %387 = vector.broadcast %cst_100 : f32 to vector<8x128xf32>
    %388 = arith.mulf %65, %387 : vector<8x128xf32>
    %cst_101 = arith.constant 0.000000e+00 : f32
    %389 = vector.broadcast %cst_101 : f32 to vector<1x128xf32>
    %390 = arith.mulf %388, %369 : vector<8x128xf32>
    %cst_102 = arith.constant dense<0.000000e+00> : vector<8xf32>
    %391 = vector.multi_reduction <add>, %390, %cst_102 [1] : vector<8x128xf32> to vector<8xf32>
    %392 = vector.shape_cast %391 : vector<8xf32> to vector<8x1xf32>
    %393 = vector.broadcast %392 : vector<8x1xf32> to vector<8x128xf32>
    %394 = arith.subf %388, %393 : vector<8x128xf32>
    %395 = vector.broadcast %367 : vector<8x1xf32> to vector<8x128xf32>
    %396 = arith.mulf %394, %395 : vector<8x128xf32>
    %397 = arith.mulf %396, %359 : vector<8x128xf32>
    %cst_103 = arith.constant dense<0.000000e+00> : vector<128xf32>
    %398 = vector.multi_reduction <add>, %397, %cst_103 [0] : vector<8x128xf32> to vector<128xf32>
    %399 = vector.shape_cast %398 : vector<128xf32> to vector<1x128xf32>
    %400 = arith.addf %389, %399 : vector<1x128xf32>
    %401 = vector.broadcast %313 : vector<1x128xf32> to vector<8x128xf32>
    %402 = arith.mulf %396, %401 : vector<8x128xf32>
    %403 = arith.mulf %402, %359 : vector<8x128xf32>
    %cst_104 = arith.constant dense<0.000000e+00> : vector<128xf32>
    %404 = vector.multi_reduction <add>, %403, %cst_104 [0] : vector<8x128xf32> to vector<128xf32>
    %405 = vector.shape_cast %404 : vector<128xf32> to vector<1x128xf32>
    %406 = vector.broadcast %405 : vector<1x128xf32> to vector<8x128xf32>
    %407 = arith.subf %402, %406 : vector<8x128xf32>
    %408 = vector.broadcast %357 : vector<1x128xf32> to vector<8x128xf32>
    %409 = arith.mulf %407, %408 : vector<8x128xf32>
    %410 = arith.mulf %409, %352 : vector<8x128xf32>
    %cst_105 = arith.constant dense<0.000000e+00> : vector<8xf32>
    %411 = vector.multi_reduction <add>, %410, %cst_105 [1] : vector<8x128xf32> to vector<8xf32>
    %412 = vector.shape_cast %411 : vector<8xf32> to vector<8x1xf32>
    %413 = vector.broadcast %412 : vector<8x1xf32> to vector<8x128xf32>
    %414 = arith.subf %409, %413 : vector<8x128xf32>
    %415 = vector.broadcast %350 : vector<8x1xf32> to vector<8x128xf32>
    %416 = arith.mulf %414, %415 : vector<8x128xf32>
    %417 = arith.mulf %416, %343 : vector<8x128xf32>
    %cst_106 = arith.constant dense<0.000000e+00> : vector<128xf32>
    %418 = vector.multi_reduction <add>, %417, %cst_106 [0] : vector<8x128xf32> to vector<128xf32>
    %419 = vector.shape_cast %418 : vector<128xf32> to vector<1x128xf32>
    %420 = arith.addf %400, %419 : vector<1x128xf32>
    %421 = vector.broadcast %313 : vector<1x128xf32> to vector<8x128xf32>
    %422 = arith.mulf %416, %421 : vector<8x128xf32>
    %423 = arith.mulf %422, %343 : vector<8x128xf32>
    %cst_107 = arith.constant dense<0.000000e+00> : vector<128xf32>
    %424 = vector.multi_reduction <add>, %423, %cst_107 [0] : vector<8x128xf32> to vector<128xf32>
    %425 = vector.shape_cast %424 : vector<128xf32> to vector<1x128xf32>
    %426 = vector.broadcast %425 : vector<1x128xf32> to vector<8x128xf32>
    %427 = arith.subf %422, %426 : vector<8x128xf32>
    %428 = vector.broadcast %341 : vector<1x128xf32> to vector<8x128xf32>
    %429 = arith.mulf %427, %428 : vector<8x128xf32>
    %430 = arith.mulf %429, %336 : vector<8x128xf32>
    %cst_108 = arith.constant dense<0.000000e+00> : vector<8xf32>
    %431 = vector.multi_reduction <add>, %430, %cst_108 [1] : vector<8x128xf32> to vector<8xf32>
    %432 = vector.shape_cast %431 : vector<8xf32> to vector<8x1xf32>
    %433 = vector.broadcast %432 : vector<8x1xf32> to vector<8x128xf32>
    %434 = arith.subf %429, %433 : vector<8x128xf32>
    %435 = vector.broadcast %334 : vector<8x1xf32> to vector<8x128xf32>
    %436 = arith.mulf %434, %435 : vector<8x128xf32>
    %437 = arith.mulf %436, %327 : vector<8x128xf32>
    %cst_109 = arith.constant dense<0.000000e+00> : vector<128xf32>
    %438 = vector.multi_reduction <add>, %437, %cst_109 [0] : vector<8x128xf32> to vector<128xf32>
    %439 = vector.shape_cast %438 : vector<128xf32> to vector<1x128xf32>
    %440 = arith.addf %420, %439 : vector<1x128xf32>
    %441 = arith.mulf %313, %440 : vector<1x128xf32>
    %cst_110 = arith.constant dense<0.000000e+00> : vector<1xf32>
    %442 = vector.multi_reduction <add>, %441, %cst_110 [1] : vector<1x128xf32> to vector<1xf32>
    %443 = vector.shape_cast %442 : vector<1xf32> to vector<1x1xf32>
    %444 = vector.broadcast %443 : vector<1x1xf32> to vector<1x128xf32>
    %445 = arith.subf %440, %444 : vector<1x128xf32>
    %446 = arith.mulf %313, %445 : vector<1x128xf32>
    %447 = arith.subf %313, %80 : vector<1x128xf32>
    %cst_111 = arith.constant 5.000000e-02 : f32
    %448 = vector.broadcast %cst_111 : f32 to vector<1x128xf32>
    %449 = arith.mulf %448, %447 : vector<1x128xf32>
    %cst_112 = arith.constant 0.333333343 : f32
    %450 = vector.broadcast %cst_112 : f32 to vector<1x128xf32>
    %451 = arith.mulf %449, %450 : vector<1x128xf32>
    %452 = arith.addf %446, %451 : vector<1x128xf32>
    %cst_113 = arith.constant 0.000000e+00 : f32
    %453 = vector.broadcast %cst_113 : f32 to vector<1x128xf32>
    %454 = arith.select %3, %452, %453 : vector<1x128xi1>, vector<1x128xf32>
    %455 = arith.mulf %454, %454 : vector<1x128xf32>
    %cst_114 = arith.constant dense<0.000000e+00> : vector<1xf32>
    %456 = vector.multi_reduction <add>, %455, %cst_114 [1] : vector<1x128xf32> to vector<1xf32>
    %457 = vector.shape_cast %456 : vector<1xf32> to vector<1x1xf32>
    %458 = math.sqrt %457 : vector<1x1xf32>
    %cst_115 = arith.constant 9.99999997E-7 : f32
    %459 = vector.broadcast %cst_115 : f32 to vector<1x1xf32>
    %460 = arith.addf %458, %459 : vector<1x1xf32>
    %cst_116 = arith.constant 1.000000e+00 : f32
    %461 = vector.broadcast %cst_116 : f32 to vector<1x1xf32>
    %462 = arith.divf %461, %460 : vector<1x1xf32>
    %cst_117 = arith.constant 1.000000e+00 : f32
    %463 = vector.broadcast %cst_117 : f32 to vector<1x1xf32>
    %464 = arith.minimumf %463, %462 : vector<1x1xf32>
    %465 = vector.broadcast %464 : vector<1x1xf32> to vector<1x128xf32>
    %466 = arith.mulf %454, %465 : vector<1x128xf32>
    %cst_118 = arith.constant 0.899999976 : f32
    %467 = vector.broadcast %cst_118 : f32 to vector<1x128xf32>
    %468 = arith.mulf %467, %295 : vector<1x128xf32>
    %469 = arith.addf %468, %466 : vector<1x128xf32>
    %cst_119 = arith.constant 0.00999999977 : f32
    %470 = vector.broadcast %cst_119 : f32 to vector<1x128xf32>
    %471 = arith.mulf %470, %469 : vector<1x128xf32>
    %472 = arith.subf %290, %471 : vector<1x128xf32>
    %473 = arith.subf %313, %300 : vector<1x128xf32>
    %474 = arith.mulf %473, %473 : vector<1x128xf32>
    %cst_120 = arith.constant dense<0.000000e+00> : vector<1xf32>
    %475 = vector.multi_reduction <add>, %474, %cst_120 [1] : vector<1x128xf32> to vector<1xf32>
    %476 = vector.shape_cast %475 : vector<1xf32> to vector<1x1xf32>
    %477 = math.sqrt %476 : vector<1x1xf32>
    %cst_121 = arith.constant 9.99999974E-5 : f32
    %478 = vector.broadcast %cst_121 : f32 to vector<1x1xf32>
    %479 = arith.cmpf olt, %477, %478 : vector<1x1xf32>
    %480 = arith.extui %479 : vector<1x1xi1> to vector<1x1xi32>
    %481 = arith.sitofp %480 : vector<1x1xi32> to vector<1x1xf32>
    %cst_122 = arith.constant 1.000000e+00 : f32
    %482 = vector.broadcast %cst_122 : f32 to vector<1x1xf32>
    %483 = arith.subf %482, %301 : vector<1x1xf32>
    %484 = vector.broadcast %301 : vector<1x1xf32> to vector<8x128xf32>
    %485 = arith.mulf %484, %279 : vector<8x128xf32>
    %486 = vector.broadcast %483 : vector<1x1xf32> to vector<8x128xf32>
    %487 = arith.mulf %486, %369 : vector<8x128xf32>
    %488 = arith.addf %485, %487 : vector<8x128xf32>
    %489 = arith.mulf %301, %282 : vector<1x1xf32>
    %490 = arith.mulf %483, %378 : vector<1x1xf32>
    %491 = arith.addf %489, %490 : vector<1x1xf32>
    %492 = arith.mulf %301, %285 : vector<1x1xf32>
    %493 = arith.mulf %483, %386 : vector<1x1xf32>
    %494 = arith.addf %492, %493 : vector<1x1xf32>
    %495 = vector.broadcast %301 : vector<1x1xf32> to vector<1x128xf32>
    %496 = arith.mulf %495, %290 : vector<1x128xf32>
    %497 = vector.broadcast %483 : vector<1x1xf32> to vector<1x128xf32>
    %498 = arith.mulf %497, %472 : vector<1x128xf32>
    %499 = arith.addf %496, %498 : vector<1x128xf32>
    %500 = vector.broadcast %301 : vector<1x1xf32> to vector<1x128xf32>
    %501 = arith.mulf %500, %295 : vector<1x128xf32>
    %502 = vector.broadcast %483 : vector<1x1xf32> to vector<1x128xf32>
    %503 = arith.mulf %502, %469 : vector<1x128xf32>
    %504 = arith.addf %501, %503 : vector<1x128xf32>
    %505 = vector.broadcast %301 : vector<1x1xf32> to vector<1x128xf32>
    %506 = arith.mulf %505, %300 : vector<1x128xf32>
    %507 = vector.broadcast %483 : vector<1x1xf32> to vector<1x128xf32>
    %508 = arith.mulf %507, %313 : vector<1x128xf32>
    %509 = arith.addf %506, %508 : vector<1x128xf32>
    %510 = arith.maximumf %301, %481 : vector<1x1xf32>
    %cst_123 = arith.constant -1.000000e+30 : f32
    %511 = vector.broadcast %cst_123 : f32 to vector<1x128xf32>
    %512 = arith.select %3, %499, %511 : vector<1x128xi1>, vector<1x128xf32>
    %cst_124 = arith.constant dense<0xFF800000> : vector<1xf32>
    %513 = vector.multi_reduction <maximumf>, %512, %cst_124 [1] : vector<1x128xf32> to vector<1xf32>
    %514 = vector.shape_cast %513 : vector<1xf32> to vector<1x1xf32>
    %515 = vector.broadcast %514 : vector<1x1xf32> to vector<1x128xf32>
    %516 = arith.subf %512, %515 : vector<1x128xf32>
    %517 = math.exp %516 : vector<1x128xf32>
    %cst_125 = arith.constant dense<0.000000e+00> : vector<1xf32>
    %518 = vector.multi_reduction <add>, %517, %cst_125 [1] : vector<1x128xf32> to vector<1xf32>
    %519 = vector.shape_cast %518 : vector<1xf32> to vector<1x1xf32>
    %520 = tpu.reciprocal %519 {approx = true} : vector<1x1xf32> -> vector<1x1xf32>
    %521 = vector.broadcast %520 : vector<1x1xf32> to vector<1x128xf32>
    %522 = arith.mulf %517, %521 : vector<1x128xf32>
    %523 = vector.broadcast %514 : vector<1x1xf32> to vector<1x128xf32>
    %524 = arith.subf %512, %523 : vector<1x128xf32>
    %525 = math.log %519 : vector<1x1xf32>
    %526 = vector.broadcast %525 : vector<1x1xf32> to vector<1x128xf32>
    %527 = arith.subf %524, %526 : vector<1x128xf32>
    %cst_126 = arith.constant 0.000000e+00 : f32
    %528 = vector.broadcast %cst_126 : f32 to vector<1x128xf32>
    %529 = arith.select %3, %527, %528 : vector<1x128xi1>, vector<1x128xf32>
    %cst_127 = arith.constant dense<0.000000e+00> : vector<128xf32>
    %530 = vector.multi_reduction <add>, %45, %cst_127 [0] : vector<8x128xf32> to vector<128xf32>
    %531 = vector.shape_cast %530 : vector<128xf32> to vector<1x128xf32>
    %cst_128 = arith.constant 1.000000e+00 : f32
    %532 = vector.broadcast %cst_128 : f32 to vector<1x128xf32>
    %533 = arith.select %3, %531, %532 : vector<1x128xi1>, vector<1x128xf32>
    %534 = tpu.reciprocal %533 {approx = true} : vector<1x128xf32> -> vector<1x128xf32>
    %535 = vector.broadcast %534 : vector<1x128xf32> to vector<8x128xf32>
    %536 = arith.mulf %45, %535 : vector<8x128xf32>
    %537 = vector.broadcast %522 : vector<1x128xf32> to vector<8x128xf32>
    %538 = arith.mulf %536, %537 : vector<8x128xf32>
    %cst_129 = arith.constant dense<0.000000e+00> : vector<8xf32>
    %539 = vector.multi_reduction <add>, %538, %cst_129 [1] : vector<8x128xf32> to vector<8xf32>
    %540 = vector.shape_cast %539 : vector<8xf32> to vector<8x1xf32>
    %cst_130 = arith.constant 1.000000e+00 : f32
    %541 = vector.broadcast %cst_130 : f32 to vector<8x1xf32>
    %542 = arith.select %5, %540, %541 : vector<8x1xi1>, vector<8x1xf32>
    %543 = tpu.reciprocal %542 {approx = true} : vector<8x1xf32> -> vector<8x1xf32>
    %544 = vector.broadcast %543 : vector<8x1xf32> to vector<8x128xf32>
    %545 = arith.mulf %538, %544 : vector<8x128xf32>
    %cst_131 = arith.constant dense<0.000000e+00> : vector<128xf32>
    %546 = vector.multi_reduction <add>, %545, %cst_131 [0] : vector<8x128xf32> to vector<128xf32>
    %547 = vector.shape_cast %546 : vector<128xf32> to vector<1x128xf32>
    %cst_132 = arith.constant 1.000000e+00 : f32
    %548 = vector.broadcast %cst_132 : f32 to vector<1x128xf32>
    %549 = arith.select %3, %547, %548 : vector<1x128xi1>, vector<1x128xf32>
    %550 = tpu.reciprocal %549 {approx = true} : vector<1x128xf32> -> vector<1x128xf32>
    %551 = vector.broadcast %550 : vector<1x128xf32> to vector<8x128xf32>
    %552 = arith.mulf %545, %551 : vector<8x128xf32>
    %553 = vector.broadcast %522 : vector<1x128xf32> to vector<8x128xf32>
    %554 = arith.mulf %552, %553 : vector<8x128xf32>
    %cst_133 = arith.constant dense<0.000000e+00> : vector<8xf32>
    %555 = vector.multi_reduction <add>, %554, %cst_133 [1] : vector<8x128xf32> to vector<8xf32>
    %556 = vector.shape_cast %555 : vector<8xf32> to vector<8x1xf32>
    %cst_134 = arith.constant 1.000000e+00 : f32
    %557 = vector.broadcast %cst_134 : f32 to vector<8x1xf32>
    %558 = arith.select %5, %556, %557 : vector<8x1xi1>, vector<8x1xf32>
    %559 = tpu.reciprocal %558 {approx = true} : vector<8x1xf32> -> vector<8x1xf32>
    %560 = vector.broadcast %559 : vector<8x1xf32> to vector<8x128xf32>
    %561 = arith.mulf %554, %560 : vector<8x128xf32>
    %cst_135 = arith.constant dense<0.000000e+00> : vector<128xf32>
    %562 = vector.multi_reduction <add>, %561, %cst_135 [0] : vector<8x128xf32> to vector<128xf32>
    %563 = vector.shape_cast %562 : vector<128xf32> to vector<1x128xf32>
    %cst_136 = arith.constant 1.000000e+00 : f32
    %564 = vector.broadcast %cst_136 : f32 to vector<1x128xf32>
    %565 = arith.select %3, %563, %564 : vector<1x128xi1>, vector<1x128xf32>
    %566 = tpu.reciprocal %565 {approx = true} : vector<1x128xf32> -> vector<1x128xf32>
    %567 = vector.broadcast %566 : vector<1x128xf32> to vector<8x128xf32>
    %568 = arith.mulf %561, %567 : vector<8x128xf32>
    %569 = vector.broadcast %522 : vector<1x128xf32> to vector<8x128xf32>
    %570 = arith.mulf %568, %569 : vector<8x128xf32>
    %cst_137 = arith.constant dense<0.000000e+00> : vector<8xf32>
    %571 = vector.multi_reduction <add>, %570, %cst_137 [1] : vector<8x128xf32> to vector<8xf32>
    %572 = vector.shape_cast %571 : vector<8xf32> to vector<8x1xf32>
    %cst_138 = arith.constant 1.000000e+00 : f32
    %573 = vector.broadcast %cst_138 : f32 to vector<8x1xf32>
    %574 = arith.select %5, %572, %573 : vector<8x1xi1>, vector<8x1xf32>
    %cst_139 = arith.constant 1.000000e+00 : f32
    %575 = vector.broadcast %cst_139 : f32 to vector<8x1xf32>
    %576 = arith.divf %575, %574 : vector<8x1xf32>
    %577 = vector.broadcast %576 : vector<8x1xf32> to vector<8x128xf32>
    %578 = arith.mulf %570, %577 : vector<8x128xf32>
    %579 = arith.mulf %578, %65 : vector<8x128xf32>
    %cst_140 = arith.constant dense<0.000000e+00> : vector<8xf32>
    %580 = vector.multi_reduction <add>, %579, %cst_140 [1] : vector<8x128xf32> to vector<8xf32>
    %581 = vector.shape_cast %580 : vector<8xf32> to vector<8x1xf32>
    %cst_141 = arith.constant dense<0.000000e+00> : vector<1xf32>
    %582 = vector.multi_reduction <add>, %581, %cst_141 [0] : vector<8x1xf32> to vector<1xf32>
    %583 = vector.shape_cast %582 : vector<1xf32> to vector<1x1xf32>
    %cst_142 = arith.constant 0.000000e+00 : f32
    %584 = vector.broadcast %cst_142 : f32 to vector<1x1xf32>
    %585 = arith.subf %584, %583 : vector<1x1xf32>
    %cst_143 = arith.constant 1.250000e-01 : f32
    %586 = vector.broadcast %cst_143 : f32 to vector<1x1xf32>
    %587 = arith.mulf %585, %586 : vector<1x1xf32>
    %588 = arith.subf %87, %529 : vector<1x128xf32>
    %589 = arith.mulf %80, %588 : vector<1x128xf32>
    %cst_144 = arith.constant 0.000000e+00 : f32
    %590 = vector.broadcast %cst_144 : f32 to vector<1x128xf32>
    %591 = arith.select %3, %589, %590 : vector<1x128xi1>, vector<1x128xf32>
    %cst_145 = arith.constant dense<0.000000e+00> : vector<1xf32>
    %592 = vector.multi_reduction <add>, %591, %cst_145 [1] : vector<1x128xf32> to vector<1xf32>
    %593 = vector.shape_cast %592 : vector<1xf32> to vector<1x1xf32>
    %cst_146 = arith.constant 0.333333343 : f32
    %594 = vector.broadcast %cst_146 : f32 to vector<1x1xf32>
    %595 = arith.mulf %593, %594 : vector<1x1xf32>
    %cst_147 = arith.constant -1.250000e-01 : f32
    %596 = vector.broadcast %cst_147 : f32 to vector<8x128xf32>
    %597 = arith.mulf %65, %596 : vector<8x128xf32>
    %cst_148 = arith.constant 0.000000e+00 : f32
    %598 = vector.broadcast %cst_148 : f32 to vector<1x128xf32>
    %599 = arith.mulf %597, %578 : vector<8x128xf32>
    %cst_149 = arith.constant dense<0.000000e+00> : vector<8xf32>
    %600 = vector.multi_reduction <add>, %599, %cst_149 [1] : vector<8x128xf32> to vector<8xf32>
    %601 = vector.shape_cast %600 : vector<8xf32> to vector<8x1xf32>
    %602 = vector.broadcast %601 : vector<8x1xf32> to vector<8x128xf32>
    %603 = arith.subf %597, %602 : vector<8x128xf32>
    %604 = vector.broadcast %576 : vector<8x1xf32> to vector<8x128xf32>
    %605 = arith.mulf %603, %604 : vector<8x128xf32>
    %606 = arith.mulf %605, %568 : vector<8x128xf32>
    %cst_150 = arith.constant dense<0.000000e+00> : vector<128xf32>
    %607 = vector.multi_reduction <add>, %606, %cst_150 [0] : vector<8x128xf32> to vector<128xf32>
    %608 = vector.shape_cast %607 : vector<128xf32> to vector<1x128xf32>
    %609 = arith.addf %598, %608 : vector<1x128xf32>
    %610 = vector.broadcast %522 : vector<1x128xf32> to vector<8x128xf32>
    %611 = arith.mulf %605, %610 : vector<8x128xf32>
    %612 = arith.mulf %611, %568 : vector<8x128xf32>
    %cst_151 = arith.constant dense<0.000000e+00> : vector<128xf32>
    %613 = vector.multi_reduction <add>, %612, %cst_151 [0] : vector<8x128xf32> to vector<128xf32>
    %614 = vector.shape_cast %613 : vector<128xf32> to vector<1x128xf32>
    %615 = vector.broadcast %614 : vector<1x128xf32> to vector<8x128xf32>
    %616 = arith.subf %611, %615 : vector<8x128xf32>
    %617 = vector.broadcast %566 : vector<1x128xf32> to vector<8x128xf32>
    %618 = arith.mulf %616, %617 : vector<8x128xf32>
    %619 = arith.mulf %618, %561 : vector<8x128xf32>
    %cst_152 = arith.constant dense<0.000000e+00> : vector<8xf32>
    %620 = vector.multi_reduction <add>, %619, %cst_152 [1] : vector<8x128xf32> to vector<8xf32>
    %621 = vector.shape_cast %620 : vector<8xf32> to vector<8x1xf32>
    %622 = vector.broadcast %621 : vector<8x1xf32> to vector<8x128xf32>
    %623 = arith.subf %618, %622 : vector<8x128xf32>
    %624 = vector.broadcast %559 : vector<8x1xf32> to vector<8x128xf32>
    %625 = arith.mulf %623, %624 : vector<8x128xf32>
    %626 = arith.mulf %625, %552 : vector<8x128xf32>
    %cst_153 = arith.constant dense<0.000000e+00> : vector<128xf32>
    %627 = vector.multi_reduction <add>, %626, %cst_153 [0] : vector<8x128xf32> to vector<128xf32>
    %628 = vector.shape_cast %627 : vector<128xf32> to vector<1x128xf32>
    %629 = arith.addf %609, %628 : vector<1x128xf32>
    %630 = vector.broadcast %522 : vector<1x128xf32> to vector<8x128xf32>
    %631 = arith.mulf %625, %630 : vector<8x128xf32>
    %632 = arith.mulf %631, %552 : vector<8x128xf32>
    %cst_154 = arith.constant dense<0.000000e+00> : vector<128xf32>
    %633 = vector.multi_reduction <add>, %632, %cst_154 [0] : vector<8x128xf32> to vector<128xf32>
    %634 = vector.shape_cast %633 : vector<128xf32> to vector<1x128xf32>
    %635 = vector.broadcast %634 : vector<1x128xf32> to vector<8x128xf32>
    %636 = arith.subf %631, %635 : vector<8x128xf32>
    %637 = vector.broadcast %550 : vector<1x128xf32> to vector<8x128xf32>
    %638 = arith.mulf %636, %637 : vector<8x128xf32>
    %639 = arith.mulf %638, %545 : vector<8x128xf32>
    %cst_155 = arith.constant dense<0.000000e+00> : vector<8xf32>
    %640 = vector.multi_reduction <add>, %639, %cst_155 [1] : vector<8x128xf32> to vector<8xf32>
    %641 = vector.shape_cast %640 : vector<8xf32> to vector<8x1xf32>
    %642 = vector.broadcast %641 : vector<8x1xf32> to vector<8x128xf32>
    %643 = arith.subf %638, %642 : vector<8x128xf32>
    %644 = vector.broadcast %543 : vector<8x1xf32> to vector<8x128xf32>
    %645 = arith.mulf %643, %644 : vector<8x128xf32>
    %646 = arith.mulf %645, %536 : vector<8x128xf32>
    %cst_156 = arith.constant dense<0.000000e+00> : vector<128xf32>
    %647 = vector.multi_reduction <add>, %646, %cst_156 [0] : vector<8x128xf32> to vector<128xf32>
    %648 = vector.shape_cast %647 : vector<128xf32> to vector<1x128xf32>
    %649 = arith.addf %629, %648 : vector<1x128xf32>
    %650 = arith.mulf %522, %649 : vector<1x128xf32>
    %cst_157 = arith.constant dense<0.000000e+00> : vector<1xf32>
    %651 = vector.multi_reduction <add>, %650, %cst_157 [1] : vector<1x128xf32> to vector<1xf32>
    %652 = vector.shape_cast %651 : vector<1xf32> to vector<1x1xf32>
    %653 = vector.broadcast %652 : vector<1x1xf32> to vector<1x128xf32>
    %654 = arith.subf %649, %653 : vector<1x128xf32>
    %655 = arith.mulf %522, %654 : vector<1x128xf32>
    %656 = arith.subf %522, %80 : vector<1x128xf32>
    %cst_158 = arith.constant 5.000000e-02 : f32
    %657 = vector.broadcast %cst_158 : f32 to vector<1x128xf32>
    %658 = arith.mulf %657, %656 : vector<1x128xf32>
    %cst_159 = arith.constant 0.333333343 : f32
    %659 = vector.broadcast %cst_159 : f32 to vector<1x128xf32>
    %660 = arith.mulf %658, %659 : vector<1x128xf32>
    %661 = arith.addf %655, %660 : vector<1x128xf32>
    %cst_160 = arith.constant 0.000000e+00 : f32
    %662 = vector.broadcast %cst_160 : f32 to vector<1x128xf32>
    %663 = arith.select %3, %661, %662 : vector<1x128xi1>, vector<1x128xf32>
    %664 = arith.mulf %663, %663 : vector<1x128xf32>
    %cst_161 = arith.constant dense<0.000000e+00> : vector<1xf32>
    %665 = vector.multi_reduction <add>, %664, %cst_161 [1] : vector<1x128xf32> to vector<1xf32>
    %666 = vector.shape_cast %665 : vector<1xf32> to vector<1x1xf32>
    %667 = math.sqrt %666 : vector<1x1xf32>
    %cst_162 = arith.constant 9.99999997E-7 : f32
    %668 = vector.broadcast %cst_162 : f32 to vector<1x1xf32>
    %669 = arith.addf %667, %668 : vector<1x1xf32>
    %cst_163 = arith.constant 1.000000e+00 : f32
    %670 = vector.broadcast %cst_163 : f32 to vector<1x1xf32>
    %671 = arith.divf %670, %669 : vector<1x1xf32>
    %cst_164 = arith.constant 1.000000e+00 : f32
    %672 = vector.broadcast %cst_164 : f32 to vector<1x1xf32>
    %673 = arith.minimumf %672, %671 : vector<1x1xf32>
    %674 = vector.broadcast %673 : vector<1x1xf32> to vector<1x128xf32>
    %675 = arith.mulf %663, %674 : vector<1x128xf32>
    %cst_165 = arith.constant 0.899999976 : f32
    %676 = vector.broadcast %cst_165 : f32 to vector<1x128xf32>
    %677 = arith.mulf %676, %504 : vector<1x128xf32>
    %678 = arith.addf %677, %675 : vector<1x128xf32>
    %cst_166 = arith.constant 0.00999999977 : f32
    %679 = vector.broadcast %cst_166 : f32 to vector<1x128xf32>
    %680 = arith.mulf %679, %678 : vector<1x128xf32>
    %681 = arith.subf %499, %680 : vector<1x128xf32>
    %682 = arith.subf %522, %509 : vector<1x128xf32>
    %683 = arith.mulf %682, %682 : vector<1x128xf32>
    %cst_167 = arith.constant dense<0.000000e+00> : vector<1xf32>
    %684 = vector.multi_reduction <add>, %683, %cst_167 [1] : vector<1x128xf32> to vector<1xf32>
    %685 = vector.shape_cast %684 : vector<1xf32> to vector<1x1xf32>
    %686 = math.sqrt %685 : vector<1x1xf32>
    %cst_168 = arith.constant 9.99999974E-5 : f32
    %687 = vector.broadcast %cst_168 : f32 to vector<1x1xf32>
    %688 = arith.cmpf olt, %686, %687 : vector<1x1xf32>
    %689 = arith.extui %688 : vector<1x1xi1> to vector<1x1xi32>
    %690 = arith.sitofp %689 : vector<1x1xi32> to vector<1x1xf32>
    %cst_169 = arith.constant 1.000000e+00 : f32
    %691 = vector.broadcast %cst_169 : f32 to vector<1x1xf32>
    %692 = arith.subf %691, %510 : vector<1x1xf32>
    %693 = vector.broadcast %510 : vector<1x1xf32> to vector<8x128xf32>
    %694 = arith.mulf %693, %488 : vector<8x128xf32>
    %695 = vector.broadcast %692 : vector<1x1xf32> to vector<8x128xf32>
    %696 = arith.mulf %695, %578 : vector<8x128xf32>
    %697 = arith.addf %694, %696 : vector<8x128xf32>
    %698 = arith.mulf %510, %491 : vector<1x1xf32>
    %699 = arith.mulf %692, %587 : vector<1x1xf32>
    %700 = arith.addf %698, %699 : vector<1x1xf32>
    %701 = arith.mulf %510, %494 : vector<1x1xf32>
    %702 = arith.mulf %692, %595 : vector<1x1xf32>
    %703 = arith.addf %701, %702 : vector<1x1xf32>
    %704 = vector.broadcast %510 : vector<1x1xf32> to vector<1x128xf32>
    %705 = arith.mulf %704, %499 : vector<1x128xf32>
    %706 = vector.broadcast %692 : vector<1x1xf32> to vector<1x128xf32>
    %707 = arith.mulf %706, %681 : vector<1x128xf32>
    %708 = arith.addf %705, %707 : vector<1x128xf32>
    %709 = vector.broadcast %510 : vector<1x1xf32> to vector<1x128xf32>
    %710 = arith.mulf %709, %504 : vector<1x128xf32>
    %711 = vector.broadcast %692 : vector<1x1xf32> to vector<1x128xf32>
    %712 = arith.mulf %711, %678 : vector<1x128xf32>
    %713 = arith.addf %710, %712 : vector<1x128xf32>
    %714 = vector.broadcast %510 : vector<1x1xf32> to vector<1x128xf32>
    %715 = arith.mulf %714, %509 : vector<1x128xf32>
    %716 = vector.broadcast %692 : vector<1x1xf32> to vector<1x128xf32>
    %717 = arith.mulf %716, %522 : vector<1x128xf32>
    %718 = arith.addf %715, %717 : vector<1x128xf32>
    %719 = arith.maximumf %510, %690 : vector<1x1xf32>
    %cst_170 = arith.constant -1.000000e+30 : f32
    %720 = vector.broadcast %cst_170 : f32 to vector<1x128xf32>
    %721 = arith.select %3, %708, %720 : vector<1x128xi1>, vector<1x128xf32>
    %cst_171 = arith.constant dense<0xFF800000> : vector<1xf32>
    %722 = vector.multi_reduction <maximumf>, %721, %cst_171 [1] : vector<1x128xf32> to vector<1xf32>
    %723 = vector.shape_cast %722 : vector<1xf32> to vector<1x1xf32>
    %724 = vector.broadcast %723 : vector<1x1xf32> to vector<1x128xf32>
    %725 = arith.subf %721, %724 : vector<1x128xf32>
    %726 = math.exp %725 : vector<1x128xf32>
    %cst_172 = arith.constant dense<0.000000e+00> : vector<1xf32>
    %727 = vector.multi_reduction <add>, %726, %cst_172 [1] : vector<1x128xf32> to vector<1xf32>
    %728 = vector.shape_cast %727 : vector<1xf32> to vector<1x1xf32>
    %729 = tpu.reciprocal %728 {approx = true} : vector<1x1xf32> -> vector<1x1xf32>
    %730 = vector.broadcast %729 : vector<1x1xf32> to vector<1x128xf32>
    %731 = arith.mulf %726, %730 : vector<1x128xf32>
    %732 = vector.broadcast %723 : vector<1x1xf32> to vector<1x128xf32>
    %733 = arith.subf %721, %732 : vector<1x128xf32>
    %734 = math.log %728 : vector<1x1xf32>
    %735 = vector.broadcast %734 : vector<1x1xf32> to vector<1x128xf32>
    %736 = arith.subf %733, %735 : vector<1x128xf32>
    %cst_173 = arith.constant 0.000000e+00 : f32
    %737 = vector.broadcast %cst_173 : f32 to vector<1x128xf32>
    %738 = arith.select %3, %736, %737 : vector<1x128xi1>, vector<1x128xf32>
    %cst_174 = arith.constant dense<0.000000e+00> : vector<128xf32>
    %739 = vector.multi_reduction <add>, %45, %cst_174 [0] : vector<8x128xf32> to vector<128xf32>
    %740 = vector.shape_cast %739 : vector<128xf32> to vector<1x128xf32>
    %cst_175 = arith.constant 1.000000e+00 : f32
    %741 = vector.broadcast %cst_175 : f32 to vector<1x128xf32>
    %742 = arith.select %3, %740, %741 : vector<1x128xi1>, vector<1x128xf32>
    %743 = tpu.reciprocal %742 {approx = true} : vector<1x128xf32> -> vector<1x128xf32>
    %744 = vector.broadcast %743 : vector<1x128xf32> to vector<8x128xf32>
    %745 = arith.mulf %45, %744 : vector<8x128xf32>
    %746 = vector.broadcast %731 : vector<1x128xf32> to vector<8x128xf32>
    %747 = arith.mulf %745, %746 : vector<8x128xf32>
    %cst_176 = arith.constant dense<0.000000e+00> : vector<8xf32>
    %748 = vector.multi_reduction <add>, %747, %cst_176 [1] : vector<8x128xf32> to vector<8xf32>
    %749 = vector.shape_cast %748 : vector<8xf32> to vector<8x1xf32>
    %cst_177 = arith.constant 1.000000e+00 : f32
    %750 = vector.broadcast %cst_177 : f32 to vector<8x1xf32>
    %751 = arith.select %5, %749, %750 : vector<8x1xi1>, vector<8x1xf32>
    %752 = tpu.reciprocal %751 {approx = true} : vector<8x1xf32> -> vector<8x1xf32>
    %753 = vector.broadcast %752 : vector<8x1xf32> to vector<8x128xf32>
    %754 = arith.mulf %747, %753 : vector<8x128xf32>
    %cst_178 = arith.constant dense<0.000000e+00> : vector<128xf32>
    %755 = vector.multi_reduction <add>, %754, %cst_178 [0] : vector<8x128xf32> to vector<128xf32>
    %756 = vector.shape_cast %755 : vector<128xf32> to vector<1x128xf32>
    %cst_179 = arith.constant 1.000000e+00 : f32
    %757 = vector.broadcast %cst_179 : f32 to vector<1x128xf32>
    %758 = arith.select %3, %756, %757 : vector<1x128xi1>, vector<1x128xf32>
    %759 = tpu.reciprocal %758 {approx = true} : vector<1x128xf32> -> vector<1x128xf32>
    %760 = vector.broadcast %759 : vector<1x128xf32> to vector<8x128xf32>
    %761 = arith.mulf %754, %760 : vector<8x128xf32>
    %762 = vector.broadcast %731 : vector<1x128xf32> to vector<8x128xf32>
    %763 = arith.mulf %761, %762 : vector<8x128xf32>
    %cst_180 = arith.constant dense<0.000000e+00> : vector<8xf32>
    %764 = vector.multi_reduction <add>, %763, %cst_180 [1] : vector<8x128xf32> to vector<8xf32>
    %765 = vector.shape_cast %764 : vector<8xf32> to vector<8x1xf32>
    %cst_181 = arith.constant 1.000000e+00 : f32
    %766 = vector.broadcast %cst_181 : f32 to vector<8x1xf32>
    %767 = arith.select %5, %765, %766 : vector<8x1xi1>, vector<8x1xf32>
    %768 = tpu.reciprocal %767 {approx = true} : vector<8x1xf32> -> vector<8x1xf32>
    %769 = vector.broadcast %768 : vector<8x1xf32> to vector<8x128xf32>
    %770 = arith.mulf %763, %769 : vector<8x128xf32>
    %cst_182 = arith.constant dense<0.000000e+00> : vector<128xf32>
    %771 = vector.multi_reduction <add>, %770, %cst_182 [0] : vector<8x128xf32> to vector<128xf32>
    %772 = vector.shape_cast %771 : vector<128xf32> to vector<1x128xf32>
    %cst_183 = arith.constant 1.000000e+00 : f32
    %773 = vector.broadcast %cst_183 : f32 to vector<1x128xf32>
    %774 = arith.select %3, %772, %773 : vector<1x128xi1>, vector<1x128xf32>
    %775 = tpu.reciprocal %774 {approx = true} : vector<1x128xf32> -> vector<1x128xf32>
    %776 = vector.broadcast %775 : vector<1x128xf32> to vector<8x128xf32>
    %777 = arith.mulf %770, %776 : vector<8x128xf32>
    %778 = vector.broadcast %731 : vector<1x128xf32> to vector<8x128xf32>
    %779 = arith.mulf %777, %778 : vector<8x128xf32>
    %cst_184 = arith.constant dense<0.000000e+00> : vector<8xf32>
    %780 = vector.multi_reduction <add>, %779, %cst_184 [1] : vector<8x128xf32> to vector<8xf32>
    %781 = vector.shape_cast %780 : vector<8xf32> to vector<8x1xf32>
    %cst_185 = arith.constant 1.000000e+00 : f32
    %782 = vector.broadcast %cst_185 : f32 to vector<8x1xf32>
    %783 = arith.select %5, %781, %782 : vector<8x1xi1>, vector<8x1xf32>
    %cst_186 = arith.constant 1.000000e+00 : f32
    %784 = vector.broadcast %cst_186 : f32 to vector<8x1xf32>
    %785 = arith.divf %784, %783 : vector<8x1xf32>
    %786 = vector.broadcast %785 : vector<8x1xf32> to vector<8x128xf32>
    %787 = arith.mulf %779, %786 : vector<8x128xf32>
    %788 = arith.mulf %787, %65 : vector<8x128xf32>
    %cst_187 = arith.constant dense<0.000000e+00> : vector<8xf32>
    %789 = vector.multi_reduction <add>, %788, %cst_187 [1] : vector<8x128xf32> to vector<8xf32>
    %790 = vector.shape_cast %789 : vector<8xf32> to vector<8x1xf32>
    %cst_188 = arith.constant dense<0.000000e+00> : vector<1xf32>
    %791 = vector.multi_reduction <add>, %790, %cst_188 [0] : vector<8x1xf32> to vector<1xf32>
    %792 = vector.shape_cast %791 : vector<1xf32> to vector<1x1xf32>
    %cst_189 = arith.constant 0.000000e+00 : f32
    %793 = vector.broadcast %cst_189 : f32 to vector<1x1xf32>
    %794 = arith.subf %793, %792 : vector<1x1xf32>
    %cst_190 = arith.constant 1.250000e-01 : f32
    %795 = vector.broadcast %cst_190 : f32 to vector<1x1xf32>
    %796 = arith.mulf %794, %795 : vector<1x1xf32>
    %797 = arith.subf %87, %738 : vector<1x128xf32>
    %798 = arith.mulf %80, %797 : vector<1x128xf32>
    %cst_191 = arith.constant 0.000000e+00 : f32
    %799 = vector.broadcast %cst_191 : f32 to vector<1x128xf32>
    %800 = arith.select %3, %798, %799 : vector<1x128xi1>, vector<1x128xf32>
    %cst_192 = arith.constant dense<0.000000e+00> : vector<1xf32>
    %801 = vector.multi_reduction <add>, %800, %cst_192 [1] : vector<1x128xf32> to vector<1xf32>
    %802 = vector.shape_cast %801 : vector<1xf32> to vector<1x1xf32>
    %cst_193 = arith.constant 0.333333343 : f32
    %803 = vector.broadcast %cst_193 : f32 to vector<1x1xf32>
    %804 = arith.mulf %802, %803 : vector<1x1xf32>
    %cst_194 = arith.constant -1.250000e-01 : f32
    %805 = vector.broadcast %cst_194 : f32 to vector<8x128xf32>
    %806 = arith.mulf %65, %805 : vector<8x128xf32>
    %cst_195 = arith.constant 0.000000e+00 : f32
    %807 = vector.broadcast %cst_195 : f32 to vector<1x128xf32>
    %808 = arith.mulf %806, %787 : vector<8x128xf32>
    %cst_196 = arith.constant dense<0.000000e+00> : vector<8xf32>
    %809 = vector.multi_reduction <add>, %808, %cst_196 [1] : vector<8x128xf32> to vector<8xf32>
    %810 = vector.shape_cast %809 : vector<8xf32> to vector<8x1xf32>
    %811 = vector.broadcast %810 : vector<8x1xf32> to vector<8x128xf32>
    %812 = arith.subf %806, %811 : vector<8x128xf32>
    %813 = vector.broadcast %785 : vector<8x1xf32> to vector<8x128xf32>
    %814 = arith.mulf %812, %813 : vector<8x128xf32>
    %815 = arith.mulf %814, %777 : vector<8x128xf32>
    %cst_197 = arith.constant dense<0.000000e+00> : vector<128xf32>
    %816 = vector.multi_reduction <add>, %815, %cst_197 [0] : vector<8x128xf32> to vector<128xf32>
    %817 = vector.shape_cast %816 : vector<128xf32> to vector<1x128xf32>
    %818 = arith.addf %807, %817 : vector<1x128xf32>
    %819 = vector.broadcast %731 : vector<1x128xf32> to vector<8x128xf32>
    %820 = arith.mulf %814, %819 : vector<8x128xf32>
    %821 = arith.mulf %820, %777 : vector<8x128xf32>
    %cst_198 = arith.constant dense<0.000000e+00> : vector<128xf32>
    %822 = vector.multi_reduction <add>, %821, %cst_198 [0] : vector<8x128xf32> to vector<128xf32>
    %823 = vector.shape_cast %822 : vector<128xf32> to vector<1x128xf32>
    %824 = vector.broadcast %823 : vector<1x128xf32> to vector<8x128xf32>
    %825 = arith.subf %820, %824 : vector<8x128xf32>
    %826 = vector.broadcast %775 : vector<1x128xf32> to vector<8x128xf32>
    %827 = arith.mulf %825, %826 : vector<8x128xf32>
    %828 = arith.mulf %827, %770 : vector<8x128xf32>
    %cst_199 = arith.constant dense<0.000000e+00> : vector<8xf32>
    %829 = vector.multi_reduction <add>, %828, %cst_199 [1] : vector<8x128xf32> to vector<8xf32>
    %830 = vector.shape_cast %829 : vector<8xf32> to vector<8x1xf32>
    %831 = vector.broadcast %830 : vector<8x1xf32> to vector<8x128xf32>
    %832 = arith.subf %827, %831 : vector<8x128xf32>
    %833 = vector.broadcast %768 : vector<8x1xf32> to vector<8x128xf32>
    %834 = arith.mulf %832, %833 : vector<8x128xf32>
    %835 = arith.mulf %834, %761 : vector<8x128xf32>
    %cst_200 = arith.constant dense<0.000000e+00> : vector<128xf32>
    %836 = vector.multi_reduction <add>, %835, %cst_200 [0] : vector<8x128xf32> to vector<128xf32>
    %837 = vector.shape_cast %836 : vector<128xf32> to vector<1x128xf32>
    %838 = arith.addf %818, %837 : vector<1x128xf32>
    %839 = vector.broadcast %731 : vector<1x128xf32> to vector<8x128xf32>
    %840 = arith.mulf %834, %839 : vector<8x128xf32>
    %841 = arith.mulf %840, %761 : vector<8x128xf32>
    %cst_201 = arith.constant dense<0.000000e+00> : vector<128xf32>
    %842 = vector.multi_reduction <add>, %841, %cst_201 [0] : vector<8x128xf32> to vector<128xf32>
    %843 = vector.shape_cast %842 : vector<128xf32> to vector<1x128xf32>
    %844 = vector.broadcast %843 : vector<1x128xf32> to vector<8x128xf32>
    %845 = arith.subf %840, %844 : vector<8x128xf32>
    %846 = vector.broadcast %759 : vector<1x128xf32> to vector<8x128xf32>
    %847 = arith.mulf %845, %846 : vector<8x128xf32>
    %848 = arith.mulf %847, %754 : vector<8x128xf32>
    %cst_202 = arith.constant dense<0.000000e+00> : vector<8xf32>
    %849 = vector.multi_reduction <add>, %848, %cst_202 [1] : vector<8x128xf32> to vector<8xf32>
    %850 = vector.shape_cast %849 : vector<8xf32> to vector<8x1xf32>
    %851 = vector.broadcast %850 : vector<8x1xf32> to vector<8x128xf32>
    %852 = arith.subf %847, %851 : vector<8x128xf32>
    %853 = vector.broadcast %752 : vector<8x1xf32> to vector<8x128xf32>
    %854 = arith.mulf %852, %853 : vector<8x128xf32>
    %855 = arith.mulf %854, %745 : vector<8x128xf32>
    %cst_203 = arith.constant dense<0.000000e+00> : vector<128xf32>
    %856 = vector.multi_reduction <add>, %855, %cst_203 [0] : vector<8x128xf32> to vector<128xf32>
    %857 = vector.shape_cast %856 : vector<128xf32> to vector<1x128xf32>
    %858 = arith.addf %838, %857 : vector<1x128xf32>
    %859 = arith.mulf %731, %858 : vector<1x128xf32>
    %cst_204 = arith.constant dense<0.000000e+00> : vector<1xf32>
    %860 = vector.multi_reduction <add>, %859, %cst_204 [1] : vector<1x128xf32> to vector<1xf32>
    %861 = vector.shape_cast %860 : vector<1xf32> to vector<1x1xf32>
    %862 = vector.broadcast %861 : vector<1x1xf32> to vector<1x128xf32>
    %863 = arith.subf %858, %862 : vector<1x128xf32>
    %864 = arith.mulf %731, %863 : vector<1x128xf32>
    %865 = arith.subf %731, %80 : vector<1x128xf32>
    %cst_205 = arith.constant 5.000000e-02 : f32
    %866 = vector.broadcast %cst_205 : f32 to vector<1x128xf32>
    %867 = arith.mulf %866, %865 : vector<1x128xf32>
    %cst_206 = arith.constant 0.333333343 : f32
    %868 = vector.broadcast %cst_206 : f32 to vector<1x128xf32>
    %869 = arith.mulf %867, %868 : vector<1x128xf32>
    %870 = arith.addf %864, %869 : vector<1x128xf32>
    %cst_207 = arith.constant 0.000000e+00 : f32
    %871 = vector.broadcast %cst_207 : f32 to vector<1x128xf32>
    %872 = arith.select %3, %870, %871 : vector<1x128xi1>, vector<1x128xf32>
    %873 = arith.mulf %872, %872 : vector<1x128xf32>
    %cst_208 = arith.constant dense<0.000000e+00> : vector<1xf32>
    %874 = vector.multi_reduction <add>, %873, %cst_208 [1] : vector<1x128xf32> to vector<1xf32>
    %875 = vector.shape_cast %874 : vector<1xf32> to vector<1x1xf32>
    %876 = math.sqrt %875 : vector<1x1xf32>
    %cst_209 = arith.constant 9.99999997E-7 : f32
    %877 = vector.broadcast %cst_209 : f32 to vector<1x1xf32>
    %878 = arith.addf %876, %877 : vector<1x1xf32>
    %cst_210 = arith.constant 1.000000e+00 : f32
    %879 = vector.broadcast %cst_210 : f32 to vector<1x1xf32>
    %880 = arith.divf %879, %878 : vector<1x1xf32>
    %cst_211 = arith.constant 1.000000e+00 : f32
    %881 = vector.broadcast %cst_211 : f32 to vector<1x1xf32>
    %882 = arith.minimumf %881, %880 : vector<1x1xf32>
    %883 = vector.broadcast %882 : vector<1x1xf32> to vector<1x128xf32>
    %884 = arith.mulf %872, %883 : vector<1x128xf32>
    %cst_212 = arith.constant 0.899999976 : f32
    %885 = vector.broadcast %cst_212 : f32 to vector<1x128xf32>
    %886 = arith.mulf %885, %713 : vector<1x128xf32>
    %887 = arith.addf %886, %884 : vector<1x128xf32>
    %cst_213 = arith.constant 0.00999999977 : f32
    %888 = vector.broadcast %cst_213 : f32 to vector<1x128xf32>
    %889 = arith.mulf %888, %887 : vector<1x128xf32>
    %890 = arith.subf %708, %889 : vector<1x128xf32>
    %891 = arith.subf %731, %718 : vector<1x128xf32>
    %892 = arith.mulf %891, %891 : vector<1x128xf32>
    %cst_214 = arith.constant dense<0.000000e+00> : vector<1xf32>
    %893 = vector.multi_reduction <add>, %892, %cst_214 [1] : vector<1x128xf32> to vector<1xf32>
    %894 = vector.shape_cast %893 : vector<1xf32> to vector<1x1xf32>
    %895 = math.sqrt %894 : vector<1x1xf32>
    %cst_215 = arith.constant 9.99999974E-5 : f32
    %896 = vector.broadcast %cst_215 : f32 to vector<1x1xf32>
    %897 = arith.cmpf olt, %895, %896 : vector<1x1xf32>
    %898 = arith.extui %897 : vector<1x1xi1> to vector<1x1xi32>
    %899 = arith.sitofp %898 : vector<1x1xi32> to vector<1x1xf32>
    %cst_216 = arith.constant 1.000000e+00 : f32
    %900 = vector.broadcast %cst_216 : f32 to vector<1x1xf32>
    %901 = arith.subf %900, %719 : vector<1x1xf32>
    %902 = vector.broadcast %719 : vector<1x1xf32> to vector<8x128xf32>
    %903 = arith.mulf %902, %697 : vector<8x128xf32>
    %904 = vector.broadcast %901 : vector<1x1xf32> to vector<8x128xf32>
    %905 = arith.mulf %904, %787 : vector<8x128xf32>
    %906 = arith.addf %903, %905 : vector<8x128xf32>
    %907 = arith.mulf %719, %700 : vector<1x1xf32>
    %908 = arith.mulf %901, %796 : vector<1x1xf32>
    %909 = arith.addf %907, %908 : vector<1x1xf32>
    %910 = arith.mulf %719, %703 : vector<1x1xf32>
    %911 = arith.mulf %901, %804 : vector<1x1xf32>
    %912 = arith.addf %910, %911 : vector<1x1xf32>
    %913 = vector.broadcast %719 : vector<1x1xf32> to vector<1x128xf32>
    %914 = arith.mulf %913, %708 : vector<1x128xf32>
    %915 = vector.broadcast %901 : vector<1x1xf32> to vector<1x128xf32>
    %916 = arith.mulf %915, %890 : vector<1x128xf32>
    %917 = arith.addf %914, %916 : vector<1x128xf32>
    %918 = vector.broadcast %719 : vector<1x1xf32> to vector<1x128xf32>
    %919 = arith.mulf %918, %713 : vector<1x128xf32>
    %920 = vector.broadcast %901 : vector<1x1xf32> to vector<1x128xf32>
    %921 = arith.mulf %920, %887 : vector<1x128xf32>
    %922 = arith.addf %919, %921 : vector<1x128xf32>
    %923 = vector.broadcast %719 : vector<1x1xf32> to vector<1x128xf32>
    %924 = arith.mulf %923, %718 : vector<1x128xf32>
    %925 = vector.broadcast %901 : vector<1x1xf32> to vector<1x128xf32>
    %926 = arith.mulf %925, %731 : vector<1x128xf32>
    %927 = arith.addf %924, %926 : vector<1x128xf32>
    %928 = arith.maximumf %719, %899 : vector<1x1xf32>
    %cst_217 = arith.constant -1.000000e+30 : f32
    %929 = vector.broadcast %cst_217 : f32 to vector<1x128xf32>
    %930 = arith.select %3, %917, %929 : vector<1x128xi1>, vector<1x128xf32>
    %cst_218 = arith.constant dense<0xFF800000> : vector<1xf32>
    %931 = vector.multi_reduction <maximumf>, %930, %cst_218 [1] : vector<1x128xf32> to vector<1xf32>
    %932 = vector.shape_cast %931 : vector<1xf32> to vector<1x1xf32>
    %933 = vector.broadcast %932 : vector<1x1xf32> to vector<1x128xf32>
    %934 = arith.subf %930, %933 : vector<1x128xf32>
    %935 = math.exp %934 : vector<1x128xf32>
    %cst_219 = arith.constant dense<0.000000e+00> : vector<1xf32>
    %936 = vector.multi_reduction <add>, %935, %cst_219 [1] : vector<1x128xf32> to vector<1xf32>
    %937 = vector.shape_cast %936 : vector<1xf32> to vector<1x1xf32>
    %938 = tpu.reciprocal %937 {approx = true} : vector<1x1xf32> -> vector<1x1xf32>
    %939 = vector.broadcast %938 : vector<1x1xf32> to vector<1x128xf32>
    %940 = arith.mulf %935, %939 : vector<1x128xf32>
    %941 = vector.broadcast %932 : vector<1x1xf32> to vector<1x128xf32>
    %942 = arith.subf %930, %941 : vector<1x128xf32>
    %943 = math.log %937 : vector<1x1xf32>
    %944 = vector.broadcast %943 : vector<1x1xf32> to vector<1x128xf32>
    %945 = arith.subf %942, %944 : vector<1x128xf32>
    %cst_220 = arith.constant 0.000000e+00 : f32
    %946 = vector.broadcast %cst_220 : f32 to vector<1x128xf32>
    %947 = arith.select %3, %945, %946 : vector<1x128xi1>, vector<1x128xf32>
    %cst_221 = arith.constant dense<0.000000e+00> : vector<128xf32>
    %948 = vector.multi_reduction <add>, %45, %cst_221 [0] : vector<8x128xf32> to vector<128xf32>
    %949 = vector.shape_cast %948 : vector<128xf32> to vector<1x128xf32>
    %cst_222 = arith.constant 1.000000e+00 : f32
    %950 = vector.broadcast %cst_222 : f32 to vector<1x128xf32>
    %951 = arith.select %3, %949, %950 : vector<1x128xi1>, vector<1x128xf32>
    %952 = tpu.reciprocal %951 {approx = true} : vector<1x128xf32> -> vector<1x128xf32>
    %953 = vector.broadcast %952 : vector<1x128xf32> to vector<8x128xf32>
    %954 = arith.mulf %45, %953 : vector<8x128xf32>
    %955 = vector.broadcast %940 : vector<1x128xf32> to vector<8x128xf32>
    %956 = arith.mulf %954, %955 : vector<8x128xf32>
    %cst_223 = arith.constant dense<0.000000e+00> : vector<8xf32>
    %957 = vector.multi_reduction <add>, %956, %cst_223 [1] : vector<8x128xf32> to vector<8xf32>
    %958 = vector.shape_cast %957 : vector<8xf32> to vector<8x1xf32>
    %cst_224 = arith.constant 1.000000e+00 : f32
    %959 = vector.broadcast %cst_224 : f32 to vector<8x1xf32>
    %960 = arith.select %5, %958, %959 : vector<8x1xi1>, vector<8x1xf32>
    %961 = tpu.reciprocal %960 {approx = true} : vector<8x1xf32> -> vector<8x1xf32>
    %962 = vector.broadcast %961 : vector<8x1xf32> to vector<8x128xf32>
    %963 = arith.mulf %956, %962 : vector<8x128xf32>
    %cst_225 = arith.constant dense<0.000000e+00> : vector<128xf32>
    %964 = vector.multi_reduction <add>, %963, %cst_225 [0] : vector<8x128xf32> to vector<128xf32>
    %965 = vector.shape_cast %964 : vector<128xf32> to vector<1x128xf32>
    %cst_226 = arith.constant 1.000000e+00 : f32
    %966 = vector.broadcast %cst_226 : f32 to vector<1x128xf32>
    %967 = arith.select %3, %965, %966 : vector<1x128xi1>, vector<1x128xf32>
    %968 = tpu.reciprocal %967 {approx = true} : vector<1x128xf32> -> vector<1x128xf32>
    %969 = vector.broadcast %968 : vector<1x128xf32> to vector<8x128xf32>
    %970 = arith.mulf %963, %969 : vector<8x128xf32>
    %971 = vector.broadcast %940 : vector<1x128xf32> to vector<8x128xf32>
    %972 = arith.mulf %970, %971 : vector<8x128xf32>
    %cst_227 = arith.constant dense<0.000000e+00> : vector<8xf32>
    %973 = vector.multi_reduction <add>, %972, %cst_227 [1] : vector<8x128xf32> to vector<8xf32>
    %974 = vector.shape_cast %973 : vector<8xf32> to vector<8x1xf32>
    %cst_228 = arith.constant 1.000000e+00 : f32
    %975 = vector.broadcast %cst_228 : f32 to vector<8x1xf32>
    %976 = arith.select %5, %974, %975 : vector<8x1xi1>, vector<8x1xf32>
    %977 = tpu.reciprocal %976 {approx = true} : vector<8x1xf32> -> vector<8x1xf32>
    %978 = vector.broadcast %977 : vector<8x1xf32> to vector<8x128xf32>
    %979 = arith.mulf %972, %978 : vector<8x128xf32>
    %cst_229 = arith.constant dense<0.000000e+00> : vector<128xf32>
    %980 = vector.multi_reduction <add>, %979, %cst_229 [0] : vector<8x128xf32> to vector<128xf32>
    %981 = vector.shape_cast %980 : vector<128xf32> to vector<1x128xf32>
    %cst_230 = arith.constant 1.000000e+00 : f32
    %982 = vector.broadcast %cst_230 : f32 to vector<1x128xf32>
    %983 = arith.select %3, %981, %982 : vector<1x128xi1>, vector<1x128xf32>
    %984 = tpu.reciprocal %983 {approx = true} : vector<1x128xf32> -> vector<1x128xf32>
    %985 = vector.broadcast %984 : vector<1x128xf32> to vector<8x128xf32>
    %986 = arith.mulf %979, %985 : vector<8x128xf32>
    %987 = vector.broadcast %940 : vector<1x128xf32> to vector<8x128xf32>
    %988 = arith.mulf %986, %987 : vector<8x128xf32>
    %cst_231 = arith.constant dense<0.000000e+00> : vector<8xf32>
    %989 = vector.multi_reduction <add>, %988, %cst_231 [1] : vector<8x128xf32> to vector<8xf32>
    %990 = vector.shape_cast %989 : vector<8xf32> to vector<8x1xf32>
    %cst_232 = arith.constant 1.000000e+00 : f32
    %991 = vector.broadcast %cst_232 : f32 to vector<8x1xf32>
    %992 = arith.select %5, %990, %991 : vector<8x1xi1>, vector<8x1xf32>
    %cst_233 = arith.constant 1.000000e+00 : f32
    %993 = vector.broadcast %cst_233 : f32 to vector<8x1xf32>
    %994 = arith.divf %993, %992 : vector<8x1xf32>
    %995 = vector.broadcast %994 : vector<8x1xf32> to vector<8x128xf32>
    %996 = arith.mulf %988, %995 : vector<8x128xf32>
    %997 = arith.mulf %996, %65 : vector<8x128xf32>
    %cst_234 = arith.constant dense<0.000000e+00> : vector<8xf32>
    %998 = vector.multi_reduction <add>, %997, %cst_234 [1] : vector<8x128xf32> to vector<8xf32>
    %999 = vector.shape_cast %998 : vector<8xf32> to vector<8x1xf32>
    %cst_235 = arith.constant dense<0.000000e+00> : vector<1xf32>
    %1000 = vector.multi_reduction <add>, %999, %cst_235 [0] : vector<8x1xf32> to vector<1xf32>
    %1001 = vector.shape_cast %1000 : vector<1xf32> to vector<1x1xf32>
    %cst_236 = arith.constant 0.000000e+00 : f32
    %1002 = vector.broadcast %cst_236 : f32 to vector<1x1xf32>
    %1003 = arith.subf %1002, %1001 : vector<1x1xf32>
    %cst_237 = arith.constant 1.250000e-01 : f32
    %1004 = vector.broadcast %cst_237 : f32 to vector<1x1xf32>
    %1005 = arith.mulf %1003, %1004 : vector<1x1xf32>
    %1006 = arith.subf %87, %947 : vector<1x128xf32>
    %1007 = arith.mulf %80, %1006 : vector<1x128xf32>
    %cst_238 = arith.constant 0.000000e+00 : f32
    %1008 = vector.broadcast %cst_238 : f32 to vector<1x128xf32>
    %1009 = arith.select %3, %1007, %1008 : vector<1x128xi1>, vector<1x128xf32>
    %cst_239 = arith.constant dense<0.000000e+00> : vector<1xf32>
    %1010 = vector.multi_reduction <add>, %1009, %cst_239 [1] : vector<1x128xf32> to vector<1xf32>
    %1011 = vector.shape_cast %1010 : vector<1xf32> to vector<1x1xf32>
    %cst_240 = arith.constant 0.333333343 : f32
    %1012 = vector.broadcast %cst_240 : f32 to vector<1x1xf32>
    %1013 = arith.mulf %1011, %1012 : vector<1x1xf32>
    %cst_241 = arith.constant -1.250000e-01 : f32
    %1014 = vector.broadcast %cst_241 : f32 to vector<8x128xf32>
    %1015 = arith.mulf %65, %1014 : vector<8x128xf32>
    %cst_242 = arith.constant 0.000000e+00 : f32
    %1016 = vector.broadcast %cst_242 : f32 to vector<1x128xf32>
    %1017 = arith.mulf %1015, %996 : vector<8x128xf32>
    %cst_243 = arith.constant dense<0.000000e+00> : vector<8xf32>
    %1018 = vector.multi_reduction <add>, %1017, %cst_243 [1] : vector<8x128xf32> to vector<8xf32>
    %1019 = vector.shape_cast %1018 : vector<8xf32> to vector<8x1xf32>
    %1020 = vector.broadcast %1019 : vector<8x1xf32> to vector<8x128xf32>
    %1021 = arith.subf %1015, %1020 : vector<8x128xf32>
    %1022 = vector.broadcast %994 : vector<8x1xf32> to vector<8x128xf32>
    %1023 = arith.mulf %1021, %1022 : vector<8x128xf32>
    %1024 = arith.mulf %1023, %986 : vector<8x128xf32>
    %cst_244 = arith.constant dense<0.000000e+00> : vector<128xf32>
    %1025 = vector.multi_reduction <add>, %1024, %cst_244 [0] : vector<8x128xf32> to vector<128xf32>
    %1026 = vector.shape_cast %1025 : vector<128xf32> to vector<1x128xf32>
    %1027 = arith.addf %1016, %1026 : vector<1x128xf32>
    %1028 = vector.broadcast %940 : vector<1x128xf32> to vector<8x128xf32>
    %1029 = arith.mulf %1023, %1028 : vector<8x128xf32>
    %1030 = arith.mulf %1029, %986 : vector<8x128xf32>
    %cst_245 = arith.constant dense<0.000000e+00> : vector<128xf32>
    %1031 = vector.multi_reduction <add>, %1030, %cst_245 [0] : vector<8x128xf32> to vector<128xf32>
    %1032 = vector.shape_cast %1031 : vector<128xf32> to vector<1x128xf32>
    %1033 = vector.broadcast %1032 : vector<1x128xf32> to vector<8x128xf32>
    %1034 = arith.subf %1029, %1033 : vector<8x128xf32>
    %1035 = vector.broadcast %984 : vector<1x128xf32> to vector<8x128xf32>
    %1036 = arith.mulf %1034, %1035 : vector<8x128xf32>
    %1037 = arith.mulf %1036, %979 : vector<8x128xf32>
    %cst_246 = arith.constant dense<0.000000e+00> : vector<8xf32>
    %1038 = vector.multi_reduction <add>, %1037, %cst_246 [1] : vector<8x128xf32> to vector<8xf32>
    %1039 = vector.shape_cast %1038 : vector<8xf32> to vector<8x1xf32>
    %1040 = vector.broadcast %1039 : vector<8x1xf32> to vector<8x128xf32>
    %1041 = arith.subf %1036, %1040 : vector<8x128xf32>
    %1042 = vector.broadcast %977 : vector<8x1xf32> to vector<8x128xf32>
    %1043 = arith.mulf %1041, %1042 : vector<8x128xf32>
    %1044 = arith.mulf %1043, %970 : vector<8x128xf32>
    %cst_247 = arith.constant dense<0.000000e+00> : vector<128xf32>
    %1045 = vector.multi_reduction <add>, %1044, %cst_247 [0] : vector<8x128xf32> to vector<128xf32>
    %1046 = vector.shape_cast %1045 : vector<128xf32> to vector<1x128xf32>
    %1047 = arith.addf %1027, %1046 : vector<1x128xf32>
    %1048 = vector.broadcast %940 : vector<1x128xf32> to vector<8x128xf32>
    %1049 = arith.mulf %1043, %1048 : vector<8x128xf32>
    %1050 = arith.mulf %1049, %970 : vector<8x128xf32>
    %cst_248 = arith.constant dense<0.000000e+00> : vector<128xf32>
    %1051 = vector.multi_reduction <add>, %1050, %cst_248 [0] : vector<8x128xf32> to vector<128xf32>
    %1052 = vector.shape_cast %1051 : vector<128xf32> to vector<1x128xf32>
    %1053 = vector.broadcast %1052 : vector<1x128xf32> to vector<8x128xf32>
    %1054 = arith.subf %1049, %1053 : vector<8x128xf32>
    %1055 = vector.broadcast %968 : vector<1x128xf32> to vector<8x128xf32>
    %1056 = arith.mulf %1054, %1055 : vector<8x128xf32>
    %1057 = arith.mulf %1056, %963 : vector<8x128xf32>
    %cst_249 = arith.constant dense<0.000000e+00> : vector<8xf32>
    %1058 = vector.multi_reduction <add>, %1057, %cst_249 [1] : vector<8x128xf32> to vector<8xf32>
    %1059 = vector.shape_cast %1058 : vector<8xf32> to vector<8x1xf32>
    %1060 = vector.broadcast %1059 : vector<8x1xf32> to vector<8x128xf32>
    %1061 = arith.subf %1056, %1060 : vector<8x128xf32>
    %1062 = vector.broadcast %961 : vector<8x1xf32> to vector<8x128xf32>
    %1063 = arith.mulf %1061, %1062 : vector<8x128xf32>
    %1064 = arith.mulf %1063, %954 : vector<8x128xf32>
    %cst_250 = arith.constant dense<0.000000e+00> : vector<128xf32>
    %1065 = vector.multi_reduction <add>, %1064, %cst_250 [0] : vector<8x128xf32> to vector<128xf32>
    %1066 = vector.shape_cast %1065 : vector<128xf32> to vector<1x128xf32>
    %1067 = arith.addf %1047, %1066 : vector<1x128xf32>
    %1068 = arith.mulf %940, %1067 : vector<1x128xf32>
    %cst_251 = arith.constant dense<0.000000e+00> : vector<1xf32>
    %1069 = vector.multi_reduction <add>, %1068, %cst_251 [1] : vector<1x128xf32> to vector<1xf32>
    %1070 = vector.shape_cast %1069 : vector<1xf32> to vector<1x1xf32>
    %1071 = vector.broadcast %1070 : vector<1x1xf32> to vector<1x128xf32>
    %1072 = arith.subf %1067, %1071 : vector<1x128xf32>
    %1073 = arith.mulf %940, %1072 : vector<1x128xf32>
    %1074 = arith.subf %940, %80 : vector<1x128xf32>
    %cst_252 = arith.constant 5.000000e-02 : f32
    %1075 = vector.broadcast %cst_252 : f32 to vector<1x128xf32>
    %1076 = arith.mulf %1075, %1074 : vector<1x128xf32>
    %cst_253 = arith.constant 0.333333343 : f32
    %1077 = vector.broadcast %cst_253 : f32 to vector<1x128xf32>
    %1078 = arith.mulf %1076, %1077 : vector<1x128xf32>
    %1079 = arith.addf %1073, %1078 : vector<1x128xf32>
    %cst_254 = arith.constant 0.000000e+00 : f32
    %1080 = vector.broadcast %cst_254 : f32 to vector<1x128xf32>
    %1081 = arith.select %3, %1079, %1080 : vector<1x128xi1>, vector<1x128xf32>
    %1082 = arith.mulf %1081, %1081 : vector<1x128xf32>
    %cst_255 = arith.constant dense<0.000000e+00> : vector<1xf32>
    %1083 = vector.multi_reduction <add>, %1082, %cst_255 [1] : vector<1x128xf32> to vector<1xf32>
    %1084 = vector.shape_cast %1083 : vector<1xf32> to vector<1x1xf32>
    %1085 = math.sqrt %1084 : vector<1x1xf32>
    %cst_256 = arith.constant 9.99999997E-7 : f32
    %1086 = vector.broadcast %cst_256 : f32 to vector<1x1xf32>
    %1087 = arith.addf %1085, %1086 : vector<1x1xf32>
    %cst_257 = arith.constant 1.000000e+00 : f32
    %1088 = vector.broadcast %cst_257 : f32 to vector<1x1xf32>
    %1089 = arith.divf %1088, %1087 : vector<1x1xf32>
    %cst_258 = arith.constant 1.000000e+00 : f32
    %1090 = vector.broadcast %cst_258 : f32 to vector<1x1xf32>
    %1091 = arith.minimumf %1090, %1089 : vector<1x1xf32>
    %1092 = vector.broadcast %1091 : vector<1x1xf32> to vector<1x128xf32>
    %1093 = arith.mulf %1081, %1092 : vector<1x128xf32>
    %cst_259 = arith.constant 0.899999976 : f32
    %1094 = vector.broadcast %cst_259 : f32 to vector<1x128xf32>
    %1095 = arith.mulf %1094, %922 : vector<1x128xf32>
    %1096 = arith.addf %1095, %1093 : vector<1x128xf32>
    %cst_260 = arith.constant 0.00999999977 : f32
    %1097 = vector.broadcast %cst_260 : f32 to vector<1x128xf32>
    %1098 = arith.mulf %1097, %1096 : vector<1x128xf32>
    %1099 = arith.subf %917, %1098 : vector<1x128xf32>
    %1100 = arith.subf %940, %927 : vector<1x128xf32>
    %1101 = arith.mulf %1100, %1100 : vector<1x128xf32>
    %cst_261 = arith.constant dense<0.000000e+00> : vector<1xf32>
    %1102 = vector.multi_reduction <add>, %1101, %cst_261 [1] : vector<1x128xf32> to vector<1xf32>
    %1103 = vector.shape_cast %1102 : vector<1xf32> to vector<1x1xf32>
    %1104 = math.sqrt %1103 : vector<1x1xf32>
    %cst_262 = arith.constant 9.99999974E-5 : f32
    %1105 = vector.broadcast %cst_262 : f32 to vector<1x1xf32>
    %1106 = arith.cmpf olt, %1104, %1105 : vector<1x1xf32>
    %1107 = arith.extui %1106 : vector<1x1xi1> to vector<1x1xi32>
    %1108 = arith.sitofp %1107 : vector<1x1xi32> to vector<1x1xf32>
    %cst_263 = arith.constant 1.000000e+00 : f32
    %1109 = vector.broadcast %cst_263 : f32 to vector<1x1xf32>
    %1110 = arith.subf %1109, %928 : vector<1x1xf32>
    %1111 = vector.broadcast %928 : vector<1x1xf32> to vector<8x128xf32>
    %1112 = arith.mulf %1111, %906 : vector<8x128xf32>
    %1113 = vector.broadcast %1110 : vector<1x1xf32> to vector<8x128xf32>
    %1114 = arith.mulf %1113, %996 : vector<8x128xf32>
    %1115 = arith.addf %1112, %1114 : vector<8x128xf32>
    %1116 = arith.mulf %928, %909 : vector<1x1xf32>
    %1117 = arith.mulf %1110, %1005 : vector<1x1xf32>
    %1118 = arith.addf %1116, %1117 : vector<1x1xf32>
    %1119 = arith.mulf %928, %912 : vector<1x1xf32>
    %1120 = arith.mulf %1110, %1013 : vector<1x1xf32>
    %1121 = arith.addf %1119, %1120 : vector<1x1xf32>
    %1122 = vector.broadcast %928 : vector<1x1xf32> to vector<1x128xf32>
    %1123 = arith.mulf %1122, %917 : vector<1x128xf32>
    %1124 = vector.broadcast %1110 : vector<1x1xf32> to vector<1x128xf32>
    %1125 = arith.mulf %1124, %1099 : vector<1x128xf32>
    %1126 = arith.addf %1123, %1125 : vector<1x128xf32>
    %1127 = vector.broadcast %928 : vector<1x1xf32> to vector<1x128xf32>
    %1128 = arith.mulf %1127, %922 : vector<1x128xf32>
    %1129 = vector.broadcast %1110 : vector<1x1xf32> to vector<1x128xf32>
    %1130 = arith.mulf %1129, %1096 : vector<1x128xf32>
    %1131 = arith.addf %1128, %1130 : vector<1x128xf32>
    %1132 = vector.broadcast %928 : vector<1x1xf32> to vector<1x128xf32>
    %1133 = arith.mulf %1132, %927 : vector<1x128xf32>
    %1134 = vector.broadcast %1110 : vector<1x1xf32> to vector<1x128xf32>
    %1135 = arith.mulf %1134, %940 : vector<1x128xf32>
    %1136 = arith.addf %1133, %1135 : vector<1x128xf32>
    %1137 = arith.maximumf %928, %1108 : vector<1x1xf32>
    %cst_264 = arith.constant -1.000000e+30 : f32
    %1138 = vector.broadcast %cst_264 : f32 to vector<1x128xf32>
    %1139 = arith.select %3, %1126, %1138 : vector<1x128xi1>, vector<1x128xf32>
    %cst_265 = arith.constant dense<0xFF800000> : vector<1xf32>
    %1140 = vector.multi_reduction <maximumf>, %1139, %cst_265 [1] : vector<1x128xf32> to vector<1xf32>
    %1141 = vector.shape_cast %1140 : vector<1xf32> to vector<1x1xf32>
    %1142 = vector.broadcast %1141 : vector<1x1xf32> to vector<1x128xf32>
    %1143 = arith.subf %1139, %1142 : vector<1x128xf32>
    %1144 = math.exp %1143 : vector<1x128xf32>
    %cst_266 = arith.constant dense<0.000000e+00> : vector<1xf32>
    %1145 = vector.multi_reduction <add>, %1144, %cst_266 [1] : vector<1x128xf32> to vector<1xf32>
    %1146 = vector.shape_cast %1145 : vector<1xf32> to vector<1x1xf32>
    %1147 = tpu.reciprocal %1146 {approx = true} : vector<1x1xf32> -> vector<1x1xf32>
    %1148 = vector.broadcast %1147 : vector<1x1xf32> to vector<1x128xf32>
    %1149 = arith.mulf %1144, %1148 : vector<1x128xf32>
    %1150 = vector.broadcast %1141 : vector<1x1xf32> to vector<1x128xf32>
    %1151 = arith.subf %1139, %1150 : vector<1x128xf32>
    %1152 = math.log %1146 : vector<1x1xf32>
    %1153 = vector.broadcast %1152 : vector<1x1xf32> to vector<1x128xf32>
    %1154 = arith.subf %1151, %1153 : vector<1x128xf32>
    %cst_267 = arith.constant 0.000000e+00 : f32
    %1155 = vector.broadcast %cst_267 : f32 to vector<1x128xf32>
    %1156 = arith.select %3, %1154, %1155 : vector<1x128xi1>, vector<1x128xf32>
    %cst_268 = arith.constant dense<0.000000e+00> : vector<128xf32>
    %1157 = vector.multi_reduction <add>, %45, %cst_268 [0] : vector<8x128xf32> to vector<128xf32>
    %1158 = vector.shape_cast %1157 : vector<128xf32> to vector<1x128xf32>
    %cst_269 = arith.constant 1.000000e+00 : f32
    %1159 = vector.broadcast %cst_269 : f32 to vector<1x128xf32>
    %1160 = arith.select %3, %1158, %1159 : vector<1x128xi1>, vector<1x128xf32>
    %1161 = tpu.reciprocal %1160 {approx = true} : vector<1x128xf32> -> vector<1x128xf32>
    %1162 = vector.broadcast %1161 : vector<1x128xf32> to vector<8x128xf32>
    %1163 = arith.mulf %45, %1162 : vector<8x128xf32>
    %1164 = vector.broadcast %1149 : vector<1x128xf32> to vector<8x128xf32>
    %1165 = arith.mulf %1163, %1164 : vector<8x128xf32>
    %cst_270 = arith.constant dense<0.000000e+00> : vector<8xf32>
    %1166 = vector.multi_reduction <add>, %1165, %cst_270 [1] : vector<8x128xf32> to vector<8xf32>
    %1167 = vector.shape_cast %1166 : vector<8xf32> to vector<8x1xf32>
    %cst_271 = arith.constant 1.000000e+00 : f32
    %1168 = vector.broadcast %cst_271 : f32 to vector<8x1xf32>
    %1169 = arith.select %5, %1167, %1168 : vector<8x1xi1>, vector<8x1xf32>
    %1170 = tpu.reciprocal %1169 {approx = true} : vector<8x1xf32> -> vector<8x1xf32>
    %1171 = vector.broadcast %1170 : vector<8x1xf32> to vector<8x128xf32>
    %1172 = arith.mulf %1165, %1171 : vector<8x128xf32>
    %cst_272 = arith.constant dense<0.000000e+00> : vector<128xf32>
    %1173 = vector.multi_reduction <add>, %1172, %cst_272 [0] : vector<8x128xf32> to vector<128xf32>
    %1174 = vector.shape_cast %1173 : vector<128xf32> to vector<1x128xf32>
    %cst_273 = arith.constant 1.000000e+00 : f32
    %1175 = vector.broadcast %cst_273 : f32 to vector<1x128xf32>
    %1176 = arith.select %3, %1174, %1175 : vector<1x128xi1>, vector<1x128xf32>
    %1177 = tpu.reciprocal %1176 {approx = true} : vector<1x128xf32> -> vector<1x128xf32>
    %1178 = vector.broadcast %1177 : vector<1x128xf32> to vector<8x128xf32>
    %1179 = arith.mulf %1172, %1178 : vector<8x128xf32>
    %1180 = vector.broadcast %1149 : vector<1x128xf32> to vector<8x128xf32>
    %1181 = arith.mulf %1179, %1180 : vector<8x128xf32>
    %cst_274 = arith.constant dense<0.000000e+00> : vector<8xf32>
    %1182 = vector.multi_reduction <add>, %1181, %cst_274 [1] : vector<8x128xf32> to vector<8xf32>
    %1183 = vector.shape_cast %1182 : vector<8xf32> to vector<8x1xf32>
    %cst_275 = arith.constant 1.000000e+00 : f32
    %1184 = vector.broadcast %cst_275 : f32 to vector<8x1xf32>
    %1185 = arith.select %5, %1183, %1184 : vector<8x1xi1>, vector<8x1xf32>
    %1186 = tpu.reciprocal %1185 {approx = true} : vector<8x1xf32> -> vector<8x1xf32>
    %1187 = vector.broadcast %1186 : vector<8x1xf32> to vector<8x128xf32>
    %1188 = arith.mulf %1181, %1187 : vector<8x128xf32>
    %cst_276 = arith.constant dense<0.000000e+00> : vector<128xf32>
    %1189 = vector.multi_reduction <add>, %1188, %cst_276 [0] : vector<8x128xf32> to vector<128xf32>
    %1190 = vector.shape_cast %1189 : vector<128xf32> to vector<1x128xf32>
    %cst_277 = arith.constant 1.000000e+00 : f32
    %1191 = vector.broadcast %cst_277 : f32 to vector<1x128xf32>
    %1192 = arith.select %3, %1190, %1191 : vector<1x128xi1>, vector<1x128xf32>
    %1193 = tpu.reciprocal %1192 {approx = true} : vector<1x128xf32> -> vector<1x128xf32>
    %1194 = vector.broadcast %1193 : vector<1x128xf32> to vector<8x128xf32>
    %1195 = arith.mulf %1188, %1194 : vector<8x128xf32>
    %1196 = vector.broadcast %1149 : vector<1x128xf32> to vector<8x128xf32>
    %1197 = arith.mulf %1195, %1196 : vector<8x128xf32>
    %cst_278 = arith.constant dense<0.000000e+00> : vector<8xf32>
    %1198 = vector.multi_reduction <add>, %1197, %cst_278 [1] : vector<8x128xf32> to vector<8xf32>
    %1199 = vector.shape_cast %1198 : vector<8xf32> to vector<8x1xf32>
    %cst_279 = arith.constant 1.000000e+00 : f32
    %1200 = vector.broadcast %cst_279 : f32 to vector<8x1xf32>
    %1201 = arith.select %5, %1199, %1200 : vector<8x1xi1>, vector<8x1xf32>
    %cst_280 = arith.constant 1.000000e+00 : f32
    %1202 = vector.broadcast %cst_280 : f32 to vector<8x1xf32>
    %1203 = arith.divf %1202, %1201 : vector<8x1xf32>
    %1204 = vector.broadcast %1203 : vector<8x1xf32> to vector<8x128xf32>
    %1205 = arith.mulf %1197, %1204 : vector<8x128xf32>
    %1206 = arith.mulf %1205, %65 : vector<8x128xf32>
    %cst_281 = arith.constant dense<0.000000e+00> : vector<8xf32>
    %1207 = vector.multi_reduction <add>, %1206, %cst_281 [1] : vector<8x128xf32> to vector<8xf32>
    %1208 = vector.shape_cast %1207 : vector<8xf32> to vector<8x1xf32>
    %cst_282 = arith.constant dense<0.000000e+00> : vector<1xf32>
    %1209 = vector.multi_reduction <add>, %1208, %cst_282 [0] : vector<8x1xf32> to vector<1xf32>
    %1210 = vector.shape_cast %1209 : vector<1xf32> to vector<1x1xf32>
    %cst_283 = arith.constant 0.000000e+00 : f32
    %1211 = vector.broadcast %cst_283 : f32 to vector<1x1xf32>
    %1212 = arith.subf %1211, %1210 : vector<1x1xf32>
    %cst_284 = arith.constant 1.250000e-01 : f32
    %1213 = vector.broadcast %cst_284 : f32 to vector<1x1xf32>
    %1214 = arith.mulf %1212, %1213 : vector<1x1xf32>
    %1215 = arith.subf %87, %1156 : vector<1x128xf32>
    %1216 = arith.mulf %80, %1215 : vector<1x128xf32>
    %cst_285 = arith.constant 0.000000e+00 : f32
    %1217 = vector.broadcast %cst_285 : f32 to vector<1x128xf32>
    %1218 = arith.select %3, %1216, %1217 : vector<1x128xi1>, vector<1x128xf32>
    %cst_286 = arith.constant dense<0.000000e+00> : vector<1xf32>
    %1219 = vector.multi_reduction <add>, %1218, %cst_286 [1] : vector<1x128xf32> to vector<1xf32>
    %1220 = vector.shape_cast %1219 : vector<1xf32> to vector<1x1xf32>
    %cst_287 = arith.constant 0.333333343 : f32
    %1221 = vector.broadcast %cst_287 : f32 to vector<1x1xf32>
    %1222 = arith.mulf %1220, %1221 : vector<1x1xf32>
    %cst_288 = arith.constant -1.250000e-01 : f32
    %1223 = vector.broadcast %cst_288 : f32 to vector<8x128xf32>
    %1224 = arith.mulf %65, %1223 : vector<8x128xf32>
    %cst_289 = arith.constant 0.000000e+00 : f32
    %1225 = vector.broadcast %cst_289 : f32 to vector<1x128xf32>
    %1226 = arith.mulf %1224, %1205 : vector<8x128xf32>
    %cst_290 = arith.constant dense<0.000000e+00> : vector<8xf32>
    %1227 = vector.multi_reduction <add>, %1226, %cst_290 [1] : vector<8x128xf32> to vector<8xf32>
    %1228 = vector.shape_cast %1227 : vector<8xf32> to vector<8x1xf32>
    %1229 = vector.broadcast %1228 : vector<8x1xf32> to vector<8x128xf32>
    %1230 = arith.subf %1224, %1229 : vector<8x128xf32>
    %1231 = vector.broadcast %1203 : vector<8x1xf32> to vector<8x128xf32>
    %1232 = arith.mulf %1230, %1231 : vector<8x128xf32>
    %1233 = arith.mulf %1232, %1195 : vector<8x128xf32>
    %cst_291 = arith.constant dense<0.000000e+00> : vector<128xf32>
    %1234 = vector.multi_reduction <add>, %1233, %cst_291 [0] : vector<8x128xf32> to vector<128xf32>
    %1235 = vector.shape_cast %1234 : vector<128xf32> to vector<1x128xf32>
    %1236 = arith.addf %1225, %1235 : vector<1x128xf32>
    %1237 = vector.broadcast %1149 : vector<1x128xf32> to vector<8x128xf32>
    %1238 = arith.mulf %1232, %1237 : vector<8x128xf32>
    %1239 = arith.mulf %1238, %1195 : vector<8x128xf32>
    %cst_292 = arith.constant dense<0.000000e+00> : vector<128xf32>
    %1240 = vector.multi_reduction <add>, %1239, %cst_292 [0] : vector<8x128xf32> to vector<128xf32>
    %1241 = vector.shape_cast %1240 : vector<128xf32> to vector<1x128xf32>
    %1242 = vector.broadcast %1241 : vector<1x128xf32> to vector<8x128xf32>
    %1243 = arith.subf %1238, %1242 : vector<8x128xf32>
    %1244 = vector.broadcast %1193 : vector<1x128xf32> to vector<8x128xf32>
    %1245 = arith.mulf %1243, %1244 : vector<8x128xf32>
    %1246 = arith.mulf %1245, %1188 : vector<8x128xf32>
    %cst_293 = arith.constant dense<0.000000e+00> : vector<8xf32>
    %1247 = vector.multi_reduction <add>, %1246, %cst_293 [1] : vector<8x128xf32> to vector<8xf32>
    %1248 = vector.shape_cast %1247 : vector<8xf32> to vector<8x1xf32>
    %1249 = vector.broadcast %1248 : vector<8x1xf32> to vector<8x128xf32>
    %1250 = arith.subf %1245, %1249 : vector<8x128xf32>
    %1251 = vector.broadcast %1186 : vector<8x1xf32> to vector<8x128xf32>
    %1252 = arith.mulf %1250, %1251 : vector<8x128xf32>
    %1253 = arith.mulf %1252, %1179 : vector<8x128xf32>
    %cst_294 = arith.constant dense<0.000000e+00> : vector<128xf32>
    %1254 = vector.multi_reduction <add>, %1253, %cst_294 [0] : vector<8x128xf32> to vector<128xf32>
    %1255 = vector.shape_cast %1254 : vector<128xf32> to vector<1x128xf32>
    %1256 = arith.addf %1236, %1255 : vector<1x128xf32>
    %1257 = vector.broadcast %1149 : vector<1x128xf32> to vector<8x128xf32>
    %1258 = arith.mulf %1252, %1257 : vector<8x128xf32>
    %1259 = arith.mulf %1258, %1179 : vector<8x128xf32>
    %cst_295 = arith.constant dense<0.000000e+00> : vector<128xf32>
    %1260 = vector.multi_reduction <add>, %1259, %cst_295 [0] : vector<8x128xf32> to vector<128xf32>
    %1261 = vector.shape_cast %1260 : vector<128xf32> to vector<1x128xf32>
    %1262 = vector.broadcast %1261 : vector<1x128xf32> to vector<8x128xf32>
    %1263 = arith.subf %1258, %1262 : vector<8x128xf32>
    %1264 = vector.broadcast %1177 : vector<1x128xf32> to vector<8x128xf32>
    %1265 = arith.mulf %1263, %1264 : vector<8x128xf32>
    %1266 = arith.mulf %1265, %1172 : vector<8x128xf32>
    %cst_296 = arith.constant dense<0.000000e+00> : vector<8xf32>
    %1267 = vector.multi_reduction <add>, %1266, %cst_296 [1] : vector<8x128xf32> to vector<8xf32>
    %1268 = vector.shape_cast %1267 : vector<8xf32> to vector<8x1xf32>
    %1269 = vector.broadcast %1268 : vector<8x1xf32> to vector<8x128xf32>
    %1270 = arith.subf %1265, %1269 : vector<8x128xf32>
    %1271 = vector.broadcast %1170 : vector<8x1xf32> to vector<8x128xf32>
    %1272 = arith.mulf %1270, %1271 : vector<8x128xf32>
    %1273 = arith.mulf %1272, %1163 : vector<8x128xf32>
    %cst_297 = arith.constant dense<0.000000e+00> : vector<128xf32>
    %1274 = vector.multi_reduction <add>, %1273, %cst_297 [0] : vector<8x128xf32> to vector<128xf32>
    %1275 = vector.shape_cast %1274 : vector<128xf32> to vector<1x128xf32>
    %1276 = arith.addf %1256, %1275 : vector<1x128xf32>
    %1277 = arith.mulf %1149, %1276 : vector<1x128xf32>
    %cst_298 = arith.constant dense<0.000000e+00> : vector<1xf32>
    %1278 = vector.multi_reduction <add>, %1277, %cst_298 [1] : vector<1x128xf32> to vector<1xf32>
    %1279 = vector.shape_cast %1278 : vector<1xf32> to vector<1x1xf32>
    %1280 = vector.broadcast %1279 : vector<1x1xf32> to vector<1x128xf32>
    %1281 = arith.subf %1276, %1280 : vector<1x128xf32>
    %1282 = arith.mulf %1149, %1281 : vector<1x128xf32>
    %1283 = arith.subf %1149, %80 : vector<1x128xf32>
    %cst_299 = arith.constant 5.000000e-02 : f32
    %1284 = vector.broadcast %cst_299 : f32 to vector<1x128xf32>
    %1285 = arith.mulf %1284, %1283 : vector<1x128xf32>
    %cst_300 = arith.constant 0.333333343 : f32
    %1286 = vector.broadcast %cst_300 : f32 to vector<1x128xf32>
    %1287 = arith.mulf %1285, %1286 : vector<1x128xf32>
    %1288 = arith.addf %1282, %1287 : vector<1x128xf32>
    %cst_301 = arith.constant 0.000000e+00 : f32
    %1289 = vector.broadcast %cst_301 : f32 to vector<1x128xf32>
    %1290 = arith.select %3, %1288, %1289 : vector<1x128xi1>, vector<1x128xf32>
    %1291 = arith.mulf %1290, %1290 : vector<1x128xf32>
    %cst_302 = arith.constant dense<0.000000e+00> : vector<1xf32>
    %1292 = vector.multi_reduction <add>, %1291, %cst_302 [1] : vector<1x128xf32> to vector<1xf32>
    %1293 = vector.shape_cast %1292 : vector<1xf32> to vector<1x1xf32>
    %1294 = math.sqrt %1293 : vector<1x1xf32>
    %cst_303 = arith.constant 9.99999997E-7 : f32
    %1295 = vector.broadcast %cst_303 : f32 to vector<1x1xf32>
    %1296 = arith.addf %1294, %1295 : vector<1x1xf32>
    %cst_304 = arith.constant 1.000000e+00 : f32
    %1297 = vector.broadcast %cst_304 : f32 to vector<1x1xf32>
    %1298 = arith.divf %1297, %1296 : vector<1x1xf32>
    %cst_305 = arith.constant 1.000000e+00 : f32
    %1299 = vector.broadcast %cst_305 : f32 to vector<1x1xf32>
    %1300 = arith.minimumf %1299, %1298 : vector<1x1xf32>
    %1301 = vector.broadcast %1300 : vector<1x1xf32> to vector<1x128xf32>
    %1302 = arith.mulf %1290, %1301 : vector<1x128xf32>
    %cst_306 = arith.constant 0.899999976 : f32
    %1303 = vector.broadcast %cst_306 : f32 to vector<1x128xf32>
    %1304 = arith.mulf %1303, %1131 : vector<1x128xf32>
    %1305 = arith.addf %1304, %1302 : vector<1x128xf32>
    %cst_307 = arith.constant 0.00999999977 : f32
    %1306 = vector.broadcast %cst_307 : f32 to vector<1x128xf32>
    %1307 = arith.mulf %1306, %1305 : vector<1x128xf32>
    %1308 = arith.subf %1126, %1307 : vector<1x128xf32>
    %1309 = arith.subf %1149, %1136 : vector<1x128xf32>
    %1310 = arith.mulf %1309, %1309 : vector<1x128xf32>
    %cst_308 = arith.constant dense<0.000000e+00> : vector<1xf32>
    %1311 = vector.multi_reduction <add>, %1310, %cst_308 [1] : vector<1x128xf32> to vector<1xf32>
    %1312 = vector.shape_cast %1311 : vector<1xf32> to vector<1x1xf32>
    %1313 = math.sqrt %1312 : vector<1x1xf32>
    %cst_309 = arith.constant 9.99999974E-5 : f32
    %1314 = vector.broadcast %cst_309 : f32 to vector<1x1xf32>
    %1315 = arith.cmpf olt, %1313, %1314 : vector<1x1xf32>
    %1316 = arith.extui %1315 : vector<1x1xi1> to vector<1x1xi32>
    %1317 = arith.sitofp %1316 : vector<1x1xi32> to vector<1x1xf32>
    %cst_310 = arith.constant 1.000000e+00 : f32
    %1318 = vector.broadcast %cst_310 : f32 to vector<1x1xf32>
    %1319 = arith.subf %1318, %1137 : vector<1x1xf32>
    %1320 = vector.broadcast %1137 : vector<1x1xf32> to vector<8x128xf32>
    %1321 = arith.mulf %1320, %1115 : vector<8x128xf32>
    %1322 = vector.broadcast %1319 : vector<1x1xf32> to vector<8x128xf32>
    %1323 = arith.mulf %1322, %1205 : vector<8x128xf32>
    %1324 = arith.addf %1321, %1323 : vector<8x128xf32>
    %1325 = arith.mulf %1137, %1118 : vector<1x1xf32>
    %1326 = arith.mulf %1319, %1214 : vector<1x1xf32>
    %1327 = arith.addf %1325, %1326 : vector<1x1xf32>
    %1328 = arith.mulf %1137, %1121 : vector<1x1xf32>
    %1329 = arith.mulf %1319, %1222 : vector<1x1xf32>
    %1330 = arith.addf %1328, %1329 : vector<1x1xf32>
    %1331 = vector.broadcast %1137 : vector<1x1xf32> to vector<1x128xf32>
    %1332 = arith.mulf %1331, %1126 : vector<1x128xf32>
    %1333 = vector.broadcast %1319 : vector<1x1xf32> to vector<1x128xf32>
    %1334 = arith.mulf %1333, %1308 : vector<1x128xf32>
    %1335 = arith.addf %1332, %1334 : vector<1x128xf32>
    %1336 = vector.broadcast %1137 : vector<1x1xf32> to vector<1x128xf32>
    %1337 = arith.mulf %1336, %1131 : vector<1x128xf32>
    %1338 = vector.broadcast %1319 : vector<1x1xf32> to vector<1x128xf32>
    %1339 = arith.mulf %1338, %1305 : vector<1x128xf32>
    %1340 = arith.addf %1337, %1339 : vector<1x128xf32>
    %1341 = vector.broadcast %1137 : vector<1x1xf32> to vector<1x128xf32>
    %1342 = arith.mulf %1341, %1136 : vector<1x128xf32>
    %1343 = vector.broadcast %1319 : vector<1x1xf32> to vector<1x128xf32>
    %1344 = arith.mulf %1343, %1149 : vector<1x128xf32>
    %1345 = arith.addf %1342, %1344 : vector<1x128xf32>
    %1346 = arith.maximumf %1137, %1317 : vector<1x1xf32>
    %cst_311 = arith.constant -1.000000e+30 : f32
    %1347 = vector.broadcast %cst_311 : f32 to vector<1x128xf32>
    %1348 = arith.select %3, %1335, %1347 : vector<1x128xi1>, vector<1x128xf32>
    %cst_312 = arith.constant dense<0xFF800000> : vector<1xf32>
    %1349 = vector.multi_reduction <maximumf>, %1348, %cst_312 [1] : vector<1x128xf32> to vector<1xf32>
    %1350 = vector.shape_cast %1349 : vector<1xf32> to vector<1x1xf32>
    %1351 = vector.broadcast %1350 : vector<1x1xf32> to vector<1x128xf32>
    %1352 = arith.subf %1348, %1351 : vector<1x128xf32>
    %1353 = math.exp %1352 : vector<1x128xf32>
    %cst_313 = arith.constant dense<0.000000e+00> : vector<1xf32>
    %1354 = vector.multi_reduction <add>, %1353, %cst_313 [1] : vector<1x128xf32> to vector<1xf32>
    %1355 = vector.shape_cast %1354 : vector<1xf32> to vector<1x1xf32>
    %1356 = tpu.reciprocal %1355 {approx = true} : vector<1x1xf32> -> vector<1x1xf32>
    %1357 = vector.broadcast %1356 : vector<1x1xf32> to vector<1x128xf32>
    %1358 = arith.mulf %1353, %1357 : vector<1x128xf32>
    %1359 = vector.broadcast %1350 : vector<1x1xf32> to vector<1x128xf32>
    %1360 = arith.subf %1348, %1359 : vector<1x128xf32>
    %1361 = math.log %1355 : vector<1x1xf32>
    %1362 = vector.broadcast %1361 : vector<1x1xf32> to vector<1x128xf32>
    %1363 = arith.subf %1360, %1362 : vector<1x128xf32>
    %cst_314 = arith.constant 0.000000e+00 : f32
    %1364 = vector.broadcast %cst_314 : f32 to vector<1x128xf32>
    %1365 = arith.select %3, %1363, %1364 : vector<1x128xi1>, vector<1x128xf32>
    %cst_315 = arith.constant dense<0.000000e+00> : vector<128xf32>
    %1366 = vector.multi_reduction <add>, %45, %cst_315 [0] : vector<8x128xf32> to vector<128xf32>
    %1367 = vector.shape_cast %1366 : vector<128xf32> to vector<1x128xf32>
    %cst_316 = arith.constant 1.000000e+00 : f32
    %1368 = vector.broadcast %cst_316 : f32 to vector<1x128xf32>
    %1369 = arith.select %3, %1367, %1368 : vector<1x128xi1>, vector<1x128xf32>
    %1370 = tpu.reciprocal %1369 {approx = true} : vector<1x128xf32> -> vector<1x128xf32>
    %1371 = vector.broadcast %1370 : vector<1x128xf32> to vector<8x128xf32>
    %1372 = arith.mulf %45, %1371 : vector<8x128xf32>
    %1373 = vector.broadcast %1358 : vector<1x128xf32> to vector<8x128xf32>
    %1374 = arith.mulf %1372, %1373 : vector<8x128xf32>
    %cst_317 = arith.constant dense<0.000000e+00> : vector<8xf32>
    %1375 = vector.multi_reduction <add>, %1374, %cst_317 [1] : vector<8x128xf32> to vector<8xf32>
    %1376 = vector.shape_cast %1375 : vector<8xf32> to vector<8x1xf32>
    %cst_318 = arith.constant 1.000000e+00 : f32
    %1377 = vector.broadcast %cst_318 : f32 to vector<8x1xf32>
    %1378 = arith.select %5, %1376, %1377 : vector<8x1xi1>, vector<8x1xf32>
    %1379 = tpu.reciprocal %1378 {approx = true} : vector<8x1xf32> -> vector<8x1xf32>
    %1380 = vector.broadcast %1379 : vector<8x1xf32> to vector<8x128xf32>
    %1381 = arith.mulf %1374, %1380 : vector<8x128xf32>
    %cst_319 = arith.constant dense<0.000000e+00> : vector<128xf32>
    %1382 = vector.multi_reduction <add>, %1381, %cst_319 [0] : vector<8x128xf32> to vector<128xf32>
    %1383 = vector.shape_cast %1382 : vector<128xf32> to vector<1x128xf32>
    %cst_320 = arith.constant 1.000000e+00 : f32
    %1384 = vector.broadcast %cst_320 : f32 to vector<1x128xf32>
    %1385 = arith.select %3, %1383, %1384 : vector<1x128xi1>, vector<1x128xf32>
    %1386 = tpu.reciprocal %1385 {approx = true} : vector<1x128xf32> -> vector<1x128xf32>
    %1387 = vector.broadcast %1386 : vector<1x128xf32> to vector<8x128xf32>
    %1388 = arith.mulf %1381, %1387 : vector<8x128xf32>
    %1389 = vector.broadcast %1358 : vector<1x128xf32> to vector<8x128xf32>
    %1390 = arith.mulf %1388, %1389 : vector<8x128xf32>
    %cst_321 = arith.constant dense<0.000000e+00> : vector<8xf32>
    %1391 = vector.multi_reduction <add>, %1390, %cst_321 [1] : vector<8x128xf32> to vector<8xf32>
    %1392 = vector.shape_cast %1391 : vector<8xf32> to vector<8x1xf32>
    %cst_322 = arith.constant 1.000000e+00 : f32
    %1393 = vector.broadcast %cst_322 : f32 to vector<8x1xf32>
    %1394 = arith.select %5, %1392, %1393 : vector<8x1xi1>, vector<8x1xf32>
    %1395 = tpu.reciprocal %1394 {approx = true} : vector<8x1xf32> -> vector<8x1xf32>
    %1396 = vector.broadcast %1395 : vector<8x1xf32> to vector<8x128xf32>
    %1397 = arith.mulf %1390, %1396 : vector<8x128xf32>
    %cst_323 = arith.constant dense<0.000000e+00> : vector<128xf32>
    %1398 = vector.multi_reduction <add>, %1397, %cst_323 [0] : vector<8x128xf32> to vector<128xf32>
    %1399 = vector.shape_cast %1398 : vector<128xf32> to vector<1x128xf32>
    %cst_324 = arith.constant 1.000000e+00 : f32
    %1400 = vector.broadcast %cst_324 : f32 to vector<1x128xf32>
    %1401 = arith.select %3, %1399, %1400 : vector<1x128xi1>, vector<1x128xf32>
    %1402 = tpu.reciprocal %1401 {approx = true} : vector<1x128xf32> -> vector<1x128xf32>
    %1403 = vector.broadcast %1402 : vector<1x128xf32> to vector<8x128xf32>
    %1404 = arith.mulf %1397, %1403 : vector<8x128xf32>
    %1405 = vector.broadcast %1358 : vector<1x128xf32> to vector<8x128xf32>
    %1406 = arith.mulf %1404, %1405 : vector<8x128xf32>
    %cst_325 = arith.constant dense<0.000000e+00> : vector<8xf32>
    %1407 = vector.multi_reduction <add>, %1406, %cst_325 [1] : vector<8x128xf32> to vector<8xf32>
    %1408 = vector.shape_cast %1407 : vector<8xf32> to vector<8x1xf32>
    %cst_326 = arith.constant 1.000000e+00 : f32
    %1409 = vector.broadcast %cst_326 : f32 to vector<8x1xf32>
    %1410 = arith.select %5, %1408, %1409 : vector<8x1xi1>, vector<8x1xf32>
    %cst_327 = arith.constant 1.000000e+00 : f32
    %1411 = vector.broadcast %cst_327 : f32 to vector<8x1xf32>
    %1412 = arith.divf %1411, %1410 : vector<8x1xf32>
    %1413 = vector.broadcast %1412 : vector<8x1xf32> to vector<8x128xf32>
    %1414 = arith.mulf %1406, %1413 : vector<8x128xf32>
    %1415 = arith.mulf %1414, %65 : vector<8x128xf32>
    %cst_328 = arith.constant dense<0.000000e+00> : vector<8xf32>
    %1416 = vector.multi_reduction <add>, %1415, %cst_328 [1] : vector<8x128xf32> to vector<8xf32>
    %1417 = vector.shape_cast %1416 : vector<8xf32> to vector<8x1xf32>
    %cst_329 = arith.constant dense<0.000000e+00> : vector<1xf32>
    %1418 = vector.multi_reduction <add>, %1417, %cst_329 [0] : vector<8x1xf32> to vector<1xf32>
    %1419 = vector.shape_cast %1418 : vector<1xf32> to vector<1x1xf32>
    %cst_330 = arith.constant 0.000000e+00 : f32
    %1420 = vector.broadcast %cst_330 : f32 to vector<1x1xf32>
    %1421 = arith.subf %1420, %1419 : vector<1x1xf32>
    %cst_331 = arith.constant 1.250000e-01 : f32
    %1422 = vector.broadcast %cst_331 : f32 to vector<1x1xf32>
    %1423 = arith.mulf %1421, %1422 : vector<1x1xf32>
    %1424 = arith.subf %87, %1365 : vector<1x128xf32>
    %1425 = arith.mulf %80, %1424 : vector<1x128xf32>
    %cst_332 = arith.constant 0.000000e+00 : f32
    %1426 = vector.broadcast %cst_332 : f32 to vector<1x128xf32>
    %1427 = arith.select %3, %1425, %1426 : vector<1x128xi1>, vector<1x128xf32>
    %cst_333 = arith.constant dense<0.000000e+00> : vector<1xf32>
    %1428 = vector.multi_reduction <add>, %1427, %cst_333 [1] : vector<1x128xf32> to vector<1xf32>
    %1429 = vector.shape_cast %1428 : vector<1xf32> to vector<1x1xf32>
    %cst_334 = arith.constant 0.333333343 : f32
    %1430 = vector.broadcast %cst_334 : f32 to vector<1x1xf32>
    %1431 = arith.mulf %1429, %1430 : vector<1x1xf32>
    %cst_335 = arith.constant -1.250000e-01 : f32
    %1432 = vector.broadcast %cst_335 : f32 to vector<8x128xf32>
    %1433 = arith.mulf %65, %1432 : vector<8x128xf32>
    %cst_336 = arith.constant 0.000000e+00 : f32
    %1434 = vector.broadcast %cst_336 : f32 to vector<1x128xf32>
    %1435 = arith.mulf %1433, %1414 : vector<8x128xf32>
    %cst_337 = arith.constant dense<0.000000e+00> : vector<8xf32>
    %1436 = vector.multi_reduction <add>, %1435, %cst_337 [1] : vector<8x128xf32> to vector<8xf32>
    %1437 = vector.shape_cast %1436 : vector<8xf32> to vector<8x1xf32>
    %1438 = vector.broadcast %1437 : vector<8x1xf32> to vector<8x128xf32>
    %1439 = arith.subf %1433, %1438 : vector<8x128xf32>
    %1440 = vector.broadcast %1412 : vector<8x1xf32> to vector<8x128xf32>
    %1441 = arith.mulf %1439, %1440 : vector<8x128xf32>
    %1442 = arith.mulf %1441, %1404 : vector<8x128xf32>
    %cst_338 = arith.constant dense<0.000000e+00> : vector<128xf32>
    %1443 = vector.multi_reduction <add>, %1442, %cst_338 [0] : vector<8x128xf32> to vector<128xf32>
    %1444 = vector.shape_cast %1443 : vector<128xf32> to vector<1x128xf32>
    %1445 = arith.addf %1434, %1444 : vector<1x128xf32>
    %1446 = vector.broadcast %1358 : vector<1x128xf32> to vector<8x128xf32>
    %1447 = arith.mulf %1441, %1446 : vector<8x128xf32>
    %1448 = arith.mulf %1447, %1404 : vector<8x128xf32>
    %cst_339 = arith.constant dense<0.000000e+00> : vector<128xf32>
    %1449 = vector.multi_reduction <add>, %1448, %cst_339 [0] : vector<8x128xf32> to vector<128xf32>
    %1450 = vector.shape_cast %1449 : vector<128xf32> to vector<1x128xf32>
    %1451 = vector.broadcast %1450 : vector<1x128xf32> to vector<8x128xf32>
    %1452 = arith.subf %1447, %1451 : vector<8x128xf32>
    %1453 = vector.broadcast %1402 : vector<1x128xf32> to vector<8x128xf32>
    %1454 = arith.mulf %1452, %1453 : vector<8x128xf32>
    %1455 = arith.mulf %1454, %1397 : vector<8x128xf32>
    %cst_340 = arith.constant dense<0.000000e+00> : vector<8xf32>
    %1456 = vector.multi_reduction <add>, %1455, %cst_340 [1] : vector<8x128xf32> to vector<8xf32>
    %1457 = vector.shape_cast %1456 : vector<8xf32> to vector<8x1xf32>
    %1458 = vector.broadcast %1457 : vector<8x1xf32> to vector<8x128xf32>
    %1459 = arith.subf %1454, %1458 : vector<8x128xf32>
    %1460 = vector.broadcast %1395 : vector<8x1xf32> to vector<8x128xf32>
    %1461 = arith.mulf %1459, %1460 : vector<8x128xf32>
    %1462 = arith.mulf %1461, %1388 : vector<8x128xf32>
    %cst_341 = arith.constant dense<0.000000e+00> : vector<128xf32>
    %1463 = vector.multi_reduction <add>, %1462, %cst_341 [0] : vector<8x128xf32> to vector<128xf32>
    %1464 = vector.shape_cast %1463 : vector<128xf32> to vector<1x128xf32>
    %1465 = arith.addf %1445, %1464 : vector<1x128xf32>
    %1466 = vector.broadcast %1358 : vector<1x128xf32> to vector<8x128xf32>
    %1467 = arith.mulf %1461, %1466 : vector<8x128xf32>
    %1468 = arith.mulf %1467, %1388 : vector<8x128xf32>
    %cst_342 = arith.constant dense<0.000000e+00> : vector<128xf32>
    %1469 = vector.multi_reduction <add>, %1468, %cst_342 [0] : vector<8x128xf32> to vector<128xf32>
    %1470 = vector.shape_cast %1469 : vector<128xf32> to vector<1x128xf32>
    %1471 = vector.broadcast %1470 : vector<1x128xf32> to vector<8x128xf32>
    %1472 = arith.subf %1467, %1471 : vector<8x128xf32>
    %1473 = vector.broadcast %1386 : vector<1x128xf32> to vector<8x128xf32>
    %1474 = arith.mulf %1472, %1473 : vector<8x128xf32>
    %1475 = arith.mulf %1474, %1381 : vector<8x128xf32>
    %cst_343 = arith.constant dense<0.000000e+00> : vector<8xf32>
    %1476 = vector.multi_reduction <add>, %1475, %cst_343 [1] : vector<8x128xf32> to vector<8xf32>
    %1477 = vector.shape_cast %1476 : vector<8xf32> to vector<8x1xf32>
    %1478 = vector.broadcast %1477 : vector<8x1xf32> to vector<8x128xf32>
    %1479 = arith.subf %1474, %1478 : vector<8x128xf32>
    %1480 = vector.broadcast %1379 : vector<8x1xf32> to vector<8x128xf32>
    %1481 = arith.mulf %1479, %1480 : vector<8x128xf32>
    %1482 = arith.mulf %1481, %1372 : vector<8x128xf32>
    %cst_344 = arith.constant dense<0.000000e+00> : vector<128xf32>
    %1483 = vector.multi_reduction <add>, %1482, %cst_344 [0] : vector<8x128xf32> to vector<128xf32>
    %1484 = vector.shape_cast %1483 : vector<128xf32> to vector<1x128xf32>
    %1485 = arith.addf %1465, %1484 : vector<1x128xf32>
    %1486 = arith.mulf %1358, %1485 : vector<1x128xf32>
    %cst_345 = arith.constant dense<0.000000e+00> : vector<1xf32>
    %1487 = vector.multi_reduction <add>, %1486, %cst_345 [1] : vector<1x128xf32> to vector<1xf32>
    %1488 = vector.shape_cast %1487 : vector<1xf32> to vector<1x1xf32>
    %1489 = vector.broadcast %1488 : vector<1x1xf32> to vector<1x128xf32>
    %1490 = arith.subf %1485, %1489 : vector<1x128xf32>
    %1491 = arith.mulf %1358, %1490 : vector<1x128xf32>
    %1492 = arith.subf %1358, %80 : vector<1x128xf32>
    %cst_346 = arith.constant 5.000000e-02 : f32
    %1493 = vector.broadcast %cst_346 : f32 to vector<1x128xf32>
    %1494 = arith.mulf %1493, %1492 : vector<1x128xf32>
    %cst_347 = arith.constant 0.333333343 : f32
    %1495 = vector.broadcast %cst_347 : f32 to vector<1x128xf32>
    %1496 = arith.mulf %1494, %1495 : vector<1x128xf32>
    %1497 = arith.addf %1491, %1496 : vector<1x128xf32>
    %cst_348 = arith.constant 0.000000e+00 : f32
    %1498 = vector.broadcast %cst_348 : f32 to vector<1x128xf32>
    %1499 = arith.select %3, %1497, %1498 : vector<1x128xi1>, vector<1x128xf32>
    %1500 = arith.mulf %1499, %1499 : vector<1x128xf32>
    %cst_349 = arith.constant dense<0.000000e+00> : vector<1xf32>
    %1501 = vector.multi_reduction <add>, %1500, %cst_349 [1] : vector<1x128xf32> to vector<1xf32>
    %1502 = vector.shape_cast %1501 : vector<1xf32> to vector<1x1xf32>
    %1503 = math.sqrt %1502 : vector<1x1xf32>
    %cst_350 = arith.constant 9.99999997E-7 : f32
    %1504 = vector.broadcast %cst_350 : f32 to vector<1x1xf32>
    %1505 = arith.addf %1503, %1504 : vector<1x1xf32>
    %cst_351 = arith.constant 1.000000e+00 : f32
    %1506 = vector.broadcast %cst_351 : f32 to vector<1x1xf32>
    %1507 = arith.divf %1506, %1505 : vector<1x1xf32>
    %cst_352 = arith.constant 1.000000e+00 : f32
    %1508 = vector.broadcast %cst_352 : f32 to vector<1x1xf32>
    %1509 = arith.minimumf %1508, %1507 : vector<1x1xf32>
    %1510 = vector.broadcast %1509 : vector<1x1xf32> to vector<1x128xf32>
    %1511 = arith.mulf %1499, %1510 : vector<1x128xf32>
    %cst_353 = arith.constant 0.899999976 : f32
    %1512 = vector.broadcast %cst_353 : f32 to vector<1x128xf32>
    %1513 = arith.mulf %1512, %1340 : vector<1x128xf32>
    %1514 = arith.addf %1513, %1511 : vector<1x128xf32>
    %cst_354 = arith.constant 0.00999999977 : f32
    %1515 = vector.broadcast %cst_354 : f32 to vector<1x128xf32>
    %1516 = arith.mulf %1515, %1514 : vector<1x128xf32>
    %1517 = arith.subf %1335, %1516 : vector<1x128xf32>
    %1518 = arith.subf %1358, %1345 : vector<1x128xf32>
    %1519 = arith.mulf %1518, %1518 : vector<1x128xf32>
    %cst_355 = arith.constant dense<0.000000e+00> : vector<1xf32>
    %1520 = vector.multi_reduction <add>, %1519, %cst_355 [1] : vector<1x128xf32> to vector<1xf32>
    %1521 = vector.shape_cast %1520 : vector<1xf32> to vector<1x1xf32>
    %1522 = math.sqrt %1521 : vector<1x1xf32>
    %cst_356 = arith.constant 9.99999974E-5 : f32
    %1523 = vector.broadcast %cst_356 : f32 to vector<1x1xf32>
    %1524 = arith.cmpf olt, %1522, %1523 : vector<1x1xf32>
    %1525 = arith.extui %1524 : vector<1x1xi1> to vector<1x1xi32>
    %1526 = arith.sitofp %1525 : vector<1x1xi32> to vector<1x1xf32>
    %cst_357 = arith.constant 1.000000e+00 : f32
    %1527 = vector.broadcast %cst_357 : f32 to vector<1x1xf32>
    %1528 = arith.subf %1527, %1346 : vector<1x1xf32>
    %1529 = vector.broadcast %1346 : vector<1x1xf32> to vector<8x128xf32>
    %1530 = arith.mulf %1529, %1324 : vector<8x128xf32>
    %1531 = vector.broadcast %1528 : vector<1x1xf32> to vector<8x128xf32>
    %1532 = arith.mulf %1531, %1414 : vector<8x128xf32>
    %1533 = arith.addf %1530, %1532 : vector<8x128xf32>
    %1534 = arith.mulf %1346, %1327 : vector<1x1xf32>
    %1535 = arith.mulf %1528, %1423 : vector<1x1xf32>
    %1536 = arith.addf %1534, %1535 : vector<1x1xf32>
    %1537 = arith.mulf %1346, %1330 : vector<1x1xf32>
    %1538 = arith.mulf %1528, %1431 : vector<1x1xf32>
    %1539 = arith.addf %1537, %1538 : vector<1x1xf32>
    %1540 = vector.broadcast %1346 : vector<1x1xf32> to vector<1x128xf32>
    %1541 = arith.mulf %1540, %1335 : vector<1x128xf32>
    %1542 = vector.broadcast %1528 : vector<1x1xf32> to vector<1x128xf32>
    %1543 = arith.mulf %1542, %1517 : vector<1x128xf32>
    %1544 = arith.addf %1541, %1543 : vector<1x128xf32>
    %1545 = vector.broadcast %1346 : vector<1x1xf32> to vector<1x128xf32>
    %1546 = arith.mulf %1545, %1340 : vector<1x128xf32>
    %1547 = vector.broadcast %1528 : vector<1x1xf32> to vector<1x128xf32>
    %1548 = arith.mulf %1547, %1514 : vector<1x128xf32>
    %1549 = arith.addf %1546, %1548 : vector<1x128xf32>
    %1550 = vector.broadcast %1346 : vector<1x1xf32> to vector<1x128xf32>
    %1551 = arith.mulf %1550, %1345 : vector<1x128xf32>
    %1552 = vector.broadcast %1528 : vector<1x1xf32> to vector<1x128xf32>
    %1553 = arith.mulf %1552, %1358 : vector<1x128xf32>
    %1554 = arith.addf %1551, %1553 : vector<1x128xf32>
    %1555 = arith.maximumf %1346, %1526 : vector<1x1xf32>
    %cst_358 = arith.constant -1.000000e+30 : f32
    %1556 = vector.broadcast %cst_358 : f32 to vector<1x128xf32>
    %1557 = arith.select %3, %1544, %1556 : vector<1x128xi1>, vector<1x128xf32>
    %cst_359 = arith.constant dense<0xFF800000> : vector<1xf32>
    %1558 = vector.multi_reduction <maximumf>, %1557, %cst_359 [1] : vector<1x128xf32> to vector<1xf32>
    %1559 = vector.shape_cast %1558 : vector<1xf32> to vector<1x1xf32>
    %1560 = vector.broadcast %1559 : vector<1x1xf32> to vector<1x128xf32>
    %1561 = arith.subf %1557, %1560 : vector<1x128xf32>
    %1562 = math.exp %1561 : vector<1x128xf32>
    %cst_360 = arith.constant dense<0.000000e+00> : vector<1xf32>
    %1563 = vector.multi_reduction <add>, %1562, %cst_360 [1] : vector<1x128xf32> to vector<1xf32>
    %1564 = vector.shape_cast %1563 : vector<1xf32> to vector<1x1xf32>
    %1565 = tpu.reciprocal %1564 {approx = true} : vector<1x1xf32> -> vector<1x1xf32>
    %1566 = vector.broadcast %1565 : vector<1x1xf32> to vector<1x128xf32>
    %1567 = arith.mulf %1562, %1566 : vector<1x128xf32>
    %1568 = vector.broadcast %1559 : vector<1x1xf32> to vector<1x128xf32>
    %1569 = arith.subf %1557, %1568 : vector<1x128xf32>
    %1570 = math.log %1564 : vector<1x1xf32>
    %1571 = vector.broadcast %1570 : vector<1x1xf32> to vector<1x128xf32>
    %1572 = arith.subf %1569, %1571 : vector<1x128xf32>
    %cst_361 = arith.constant 0.000000e+00 : f32
    %1573 = vector.broadcast %cst_361 : f32 to vector<1x128xf32>
    %1574 = arith.select %3, %1572, %1573 : vector<1x128xi1>, vector<1x128xf32>
    %cst_362 = arith.constant dense<0.000000e+00> : vector<128xf32>
    %1575 = vector.multi_reduction <add>, %45, %cst_362 [0] : vector<8x128xf32> to vector<128xf32>
    %1576 = vector.shape_cast %1575 : vector<128xf32> to vector<1x128xf32>
    %cst_363 = arith.constant 1.000000e+00 : f32
    %1577 = vector.broadcast %cst_363 : f32 to vector<1x128xf32>
    %1578 = arith.select %3, %1576, %1577 : vector<1x128xi1>, vector<1x128xf32>
    %1579 = tpu.reciprocal %1578 {approx = true} : vector<1x128xf32> -> vector<1x128xf32>
    %1580 = vector.broadcast %1579 : vector<1x128xf32> to vector<8x128xf32>
    %1581 = arith.mulf %45, %1580 : vector<8x128xf32>
    %1582 = vector.broadcast %1567 : vector<1x128xf32> to vector<8x128xf32>
    %1583 = arith.mulf %1581, %1582 : vector<8x128xf32>
    %cst_364 = arith.constant dense<0.000000e+00> : vector<8xf32>
    %1584 = vector.multi_reduction <add>, %1583, %cst_364 [1] : vector<8x128xf32> to vector<8xf32>
    %1585 = vector.shape_cast %1584 : vector<8xf32> to vector<8x1xf32>
    %cst_365 = arith.constant 1.000000e+00 : f32
    %1586 = vector.broadcast %cst_365 : f32 to vector<8x1xf32>
    %1587 = arith.select %5, %1585, %1586 : vector<8x1xi1>, vector<8x1xf32>
    %1588 = tpu.reciprocal %1587 {approx = true} : vector<8x1xf32> -> vector<8x1xf32>
    %1589 = vector.broadcast %1588 : vector<8x1xf32> to vector<8x128xf32>
    %1590 = arith.mulf %1583, %1589 : vector<8x128xf32>
    %cst_366 = arith.constant dense<0.000000e+00> : vector<128xf32>
    %1591 = vector.multi_reduction <add>, %1590, %cst_366 [0] : vector<8x128xf32> to vector<128xf32>
    %1592 = vector.shape_cast %1591 : vector<128xf32> to vector<1x128xf32>
    %cst_367 = arith.constant 1.000000e+00 : f32
    %1593 = vector.broadcast %cst_367 : f32 to vector<1x128xf32>
    %1594 = arith.select %3, %1592, %1593 : vector<1x128xi1>, vector<1x128xf32>
    %1595 = tpu.reciprocal %1594 {approx = true} : vector<1x128xf32> -> vector<1x128xf32>
    %1596 = vector.broadcast %1595 : vector<1x128xf32> to vector<8x128xf32>
    %1597 = arith.mulf %1590, %1596 : vector<8x128xf32>
    %1598 = vector.broadcast %1567 : vector<1x128xf32> to vector<8x128xf32>
    %1599 = arith.mulf %1597, %1598 : vector<8x128xf32>
    %cst_368 = arith.constant dense<0.000000e+00> : vector<8xf32>
    %1600 = vector.multi_reduction <add>, %1599, %cst_368 [1] : vector<8x128xf32> to vector<8xf32>
    %1601 = vector.shape_cast %1600 : vector<8xf32> to vector<8x1xf32>
    %cst_369 = arith.constant 1.000000e+00 : f32
    %1602 = vector.broadcast %cst_369 : f32 to vector<8x1xf32>
    %1603 = arith.select %5, %1601, %1602 : vector<8x1xi1>, vector<8x1xf32>
    %1604 = tpu.reciprocal %1603 {approx = true} : vector<8x1xf32> -> vector<8x1xf32>
    %1605 = vector.broadcast %1604 : vector<8x1xf32> to vector<8x128xf32>
    %1606 = arith.mulf %1599, %1605 : vector<8x128xf32>
    %cst_370 = arith.constant dense<0.000000e+00> : vector<128xf32>
    %1607 = vector.multi_reduction <add>, %1606, %cst_370 [0] : vector<8x128xf32> to vector<128xf32>
    %1608 = vector.shape_cast %1607 : vector<128xf32> to vector<1x128xf32>
    %cst_371 = arith.constant 1.000000e+00 : f32
    %1609 = vector.broadcast %cst_371 : f32 to vector<1x128xf32>
    %1610 = arith.select %3, %1608, %1609 : vector<1x128xi1>, vector<1x128xf32>
    %1611 = tpu.reciprocal %1610 {approx = true} : vector<1x128xf32> -> vector<1x128xf32>
    %1612 = vector.broadcast %1611 : vector<1x128xf32> to vector<8x128xf32>
    %1613 = arith.mulf %1606, %1612 : vector<8x128xf32>
    %1614 = vector.broadcast %1567 : vector<1x128xf32> to vector<8x128xf32>
    %1615 = arith.mulf %1613, %1614 : vector<8x128xf32>
    %cst_372 = arith.constant dense<0.000000e+00> : vector<8xf32>
    %1616 = vector.multi_reduction <add>, %1615, %cst_372 [1] : vector<8x128xf32> to vector<8xf32>
    %1617 = vector.shape_cast %1616 : vector<8xf32> to vector<8x1xf32>
    %cst_373 = arith.constant 1.000000e+00 : f32
    %1618 = vector.broadcast %cst_373 : f32 to vector<8x1xf32>
    %1619 = arith.select %5, %1617, %1618 : vector<8x1xi1>, vector<8x1xf32>
    %cst_374 = arith.constant 1.000000e+00 : f32
    %1620 = vector.broadcast %cst_374 : f32 to vector<8x1xf32>
    %1621 = arith.divf %1620, %1619 : vector<8x1xf32>
    %1622 = vector.broadcast %1621 : vector<8x1xf32> to vector<8x128xf32>
    %1623 = arith.mulf %1615, %1622 : vector<8x128xf32>
    %1624 = arith.mulf %1623, %65 : vector<8x128xf32>
    %cst_375 = arith.constant dense<0.000000e+00> : vector<8xf32>
    %1625 = vector.multi_reduction <add>, %1624, %cst_375 [1] : vector<8x128xf32> to vector<8xf32>
    %1626 = vector.shape_cast %1625 : vector<8xf32> to vector<8x1xf32>
    %cst_376 = arith.constant dense<0.000000e+00> : vector<1xf32>
    %1627 = vector.multi_reduction <add>, %1626, %cst_376 [0] : vector<8x1xf32> to vector<1xf32>
    %1628 = vector.shape_cast %1627 : vector<1xf32> to vector<1x1xf32>
    %cst_377 = arith.constant 0.000000e+00 : f32
    %1629 = vector.broadcast %cst_377 : f32 to vector<1x1xf32>
    %1630 = arith.subf %1629, %1628 : vector<1x1xf32>
    %cst_378 = arith.constant 1.250000e-01 : f32
    %1631 = vector.broadcast %cst_378 : f32 to vector<1x1xf32>
    %1632 = arith.mulf %1630, %1631 : vector<1x1xf32>
    %1633 = arith.subf %87, %1574 : vector<1x128xf32>
    %1634 = arith.mulf %80, %1633 : vector<1x128xf32>
    %cst_379 = arith.constant 0.000000e+00 : f32
    %1635 = vector.broadcast %cst_379 : f32 to vector<1x128xf32>
    %1636 = arith.select %3, %1634, %1635 : vector<1x128xi1>, vector<1x128xf32>
    %cst_380 = arith.constant dense<0.000000e+00> : vector<1xf32>
    %1637 = vector.multi_reduction <add>, %1636, %cst_380 [1] : vector<1x128xf32> to vector<1xf32>
    %1638 = vector.shape_cast %1637 : vector<1xf32> to vector<1x1xf32>
    %cst_381 = arith.constant 0.333333343 : f32
    %1639 = vector.broadcast %cst_381 : f32 to vector<1x1xf32>
    %1640 = arith.mulf %1638, %1639 : vector<1x1xf32>
    %cst_382 = arith.constant -1.250000e-01 : f32
    %1641 = vector.broadcast %cst_382 : f32 to vector<8x128xf32>
    %1642 = arith.mulf %65, %1641 : vector<8x128xf32>
    %cst_383 = arith.constant 0.000000e+00 : f32
    %1643 = vector.broadcast %cst_383 : f32 to vector<1x128xf32>
    %1644 = arith.mulf %1642, %1623 : vector<8x128xf32>
    %cst_384 = arith.constant dense<0.000000e+00> : vector<8xf32>
    %1645 = vector.multi_reduction <add>, %1644, %cst_384 [1] : vector<8x128xf32> to vector<8xf32>
    %1646 = vector.shape_cast %1645 : vector<8xf32> to vector<8x1xf32>
    %1647 = vector.broadcast %1646 : vector<8x1xf32> to vector<8x128xf32>
    %1648 = arith.subf %1642, %1647 : vector<8x128xf32>
    %1649 = vector.broadcast %1621 : vector<8x1xf32> to vector<8x128xf32>
    %1650 = arith.mulf %1648, %1649 : vector<8x128xf32>
    %1651 = arith.mulf %1650, %1613 : vector<8x128xf32>
    %cst_385 = arith.constant dense<0.000000e+00> : vector<128xf32>
    %1652 = vector.multi_reduction <add>, %1651, %cst_385 [0] : vector<8x128xf32> to vector<128xf32>
    %1653 = vector.shape_cast %1652 : vector<128xf32> to vector<1x128xf32>
    %1654 = arith.addf %1643, %1653 : vector<1x128xf32>
    %1655 = vector.broadcast %1567 : vector<1x128xf32> to vector<8x128xf32>
    %1656 = arith.mulf %1650, %1655 : vector<8x128xf32>
    %1657 = arith.mulf %1656, %1613 : vector<8x128xf32>
    %cst_386 = arith.constant dense<0.000000e+00> : vector<128xf32>
    %1658 = vector.multi_reduction <add>, %1657, %cst_386 [0] : vector<8x128xf32> to vector<128xf32>
    %1659 = vector.shape_cast %1658 : vector<128xf32> to vector<1x128xf32>
    %1660 = vector.broadcast %1659 : vector<1x128xf32> to vector<8x128xf32>
    %1661 = arith.subf %1656, %1660 : vector<8x128xf32>
    %1662 = vector.broadcast %1611 : vector<1x128xf32> to vector<8x128xf32>
    %1663 = arith.mulf %1661, %1662 : vector<8x128xf32>
    %1664 = arith.mulf %1663, %1606 : vector<8x128xf32>
    %cst_387 = arith.constant dense<0.000000e+00> : vector<8xf32>
    %1665 = vector.multi_reduction <add>, %1664, %cst_387 [1] : vector<8x128xf32> to vector<8xf32>
    %1666 = vector.shape_cast %1665 : vector<8xf32> to vector<8x1xf32>
    %1667 = vector.broadcast %1666 : vector<8x1xf32> to vector<8x128xf32>
    %1668 = arith.subf %1663, %1667 : vector<8x128xf32>
    %1669 = vector.broadcast %1604 : vector<8x1xf32> to vector<8x128xf32>
    %1670 = arith.mulf %1668, %1669 : vector<8x128xf32>
    %1671 = arith.mulf %1670, %1597 : vector<8x128xf32>
    %cst_388 = arith.constant dense<0.000000e+00> : vector<128xf32>
    %1672 = vector.multi_reduction <add>, %1671, %cst_388 [0] : vector<8x128xf32> to vector<128xf32>
    %1673 = vector.shape_cast %1672 : vector<128xf32> to vector<1x128xf32>
    %1674 = arith.addf %1654, %1673 : vector<1x128xf32>
    %1675 = vector.broadcast %1567 : vector<1x128xf32> to vector<8x128xf32>
    %1676 = arith.mulf %1670, %1675 : vector<8x128xf32>
    %1677 = arith.mulf %1676, %1597 : vector<8x128xf32>
    %cst_389 = arith.constant dense<0.000000e+00> : vector<128xf32>
    %1678 = vector.multi_reduction <add>, %1677, %cst_389 [0] : vector<8x128xf32> to vector<128xf32>
    %1679 = vector.shape_cast %1678 : vector<128xf32> to vector<1x128xf32>
    %1680 = vector.broadcast %1679 : vector<1x128xf32> to vector<8x128xf32>
    %1681 = arith.subf %1676, %1680 : vector<8x128xf32>
    %1682 = vector.broadcast %1595 : vector<1x128xf32> to vector<8x128xf32>
    %1683 = arith.mulf %1681, %1682 : vector<8x128xf32>
    %1684 = arith.mulf %1683, %1590 : vector<8x128xf32>
    %cst_390 = arith.constant dense<0.000000e+00> : vector<8xf32>
    %1685 = vector.multi_reduction <add>, %1684, %cst_390 [1] : vector<8x128xf32> to vector<8xf32>
    %1686 = vector.shape_cast %1685 : vector<8xf32> to vector<8x1xf32>
    %1687 = vector.broadcast %1686 : vector<8x1xf32> to vector<8x128xf32>
    %1688 = arith.subf %1683, %1687 : vector<8x128xf32>
    %1689 = vector.broadcast %1588 : vector<8x1xf32> to vector<8x128xf32>
    %1690 = arith.mulf %1688, %1689 : vector<8x128xf32>
    %1691 = arith.mulf %1690, %1581 : vector<8x128xf32>
    %cst_391 = arith.constant dense<0.000000e+00> : vector<128xf32>
    %1692 = vector.multi_reduction <add>, %1691, %cst_391 [0] : vector<8x128xf32> to vector<128xf32>
    %1693 = vector.shape_cast %1692 : vector<128xf32> to vector<1x128xf32>
    %1694 = arith.addf %1674, %1693 : vector<1x128xf32>
    %1695 = arith.mulf %1567, %1694 : vector<1x128xf32>
    %cst_392 = arith.constant dense<0.000000e+00> : vector<1xf32>
    %1696 = vector.multi_reduction <add>, %1695, %cst_392 [1] : vector<1x128xf32> to vector<1xf32>
    %1697 = vector.shape_cast %1696 : vector<1xf32> to vector<1x1xf32>
    %1698 = vector.broadcast %1697 : vector<1x1xf32> to vector<1x128xf32>
    %1699 = arith.subf %1694, %1698 : vector<1x128xf32>
    %1700 = arith.mulf %1567, %1699 : vector<1x128xf32>
    %1701 = arith.subf %1567, %80 : vector<1x128xf32>
    %cst_393 = arith.constant 5.000000e-02 : f32
    %1702 = vector.broadcast %cst_393 : f32 to vector<1x128xf32>
    %1703 = arith.mulf %1702, %1701 : vector<1x128xf32>
    %cst_394 = arith.constant 0.333333343 : f32
    %1704 = vector.broadcast %cst_394 : f32 to vector<1x128xf32>
    %1705 = arith.mulf %1703, %1704 : vector<1x128xf32>
    %1706 = arith.addf %1700, %1705 : vector<1x128xf32>
    %cst_395 = arith.constant 0.000000e+00 : f32
    %1707 = vector.broadcast %cst_395 : f32 to vector<1x128xf32>
    %1708 = arith.select %3, %1706, %1707 : vector<1x128xi1>, vector<1x128xf32>
    %1709 = arith.mulf %1708, %1708 : vector<1x128xf32>
    %cst_396 = arith.constant dense<0.000000e+00> : vector<1xf32>
    %1710 = vector.multi_reduction <add>, %1709, %cst_396 [1] : vector<1x128xf32> to vector<1xf32>
    %1711 = vector.shape_cast %1710 : vector<1xf32> to vector<1x1xf32>
    %1712 = math.sqrt %1711 : vector<1x1xf32>
    %cst_397 = arith.constant 9.99999997E-7 : f32
    %1713 = vector.broadcast %cst_397 : f32 to vector<1x1xf32>
    %1714 = arith.addf %1712, %1713 : vector<1x1xf32>
    %cst_398 = arith.constant 1.000000e+00 : f32
    %1715 = vector.broadcast %cst_398 : f32 to vector<1x1xf32>
    %1716 = arith.divf %1715, %1714 : vector<1x1xf32>
    %cst_399 = arith.constant 1.000000e+00 : f32
    %1717 = vector.broadcast %cst_399 : f32 to vector<1x1xf32>
    %1718 = arith.minimumf %1717, %1716 : vector<1x1xf32>
    %1719 = vector.broadcast %1718 : vector<1x1xf32> to vector<1x128xf32>
    %1720 = arith.mulf %1708, %1719 : vector<1x128xf32>
    %cst_400 = arith.constant 0.899999976 : f32
    %1721 = vector.broadcast %cst_400 : f32 to vector<1x128xf32>
    %1722 = arith.mulf %1721, %1549 : vector<1x128xf32>
    %1723 = arith.addf %1722, %1720 : vector<1x128xf32>
    %cst_401 = arith.constant 0.00999999977 : f32
    %1724 = vector.broadcast %cst_401 : f32 to vector<1x128xf32>
    %1725 = arith.mulf %1724, %1723 : vector<1x128xf32>
    %1726 = arith.subf %1544, %1725 : vector<1x128xf32>
    %1727 = arith.subf %1567, %1554 : vector<1x128xf32>
    %1728 = arith.mulf %1727, %1727 : vector<1x128xf32>
    %cst_402 = arith.constant dense<0.000000e+00> : vector<1xf32>
    %1729 = vector.multi_reduction <add>, %1728, %cst_402 [1] : vector<1x128xf32> to vector<1xf32>
    %1730 = vector.shape_cast %1729 : vector<1xf32> to vector<1x1xf32>
    %1731 = math.sqrt %1730 : vector<1x1xf32>
    %cst_403 = arith.constant 9.99999974E-5 : f32
    %1732 = vector.broadcast %cst_403 : f32 to vector<1x1xf32>
    %1733 = arith.cmpf olt, %1731, %1732 : vector<1x1xf32>
    %1734 = arith.extui %1733 : vector<1x1xi1> to vector<1x1xi32>
    %1735 = arith.sitofp %1734 : vector<1x1xi32> to vector<1x1xf32>
    %cst_404 = arith.constant 1.000000e+00 : f32
    %1736 = vector.broadcast %cst_404 : f32 to vector<1x1xf32>
    %1737 = arith.subf %1736, %1555 : vector<1x1xf32>
    %1738 = vector.broadcast %1555 : vector<1x1xf32> to vector<8x128xf32>
    %1739 = arith.mulf %1738, %1533 : vector<8x128xf32>
    %1740 = vector.broadcast %1737 : vector<1x1xf32> to vector<8x128xf32>
    %1741 = arith.mulf %1740, %1623 : vector<8x128xf32>
    %1742 = arith.addf %1739, %1741 : vector<8x128xf32>
    %1743 = arith.mulf %1555, %1536 : vector<1x1xf32>
    %1744 = arith.mulf %1737, %1632 : vector<1x1xf32>
    %1745 = arith.addf %1743, %1744 : vector<1x1xf32>
    %1746 = arith.mulf %1555, %1539 : vector<1x1xf32>
    %1747 = arith.mulf %1737, %1640 : vector<1x1xf32>
    %1748 = arith.addf %1746, %1747 : vector<1x1xf32>
    %1749 = vector.broadcast %1555 : vector<1x1xf32> to vector<1x128xf32>
    %1750 = arith.mulf %1749, %1544 : vector<1x128xf32>
    %1751 = vector.broadcast %1737 : vector<1x1xf32> to vector<1x128xf32>
    %1752 = arith.mulf %1751, %1726 : vector<1x128xf32>
    %1753 = arith.addf %1750, %1752 : vector<1x128xf32>
    %1754 = vector.broadcast %1555 : vector<1x1xf32> to vector<1x128xf32>
    %1755 = arith.mulf %1754, %1549 : vector<1x128xf32>
    %1756 = vector.broadcast %1737 : vector<1x1xf32> to vector<1x128xf32>
    %1757 = arith.mulf %1756, %1723 : vector<1x128xf32>
    %1758 = arith.addf %1755, %1757 : vector<1x128xf32>
    %1759 = vector.broadcast %1555 : vector<1x1xf32> to vector<1x128xf32>
    %1760 = arith.mulf %1759, %1554 : vector<1x128xf32>
    %1761 = vector.broadcast %1737 : vector<1x1xf32> to vector<1x128xf32>
    %1762 = arith.mulf %1761, %1567 : vector<1x128xf32>
    %1763 = arith.addf %1760, %1762 : vector<1x128xf32>
    %1764 = arith.maximumf %1555, %1735 : vector<1x1xf32>
    %cst_405 = arith.constant -1.000000e+30 : f32
    %1765 = vector.broadcast %cst_405 : f32 to vector<1x128xf32>
    %1766 = arith.select %3, %1753, %1765 : vector<1x128xi1>, vector<1x128xf32>
    %cst_406 = arith.constant dense<0xFF800000> : vector<1xf32>
    %1767 = vector.multi_reduction <maximumf>, %1766, %cst_406 [1] : vector<1x128xf32> to vector<1xf32>
    %1768 = vector.shape_cast %1767 : vector<1xf32> to vector<1x1xf32>
    %1769 = vector.broadcast %1768 : vector<1x1xf32> to vector<1x128xf32>
    %1770 = arith.subf %1766, %1769 : vector<1x128xf32>
    %1771 = math.exp %1770 : vector<1x128xf32>
    %cst_407 = arith.constant dense<0.000000e+00> : vector<1xf32>
    %1772 = vector.multi_reduction <add>, %1771, %cst_407 [1] : vector<1x128xf32> to vector<1xf32>
    %1773 = vector.shape_cast %1772 : vector<1xf32> to vector<1x1xf32>
    %1774 = tpu.reciprocal %1773 {approx = true} : vector<1x1xf32> -> vector<1x1xf32>
    %1775 = vector.broadcast %1774 : vector<1x1xf32> to vector<1x128xf32>
    %1776 = arith.mulf %1771, %1775 : vector<1x128xf32>
    %1777 = vector.broadcast %1768 : vector<1x1xf32> to vector<1x128xf32>
    %1778 = arith.subf %1766, %1777 : vector<1x128xf32>
    %1779 = math.log %1773 : vector<1x1xf32>
    %1780 = vector.broadcast %1779 : vector<1x1xf32> to vector<1x128xf32>
    %1781 = arith.subf %1778, %1780 : vector<1x128xf32>
    %cst_408 = arith.constant 0.000000e+00 : f32
    %1782 = vector.broadcast %cst_408 : f32 to vector<1x128xf32>
    %1783 = arith.select %3, %1781, %1782 : vector<1x128xi1>, vector<1x128xf32>
    %cst_409 = arith.constant dense<0.000000e+00> : vector<128xf32>
    %1784 = vector.multi_reduction <add>, %45, %cst_409 [0] : vector<8x128xf32> to vector<128xf32>
    %1785 = vector.shape_cast %1784 : vector<128xf32> to vector<1x128xf32>
    %cst_410 = arith.constant 1.000000e+00 : f32
    %1786 = vector.broadcast %cst_410 : f32 to vector<1x128xf32>
    %1787 = arith.select %3, %1785, %1786 : vector<1x128xi1>, vector<1x128xf32>
    %1788 = tpu.reciprocal %1787 {approx = true} : vector<1x128xf32> -> vector<1x128xf32>
    %1789 = vector.broadcast %1788 : vector<1x128xf32> to vector<8x128xf32>
    %1790 = arith.mulf %45, %1789 : vector<8x128xf32>
    %1791 = vector.broadcast %1776 : vector<1x128xf32> to vector<8x128xf32>
    %1792 = arith.mulf %1790, %1791 : vector<8x128xf32>
    %cst_411 = arith.constant dense<0.000000e+00> : vector<8xf32>
    %1793 = vector.multi_reduction <add>, %1792, %cst_411 [1] : vector<8x128xf32> to vector<8xf32>
    %1794 = vector.shape_cast %1793 : vector<8xf32> to vector<8x1xf32>
    %cst_412 = arith.constant 1.000000e+00 : f32
    %1795 = vector.broadcast %cst_412 : f32 to vector<8x1xf32>
    %1796 = arith.select %5, %1794, %1795 : vector<8x1xi1>, vector<8x1xf32>
    %1797 = tpu.reciprocal %1796 {approx = true} : vector<8x1xf32> -> vector<8x1xf32>
    %1798 = vector.broadcast %1797 : vector<8x1xf32> to vector<8x128xf32>
    %1799 = arith.mulf %1792, %1798 : vector<8x128xf32>
    %cst_413 = arith.constant dense<0.000000e+00> : vector<128xf32>
    %1800 = vector.multi_reduction <add>, %1799, %cst_413 [0] : vector<8x128xf32> to vector<128xf32>
    %1801 = vector.shape_cast %1800 : vector<128xf32> to vector<1x128xf32>
    %cst_414 = arith.constant 1.000000e+00 : f32
    %1802 = vector.broadcast %cst_414 : f32 to vector<1x128xf32>
    %1803 = arith.select %3, %1801, %1802 : vector<1x128xi1>, vector<1x128xf32>
    %1804 = tpu.reciprocal %1803 {approx = true} : vector<1x128xf32> -> vector<1x128xf32>
    %1805 = vector.broadcast %1804 : vector<1x128xf32> to vector<8x128xf32>
    %1806 = arith.mulf %1799, %1805 : vector<8x128xf32>
    %1807 = vector.broadcast %1776 : vector<1x128xf32> to vector<8x128xf32>
    %1808 = arith.mulf %1806, %1807 : vector<8x128xf32>
    %cst_415 = arith.constant dense<0.000000e+00> : vector<8xf32>
    %1809 = vector.multi_reduction <add>, %1808, %cst_415 [1] : vector<8x128xf32> to vector<8xf32>
    %1810 = vector.shape_cast %1809 : vector<8xf32> to vector<8x1xf32>
    %cst_416 = arith.constant 1.000000e+00 : f32
    %1811 = vector.broadcast %cst_416 : f32 to vector<8x1xf32>
    %1812 = arith.select %5, %1810, %1811 : vector<8x1xi1>, vector<8x1xf32>
    %1813 = tpu.reciprocal %1812 {approx = true} : vector<8x1xf32> -> vector<8x1xf32>
    %1814 = vector.broadcast %1813 : vector<8x1xf32> to vector<8x128xf32>
    %1815 = arith.mulf %1808, %1814 : vector<8x128xf32>
    %cst_417 = arith.constant dense<0.000000e+00> : vector<128xf32>
    %1816 = vector.multi_reduction <add>, %1815, %cst_417 [0] : vector<8x128xf32> to vector<128xf32>
    %1817 = vector.shape_cast %1816 : vector<128xf32> to vector<1x128xf32>
    %cst_418 = arith.constant 1.000000e+00 : f32
    %1818 = vector.broadcast %cst_418 : f32 to vector<1x128xf32>
    %1819 = arith.select %3, %1817, %1818 : vector<1x128xi1>, vector<1x128xf32>
    %1820 = tpu.reciprocal %1819 {approx = true} : vector<1x128xf32> -> vector<1x128xf32>
    %1821 = vector.broadcast %1820 : vector<1x128xf32> to vector<8x128xf32>
    %1822 = arith.mulf %1815, %1821 : vector<8x128xf32>
    %1823 = vector.broadcast %1776 : vector<1x128xf32> to vector<8x128xf32>
    %1824 = arith.mulf %1822, %1823 : vector<8x128xf32>
    %cst_419 = arith.constant dense<0.000000e+00> : vector<8xf32>
    %1825 = vector.multi_reduction <add>, %1824, %cst_419 [1] : vector<8x128xf32> to vector<8xf32>
    %1826 = vector.shape_cast %1825 : vector<8xf32> to vector<8x1xf32>
    %cst_420 = arith.constant 1.000000e+00 : f32
    %1827 = vector.broadcast %cst_420 : f32 to vector<8x1xf32>
    %1828 = arith.select %5, %1826, %1827 : vector<8x1xi1>, vector<8x1xf32>
    %cst_421 = arith.constant 1.000000e+00 : f32
    %1829 = vector.broadcast %cst_421 : f32 to vector<8x1xf32>
    %1830 = arith.divf %1829, %1828 : vector<8x1xf32>
    %1831 = vector.broadcast %1830 : vector<8x1xf32> to vector<8x128xf32>
    %1832 = arith.mulf %1824, %1831 : vector<8x128xf32>
    %1833 = arith.mulf %1832, %65 : vector<8x128xf32>
    %cst_422 = arith.constant dense<0.000000e+00> : vector<8xf32>
    %1834 = vector.multi_reduction <add>, %1833, %cst_422 [1] : vector<8x128xf32> to vector<8xf32>
    %1835 = vector.shape_cast %1834 : vector<8xf32> to vector<8x1xf32>
    %cst_423 = arith.constant dense<0.000000e+00> : vector<1xf32>
    %1836 = vector.multi_reduction <add>, %1835, %cst_423 [0] : vector<8x1xf32> to vector<1xf32>
    %1837 = vector.shape_cast %1836 : vector<1xf32> to vector<1x1xf32>
    %cst_424 = arith.constant 0.000000e+00 : f32
    %1838 = vector.broadcast %cst_424 : f32 to vector<1x1xf32>
    %1839 = arith.subf %1838, %1837 : vector<1x1xf32>
    %cst_425 = arith.constant 1.250000e-01 : f32
    %1840 = vector.broadcast %cst_425 : f32 to vector<1x1xf32>
    %1841 = arith.mulf %1839, %1840 : vector<1x1xf32>
    %1842 = arith.subf %87, %1783 : vector<1x128xf32>
    %1843 = arith.mulf %80, %1842 : vector<1x128xf32>
    %cst_426 = arith.constant 0.000000e+00 : f32
    %1844 = vector.broadcast %cst_426 : f32 to vector<1x128xf32>
    %1845 = arith.select %3, %1843, %1844 : vector<1x128xi1>, vector<1x128xf32>
    %cst_427 = arith.constant dense<0.000000e+00> : vector<1xf32>
    %1846 = vector.multi_reduction <add>, %1845, %cst_427 [1] : vector<1x128xf32> to vector<1xf32>
    %1847 = vector.shape_cast %1846 : vector<1xf32> to vector<1x1xf32>
    %cst_428 = arith.constant 0.333333343 : f32
    %1848 = vector.broadcast %cst_428 : f32 to vector<1x1xf32>
    %1849 = arith.mulf %1847, %1848 : vector<1x1xf32>
    %cst_429 = arith.constant -1.250000e-01 : f32
    %1850 = vector.broadcast %cst_429 : f32 to vector<8x128xf32>
    %1851 = arith.mulf %65, %1850 : vector<8x128xf32>
    %cst_430 = arith.constant 0.000000e+00 : f32
    %1852 = vector.broadcast %cst_430 : f32 to vector<1x128xf32>
    %1853 = arith.mulf %1851, %1832 : vector<8x128xf32>
    %cst_431 = arith.constant dense<0.000000e+00> : vector<8xf32>
    %1854 = vector.multi_reduction <add>, %1853, %cst_431 [1] : vector<8x128xf32> to vector<8xf32>
    %1855 = vector.shape_cast %1854 : vector<8xf32> to vector<8x1xf32>
    %1856 = vector.broadcast %1855 : vector<8x1xf32> to vector<8x128xf32>
    %1857 = arith.subf %1851, %1856 : vector<8x128xf32>
    %1858 = vector.broadcast %1830 : vector<8x1xf32> to vector<8x128xf32>
    %1859 = arith.mulf %1857, %1858 : vector<8x128xf32>
    %1860 = arith.mulf %1859, %1822 : vector<8x128xf32>
    %cst_432 = arith.constant dense<0.000000e+00> : vector<128xf32>
    %1861 = vector.multi_reduction <add>, %1860, %cst_432 [0] : vector<8x128xf32> to vector<128xf32>
    %1862 = vector.shape_cast %1861 : vector<128xf32> to vector<1x128xf32>
    %1863 = arith.addf %1852, %1862 : vector<1x128xf32>
    %1864 = vector.broadcast %1776 : vector<1x128xf32> to vector<8x128xf32>
    %1865 = arith.mulf %1859, %1864 : vector<8x128xf32>
    %1866 = arith.mulf %1865, %1822 : vector<8x128xf32>
    %cst_433 = arith.constant dense<0.000000e+00> : vector<128xf32>
    %1867 = vector.multi_reduction <add>, %1866, %cst_433 [0] : vector<8x128xf32> to vector<128xf32>
    %1868 = vector.shape_cast %1867 : vector<128xf32> to vector<1x128xf32>
    %1869 = vector.broadcast %1868 : vector<1x128xf32> to vector<8x128xf32>
    %1870 = arith.subf %1865, %1869 : vector<8x128xf32>
    %1871 = vector.broadcast %1820 : vector<1x128xf32> to vector<8x128xf32>
    %1872 = arith.mulf %1870, %1871 : vector<8x128xf32>
    %1873 = arith.mulf %1872, %1815 : vector<8x128xf32>
    %cst_434 = arith.constant dense<0.000000e+00> : vector<8xf32>
    %1874 = vector.multi_reduction <add>, %1873, %cst_434 [1] : vector<8x128xf32> to vector<8xf32>
    %1875 = vector.shape_cast %1874 : vector<8xf32> to vector<8x1xf32>
    %1876 = vector.broadcast %1875 : vector<8x1xf32> to vector<8x128xf32>
    %1877 = arith.subf %1872, %1876 : vector<8x128xf32>
    %1878 = vector.broadcast %1813 : vector<8x1xf32> to vector<8x128xf32>
    %1879 = arith.mulf %1877, %1878 : vector<8x128xf32>
    %1880 = arith.mulf %1879, %1806 : vector<8x128xf32>
    %cst_435 = arith.constant dense<0.000000e+00> : vector<128xf32>
    %1881 = vector.multi_reduction <add>, %1880, %cst_435 [0] : vector<8x128xf32> to vector<128xf32>
    %1882 = vector.shape_cast %1881 : vector<128xf32> to vector<1x128xf32>
    %1883 = arith.addf %1863, %1882 : vector<1x128xf32>
    %1884 = vector.broadcast %1776 : vector<1x128xf32> to vector<8x128xf32>
    %1885 = arith.mulf %1879, %1884 : vector<8x128xf32>
    %1886 = arith.mulf %1885, %1806 : vector<8x128xf32>
    %cst_436 = arith.constant dense<0.000000e+00> : vector<128xf32>
    %1887 = vector.multi_reduction <add>, %1886, %cst_436 [0] : vector<8x128xf32> to vector<128xf32>
    %1888 = vector.shape_cast %1887 : vector<128xf32> to vector<1x128xf32>
    %1889 = vector.broadcast %1888 : vector<1x128xf32> to vector<8x128xf32>
    %1890 = arith.subf %1885, %1889 : vector<8x128xf32>
    %1891 = vector.broadcast %1804 : vector<1x128xf32> to vector<8x128xf32>
    %1892 = arith.mulf %1890, %1891 : vector<8x128xf32>
    %1893 = arith.mulf %1892, %1799 : vector<8x128xf32>
    %cst_437 = arith.constant dense<0.000000e+00> : vector<8xf32>
    %1894 = vector.multi_reduction <add>, %1893, %cst_437 [1] : vector<8x128xf32> to vector<8xf32>
    %1895 = vector.shape_cast %1894 : vector<8xf32> to vector<8x1xf32>
    %1896 = vector.broadcast %1895 : vector<8x1xf32> to vector<8x128xf32>
    %1897 = arith.subf %1892, %1896 : vector<8x128xf32>
    %1898 = vector.broadcast %1797 : vector<8x1xf32> to vector<8x128xf32>
    %1899 = arith.mulf %1897, %1898 : vector<8x128xf32>
    %1900 = arith.mulf %1899, %1790 : vector<8x128xf32>
    %cst_438 = arith.constant dense<0.000000e+00> : vector<128xf32>
    %1901 = vector.multi_reduction <add>, %1900, %cst_438 [0] : vector<8x128xf32> to vector<128xf32>
    %1902 = vector.shape_cast %1901 : vector<128xf32> to vector<1x128xf32>
    %1903 = arith.addf %1883, %1902 : vector<1x128xf32>
    %1904 = arith.mulf %1776, %1903 : vector<1x128xf32>
    %cst_439 = arith.constant dense<0.000000e+00> : vector<1xf32>
    %1905 = vector.multi_reduction <add>, %1904, %cst_439 [1] : vector<1x128xf32> to vector<1xf32>
    %1906 = vector.shape_cast %1905 : vector<1xf32> to vector<1x1xf32>
    %1907 = vector.broadcast %1906 : vector<1x1xf32> to vector<1x128xf32>
    %1908 = arith.subf %1903, %1907 : vector<1x128xf32>
    %1909 = arith.mulf %1776, %1908 : vector<1x128xf32>
    %1910 = arith.subf %1776, %80 : vector<1x128xf32>
    %cst_440 = arith.constant 5.000000e-02 : f32
    %1911 = vector.broadcast %cst_440 : f32 to vector<1x128xf32>
    %1912 = arith.mulf %1911, %1910 : vector<1x128xf32>
    %cst_441 = arith.constant 0.333333343 : f32
    %1913 = vector.broadcast %cst_441 : f32 to vector<1x128xf32>
    %1914 = arith.mulf %1912, %1913 : vector<1x128xf32>
    %1915 = arith.addf %1909, %1914 : vector<1x128xf32>
    %cst_442 = arith.constant 0.000000e+00 : f32
    %1916 = vector.broadcast %cst_442 : f32 to vector<1x128xf32>
    %1917 = arith.select %3, %1915, %1916 : vector<1x128xi1>, vector<1x128xf32>
    %1918 = arith.mulf %1917, %1917 : vector<1x128xf32>
    %cst_443 = arith.constant dense<0.000000e+00> : vector<1xf32>
    %1919 = vector.multi_reduction <add>, %1918, %cst_443 [1] : vector<1x128xf32> to vector<1xf32>
    %1920 = vector.shape_cast %1919 : vector<1xf32> to vector<1x1xf32>
    %1921 = math.sqrt %1920 : vector<1x1xf32>
    %cst_444 = arith.constant 9.99999997E-7 : f32
    %1922 = vector.broadcast %cst_444 : f32 to vector<1x1xf32>
    %1923 = arith.addf %1921, %1922 : vector<1x1xf32>
    %cst_445 = arith.constant 1.000000e+00 : f32
    %1924 = vector.broadcast %cst_445 : f32 to vector<1x1xf32>
    %1925 = arith.divf %1924, %1923 : vector<1x1xf32>
    %cst_446 = arith.constant 1.000000e+00 : f32
    %1926 = vector.broadcast %cst_446 : f32 to vector<1x1xf32>
    %1927 = arith.minimumf %1926, %1925 : vector<1x1xf32>
    %1928 = vector.broadcast %1927 : vector<1x1xf32> to vector<1x128xf32>
    %1929 = arith.mulf %1917, %1928 : vector<1x128xf32>
    %cst_447 = arith.constant 0.899999976 : f32
    %1930 = vector.broadcast %cst_447 : f32 to vector<1x128xf32>
    %1931 = arith.mulf %1930, %1758 : vector<1x128xf32>
    %1932 = arith.addf %1931, %1929 : vector<1x128xf32>
    %cst_448 = arith.constant 0.00999999977 : f32
    %1933 = vector.broadcast %cst_448 : f32 to vector<1x128xf32>
    %1934 = arith.mulf %1933, %1932 : vector<1x128xf32>
    %1935 = arith.subf %1753, %1934 : vector<1x128xf32>
    %1936 = arith.subf %1776, %1763 : vector<1x128xf32>
    %1937 = arith.mulf %1936, %1936 : vector<1x128xf32>
    %cst_449 = arith.constant dense<0.000000e+00> : vector<1xf32>
    %1938 = vector.multi_reduction <add>, %1937, %cst_449 [1] : vector<1x128xf32> to vector<1xf32>
    %1939 = vector.shape_cast %1938 : vector<1xf32> to vector<1x1xf32>
    %1940 = math.sqrt %1939 : vector<1x1xf32>
    %cst_450 = arith.constant 9.99999974E-5 : f32
    %1941 = vector.broadcast %cst_450 : f32 to vector<1x1xf32>
    %1942 = arith.cmpf olt, %1940, %1941 : vector<1x1xf32>
    %1943 = arith.extui %1942 : vector<1x1xi1> to vector<1x1xi32>
    %1944 = arith.sitofp %1943 : vector<1x1xi32> to vector<1x1xf32>
    %cst_451 = arith.constant 1.000000e+00 : f32
    %1945 = vector.broadcast %cst_451 : f32 to vector<1x1xf32>
    %1946 = arith.subf %1945, %1764 : vector<1x1xf32>
    %1947 = vector.broadcast %1764 : vector<1x1xf32> to vector<8x128xf32>
    %1948 = arith.mulf %1947, %1742 : vector<8x128xf32>
    %1949 = vector.broadcast %1946 : vector<1x1xf32> to vector<8x128xf32>
    %1950 = arith.mulf %1949, %1832 : vector<8x128xf32>
    %1951 = arith.addf %1948, %1950 : vector<8x128xf32>
    %1952 = arith.mulf %1764, %1745 : vector<1x1xf32>
    %1953 = arith.mulf %1946, %1841 : vector<1x1xf32>
    %1954 = arith.addf %1952, %1953 : vector<1x1xf32>
    %1955 = arith.mulf %1764, %1748 : vector<1x1xf32>
    %1956 = arith.mulf %1946, %1849 : vector<1x1xf32>
    %1957 = arith.addf %1955, %1956 : vector<1x1xf32>
    %1958 = vector.broadcast %1764 : vector<1x1xf32> to vector<1x128xf32>
    %1959 = arith.mulf %1958, %1753 : vector<1x128xf32>
    %1960 = vector.broadcast %1946 : vector<1x1xf32> to vector<1x128xf32>
    %1961 = arith.mulf %1960, %1935 : vector<1x128xf32>
    %1962 = arith.addf %1959, %1961 : vector<1x128xf32>
    %1963 = vector.broadcast %1764 : vector<1x1xf32> to vector<1x128xf32>
    %1964 = arith.mulf %1963, %1758 : vector<1x128xf32>
    %1965 = vector.broadcast %1946 : vector<1x1xf32> to vector<1x128xf32>
    %1966 = arith.mulf %1965, %1932 : vector<1x128xf32>
    %1967 = arith.addf %1964, %1966 : vector<1x128xf32>
    %1968 = arith.maximumf %1764, %1944 : vector<1x1xf32>
    %cst_452 = arith.constant -1.000000e+30 : f32
    %1969 = vector.broadcast %cst_452 : f32 to vector<1x128xf32>
    %1970 = arith.select %3, %1962, %1969 : vector<1x128xi1>, vector<1x128xf32>
    %cst_453 = arith.constant dense<0xFF800000> : vector<1xf32>
    %1971 = vector.multi_reduction <maximumf>, %1970, %cst_453 [1] : vector<1x128xf32> to vector<1xf32>
    %1972 = vector.shape_cast %1971 : vector<1xf32> to vector<1x1xf32>
    %1973 = vector.broadcast %1972 : vector<1x1xf32> to vector<1x128xf32>
    %1974 = arith.subf %1970, %1973 : vector<1x128xf32>
    %1975 = math.exp %1974 : vector<1x128xf32>
    %cst_454 = arith.constant dense<0.000000e+00> : vector<1xf32>
    %1976 = vector.multi_reduction <add>, %1975, %cst_454 [1] : vector<1x128xf32> to vector<1xf32>
    %1977 = vector.shape_cast %1976 : vector<1xf32> to vector<1x1xf32>
    %1978 = tpu.reciprocal %1977 {approx = true} : vector<1x1xf32> -> vector<1x1xf32>
    %1979 = vector.broadcast %1978 : vector<1x1xf32> to vector<1x128xf32>
    %1980 = arith.mulf %1975, %1979 : vector<1x128xf32>
    %1981 = vector.broadcast %1972 : vector<1x1xf32> to vector<1x128xf32>
    %1982 = arith.subf %1970, %1981 : vector<1x128xf32>
    %1983 = math.log %1977 : vector<1x1xf32>
    %1984 = vector.broadcast %1983 : vector<1x1xf32> to vector<1x128xf32>
    %1985 = arith.subf %1982, %1984 : vector<1x128xf32>
    %cst_455 = arith.constant 0.000000e+00 : f32
    %1986 = vector.broadcast %cst_455 : f32 to vector<1x128xf32>
    %1987 = arith.select %3, %1985, %1986 : vector<1x128xi1>, vector<1x128xf32>
    %cst_456 = arith.constant dense<0.000000e+00> : vector<128xf32>
    %1988 = vector.multi_reduction <add>, %45, %cst_456 [0] : vector<8x128xf32> to vector<128xf32>
    %1989 = vector.shape_cast %1988 : vector<128xf32> to vector<1x128xf32>
    %cst_457 = arith.constant 1.000000e+00 : f32
    %1990 = vector.broadcast %cst_457 : f32 to vector<1x128xf32>
    %1991 = arith.select %3, %1989, %1990 : vector<1x128xi1>, vector<1x128xf32>
    %1992 = tpu.reciprocal %1991 {approx = true} : vector<1x128xf32> -> vector<1x128xf32>
    %1993 = vector.broadcast %1992 : vector<1x128xf32> to vector<8x128xf32>
    %1994 = arith.mulf %45, %1993 : vector<8x128xf32>
    %1995 = vector.broadcast %1980 : vector<1x128xf32> to vector<8x128xf32>
    %1996 = arith.mulf %1994, %1995 : vector<8x128xf32>
    %cst_458 = arith.constant dense<0.000000e+00> : vector<8xf32>
    %1997 = vector.multi_reduction <add>, %1996, %cst_458 [1] : vector<8x128xf32> to vector<8xf32>
    %1998 = vector.shape_cast %1997 : vector<8xf32> to vector<8x1xf32>
    %cst_459 = arith.constant 1.000000e+00 : f32
    %1999 = vector.broadcast %cst_459 : f32 to vector<8x1xf32>
    %2000 = arith.select %5, %1998, %1999 : vector<8x1xi1>, vector<8x1xf32>
    %2001 = tpu.reciprocal %2000 {approx = true} : vector<8x1xf32> -> vector<8x1xf32>
    %2002 = vector.broadcast %2001 : vector<8x1xf32> to vector<8x128xf32>
    %2003 = arith.mulf %1996, %2002 : vector<8x128xf32>
    %cst_460 = arith.constant dense<0.000000e+00> : vector<128xf32>
    %2004 = vector.multi_reduction <add>, %2003, %cst_460 [0] : vector<8x128xf32> to vector<128xf32>
    %2005 = vector.shape_cast %2004 : vector<128xf32> to vector<1x128xf32>
    %cst_461 = arith.constant 1.000000e+00 : f32
    %2006 = vector.broadcast %cst_461 : f32 to vector<1x128xf32>
    %2007 = arith.select %3, %2005, %2006 : vector<1x128xi1>, vector<1x128xf32>
    %2008 = tpu.reciprocal %2007 {approx = true} : vector<1x128xf32> -> vector<1x128xf32>
    %2009 = vector.broadcast %2008 : vector<1x128xf32> to vector<8x128xf32>
    %2010 = arith.mulf %2003, %2009 : vector<8x128xf32>
    %2011 = vector.broadcast %1980 : vector<1x128xf32> to vector<8x128xf32>
    %2012 = arith.mulf %2010, %2011 : vector<8x128xf32>
    %cst_462 = arith.constant dense<0.000000e+00> : vector<8xf32>
    %2013 = vector.multi_reduction <add>, %2012, %cst_462 [1] : vector<8x128xf32> to vector<8xf32>
    %2014 = vector.shape_cast %2013 : vector<8xf32> to vector<8x1xf32>
    %cst_463 = arith.constant 1.000000e+00 : f32
    %2015 = vector.broadcast %cst_463 : f32 to vector<8x1xf32>
    %2016 = arith.select %5, %2014, %2015 : vector<8x1xi1>, vector<8x1xf32>
    %2017 = tpu.reciprocal %2016 {approx = true} : vector<8x1xf32> -> vector<8x1xf32>
    %2018 = vector.broadcast %2017 : vector<8x1xf32> to vector<8x128xf32>
    %2019 = arith.mulf %2012, %2018 : vector<8x128xf32>
    %cst_464 = arith.constant dense<0.000000e+00> : vector<128xf32>
    %2020 = vector.multi_reduction <add>, %2019, %cst_464 [0] : vector<8x128xf32> to vector<128xf32>
    %2021 = vector.shape_cast %2020 : vector<128xf32> to vector<1x128xf32>
    %cst_465 = arith.constant 1.000000e+00 : f32
    %2022 = vector.broadcast %cst_465 : f32 to vector<1x128xf32>
    %2023 = arith.select %3, %2021, %2022 : vector<1x128xi1>, vector<1x128xf32>
    %2024 = tpu.reciprocal %2023 {approx = true} : vector<1x128xf32> -> vector<1x128xf32>
    %2025 = vector.broadcast %2024 : vector<1x128xf32> to vector<8x128xf32>
    %2026 = arith.mulf %2019, %2025 : vector<8x128xf32>
    %2027 = vector.broadcast %1980 : vector<1x128xf32> to vector<8x128xf32>
    %2028 = arith.mulf %2026, %2027 : vector<8x128xf32>
    %cst_466 = arith.constant dense<0.000000e+00> : vector<8xf32>
    %2029 = vector.multi_reduction <add>, %2028, %cst_466 [1] : vector<8x128xf32> to vector<8xf32>
    %2030 = vector.shape_cast %2029 : vector<8xf32> to vector<8x1xf32>
    %cst_467 = arith.constant 1.000000e+00 : f32
    %2031 = vector.broadcast %cst_467 : f32 to vector<8x1xf32>
    %2032 = arith.select %5, %2030, %2031 : vector<8x1xi1>, vector<8x1xf32>
    %cst_468 = arith.constant 1.000000e+00 : f32
    %2033 = vector.broadcast %cst_468 : f32 to vector<8x1xf32>
    %2034 = arith.divf %2033, %2032 : vector<8x1xf32>
    %2035 = vector.broadcast %2034 : vector<8x1xf32> to vector<8x128xf32>
    %2036 = arith.mulf %2028, %2035 : vector<8x128xf32>
    %2037 = arith.mulf %2036, %65 : vector<8x128xf32>
    %cst_469 = arith.constant dense<0.000000e+00> : vector<8xf32>
    %2038 = vector.multi_reduction <add>, %2037, %cst_469 [1] : vector<8x128xf32> to vector<8xf32>
    %2039 = vector.shape_cast %2038 : vector<8xf32> to vector<8x1xf32>
    %cst_470 = arith.constant dense<0.000000e+00> : vector<1xf32>
    %2040 = vector.multi_reduction <add>, %2039, %cst_470 [0] : vector<8x1xf32> to vector<1xf32>
    %2041 = vector.shape_cast %2040 : vector<1xf32> to vector<1x1xf32>
    %cst_471 = arith.constant 0.000000e+00 : f32
    %2042 = vector.broadcast %cst_471 : f32 to vector<1x1xf32>
    %2043 = arith.subf %2042, %2041 : vector<1x1xf32>
    %cst_472 = arith.constant 1.250000e-01 : f32
    %2044 = vector.broadcast %cst_472 : f32 to vector<1x1xf32>
    %2045 = arith.mulf %2043, %2044 : vector<1x1xf32>
    %2046 = arith.subf %87, %1987 : vector<1x128xf32>
    %2047 = arith.mulf %80, %2046 : vector<1x128xf32>
    %cst_473 = arith.constant 0.000000e+00 : f32
    %2048 = vector.broadcast %cst_473 : f32 to vector<1x128xf32>
    %2049 = arith.select %3, %2047, %2048 : vector<1x128xi1>, vector<1x128xf32>
    %cst_474 = arith.constant dense<0.000000e+00> : vector<1xf32>
    %2050 = vector.multi_reduction <add>, %2049, %cst_474 [1] : vector<1x128xf32> to vector<1xf32>
    %2051 = vector.shape_cast %2050 : vector<1xf32> to vector<1x1xf32>
    %cst_475 = arith.constant 0.333333343 : f32
    %2052 = vector.broadcast %cst_475 : f32 to vector<1x1xf32>
    %2053 = arith.mulf %2051, %2052 : vector<1x1xf32>
    %cst_476 = arith.constant -1.250000e-01 : f32
    %2054 = vector.broadcast %cst_476 : f32 to vector<8x128xf32>
    %2055 = arith.mulf %65, %2054 : vector<8x128xf32>
    %cst_477 = arith.constant 0.000000e+00 : f32
    %2056 = vector.broadcast %cst_477 : f32 to vector<1x128xf32>
    %2057 = arith.mulf %2055, %2036 : vector<8x128xf32>
    %cst_478 = arith.constant dense<0.000000e+00> : vector<8xf32>
    %2058 = vector.multi_reduction <add>, %2057, %cst_478 [1] : vector<8x128xf32> to vector<8xf32>
    %2059 = vector.shape_cast %2058 : vector<8xf32> to vector<8x1xf32>
    %2060 = vector.broadcast %2059 : vector<8x1xf32> to vector<8x128xf32>
    %2061 = arith.subf %2055, %2060 : vector<8x128xf32>
    %2062 = vector.broadcast %2034 : vector<8x1xf32> to vector<8x128xf32>
    %2063 = arith.mulf %2061, %2062 : vector<8x128xf32>
    %2064 = arith.mulf %2063, %2026 : vector<8x128xf32>
    %cst_479 = arith.constant dense<0.000000e+00> : vector<128xf32>
    %2065 = vector.multi_reduction <add>, %2064, %cst_479 [0] : vector<8x128xf32> to vector<128xf32>
    %2066 = vector.shape_cast %2065 : vector<128xf32> to vector<1x128xf32>
    %2067 = arith.addf %2056, %2066 : vector<1x128xf32>
    %2068 = vector.broadcast %1980 : vector<1x128xf32> to vector<8x128xf32>
    %2069 = arith.mulf %2063, %2068 : vector<8x128xf32>
    %2070 = arith.mulf %2069, %2026 : vector<8x128xf32>
    %cst_480 = arith.constant dense<0.000000e+00> : vector<128xf32>
    %2071 = vector.multi_reduction <add>, %2070, %cst_480 [0] : vector<8x128xf32> to vector<128xf32>
    %2072 = vector.shape_cast %2071 : vector<128xf32> to vector<1x128xf32>
    %2073 = vector.broadcast %2072 : vector<1x128xf32> to vector<8x128xf32>
    %2074 = arith.subf %2069, %2073 : vector<8x128xf32>
    %2075 = vector.broadcast %2024 : vector<1x128xf32> to vector<8x128xf32>
    %2076 = arith.mulf %2074, %2075 : vector<8x128xf32>
    %2077 = arith.mulf %2076, %2019 : vector<8x128xf32>
    %cst_481 = arith.constant dense<0.000000e+00> : vector<8xf32>
    %2078 = vector.multi_reduction <add>, %2077, %cst_481 [1] : vector<8x128xf32> to vector<8xf32>
    %2079 = vector.shape_cast %2078 : vector<8xf32> to vector<8x1xf32>
    %2080 = vector.broadcast %2079 : vector<8x1xf32> to vector<8x128xf32>
    %2081 = arith.subf %2076, %2080 : vector<8x128xf32>
    %2082 = vector.broadcast %2017 : vector<8x1xf32> to vector<8x128xf32>
    %2083 = arith.mulf %2081, %2082 : vector<8x128xf32>
    %2084 = arith.mulf %2083, %2010 : vector<8x128xf32>
    %cst_482 = arith.constant dense<0.000000e+00> : vector<128xf32>
    %2085 = vector.multi_reduction <add>, %2084, %cst_482 [0] : vector<8x128xf32> to vector<128xf32>
    %2086 = vector.shape_cast %2085 : vector<128xf32> to vector<1x128xf32>
    %2087 = arith.addf %2067, %2086 : vector<1x128xf32>
    %2088 = vector.broadcast %1980 : vector<1x128xf32> to vector<8x128xf32>
    %2089 = arith.mulf %2083, %2088 : vector<8x128xf32>
    %2090 = arith.mulf %2089, %2010 : vector<8x128xf32>
    %cst_483 = arith.constant dense<0.000000e+00> : vector<128xf32>
    %2091 = vector.multi_reduction <add>, %2090, %cst_483 [0] : vector<8x128xf32> to vector<128xf32>
    %2092 = vector.shape_cast %2091 : vector<128xf32> to vector<1x128xf32>
    %2093 = vector.broadcast %2092 : vector<1x128xf32> to vector<8x128xf32>
    %2094 = arith.subf %2089, %2093 : vector<8x128xf32>
    %2095 = vector.broadcast %2008 : vector<1x128xf32> to vector<8x128xf32>
    %2096 = arith.mulf %2094, %2095 : vector<8x128xf32>
    %2097 = arith.mulf %2096, %2003 : vector<8x128xf32>
    %cst_484 = arith.constant dense<0.000000e+00> : vector<8xf32>
    %2098 = vector.multi_reduction <add>, %2097, %cst_484 [1] : vector<8x128xf32> to vector<8xf32>
    %2099 = vector.shape_cast %2098 : vector<8xf32> to vector<8x1xf32>
    %2100 = vector.broadcast %2099 : vector<8x1xf32> to vector<8x128xf32>
    %2101 = arith.subf %2096, %2100 : vector<8x128xf32>
    %2102 = vector.broadcast %2001 : vector<8x1xf32> to vector<8x128xf32>
    %2103 = arith.mulf %2101, %2102 : vector<8x128xf32>
    %2104 = arith.mulf %2103, %1994 : vector<8x128xf32>
    %cst_485 = arith.constant dense<0.000000e+00> : vector<128xf32>
    %2105 = vector.multi_reduction <add>, %2104, %cst_485 [0] : vector<8x128xf32> to vector<128xf32>
    %2106 = vector.shape_cast %2105 : vector<128xf32> to vector<1x128xf32>
    %2107 = arith.addf %2087, %2106 : vector<1x128xf32>
    %2108 = arith.mulf %1980, %2107 : vector<1x128xf32>
    %cst_486 = arith.constant dense<0.000000e+00> : vector<1xf32>
    %2109 = vector.multi_reduction <add>, %2108, %cst_486 [1] : vector<1x128xf32> to vector<1xf32>
    %2110 = vector.shape_cast %2109 : vector<1xf32> to vector<1x1xf32>
    %2111 = vector.broadcast %2110 : vector<1x1xf32> to vector<1x128xf32>
    %2112 = arith.subf %2107, %2111 : vector<1x128xf32>
    %2113 = arith.mulf %1980, %2112 : vector<1x128xf32>
    %2114 = arith.subf %1980, %80 : vector<1x128xf32>
    %cst_487 = arith.constant 5.000000e-02 : f32
    %2115 = vector.broadcast %cst_487 : f32 to vector<1x128xf32>
    %2116 = arith.mulf %2115, %2114 : vector<1x128xf32>
    %cst_488 = arith.constant 0.333333343 : f32
    %2117 = vector.broadcast %cst_488 : f32 to vector<1x128xf32>
    %2118 = arith.mulf %2116, %2117 : vector<1x128xf32>
    %2119 = arith.addf %2113, %2118 : vector<1x128xf32>
    %cst_489 = arith.constant 0.000000e+00 : f32
    %2120 = vector.broadcast %cst_489 : f32 to vector<1x128xf32>
    %2121 = arith.select %3, %2119, %2120 : vector<1x128xi1>, vector<1x128xf32>
    %2122 = arith.mulf %2121, %2121 : vector<1x128xf32>
    %cst_490 = arith.constant dense<0.000000e+00> : vector<1xf32>
    %2123 = vector.multi_reduction <add>, %2122, %cst_490 [1] : vector<1x128xf32> to vector<1xf32>
    %2124 = vector.shape_cast %2123 : vector<1xf32> to vector<1x1xf32>
    %2125 = math.sqrt %2124 : vector<1x1xf32>
    %cst_491 = arith.constant 9.99999997E-7 : f32
    %2126 = vector.broadcast %cst_491 : f32 to vector<1x1xf32>
    %2127 = arith.addf %2125, %2126 : vector<1x1xf32>
    %cst_492 = arith.constant 1.000000e+00 : f32
    %2128 = vector.broadcast %cst_492 : f32 to vector<1x1xf32>
    %2129 = arith.divf %2128, %2127 : vector<1x1xf32>
    %cst_493 = arith.constant 1.000000e+00 : f32
    %2130 = vector.broadcast %cst_493 : f32 to vector<1x1xf32>
    %2131 = arith.minimumf %2130, %2129 : vector<1x1xf32>
    %2132 = vector.broadcast %2131 : vector<1x1xf32> to vector<1x128xf32>
    %2133 = arith.mulf %2121, %2132 : vector<1x128xf32>
    %cst_494 = arith.constant 0.899999976 : f32
    %2134 = vector.broadcast %cst_494 : f32 to vector<1x128xf32>
    %2135 = arith.mulf %2134, %1967 : vector<1x128xf32>
    %2136 = arith.addf %2135, %2133 : vector<1x128xf32>
    %cst_495 = arith.constant 0.00999999977 : f32
    %2137 = vector.broadcast %cst_495 : f32 to vector<1x128xf32>
    %2138 = arith.mulf %2137, %2136 : vector<1x128xf32>
    %2139 = arith.subf %1962, %2138 : vector<1x128xf32>
    %cst_496 = arith.constant 1.000000e+00 : f32
    %2140 = vector.broadcast %cst_496 : f32 to vector<1x1xf32>
    %2141 = arith.subf %2140, %1968 : vector<1x1xf32>
    %2142 = vector.broadcast %1968 : vector<1x1xf32> to vector<8x128xf32>
    %2143 = arith.mulf %2142, %1951 : vector<8x128xf32>
    %2144 = vector.broadcast %2141 : vector<1x1xf32> to vector<8x128xf32>
    %2145 = arith.mulf %2144, %2036 : vector<8x128xf32>
    %2146 = arith.addf %2143, %2145 : vector<8x128xf32>
    %2147 = arith.mulf %1968, %1954 : vector<1x1xf32>
    %2148 = arith.mulf %2141, %2045 : vector<1x1xf32>
    %2149 = arith.addf %2147, %2148 : vector<1x1xf32>
    %2150 = arith.mulf %1968, %1957 : vector<1x1xf32>
    %2151 = arith.mulf %2141, %2053 : vector<1x1xf32>
    %2152 = arith.addf %2150, %2151 : vector<1x1xf32>
    %2153 = vector.broadcast %1968 : vector<1x1xf32> to vector<1x128xf32>
    %2154 = arith.mulf %2153, %1962 : vector<1x128xf32>
    %2155 = vector.broadcast %2141 : vector<1x1xf32> to vector<1x128xf32>
    %2156 = arith.mulf %2155, %2139 : vector<1x128xf32>
    %2157 = arith.addf %2154, %2156 : vector<1x128xf32>
    %2158 = vector.broadcast %1968 : vector<1x1xf32> to vector<1x128xf32>
    %2159 = arith.mulf %2158, %1967 : vector<1x128xf32>
    %2160 = vector.broadcast %2141 : vector<1x1xf32> to vector<1x128xf32>
    %2161 = arith.mulf %2160, %2136 : vector<1x128xf32>
    %2162 = arith.addf %2159, %2161 : vector<1x128xf32>
    %c0_497 = arith.constant 0 : index
    %c0_498 = arith.constant 0 : index
    %2163 = vector.load %arg4[%c0_497, %c0_498] : memref<8x128xf32, #tpu.memory_space<vmem>>, vector<8x128xf32>
    tpu.vector_store %arg4[%c0_497, %c0_498], %2146 {strides = array<i32>} : memref<8x128xf32, #tpu.memory_space<vmem>>, vector<8x128xf32>,
    %c0_i32 = arith.constant 0 : i32
    %2164 = vector.broadcast %c0_i32 : i32 to vector<1x128xi32>
    %2165 = arith.cmpi eq, %0, %2164 : vector<1x128xi32>
    %cst_499 = arith.constant 0.000000e+00 : f32
    %2166 = vector.shape_cast %2149 : vector<1x1xf32> to vector<1x1xf32>
    %2167 = vector.broadcast %2166 : vector<1x1xf32> to vector<1x128xf32>
    %2168 = vector.broadcast %cst_499 : f32 to vector<1x128xf32>
    %2169 = arith.select %2165, %2167, %2168 : vector<1x128xi1>, vector<1x128xf32>
    %c1_i32 = arith.constant 1 : i32
    %2170 = vector.broadcast %c1_i32 : i32 to vector<1x128xi32>
    %2171 = arith.cmpi eq, %0, %2170 : vector<1x128xi32>
    %cst_500 = arith.constant 0.000000e+00 : f32
    %2172 = vector.shape_cast %2152 : vector<1x1xf32> to vector<1x1xf32>
    %2173 = vector.broadcast %2172 : vector<1x1xf32> to vector<1x128xf32>
    %2174 = vector.broadcast %cst_500 : f32 to vector<1x128xf32>
    %2175 = arith.select %2171, %2173, %2174 : vector<1x128xi1>, vector<1x128xf32>
    %2176 = arith.addf %2169, %2175 : vector<1x128xf32>
    %2177 = tpu.iota {dimensions = array<i32: 0>} : vector<8x128xi32>
    %c0_i32_501 = arith.constant 0 : i32
    %2178 = vector.broadcast %c0_i32_501 : i32 to vector<8x128xi32>
    %2179 = arith.cmpi eq, %2177, %2178 : vector<8x128xi32>
    %c1_i32_502 = arith.constant 1 : i32
    %2180 = vector.broadcast %c1_i32_502 : i32 to vector<8x128xi32>
    %2181 = arith.cmpi eq, %2177, %2180 : vector<8x128xi32>
    %c2_i32 = arith.constant 2 : i32
    %2182 = vector.broadcast %c2_i32 : i32 to vector<8x128xi32>
    %2183 = arith.cmpi eq, %2177, %2182 : vector<8x128xi32>
    %cst_503 = arith.constant 0.000000e+00 : f32
    %2184 = vector.shape_cast %2176 : vector<1x128xf32> to vector<1x128xf32>
    %2185 = vector.broadcast %2184 : vector<1x128xf32> to vector<8x128xf32>
    %2186 = vector.broadcast %cst_503 : f32 to vector<8x128xf32>
    %2187 = arith.select %2183, %2185, %2186 : vector<8x128xi1>, vector<8x128xf32>
    %2188 = vector.shape_cast %2162 : vector<1x128xf32> to vector<1x128xf32>
    %2189 = vector.broadcast %2188 : vector<1x128xf32> to vector<8x128xf32>
    %2190 = arith.select %2181, %2189, %2187 : vector<8x128xi1>, vector<8x128xf32>
    %2191 = vector.shape_cast %2157 : vector<1x128xf32> to vector<1x128xf32>
    %2192 = vector.broadcast %2191 : vector<1x128xf32> to vector<8x128xf32>
    %2193 = arith.select %2179, %2192, %2190 : vector<8x128xi1>, vector<8x128xf32>
    %c0_504 = arith.constant 0 : index
    %c0_505 = arith.constant 0 : index
    %2194 = vector.load %arg5[%c0_504, %c0_505] : memref<8x128xf32, #tpu.memory_space<vmem>>, vector<8x128xf32>
    tpu.vector_store %arg5[%c0_504, %c0_505], %2193 {strides = array<i32>} : memref<8x128xf32, #tpu.memory_space<vmem>>, vector<8x128xf32>,
    return
  }
  func.func @transform_0(%arg0: i32) -> (i32, i32) {
    %c0_i32 = arith.constant 0 : i32
    %c0_i32_0 = arith.constant 0 : i32
    %c0_i32_1 = arith.constant 0 : i32
    return %c0_i32, %c0_i32_0 : i32, i32
  }
  func.func @transform_1(%arg0: i32) -> (i32, i32) {
    %c0_i32 = arith.constant 0 : i32
    %c0_i32_0 = arith.constant 0 : i32
    %c0_i32_1 = arith.constant 0 : i32
    return %c0_i32, %c0_i32_0 : i32, i32
  }
  func.func @transform_2(%arg0: i32) -> (i32, i32) {
    %c0_i32 = arith.constant 0 : i32
    %c0_i32_0 = arith.constant 0 : i32
    %c0_i32_1 = arith.constant 0 : i32
    return %c0_i32, %c0_i32_0 : i32, i32
  }
  func.func @transform_3(%arg0: i32) -> (i32, i32) {
    %c0_i32 = arith.constant 0 : i32
    %c0_i32_0 = arith.constant 0 : i32
    %c0_i32_1 = arith.constant 0 : i32
    return %c0_i32, %c0_i32_0 : i32, i32
  }
  func.func @transform_4(%arg0: i32) -> (i32, i32) {
    %c0_i32 = arith.constant 0 : i32
    %c0_i32_0 = arith.constant 0 : i32
    %c0_i32_1 = arith.constant 0 : i32
    return %c0_i32, %c0_i32_0 : i32, i32
  }
}

</mosaic_0001>

<bundles_post_ra>
// kernel: fwd.1
= control target key start
LH: loop header
LB: loop body
LE: loop exit
PB: predicated region body
PF: predicated region fallthrough
CT: control target
= control target key end

     0   :  { %vm29_vm0 = vcmask 261120   ;;  %v2645_v23 = vmov 0.0|0.0   ;;  %vm2646_vm3 = vmmov 0   ;;  %v3791_v25 = vmov 0.0   ;;  %s3786_s0 = inlined_call_operand.vmem [shape: f32[8,32], index: 0, kind: input, shape index: {}]   ;;  %s3787_s1 = inlined_call_operand.vmem [shape: f32[32,128], index: 1, kind: input, shape index: {}]   ;;  %s3788_s2 = inlined_call_operand.vmem [shape: f32[8,128], index: 2, kind: input, shape index: {}]   ;;  %s3789_s3 = inlined_call_operand.vmem [shape: f32[8,128], index: 3, kind: output, shape index: {0}]   ;;  %s3790_s4 = inlined_call_operand.vmem [shape: f32[8,128], index: 4, kind: output, shape index: {1}]  }
   0x1   :  { %v2677_v0 = vld [vmem:[%s3786_s0] sm:$0xff]  ;;  %v44_v2 = vld [vmem:[%s3787_s1 + $0x8] sm:$0xff]  ;;  %v45_v4 = vld [vmem:[%s3787_s1 + $0x10] sm:$0xff]  ;;  %2392 = vmatprep.subr.bf16.mxu0 %v2645_v23  ;;  %2389 = vmatprep.mubr.msk.f32.mxu0 %vm2646_vm3, %v3791_v25  ;;  %v16_v29 = vlaneseq  ;;  %vm200_vm4 = vcmask 1040384   ;;  %vm184_vm8 = vcmask 1041409  }
   0x2   :  { %v43_v1 = vld [vmem:[%s3787_s1] sm:$0xff]  ;;  %v28_v3 = vmul.f32 %v2677_v0, %v2677_v0  ;;  %v46_v5 = vld [vmem:[%s3787_s1 + $0x18] sm:$0xff]  ;;  %v48_v7 = vmul.f32 %v44_v2, %v44_v2  ;;  %v49_v8 = vmul.f32 %v45_v4, %v45_v4 }
   0x3   :  { %v47_v6 = vmul.f32 %v43_v1, %v43_v1  ;;  %v50_v10 = vmul.f32 %v46_v5, %v46_v5  ;;  %v2696_v34 = vand.u32 127, %v16_v29  ;;  %v2701_v35 = vld [vmem:[%s3788_s2] sm:$0xff] }
   0x4   :  { %v30_v9 = vsel %vm29_vm0, %v28_v3, 0.0 }
   0x5   :  { %v51_v11 = vadd.f32 %v48_v7, %v47_v6  ;;  %31 = vadd.xlane.f32.xlu0 %v30_v9  ;;  %vm20_vm5 = vcmp.lt.s32.totalorder %v2696_v34, 3 }
   0x6   :  { %v2707_v38 = vsel %vm20_vm5, %v2701_v35, -1e+30 }
   0x7   :  { %v52_v12 = vadd.f32 %v51_v11, %v49_v8  ;;  %v201_v39 = vsel %vm200_vm4, %v2707_v38, -inf }
   0x8   :  { %202 = vmax.xlane.f32.xlu1 %v201_v39 }
   0x9   :  { %v53_v13 = vadd.f32 %v52_v12, %v50_v10 }
   0xb   :  { %v54_v14 = vrot.slane %v53_v13, 4 }
   0xd   :  { %v55_v15 = vadd.f32 %v54_v14, %v53_v13 }
   0xf   :  { %v56_v16 = vrot.slane %v55_v15, 2 }
  0x11   :  { %v57_v17 = vadd.f32 %v56_v16, %v55_v15 }
  0x13   :  { %v58_v18 = vrot.slane %v57_v17, 1 }
  0x15   :  { %v59_v19 = vadd.f32 %v58_v18, %v57_v17 }
  0x17   :  { %2403 = vrsqrt.f32 %v59_v19  ;;  %vm62_vm1 = vcmp.eq.f32.partialorder %v59_v19, inf  ;;  %v65_v21 = vand.u32 2147483648, %v59_v19  ;;  %vm64_vm2 = vcmp.eq.f32.partialorder %v59_v19, 0.0 }
  0x21   :  { %v2404_v20 = vpop.eup %2403 }
  0x22   :  { %v61_v22 = vmul.f32 %v2404_v20, %v59_v19 }
  0x24   :  { %v63_v24 = vsel %vm62_vm1, %v59_v19, %v61_v22 }
  0x25   :  { %v66_v26 = vsel %vm64_vm2, %v65_v21, %v63_v24  ;;  %v2726_v21 = vshrl.u32 %v16_v29, 7 }
  0x26   :  { %v67_v27 = vmax.f32 %v66_v26, 1e-12 }
  0x27   :  { %3837 = vst [vmem:[#allocation2_spill] sm:$0xff] %v2726_v21  ;;  %v2731_v24 = vsub.s32 0, %v2726_v21 }
  0x28   :  { %2405 = vrcp.f32 %v67_v27 }
  0x32   :  { %v2406_v28 = vpop.eup %2405 }
  0x33   :  { %v69_v30 = vmul.f32 %v2406_v28, %v43_v1  ;;  %v70_v31 = vmul.f32 %v2406_v28, %v44_v2  ;;  %v71_v32 = vmul.f32 %v2406_v28, %v45_v4  ;;  %v72_v33 = vmul.f32 %v2406_v28, %v46_v5 }
  0x35   :  { %v2393_v36 = vpack.c.bf16 %v70_v31, %v69_v30  ;;  %v2396_v37 = vpack.c.bf16 %v72_v33, %v71_v32 }
  0x37   :  { %2394 = vmatpush3.bf16.msra.mxu0 %v2393_v36 }
  0x38   :  { %2395 = vmatprep.subr.bf16.mxu0 %v2645_v23 }
  0x3b   :  { %2397 = vmatpush3.bf16.msra.mxu0 %v2396_v37 }
  0x92   :  { %v32_v40 = vpop.xlane.xlu0 %31 }
  0x93   :  { %2407 = vrsqrt.f32 %v32_v40  ;;  %vm35_vm6 = vcmp.eq.f32.partialorder %v32_v40, inf  ;;  %v38_v43 = vand.u32 2147483648, %v32_v40  ;;  %vm37_vm7 = vcmp.eq.f32.partialorder %v32_v40, 0.0 }
  0x95   :  { %v203_v49 = vpop.xlane.xlu1 %202 }
  0x96   :  { %v2714_v50 = vsub.f32 %v2707_v38, %v203_v49 }
  0x98   :  { %v205_v51 = vmul.f32 1.442695, %v2714_v50 }
  0x9d   :  { %v2408_v41 = vpop.eup %2407 }
  0x9e   :  { %v34_v42 = vmul.f32 %v2408_v41, %v32_v40 }
  0xa0   :  { %v36_v44 = vsel %vm35_vm6, %v32_v40, %v34_v42 }
  0xa1   :  { %v39_v45 = vsel %vm37_vm7, %v38_v43, %v36_v44 }
  0xa2   :  { %v40_v46 = vmax.f32 %v39_v45, 1e-12 }
  0xa4   :  { %2409 = vrcp.f32 %v40_v46 }
  0xa5   :  { %2411 = vpow2.f32 %v205_v51 }
  0xae   :  { %v2410_v47 = vpop.eup %2409 }
  0xaf   :  { %v42_v48 = vmul.f32 %v2410_v47, %v2677_v0  ;;  %v2412_v55 = vpop.eup %2411 }
  0xb0   :  { %v207_v57 = vsel %vm200_vm4, %v2412_v55, 0.0 }
  0xb1   :  { %2390 = vmatmul.mubr.msk.f32.vlgmr.msra.gmra.mrb[0].mxu0 %vm29_vm0, %v42_v48 }
 0x184   :  { %v142_v52 = vpop.f32.mrb[0].mxu0 }
 0x185   :  { %v146_v53 = vsel %vm20_vm5, %v142_v52, -1e+30  ;;  %v2391_v54 = vpop.f32.mrb[1].mxu0 }
 0x186   :  { %v147_v56 = vmul.f32 20.0, %v146_v53  ;;  %v170_v31 = vmul.f32 10.0, %v146_v53 }
 0x188   :  { %148 = vmax.xlane.f32.xlu0 %v147_v56 }
 0x18c   :  { %208 = vadd.xlane.f32.xlu0 %v207_v57 }
 0x215   :  { %v149_v58 = vpop.xlane.xlu0 %148 }
 0x216   :  { %v150_v59 = vrot.slane %v149_v58, 4 }
 0x218   :  { %v151_v60 = vmax.f32 %v149_v58, %v150_v59 }
 0x219   :  { %v2720_v16 = vpop.xlane.xlu0 %208 }
 0x21a   :  { %v152_v61 = vrot.slane %v151_v60, 2 }
 0x21c   :  { %v153_v62 = vmax.f32 %v151_v60, %v152_v61 }
 0x21e   :  { %v154_v63 = vrot.slane %v153_v62, 1 }
 0x220   :  { %v155_v0 = vmax.f32 %v153_v62, %v154_v63 }
 0x222   :  { %v156_v1 = vsub.f32 %v147_v56, %v155_v0 }
 0x224   :  { %v157_v2 = vmul.f32 1.442695, %v156_v1 }
 0x226   :  { %2413 = vpow2.f32 %v157_v2 }
 0x230   :  { %v2414_v3 = vpop.eup %2413 }
 0x231   :  { %159 = vadd.xlane.f32.xlu1 %v2414_v3 }
 0x2be   :  { %v160_v4 = vpop.xlane.xlu1 %159 }
 0x2bf   :  { %v161_v5 = vrot.slane %v160_v4, 4 }
 0x2c1   :  { %v162_v6 = vadd.f32 %v161_v5, %v160_v4 }
 0x2c3   :  { %v163_v7 = vrot.slane %v162_v6, 2 }
 0x2c5   :  { %v164_v8 = vadd.f32 %v163_v7, %v162_v6 }
 0x2c7   :  { %v165_v9 = vrot.slane %v164_v8, 1 }
 0x2c9   :  { %v166_v10 = vadd.f32 %v165_v9, %v164_v8 }
 0x2cb   :  { %2415 = vrcp.f32 %v166_v10 }
 0x2cc   :  { %2417 = vrcp.f32 %v2720_v16 }
 0x2d5   :  { %v2416_v11 = vpop.eup %2415 }
 0x2d6   :  { %v168_v12 = vmul.f32 %v2416_v11, %v2414_v3  ;;  %v2418_v22 = vpop.eup %2417  ;;  %v185_v11 = vsel %vm184_vm8, %v2707_v38, -inf }
 0x2d7   :  { %v2728_v23 = vmul.f32 %v2418_v22, %v2412_v55 }
 0x2d8   :  { %v216_v13 = vrot.slane %v168_v12, 4 }
 0x2d9   :  { %v2737_v28 = vrot.slane %v2728_v23, %v2731_v24 }
 0x2da   :  { %v217_v14 = vadd.f32 %v216_v13, %v168_v12 }
 0x2dc   :  { %v218_v15 = vrot.slane %v217_v14, 2 }
 0x2de   :  { %v219_v17 = vadd.f32 %v218_v15, %v217_v14 }
 0x2e0   :  { %v220_v18 = vrot.slane %v219_v17, 1 }
 0x2e2   :  { %v221_v19 = vadd.f32 %v220_v18, %v219_v17 }
 0x2e4   :  { %v222_v20 = vsel %vm20_vm5, %v221_v19, 1.0 }
 0x2e5   :  { %2419 = vrcp.f32 %v222_v20 }
 0x2ef   :  { %v2420_v26 = vpop.eup %2419 }
 0x2f0   :  { %v2733_v27 = vmul.f32 %v2420_v26, %v168_v12 }
 0x2f2   :  { %v229_v30 = vmul.f32 %v2737_v28, %v2733_v27 }
 0x2f4   :  { %230 = vadd.xlane.f32.xlu1 %v229_v30 }
 0x2f8   :  { %171 = vmax.xlane.f32.xlu1 %v170_v31 }
 0x381   :  { %v231_v29 = vpop.xlane.xlu1 %230 }
 0x382   :  { %2421 = vrcp.f32 %v231_v29 }
 0x385   :  { %v172_v42 = vpop.xlane.xlu1 %171 }
 0x386   :  { %v173_v45 = vsub.f32 %v170_v31, %v172_v42 }
 0x388   :  { %v174_v46 = vmul.f32 1.442695, %v173_v45 }
 0x38c   :  { %v2741_v32 = vpop.eup %2421 }
 0x38d   :  { %v2744_v33 = vmul.f32 %v2741_v32, %v229_v30 }
 0x38f   :  { %v235_v36 = vrot.slane %v2744_v33, 4 }
 0x391   :  { %v236_v37 = vadd.f32 %v235_v36, %v2744_v33 }
 0x393   :  { %v237_v39 = vrot.slane %v236_v37, 2 }
 0x395   :  { %v238_v40 = vadd.f32 %v237_v39, %v236_v37 }
 0x397   :  { %v239_v41 = vrot.slane %v238_v40, 1 }
 0x399   :  { %v240_v43 = vadd.f32 %v239_v41, %v238_v40 }
 0x39b   :  { %v241_v44 = vsel %vm20_vm5, %v240_v43, 1.0 }
 0x39c   :  { %2423 = vrcp.f32 %v241_v44 }
 0x39d   :  { %2425 = vpow2.f32 %v174_v46 }
 0x3a6   :  { %v2750_v47 = vpop.eup %2423 }
 0x3a7   :  { %v2754_v48 = vmul.f32 %v2750_v47, %v2744_v33  ;;  %v2426_v51 = vpop.eup %2425 }
 0x3a9   :  { %v244_v49 = vmul.f32 %v2754_v48, %v2737_v28 }
 0x3ab   :  { %245 = vadd.xlane.f32.xlu0 %v244_v49 }
 0x3af   :  { %176 = vadd.xlane.f32.xlu0 %v2426_v51 }
 0x438   :  { %v246_v52 = vpop.xlane.xlu0 %245 }
 0x439   :  { %2427 = vrcp.f32 %v246_v52 }
 0x43c   :  { %v177_v1 = vpop.xlane.xlu0 %176 }
 0x443   :  { %v2428_v53 = vpop.eup %2427 }
 0x444   :  { %v249_v54 = vmul.f32 %v2428_v53, %v244_v49 }
 0x446   :  { %v250_v55 = vrot.slane %v249_v54, 4 }
 0x448   :  { %v251_v56 = vadd.f32 %v250_v55, %v249_v54 }
 0x44a   :  { %v252_v57 = vrot.slane %v251_v56, 2 }
 0x44c   :  { %v253_v58 = vadd.f32 %v252_v57, %v251_v56 }
 0x44e   :  { %v254_v59 = vrot.slane %v253_v58, 1 }
 0x450   :  { %v255_v60 = vadd.f32 %v254_v59, %v253_v58 }
 0x452   :  { %v256_v61 = vsel %vm20_vm5, %v255_v60, 1.0 }
 0x453   :  { %2429 = vrcp.f32 %v256_v61 }
 0x454   :  { %2431 = vlog2.f32 %v177_v1 }
 0x45d   :  { %v2430_v62 = vpop.eup %2429 }
 0x45e   :  { %v258_v63 = vmul.f32 %v2430_v62, %v249_v54  ;;  %v2432_v2 = vpop.eup %2431 }
 0x45f   :  { %v179_v4 = vmul.f32 0.6931472, %v2432_v2 }
 0x460   :  { %v259_v0 = vmul.f32 %v258_v63, %v2737_v28 }
 0x461   :  { %v180_v5 = vsub.f32 %v173_v45, %v179_v4 }
 0x462   :  { %260 = vadd.xlane.f32.xlu1 %v259_v0 }
 0x463   :  { %v2763_v6 = vsel %vm20_vm5, %v180_v5, 0.0 }
 0x464   :  { %v2766_v8 = vmul.f32 -0.125, %v2763_v6 }
 0x4ef   :  { %v261_v3 = vpop.xlane.xlu1 %260 }
 0x4f0   :  { %2433 = vrcp.f32 %v261_v3 }
 0x4fa   :  { %v2434_v7 = vpop.eup %2433 }
 0x4fb   :  { %v2768_v9 = vmul.f32 %v2434_v7, %v259_v0 }
 0x4fd   :  { %3838 = vst [vmem:[#allocation3_spill] sm:$0xff] %v2768_v9  ;;  %v288_v10 = vmul.f32 %v2766_v8, %v2768_v9 }
 0x4ff   :  { %289 = vadd.xlane.f32.xlu0 %v288_v10 }
 0x503   :  { %186 = vmax.xlane.f32.xlu0 %v185_v11 }
 0x58c   :  { %v290_v12 = vpop.xlane.xlu0 %289 }
 0x58d   :  { %v291_v13 = vsub.f32 %v2766_v8, %v290_v12 }
 0x58f   :  { %v292_v14 = vmul.f32 %v2434_v7, %v291_v13 }
 0x590   :  { %v187_v15 = vpop.xlane.xlu0 %186 }
 0x591   :  { %v301_v17 = vmul.f32 %v292_v14, %v2737_v28  ;;  %v2777_v18 = vsub.f32 %v2707_v38, %v187_v15  ;;  %v293_v38 = vmul.f32 %v292_v14, %v258_v63 }
 0x593   :  { %v302_v19 = vmul.f32 %v301_v17, %v258_v63  ;;  %v189_v20 = vmul.f32 1.442695, %v2777_v18  ;;  %v294_v43 = vrot.slane %v293_v38, 4 }
 0x595   :  { %v303_v22 = vrot.slane %v302_v19, 4  ;;  %2435 = vpow2.f32 %v189_v20  ;;  %v295_v45 = vadd.f32 %v294_v43, %v293_v38 }
 0x597   :  { %v304_v26 = vadd.f32 %v303_v22, %v302_v19  ;;  %v296_v51 = vrot.slane %v295_v45, 2 }
 0x599   :  { %v305_v30 = vrot.slane %v304_v26, 2  ;;  %v297_v58 = vadd.f32 %v296_v51, %v295_v45 }
 0x59b   :  { %v306_v31 = vadd.f32 %v305_v30, %v304_v26  ;;  %v298_v0 = vrot.slane %v297_v58, 1 }
 0x59d   :  { %v307_v29 = vrot.slane %v306_v31, 1 }
 0x59f   :  { %v2436_v36 = vpop.eup %2435  ;;  %v308_v37 = vadd.f32 %v307_v29, %v306_v31 }
 0x5a0   :  { %v191_v39 = vsel %vm184_vm8, %v2436_v36, 0.0 }
 0x5a1   :  { %192 = vadd.xlane.f32.xlu0 %v191_v39  ;;  %v309_v40 = vsub.f32 %v301_v17, %v308_v37 }
 0x5a3   :  { %v310_v41 = vmul.f32 %v2430_v62, %v309_v40 }
 0x5a5   :  { %v311_v42 = vmul.f32 %v310_v41, %v249_v54 }
 0x5a7   :  { %312 = vadd.xlane.f32.xlu1 %v311_v42 }
 0x634   :  { %v313_v44 = vpop.xlane.xlu1 %312 }
 0x635   :  { %v314_v46 = vsub.f32 %v310_v41, %v313_v44 }
 0x637   :  { %v315_v49 = vmul.f32 %v2428_v53, %v314_v46  ;;  %v299_v53 = vadd.f32 %v298_v0, %v297_v58 }
 0x639   :  { %v316_v52 = vmul.f32 %v315_v49, %v2754_v48  ;;  %v324_v55 = vmul.f32 %v315_v49, %v2737_v28 }
 0x63b   :  { %v317_v56 = vrot.slane %v316_v52, 4  ;;  %v325_v57 = vmul.f32 %v324_v55, %v2754_v48 }
 0x63d   :  { %v318_v59 = vadd.f32 %v317_v56, %v316_v52  ;;  %v326_v60 = vrot.slane %v325_v57, 4 }
 0x63f   :  { %v319_v61 = vrot.slane %v318_v59, 2  ;;  %v327_v54 = vadd.f32 %v326_v60, %v325_v57 }
 0x641   :  { %v320_v62 = vadd.f32 %v319_v61, %v318_v59  ;;  %v328_v63 = vrot.slane %v327_v54, 2  ;;  %v377_v61 = vmul.f32 0.9, %v2701_v35 }
 0x643   :  { %v329_v1 = vadd.f32 %v328_v63, %v327_v54  ;;  %v321_v2 = vrot.slane %v320_v62, 1  ;;  %v404_v63 = vmul.f32 0.0, %v2701_v35 }
 0x645   :  { %v330_v3 = vrot.slane %v329_v1, 1  ;;  %v322_v4 = vadd.f32 %v321_v2, %v320_v62 }
 0x647   :  { %v331_v5 = vadd.f32 %v330_v3, %v329_v1  ;;  %v323_v7 = vadd.f32 %v322_v4, %v299_v53 }
 0x649   :  { %v332_v10 = vsub.f32 %v324_v55, %v331_v5 }
 0x64b   :  { %v333_v28 = vmul.f32 %v2750_v47, %v332_v10 }
 0x64d   :  { %v334_v48 = vmul.f32 %v333_v28, %v2744_v33  ;;  %v2790_v33 = vpop.xlane.xlu0 %192 }
 0x64e   :  { %2437 = vrcp.f32 %v2790_v33 }
 0x64f   :  { %335 = vadd.xlane.f32.xlu1 %v334_v48 }
 0x658   :  { %v2438_v29 = vpop.eup %2437 }
 0x6dc   :  { %v336_v11 = vpop.xlane.xlu1 %335 }
 0x6dd   :  { %v337_v12 = vsub.f32 %v333_v28, %v336_v11 }
 0x6df   :  { %v338_v13 = vmul.f32 %v2741_v32, %v337_v12  ;;  %v2793_v32 = vmul.f32 %v2438_v29, %v2436_v36 }
 0x6e1   :  { %v339_v14 = vmul.f32 %v338_v13, %v2733_v27  ;;  %v2796_v37 = vrot.slane %v2793_v32, 1 }
 0x6e3   :  { %v340_v15 = vrot.slane %v339_v14, 4  ;;  %v356_v39 = vsub.f32 %v2728_v23, %v2796_v37 }
 0x6e5   :  { %v341_v17 = vadd.f32 %v340_v15, %v339_v14  ;;  %v357_v40 = vmul.f32 0.05, %v356_v39 }
 0x6e7   :  { %v342_v19 = vrot.slane %v341_v17, 2  ;;  %v358_v43 = vmul.f32 0.33333334, %v357_v40 }
 0x6e9   :  { %v343_v20 = vadd.f32 %v342_v19, %v341_v17 }
 0x6eb   :  { %v344_v22 = vrot.slane %v343_v20, 1 }
 0x6ed   :  { %v345_v26 = vadd.f32 %v344_v22, %v343_v20 }
 0x6ef   :  { %v346_v30 = vadd.f32 %v345_v26, %v323_v7 }
 0x6f1   :  { %v347_v31 = vmul.f32 %v346_v30, %v2728_v23 }
 0x6f3   :  { %v348_v47 = vsel %vm200_vm4, %v347_v31, 0.0 }
 0x6f4   :  { %349 = vadd.xlane.f32.xlu1 %v348_v47 }
 0x781   :  { %v350_v41 = vpop.xlane.xlu1 %349 }
 0x782   :  { %v351_v42 = vsub.f32 %v346_v30, %v350_v41 }
 0x784   :  { %v352_v38 = vmul.f32 %v351_v42, %v2728_v23 }
 0x786   :  { %v359_v44 = vadd.f32 %v358_v43, %v352_v38 }
 0x788   :  { %v360_v45 = vsel %vm20_vm5, %v359_v44, 0.0 }
 0x789   :  { %v361_v46 = vmul.f32 %v360_v45, %v360_v45 }
 0x78b   :  { %v362_v36 = vsel %vm200_vm4, %v361_v46, 0.0 }
 0x78c   :  { %363 = vadd.xlane.f32.xlu0 %v362_v36 }
 0x819   :  { %v364_v49 = vpop.xlane.xlu0 %363 }
 0x81a   :  { %2439 = vrsqrt.f32 %v364_v49  ;;  %vm367_vm9 = vcmp.eq.f32.partialorder %v364_v49, inf  ;;  %v370_v55 = vand.u32 2147483648, %v364_v49  ;;  %vm369_vm10 = vcmp.eq.f32.partialorder %v364_v49, 0.0 }
 0x824   :  { %v2440_v51 = vpop.eup %2439 }
 0x825   :  { %v366_v52 = vmul.f32 %v2440_v51, %v364_v49 }
 0x827   :  { %v368_v56 = vsel %vm367_vm9, %v364_v49, %v366_v52 }
 0x828   :  { %v371_v57 = vsel %vm369_vm10, %v370_v55, %v368_v56 }
 0x829   :  { %v372_v58 = vadd.f32 1e-06, %v371_v57 }
 0x82b   :  { %2441 = vrcp.f32 %v372_v58 }
 0x835   :  { %v2442_v59 = vpop.eup %2441 }
 0x836   :  { %v375_v60 = vmin.f32 %v2442_v59, 1.0 }
 0x838   :  { %v376_v54 = vmul.f32 %v375_v60, %v360_v45 }
 0x83a   :  { %v379_v62 = vrot.slane %v376_v54, 6 }
 0x83c   :  { %v381_v0 = vadd.f32 %v379_v62, %v377_v61 }
 0x83e   :  { %v382_v1 = vmul.f32 0.01, %v381_v0  ;;  %v2806_v2 = vadd.f32 %v404_v63, %v381_v0 }
 0x840   :  { %v384_v3 = vrot.slane %v382_v1, 2 }
 0x842   :  { %v386_v53 = vsub.f32 %v2701_v35, %v384_v3 }
 0x844   :  { %v2809_v4 = vadd.f32 %v404_v63, %v386_v53 }
 0x846   :  { %v409_v5 = vsel %vm20_vm5, %v2809_v4, -1e+30 }
 0x847   :  { %v410_v7 = vsel %vm200_vm4, %v409_v5, -inf }
 0x848   :  { %411 = vmax.xlane.f32.xlu1 %v410_v7 }
 0x8d5   :  { %v412_v10 = vpop.xlane.xlu1 %411 }
 0x8d6   :  { %v2815_v28 = vsub.f32 %v409_v5, %v412_v10 }
 0x8d8   :  { %3839 = vst [vmem:[#allocation4_spill] sm:$0xff] %v2815_v28  ;;  %v414_v48 = vmul.f32 1.442695, %v2815_v28 }
 0x8da   :  { %2443 = vpow2.f32 %v414_v48 }
 0x8e4   :  { %v2444_v11 = vpop.eup %2443 }
 0x8e5   :  { %v416_v12 = vsel %vm200_vm4, %v2444_v11, 0.0 }
 0x8e6   :  { %417 = vadd.xlane.f32.xlu0 %v416_v12 }
 0x973   :  { %v2819_v35 = vpop.xlane.xlu0 %417 }
 0x974   :  { %3840 = vst [vmem:[#allocation5_spill] sm:$0xff] %v2819_v35  ;;  %2445 = vrcp.f32 %v2819_v35 }
 0x97e   :  { %v2446_v13 = vpop.eup %2445 }
 0x97f   :  { %v2822_v14 = vmul.f32 %v2446_v13, %v2444_v11 }
 0x981   :  { %v2826_v15 = vrot.slane %v2822_v14, %v2731_v24 }
 0x983   :  { %v429_v17 = vmul.f32 %v2826_v15, %v2733_v27 }
 0x985   :  { %430 = vadd.xlane.f32.xlu1 %v429_v17 }
 0xa12   :  { %v431_v19 = vpop.xlane.xlu1 %430 }
 0xa13   :  { %2447 = vrcp.f32 %v431_v19 }
 0xa1d   :  { %v2830_v20 = vpop.eup %2447 }
 0xa1e   :  { %v2833_v22 = vmul.f32 %v2830_v20, %v429_v17 }
 0xa20   :  { %v435_v26 = vrot.slane %v2833_v22, 4 }
 0xa22   :  { %v436_v30 = vadd.f32 %v435_v26, %v2833_v22 }
 0xa24   :  { %v437_v31 = vrot.slane %v436_v30, 2 }
 0xa26   :  { %v438_v47 = vadd.f32 %v437_v31, %v436_v30 }
 0xa28   :  { %v439_v29 = vrot.slane %v438_v47, 1 }
 0xa2a   :  { %v440_v39 = vadd.f32 %v439_v29, %v438_v47 }
 0xa2c   :  { %v441_v40 = vsel %vm20_vm5, %v440_v39, 1.0 }
 0xa2d   :  { %2449 = vrcp.f32 %v441_v40 }
 0xa37   :  { %v2839_v41 = vpop.eup %2449 }
 0xa38   :  { %v443_v42 = vmul.f32 %v2839_v41, %v2833_v22 }
 0xa3a   :  { %v444_v38 = vmul.f32 %v443_v42, %v2826_v15 }
 0xa3c   :  { %445 = vadd.xlane.f32.xlu0 %v444_v38 }
 0xac9   :  { %v446_v43 = vpop.xlane.xlu0 %445 }
 0xaca   :  { %2451 = vrcp.f32 %v446_v43 }
 0xad4   :  { %v2452_v44 = vpop.eup %2451 }
 0xad5   :  { %v449_v45 = vmul.f32 %v2452_v44, %v444_v38 }
 0xad7   :  { %v450_v46 = vrot.slane %v449_v45, 4 }
 0xad9   :  { %v451_v36 = vadd.f32 %v450_v46, %v449_v45 }
 0xadb   :  { %v452_v49 = vrot.slane %v451_v36, 2 }
 0xadd   :  { %v453_v51 = vadd.f32 %v452_v49, %v451_v36 }
 0xadf   :  { %v454_v52 = vrot.slane %v453_v51, 1 }
 0xae1   :  { %v455_v55 = vadd.f32 %v454_v52, %v453_v51 }
 0xae3   :  { %v456_v56 = vsel %vm20_vm5, %v455_v55, 1.0 }
 0xae4   :  { %2453 = vrcp.f32 %v456_v56 }
 0xaee   :  { %v2454_v57 = vpop.eup %2453 }
 0xaef   :  { %v458_v58 = vmul.f32 %v2454_v57, %v449_v45 }
 0xaf1   :  { %v459_v59 = vmul.f32 %v458_v58, %v2826_v15 }
 0xaf3   :  { %460 = vadd.xlane.f32.xlu1 %v459_v59 }
 0xb80   :  { %v461_v60 = vpop.xlane.xlu1 %460 }
 0xb81   :  { %2455 = vrcp.f32 %v461_v60 }
 0xb8b   :  { %v2456_v61 = vpop.eup %2455 }
 0xb8c   :  { %v2847_v54 = vmul.f32 %v2456_v61, %v459_v59 }
 0xb8e   :  { %v487_v62 = vmul.f32 %v2847_v54, %v2766_v8 }
 0xb90   :  { %488 = vadd.xlane.f32.xlu0 %v487_v62 }
 0xc1d   :  { %v489_v63 = vpop.xlane.xlu0 %488 }
 0xc1e   :  { %v490_v0 = vsub.f32 %v2766_v8, %v489_v63 }
 0xc20   :  { %v491_v1 = vmul.f32 %v2456_v61, %v490_v0 }
 0xc22   :  { %v500_v3 = vmul.f32 %v491_v1, %v2826_v15  ;;  %v492_v26 = vmul.f32 %v491_v1, %v458_v58 }
 0xc24   :  { %v501_v53 = vmul.f32 %v500_v3, %v458_v58  ;;  %v493_v30 = vrot.slane %v492_v26, 4 }
 0xc26   :  { %v502_v5 = vrot.slane %v501_v53, 4  ;;  %v494_v47 = vadd.f32 %v493_v30, %v492_v26 }
 0xc28   :  { %v503_v7 = vadd.f32 %v502_v5, %v501_v53  ;;  %v495_v40 = vrot.slane %v494_v47, 2 }
 0xc2a   :  { %v504_v10 = vrot.slane %v503_v7, 2  ;;  %v496_v49 = vadd.f32 %v495_v40, %v494_v47 }
 0xc2c   :  { %v505_v48 = vadd.f32 %v504_v10, %v503_v7  ;;  %v497_v59 = vrot.slane %v496_v49, 1 }
 0xc2e   :  { %v506_v11 = vrot.slane %v505_v48, 1  ;;  %v498_v62 = vadd.f32 %v497_v59, %v496_v49 }
 0xc30   :  { %v507_v12 = vadd.f32 %v506_v11, %v505_v48 }
 0xc32   :  { %v508_v13 = vsub.f32 %v500_v3, %v507_v12 }
 0xc34   :  { %v509_v17 = vmul.f32 %v2454_v57, %v508_v13 }
 0xc36   :  { %v510_v19 = vmul.f32 %v509_v17, %v449_v45 }
 0xc38   :  { %511 = vadd.xlane.f32.xlu1 %v510_v19 }
 0xcc5   :  { %v512_v31 = vpop.xlane.xlu1 %511 }
 0xcc6   :  { %v513_v29 = vsub.f32 %v509_v17, %v512_v31 }
 0xcc8   :  { %v514_v39 = vmul.f32 %v2452_v44, %v513_v29 }
 0xcca   :  { %v515_v38 = vmul.f32 %v514_v39, %v443_v42  ;;  %v523_v43 = vmul.f32 %v514_v39, %v2826_v15 }
 0xccc   :  { %v516_v46 = vrot.slane %v515_v38, 4  ;;  %v524_v36 = vmul.f32 %v523_v43, %v443_v42 }
 0xcce   :  { %v517_v51 = vadd.f32 %v516_v46, %v515_v38  ;;  %v525_v52 = vrot.slane %v524_v36, 4 }
 0xcd0   :  { %v518_v55 = vrot.slane %v517_v51, 2  ;;  %v526_v56 = vadd.f32 %v525_v52, %v524_v36 }
 0xcd2   :  { %v519_v57 = vadd.f32 %v518_v55, %v517_v51  ;;  %v527_v45 = vrot.slane %v526_v56, 2 }
 0xcd4   :  { %v528_v58 = vadd.f32 %v527_v45, %v526_v56  ;;  %v520_v60 = vrot.slane %v519_v57, 1 }
 0xcd6   :  { %v529_v61 = vrot.slane %v528_v58, 1  ;;  %v521_v63 = vadd.f32 %v520_v60, %v519_v57 }
 0xcd8   :  { %v530_v44 = vadd.f32 %v529_v61, %v528_v58  ;;  %v522_v0 = vadd.f32 %v521_v63, %v498_v62 }
 0xcda   :  { %v531_v1 = vsub.f32 %v523_v43, %v530_v44 }
 0xcdc   :  { %v532_v15 = vmul.f32 %v2839_v41, %v531_v1 }
 0xcde   :  { %v533_v42 = vmul.f32 %v532_v15, %v2833_v22  ;;  %v387_v22 = vmul.f32 %v2728_v23, %v2728_v23 }
 0xce0   :  { %534 = vadd.xlane.f32.xlu0 %v533_v42  ;;  %v388_v30 = vsel %vm200_vm4, %v387_v22, 0.0  ;;  %v573_v42 = vmul.f32 0.9, %v2806_v2 }
 0xd6d   :  { %v535_v3 = vpop.xlane.xlu0 %534 }
 0xd6e   :  { %v536_v53 = vsub.f32 %v532_v15, %v535_v3 }
 0xd70   :  { %v537_v5 = vmul.f32 %v2830_v20, %v536_v53  ;;  %v552_v20 = vsub.f32 %v2822_v14, %v2796_v37 }
 0xd72   :  { %v538_v7 = vmul.f32 %v537_v5, %v2733_v27  ;;  %v553_v47 = vmul.f32 0.05, %v552_v20 }
 0xd74   :  { %v539_v10 = vrot.slane %v538_v7, 4  ;;  %v554_v40 = vmul.f32 0.33333334, %v553_v47 }
 0xd76   :  { %v540_v48 = vadd.f32 %v539_v10, %v538_v7  ;;  %v626_v7 = vrot.slane %v2806_v2, 2 }
 0xd78   :  { %v541_v11 = vrot.slane %v540_v48, 2 }
 0xd7a   :  { %v542_v12 = vadd.f32 %v541_v11, %v540_v48 }
 0xd7c   :  { %v543_v13 = vrot.slane %v542_v12, 1 }
 0xd7e   :  { %v544_v17 = vadd.f32 %v543_v13, %v542_v12 }
 0xd80   :  { %v545_v19 = vadd.f32 %v544_v17, %v522_v0 }
 0xd82   :  { %v546_v26 = vmul.f32 %v545_v19, %v2822_v14 }
 0xd84   :  { %v547_v41 = vsel %vm200_vm4, %v546_v26, 0.0 }
 0xd85   :  { %548 = vadd.xlane.f32.xlu1 %v547_v41 }
 0xd89   :  { %389 = vadd.xlane.f32.xlu1 %v388_v30 }
 0xe12   :  { %v549_v31 = vpop.xlane.xlu1 %548 }
 0xe13   :  { %v550_v29 = vsub.f32 %v545_v19, %v549_v31 }
 0xe15   :  { %v551_v39 = vmul.f32 %v550_v29, %v2822_v14 }
 0xe16   :  { %v390_v51 = vpop.xlane.xlu1 %389 }
 0xe17   :  { %v555_v38 = vadd.f32 %v554_v40, %v551_v39  ;;  %vm393_vm13 = vcmp.eq.f32.partialorder %v390_v51, inf  ;;  %v396_v62 = vand.u32 2147483648, %v390_v51  ;;  %vm395_vm14 = vcmp.eq.f32.partialorder %v390_v51, 0.0 }
 0xe19   :  { %v556_v43 = vsel %vm20_vm5, %v555_v38, 0.0 }
 0xe1a   :  { %v557_v46 = vmul.f32 %v556_v43, %v556_v43 }
 0xe1c   :  { %v558_v36 = vsel %vm200_vm4, %v557_v46, 0.0 }
 0xe1d   :  { %559 = vadd.xlane.f32.xlu0 %v558_v36 }
 0xeaa   :  { %v560_v49 = vpop.xlane.xlu0 %559 }
 0xeab   :  { %2457 = vrsqrt.f32 %v560_v49  ;;  %vm563_vm11 = vcmp.eq.f32.partialorder %v560_v49, inf  ;;  %v566_v56 = vand.u32 2147483648, %v560_v49  ;;  %vm565_vm12 = vcmp.eq.f32.partialorder %v560_v49, 0.0 }
 0xeac   :  { %2459 = vrsqrt.f32 %v390_v51 }
 0xeb5   :  { %v2458_v52 = vpop.eup %2457 }
 0xeb6   :  { %v562_v55 = vmul.f32 %v2458_v52, %v560_v49  ;;  %v2460_v57 = vpop.eup %2459 }
 0xeb7   :  { %v392_v60 = vmul.f32 %v2460_v57, %v390_v51 }
 0xeb8   :  { %v564_v45 = vsel %vm563_vm11, %v560_v49, %v562_v55 }
 0xeb9   :  { %v567_v59 = vsel %vm565_vm12, %v566_v56, %v564_v45  ;;  %v394_v61 = vsel %vm393_vm13, %v390_v51, %v392_v60 }
 0xeba   :  { %v568_v58 = vadd.f32 1e-06, %v567_v59  ;;  %v397_v63 = vsel %vm395_vm14, %v396_v62, %v394_v61 }
 0xebb   :  { %vm398_vm15 = vcmp.lt.f32.partialorder %v397_v63, 0.0001 }
 0xebc   :  { %2461 = vrcp.f32 %v568_v58  ;;  %v2367_v1 = vsel %vm398_vm15, 1.0, %v3791_v25 }
 0xebd   :  { %v2871_v3 = vmax.f32 %v2367_v1, 0.0 }
 0xebf   :  { %3841 = vst [vmem:[#allocation6_spill] sm:$0xff] %v2871_v3  ;;  %v2875_v48 = vsub.f32 1.0, %v2871_v3  ;;  %v628_v17 = vmul.f32 %v626_v7, %v2871_v3  ;;  %v622_v41 = vmul.f32 %v2871_v3, %v2809_v4 }
 0xec1   :  { %3842 = vst [vmem:[#allocation7_spill] sm:$0xff] %v2875_v48 }
 0xec6   :  { %v2462_v44 = vpop.eup %2461 }
 0xec7   :  { %v571_v0 = vmin.f32 %v2462_v44, 1.0 }
 0xec9   :  { %v572_v15 = vmul.f32 %v571_v0, %v556_v43 }
 0xecb   :  { %v575_v53 = vrot.slane %v572_v15, 6 }
 0xecd   :  { %v577_v5 = vadd.f32 %v575_v53, %v573_v42 }
 0xecf   :  { %v578_v10 = vmul.f32 0.01, %v577_v5  ;;  %v630_v11 = vrot.slane %v577_v5, 2 }
 0xed1   :  { %v580_v12 = vrot.slane %v578_v10, 2  ;;  %v632_v13 = vmul.f32 %v630_v11, %v2875_v48 }
 0xed3   :  { %v582_v19 = vsub.f32 %v2809_v4, %v580_v12  ;;  %v2880_v26 = vadd.f32 %v632_v13, %v628_v17 }
 0xed5   :  { %v623_v22 = vmul.f32 %v2875_v48, %v582_v19 }
 0xed7   :  { %v2885_v2 = vadd.f32 %v623_v22, %v622_v41 }
 0xed9   :  { %v638_v30 = vsel %vm20_vm5, %v2885_v2, -1e+30 }
 0xeda   :  { %v639_v20 = vsel %vm200_vm4, %v638_v30, -inf }
 0xedb   :  { %640 = vmax.xlane.f32.xlu0 %v639_v20 }
 0xf68   :  { %v641_v31 = vpop.xlane.xlu0 %640 }
 0xf69   :  { %v2891_v47 = vsub.f32 %v638_v30, %v641_v31 }
 0xf6b   :  { %v643_v29 = vmul.f32 1.442695, %v2891_v47 }
 0xf6d   :  { %2463 = vpow2.f32 %v643_v29 }
 0xf77   :  { %v2464_v39 = vpop.eup %2463 }
 0xf78   :  { %v645_v4 = vsel %vm200_vm4, %v2464_v39, 0.0 }
 0xf79   :  { %646 = vadd.xlane.f32.xlu1 %v645_v4 }
0x1006   :  { %v2895_v40 = vpop.xlane.xlu1 %646 }
0x1007   :  { %2465 = vrcp.f32 %v2895_v40 }
0x1011   :  { %v2466_v38 = vpop.eup %2465 }
0x1012   :  { %v2898_v43 = vmul.f32 %v2466_v38, %v2464_v39 }
0x1014   :  { %v2902_v46 = vrot.slane %v2898_v43, %v2731_v24 }
0x1016   :  { %v658_v36 = vmul.f32 %v2902_v46, %v2733_v27 }
0x1018   :  { %659 = vadd.xlane.f32.xlu0 %v658_v36 }
0x10a5   :  { %v660_v49 = vpop.xlane.xlu0 %659 }
0x10a6   :  { %2467 = vrcp.f32 %v660_v49 }
0x10b0   :  { %v2906_v51 = vpop.eup %2467 }
0x10b1   :  { %v2909_v52 = vmul.f32 %v2906_v51, %v658_v36 }
0x10b3   :  { %v664_v55 = vrot.slane %v2909_v52, 4 }
0x10b5   :  { %v665_v56 = vadd.f32 %v664_v55, %v2909_v52 }
0x10b7   :  { %v666_v57 = vrot.slane %v665_v56, 2 }
0x10b9   :  { %v667_v45 = vadd.f32 %v666_v57, %v665_v56 }
0x10bb   :  { %v668_v59 = vrot.slane %v667_v45, 1 }
0x10bd   :  { %v669_v58 = vadd.f32 %v668_v59, %v667_v45 }
0x10bf   :  { %v670_v60 = vsel %vm20_vm5, %v669_v58, 1.0 }
0x10c0   :  { %2469 = vrcp.f32 %v670_v60 }
0x10ca   :  { %v2915_v61 = vpop.eup %2469 }
0x10cb   :  { %v672_v62 = vmul.f32 %v2915_v61, %v2909_v52 }
0x10cd   :  { %v673_v63 = vmul.f32 %v672_v62, %v2902_v46 }
0x10cf   :  { %674 = vadd.xlane.f32.xlu1 %v673_v63 }
0x115c   :  { %v675_v44 = vpop.xlane.xlu1 %674 }
0x115d   :  { %2471 = vrcp.f32 %v675_v44 }
0x1167   :  { %v2472_v0 = vpop.eup %2471 }
0x1168   :  { %v678_v1 = vmul.f32 %v2472_v0, %v673_v63 }
0x116a   :  { %v679_v15 = vrot.slane %v678_v1, 4 }
0x116c   :  { %v680_v42 = vadd.f32 %v679_v15, %v678_v1 }
0x116e   :  { %v681_v53 = vrot.slane %v680_v42, 2 }
0x1170   :  { %v682_v5 = vadd.f32 %v681_v53, %v680_v42 }
0x1172   :  { %v683_v7 = vrot.slane %v682_v5, 1 }
0x1174   :  { %v684_v10 = vadd.f32 %v683_v7, %v682_v5 }
0x1176   :  { %v685_v11 = vsel %vm20_vm5, %v684_v10, 1.0 }
0x1177   :  { %2473 = vrcp.f32 %v685_v11 }
0x1181   :  { %v2474_v12 = vpop.eup %2473 }
0x1182   :  { %v687_v13 = vmul.f32 %v2474_v12, %v678_v1 }
0x1184   :  { %v688_v17 = vmul.f32 %v687_v13, %v2902_v46 }
0x1186   :  { %689 = vadd.xlane.f32.xlu0 %v688_v17 }
0x1213   :  { %v690_v19 = vpop.xlane.xlu0 %689 }
0x1214   :  { %2475 = vrcp.f32 %v690_v19 }
0x121e   :  { %v2476_v41 = vpop.eup %2475 }
0x121f   :  { %v2923_v22 = vmul.f32 %v2476_v41, %v688_v17 }
0x1221   :  { %3843 = vst [vmem:[#allocation8_spill] sm:$0xff] %v2923_v22  ;;  %v716_v30 = vmul.f32 %v2923_v22, %v2766_v8 }
0x1223   :  { %717 = vadd.xlane.f32.xlu1 %v716_v30 }
0x12b0   :  { %v718_v20 = vpop.xlane.xlu1 %717 }
0x12b1   :  { %v719_v31 = vsub.f32 %v2766_v8, %v718_v20 }
0x12b3   :  { %v720_v29 = vmul.f32 %v2476_v41, %v719_v31 }
0x12b5   :  { %v729_v39 = vmul.f32 %v720_v29, %v2902_v46  ;;  %v721_v60 = vmul.f32 %v720_v29, %v687_v13 }
0x12b7   :  { %v730_v4 = vmul.f32 %v729_v39, %v687_v13  ;;  %v722_v63 = vrot.slane %v721_v60, 4 }
0x12b9   :  { %v731_v38 = vrot.slane %v730_v4, 4  ;;  %v723_v15 = vadd.f32 %v722_v63, %v721_v60 }
0x12bb   :  { %v732_v36 = vadd.f32 %v731_v38, %v730_v4  ;;  %v724_v5 = vrot.slane %v723_v15, 2 }
0x12bd   :  { %v733_v49 = vrot.slane %v732_v36, 2  ;;  %v725_v19 = vadd.f32 %v724_v5, %v723_v15  ;;  %v583_v5 = vsub.f32 %v2822_v14, %v2728_v23 }
0x12bf   :  { %v734_v55 = vadd.f32 %v733_v49, %v732_v36 }
0x12c1   :  { %v735_v56 = vrot.slane %v734_v55, 1 }
0x12c3   :  { %v736_v57 = vadd.f32 %v735_v56, %v734_v55 }
0x12c5   :  { %v737_v45 = vsub.f32 %v729_v39, %v736_v57  ;;  %v726_v39 = vrot.slane %v725_v19, 1 }
0x12c7   :  { %v738_v59 = vmul.f32 %v2474_v12, %v737_v45  ;;  %v727_v38 = vadd.f32 %v726_v39, %v725_v19 }
0x12c9   :  { %v739_v58 = vmul.f32 %v738_v59, %v678_v1 }
0x12cb   :  { %740 = vadd.xlane.f32.xlu0 %v739_v58 }
0x1358   :  { %v741_v44 = vpop.xlane.xlu0 %740 }
0x1359   :  { %v742_v42 = vsub.f32 %v738_v59, %v741_v44 }
0x135b   :  { %v743_v53 = vmul.f32 %v2472_v0, %v742_v42 }
0x135d   :  { %v744_v7 = vmul.f32 %v743_v53, %v672_v62  ;;  %v752_v10 = vmul.f32 %v743_v53, %v2902_v46 }
0x135f   :  { %v745_v11 = vrot.slane %v744_v7, 4  ;;  %v753_v17 = vmul.f32 %v752_v10, %v672_v62 }
0x1361   :  { %v746_v41 = vadd.f32 %v745_v11, %v744_v7  ;;  %v754_v30 = vrot.slane %v753_v17, 4  ;;  %v584_v7 = vmul.f32 %v583_v5, %v583_v5 }
0x1363   :  { %v747_v20 = vrot.slane %v746_v41, 2  ;;  %v755_v31 = vadd.f32 %v754_v30, %v753_v17 }
0x1365   :  { %v748_v12 = vadd.f32 %v747_v20, %v746_v41  ;;  %v756_v1 = vrot.slane %v755_v31, 2 }
0x1367   :  { %v757_v13 = vadd.f32 %v756_v1, %v755_v31  ;;  %v749_v29 = vrot.slane %v748_v12, 1 }
0x1369   :  { %v758_v4 = vrot.slane %v757_v13, 1  ;;  %v750_v36 = vadd.f32 %v749_v29, %v748_v12 }
0x136b   :  { %v759_v0 = vadd.f32 %v758_v4, %v757_v13  ;;  %v751_v49 = vadd.f32 %v750_v36, %v727_v38 }
0x136d   :  { %v760_v55 = vsub.f32 %v752_v10, %v759_v0  ;;  %v781_v10 = vsub.f32 %v2898_v43, %v2796_v37 }
0x136f   :  { %v761_v46 = vmul.f32 %v2915_v61, %v760_v55  ;;  %v782_v17 = vmul.f32 0.05, %v781_v10 }
0x1371   :  { %v762_v62 = vmul.f32 %v761_v46, %v2909_v52  ;;  %v783_v30 = vmul.f32 0.33333334, %v782_v17 }
0x1373   :  { %763 = vadd.xlane.f32.xlu1 %v762_v62 }
0x1400   :  { %v764_v56 = vpop.xlane.xlu1 %763 }
0x1401   :  { %v765_v57 = vsub.f32 %v761_v46, %v764_v56 }
0x1403   :  { %v766_v45 = vmul.f32 %v2906_v51, %v765_v57  ;;  %v585_v51 = vsel %vm200_vm4, %v584_v7, 0.0 }
0x1405   :  { %v767_v59 = vmul.f32 %v766_v45, %v2733_v27 }
0x1407   :  { %v768_v58 = vrot.slane %v767_v59, 4 }
0x1409   :  { %v769_v60 = vadd.f32 %v768_v58, %v767_v59 }
0x140b   :  { %v770_v63 = vrot.slane %v769_v60, 2 }
0x140d   :  { %v771_v44 = vadd.f32 %v770_v63, %v769_v60  ;;  %v802_v63 = vmul.f32 0.9, %v2880_v26 }
0x140f   :  { %v772_v15 = vrot.slane %v771_v44, 1 }
0x1411   :  { %v773_v42 = vadd.f32 %v772_v15, %v771_v44 }
0x1413   :  { %v774_v53 = vadd.f32 %v773_v42, %v751_v49 }
0x1415   :  { %v775_v61 = vmul.f32 %v774_v53, %v2898_v43 }
0x1417   :  { %v776_v52 = vsel %vm200_vm4, %v775_v61, 0.0 }
0x1418   :  { %777 = vadd.xlane.f32.xlu0 %v776_v52 }
0x141c   :  { %586 = vadd.xlane.f32.xlu0 %v585_v51 }
0x14a5   :  { %v778_v11 = vpop.xlane.xlu0 %777 }
0x14a6   :  { %v779_v19 = vsub.f32 %v774_v53, %v778_v11 }
0x14a8   :  { %v780_v41 = vmul.f32 %v779_v19, %v2898_v43 }
0x14a9   :  { %v587_v13 = vpop.xlane.xlu0 %586 }
0x14aa   :  { %v784_v20 = vadd.f32 %v783_v30, %v780_v41  ;;  %vm590_vm2 = vcmp.eq.f32.partialorder %v587_v13, inf  ;;  %v593_v56 = vand.u32 2147483648, %v587_v13  ;;  %vm592_vm3 = vcmp.eq.f32.partialorder %v587_v13, 0.0 }
0x14ac   :  { %v785_v31 = vsel %vm20_vm5, %v784_v20, 0.0 }
0x14ad   :  { %v786_v12 = vmul.f32 %v785_v31, %v785_v31 }
0x14af   :  { %v787_v1 = vsel %vm200_vm4, %v786_v12, 0.0 }
0x14b0   :  { %788 = vadd.xlane.f32.xlu1 %v787_v1 }
0x153d   :  { %v789_v39 = vpop.xlane.xlu1 %788 }
0x153e   :  { %2477 = vrsqrt.f32 %v789_v39  ;;  %vm792_vm0 = vcmp.eq.f32.partialorder %v789_v39, inf  ;;  %v795_v38 = vand.u32 2147483648, %v789_v39  ;;  %vm794_vm1 = vcmp.eq.f32.partialorder %v789_v39, 0.0 }
0x153f   :  { %2479 = vrsqrt.f32 %v587_v13 }
0x1548   :  { %v2478_v29 = vpop.eup %2477 }
0x1549   :  { %v791_v4 = vmul.f32 %v2478_v29, %v789_v39  ;;  %v2480_v36 = vpop.eup %2479 }
0x154a   :  { %v589_v46 = vmul.f32 %v2480_v36, %v587_v13 }
0x154b   :  { %v793_v0 = vsel %vm792_vm0, %v789_v39, %v791_v4 }
0x154c   :  { %v796_v49 = vsel %vm794_vm1, %v795_v38, %v793_v0  ;;  %v591_v62 = vsel %vm590_vm2, %v587_v13, %v589_v46 }
0x154d   :  { %v797_v55 = vadd.f32 1e-06, %v796_v49  ;;  %v594_v57 = vsel %vm592_vm3, %v593_v56, %v591_v62 }
0x154e   :  { %vm595_vm6 = vcmp.lt.f32.partialorder %v594_v57, 0.0001 }
0x154f   :  { %2481 = vrcp.f32 %v797_v55  ;;  %v2368_v58 = vsel %vm595_vm6, 1.0, %v3791_v25 }
0x1550   :  { %v2948_v44 = vmax.f32 %v2871_v3, %v2368_v58 }
0x1552   :  { %3844 = vst [vmem:[#allocation9_spill] sm:$0xff] %v2948_v44  ;;  %v2955_v5 = vsub.f32 1.0, %v2948_v44  ;;  %v842_v61 = vmul.f32 %v2948_v44, %v2885_v2 }
0x1554   :  { %3845 = vst [vmem:[#allocation10_spill] sm:$0xff] %v2955_v5 }
0x1559   :  { %v2482_v45 = vpop.eup %2481 }
0x155a   :  { %v800_v59 = vmin.f32 %v2482_v45, 1.0 }
0x155c   :  { %v801_v60 = vmul.f32 %v800_v59, %v785_v31 }
0x155e   :  { %v2950_v15 = vadd.f32 %v802_v63, %v801_v60 }
0x1560   :  { %v804_v42 = vmul.f32 0.01, %v2950_v15 }
0x1562   :  { %v805_v53 = vsub.f32 %v2885_v2, %v804_v42 }
0x1564   :  { %v843_v52 = vmul.f32 %v2955_v5, %v805_v53 }
0x1566   :  { %v2960_v7 = vadd.f32 %v843_v52, %v842_v61 }
0x1568   :  { %v852_v51 = vsel %vm20_vm5, %v2960_v7, -1e+30 }
0x1569   :  { %v853_v10 = vsel %vm200_vm4, %v852_v51, -inf }
0x156a   :  { %854 = vmax.xlane.f32.xlu1 %v853_v10 }
0x15f7   :  { %v855_v11 = vpop.xlane.xlu1 %854 }
0x15f8   :  { %v2966_v17 = vsub.f32 %v852_v51, %v855_v11 }
0x15fa   :  { %3846 = vst [vmem:[#allocation11_spill] sm:$0xff] %v2966_v17  ;;  %v857_v19 = vmul.f32 1.442695, %v2966_v17 }
0x15fc   :  { %2483 = vpow2.f32 %v857_v19 }
0x1606   :  { %v2484_v41 = vpop.eup %2483 }
0x1607   :  { %v859_v2 = vsel %vm200_vm4, %v2484_v41, 0.0 }
0x1608   :  { %860 = vadd.xlane.f32.xlu0 %v859_v2 }
0x1695   :  { %v2970_v30 = vpop.xlane.xlu0 %860 }
0x1696   :  { %3847 = vst [vmem:[#allocation12_spill] sm:$0xff] %v2970_v30  ;;  %2485 = vrcp.f32 %v2970_v30 }
0x16a0   :  { %v2486_v20 = vpop.eup %2485 }
0x16a1   :  { %v2973_v31 = vmul.f32 %v2486_v20, %v2484_v41 }
0x16a3   :  { %v2977_v12 = vrot.slane %v2973_v31, %v2731_v24 }
0x16a5   :  { %v872_v1 = vmul.f32 %v2977_v12, %v2733_v27 }
0x16a7   :  { %873 = vadd.xlane.f32.xlu1 %v872_v1 }
0x1734   :  { %v874_v39 = vpop.xlane.xlu1 %873 }
0x1735   :  { %2487 = vrcp.f32 %v874_v39 }
0x173f   :  { %v2981_v13 = vpop.eup %2487 }
0x1740   :  { %v2984_v29 = vmul.f32 %v2981_v13, %v872_v1 }
0x1742   :  { %v878_v4 = vrot.slane %v2984_v29, 4 }
0x1744   :  { %v879_v38 = vadd.f32 %v878_v4, %v2984_v29 }
0x1746   :  { %v880_v36 = vrot.slane %v879_v38, 2 }
0x1748   :  { %v881_v0 = vadd.f32 %v880_v36, %v879_v38 }
0x174a   :  { %v882_v49 = vrot.slane %v881_v0, 1 }
0x174c   :  { %v883_v55 = vadd.f32 %v882_v49, %v881_v0 }
0x174e   :  { %v884_v46 = vsel %vm20_vm5, %v883_v55, 1.0 }
0x174f   :  { %2489 = vrcp.f32 %v884_v46 }
0x1759   :  { %v2990_v62 = vpop.eup %2489 }
0x175a   :  { %v886_v56 = vmul.f32 %v2990_v62, %v2984_v29 }
0x175c   :  { %v887_v57 = vmul.f32 %v886_v56, %v2977_v12 }
0x175e   :  { %888 = vadd.xlane.f32.xlu0 %v887_v57 }
0x17eb   :  { %v889_v45 = vpop.xlane.xlu0 %888 }
0x17ec   :  { %2491 = vrcp.f32 %v889_v45 }
0x17f6   :  { %v2492_v59 = vpop.eup %2491 }
0x17f7   :  { %v892_v58 = vmul.f32 %v2492_v59, %v887_v57 }
0x17f9   :  { %v893_v60 = vrot.slane %v892_v58, 4 }
0x17fb   :  { %v894_v63 = vadd.f32 %v893_v60, %v892_v58 }
0x17fd   :  { %v895_v42 = vrot.slane %v894_v63, 2 }
0x17ff   :  { %v896_v53 = vadd.f32 %v895_v42, %v894_v63 }
0x1801   :  { %v897_v61 = vrot.slane %v896_v53, 1 }
0x1803   :  { %v898_v52 = vadd.f32 %v897_v61, %v896_v53 }
0x1805   :  { %v899_v51 = vsel %vm20_vm5, %v898_v52, 1.0 }
0x1806   :  { %2493 = vrcp.f32 %v899_v51 }
0x1810   :  { %v2494_v10 = vpop.eup %2493 }
0x1811   :  { %v901_v11 = vmul.f32 %v2494_v10, %v892_v58 }
0x1813   :  { %v902_v19 = vmul.f32 %v901_v11, %v2977_v12 }
0x1815   :  { %903 = vadd.xlane.f32.xlu1 %v902_v19 }
0x18a2   :  { %v904_v41 = vpop.xlane.xlu1 %903 }
0x18a3   :  { %2495 = vrcp.f32 %v904_v41 }
0x18ad   :  { %v2496_v2 = vpop.eup %2495 }
0x18ae   :  { %v2998_v20 = vmul.f32 %v2496_v2, %v902_v19 }
0x18b0   :  { %v930_v1 = vmul.f32 %v2998_v20, %v2766_v8 }
0x18b2   :  { %931 = vadd.xlane.f32.xlu0 %v930_v1 }
0x193f   :  { %v932_v39 = vpop.xlane.xlu0 %931 }
0x1940   :  { %v933_v4 = vsub.f32 %v2766_v8, %v932_v39 }
0x1942   :  { %v934_v38 = vmul.f32 %v2496_v2, %v933_v4 }
0x1944   :  { %v943_v36 = vmul.f32 %v934_v38, %v2977_v12  ;;  %v935_v61 = vmul.f32 %v934_v38, %v901_v11 }
0x1946   :  { %v944_v0 = vmul.f32 %v943_v36, %v901_v11  ;;  %v936_v52 = vrot.slane %v935_v61, 4 }
0x1948   :  { %v945_v49 = vrot.slane %v944_v0, 4  ;;  %v937_v19 = vadd.f32 %v936_v52, %v935_v61 }
0x194a   :  { %v946_v55 = vadd.f32 %v945_v49, %v944_v0  ;;  %v938_v2 = vrot.slane %v937_v19, 2 }
0x194c   :  { %v947_v46 = vrot.slane %v946_v55, 2  ;;  %v939_v49 = vadd.f32 %v938_v2, %v937_v19 }
0x194e   :  { %v948_v57 = vadd.f32 %v947_v46, %v946_v55 }
0x1950   :  { %v949_v45 = vrot.slane %v948_v57, 1 }
0x1952   :  { %v950_v60 = vadd.f32 %v949_v45, %v948_v57  ;;  %v940_v45 = vrot.slane %v939_v49, 1 }
0x1954   :  { %v951_v63 = vsub.f32 %v943_v36, %v950_v60 }
0x1956   :  { %v952_v42 = vmul.f32 %v2494_v10, %v951_v63  ;;  %v941_v63 = vadd.f32 %v940_v45, %v939_v49 }
0x1958   :  { %v953_v53 = vmul.f32 %v952_v42, %v892_v58 }
0x195a   :  { %954 = vadd.xlane.f32.xlu1 %v953_v53 }
0x19e7   :  { %v955_v51 = vpop.xlane.xlu1 %954 }
0x19e8   :  { %v956_v41 = vsub.f32 %v952_v42, %v955_v51 }
0x19ea   :  { %v957_v1 = vmul.f32 %v2492_v59, %v956_v41 }
0x19ec   :  { %v958_v39 = vmul.f32 %v957_v1, %v886_v56  ;;  %v966_v4 = vmul.f32 %v957_v1, %v2977_v12 }
0x19ee   :  { %v959_v25 = vrot.slane %v958_v39, 4  ;;  %v967_v0 = vmul.f32 %v966_v4, %v886_v56 }
0x19f0   :  { %v960_v55 = vadd.f32 %v959_v25, %v958_v39  ;;  %v968_v46 = vrot.slane %v967_v0, 4 }
0x19f2   :  { %v961_v57 = vrot.slane %v960_v55, 2  ;;  %v969_v36 = vadd.f32 %v968_v46, %v967_v0  ;;  %v635_v0 = vmul.f32 %v2875_v48, %v2822_v14  ;;  %v995_v14 = vsub.f32 %v2973_v31, %v2796_v37 }
0x19f4   :  { %v962_v10 = vadd.f32 %v961_v57, %v960_v55  ;;  %v970_v58 = vrot.slane %v969_v36, 2 }
0x19f6   :  { %v971_v11 = vadd.f32 %v970_v58, %v969_v36  ;;  %v963_v38 = vrot.slane %v962_v10, 1 }
0x19f8   :  { %v972_v60 = vrot.slane %v971_v11, 1  ;;  %v964_v42 = vadd.f32 %v963_v38, %v962_v10 }
0x19fa   :  { %v973_v59 = vadd.f32 %v972_v60, %v971_v11  ;;  %v965_v53 = vadd.f32 %v964_v42, %v941_v63 }
0x19fc   :  { %v974_v61 = vsub.f32 %v966_v4, %v973_v59 }
0x19fe   :  { %v975_v12 = vmul.f32 %v2990_v62, %v974_v61  ;;  %v634_v62 = vmul.f32 %v2871_v3, %v2728_v23  ;;  %v996_v23 = vmul.f32 0.05, %v995_v14 }
0x1a00   :  { %v976_v56 = vmul.f32 %v975_v12, %v2984_v29  ;;  %v3013_v29 = vadd.f32 %v635_v0, %v634_v62  ;;  %v997_v11 = vmul.f32 0.33333334, %v996_v23  ;;  %v846_v0 = vmul.f32 %v2955_v5, %v2950_v15 }
0x1a01   :  { %v845_v62 = vmul.f32 %v2948_v44, %v2880_v26 }
0x1a02   :  { %977 = vadd.xlane.f32.xlu0 %v976_v56 }
0x1a8f   :  { %v978_v25 = vpop.xlane.xlu0 %977 }
0x1a90   :  { %v979_v52 = vsub.f32 %v975_v12, %v978_v25 }
0x1a92   :  { %v980_v51 = vmul.f32 %v2981_v13, %v979_v52  ;;  %v806_v13 = vsub.f32 %v2898_v43, %v3013_v29 }
0x1a94   :  { %v981_v19 = vmul.f32 %v980_v51, %v2733_v27  ;;  %v807_v36 = vmul.f32 %v806_v13, %v806_v13 }
0x1a96   :  { %v982_v41 = vrot.slane %v981_v19, 4  ;;  %v808_v10 = vsel %vm200_vm4, %v807_v36, 0.0 }
0x1a98   :  { %v983_v1 = vadd.f32 %v982_v41, %v981_v19 }
0x1a9a   :  { %v984_v2 = vrot.slane %v983_v1, 2 }
0x1a9c   :  { %v985_v39 = vadd.f32 %v984_v2, %v983_v1 }
0x1a9e   :  { %v986_v49 = vrot.slane %v985_v39, 1 }
0x1aa0   :  { %v987_v4 = vadd.f32 %v986_v49, %v985_v39 }
0x1aa2   :  { %v988_v55 = vadd.f32 %v987_v4, %v965_v53  ;;  %v3030_v4 = vadd.f32 %v846_v0, %v845_v62 }
0x1aa4   :  { %v989_v46 = vmul.f32 %v988_v55, %v2973_v31 }
0x1aa6   :  { %v990_v57 = vsel %vm200_vm4, %v989_v46, 0.0  ;;  %v3848_v46 = vmov 0.0  }
0x1aa7   :  { %991 = vadd.xlane.f32.xlu1 %v990_v57 }
0x1aab   :  { %809 = vadd.xlane.f32.xlu1 %v808_v10  ;;  %v1016_v10 = vmul.f32 0.9, %v3030_v4 }
0x1b34   :  { %v992_v58 = vpop.xlane.xlu1 %991 }
0x1b35   :  { %v993_v45 = vsub.f32 %v988_v55, %v992_v58 }
0x1b37   :  { %v994_v38 = vmul.f32 %v993_v45, %v2973_v31 }
0x1b38   :  { %v810_v61 = vpop.xlane.xlu1 %809 }
0x1b39   :  { %v998_v60 = vadd.f32 %v997_v11, %v994_v38  ;;  %vm813_vm10 = vcmp.eq.f32.partialorder %v810_v61, inf  ;;  %v816_v39 = vand.u32 2147483648, %v810_v61  ;;  %vm815_vm11 = vcmp.eq.f32.partialorder %v810_v61, 0.0 }
0x1b3b   :  { %v999_v63 = vsel %vm20_vm5, %v998_v60, 0.0 }
0x1b3c   :  { %v1000_v42 = vmul.f32 %v999_v63, %v999_v63 }
0x1b3e   :  { %v1001_v59 = vsel %vm200_vm4, %v1000_v42, 0.0 }
0x1b3f   :  { %1002 = vadd.xlane.f32.xlu0 %v1001_v59 }
0x1bcc   :  { %v1003_v53 = vpop.xlane.xlu0 %1002 }
0x1bcd   :  { %2497 = vrsqrt.f32 %v1003_v53  ;;  %vm1006_vm7 = vcmp.eq.f32.partialorder %v1003_v53, inf  ;;  %v1009_v25 = vand.u32 2147483648, %v1003_v53  ;;  %vm1008_vm9 = vcmp.eq.f32.partialorder %v1003_v53, 0.0 }
0x1bce   :  { %2499 = vrsqrt.f32 %v810_v61 }
0x1bd7   :  { %v2498_v12 = vpop.eup %2497 }
0x1bd8   :  { %v1005_v56 = vmul.f32 %v2498_v12, %v1003_v53  ;;  %v2500_v52 = vpop.eup %2499 }
0x1bd9   :  { %v812_v1 = vmul.f32 %v2500_v52, %v810_v61 }
0x1bda   :  { %v1007_v51 = vsel %vm1006_vm7, %v1003_v53, %v1005_v56 }
0x1bdb   :  { %v1010_v19 = vsel %vm1008_vm9, %v1009_v25, %v1007_v51  ;;  %v814_v2 = vsel %vm813_vm10, %v810_v61, %v812_v1 }
0x1bdc   :  { %v1011_v41 = vadd.f32 1e-06, %v1010_v19  ;;  %v817_v49 = vsel %vm815_vm11, %v816_v39, %v814_v2 }
0x1bdd   :  { %vm818_vm12 = vcmp.lt.f32.partialorder %v817_v49, 0.0001 }
0x1bde   :  { %2501 = vrcp.f32 %v1011_v41  ;;  %v2369_v57 = vsel %vm818_vm12, 1.0, %v3848_v46 }
0x1bdf   :  { %v3035_v14 = vmax.f32 %v2948_v44, %v2369_v57 }
0x1be1   :  { %3849 = vst [vmem:[#allocation13_spill] sm:$0xff] %v3035_v14  ;;  %v3042_v26 = vsub.f32 1.0, %v3035_v14  ;;  %v1056_v45 = vmul.f32 %v3035_v14, %v2960_v7 }
0x1be3   :  { %3850 = vst [vmem:[#allocation14_spill] sm:$0xff] %v3042_v26 }
0x1be8   :  { %v2502_v55 = vpop.eup %2501 }
0x1be9   :  { %v1014_v13 = vmin.f32 %v2502_v55, 1.0 }
0x1beb   :  { %v1015_v36 = vmul.f32 %v1014_v13, %v999_v63 }
0x1bed   :  { %v3037_v23 = vadd.f32 %v1016_v10, %v1015_v36 }
0x1bef   :  { %v1018_v15 = vmul.f32 0.01, %v3037_v23 }
0x1bf1   :  { %v1019_v58 = vsub.f32 %v2960_v7, %v1018_v15 }
0x1bf3   :  { %v1057_v11 = vmul.f32 %v3042_v26, %v1019_v58 }
0x1bf5   :  { %v3047_v38 = vadd.f32 %v1057_v11, %v1056_v45 }
0x1bf7   :  { %v1066_v60 = vsel %vm20_vm5, %v3047_v38, -1e+30 }
0x1bf8   :  { %v1067_v63 = vsel %vm200_vm4, %v1066_v60, -inf }
0x1bf9   :  { %1068 = vmax.xlane.f32.xlu0 %v1067_v63 }
0x1c86   :  { %v1069_v42 = vpop.xlane.xlu0 %1068 }
0x1c87   :  { %v3053_v59 = vsub.f32 %v1066_v60, %v1069_v42 }
0x1c89   :  { %v1071_v53 = vmul.f32 1.442695, %v3053_v59 }
0x1c8b   :  { %2503 = vpow2.f32 %v1071_v53 }
0x1c95   :  { %v2504_v61 = vpop.eup %2503 }
0x1c96   :  { %v1073_v7 = vsel %vm200_vm4, %v2504_v61, 0.0 }
0x1c97   :  { %1074 = vadd.xlane.f32.xlu1 %v1073_v7 }
0x1d24   :  { %v3057_v12 = vpop.xlane.xlu1 %1074 }
0x1d25   :  { %2505 = vrcp.f32 %v3057_v12 }
0x1d2f   :  { %v2506_v56 = vpop.eup %2505 }
0x1d30   :  { %v3060_v25 = vmul.f32 %v2506_v56, %v2504_v61 }
0x1d32   :  { %v3064_v52 = vrot.slane %v3060_v25, %v2731_v24 }
0x1d34   :  { %v1086_v51 = vmul.f32 %v3064_v52, %v2733_v27 }
0x1d36   :  { %1087 = vadd.xlane.f32.xlu0 %v1086_v51 }
0x1dc3   :  { %v1088_v19 = vpop.xlane.xlu0 %1087 }
0x1dc4   :  { %2507 = vrcp.f32 %v1088_v19 }
0x1dce   :  { %v3068_v41 = vpop.eup %2507 }
0x1dcf   :  { %v3071_v1 = vmul.f32 %v3068_v41, %v1086_v51 }
0x1dd1   :  { %v1092_v2 = vrot.slane %v3071_v1, 4 }
0x1dd3   :  { %v1093_v39 = vadd.f32 %v1092_v2, %v3071_v1 }
0x1dd5   :  { %v1094_v0 = vrot.slane %v1093_v39, 2 }
0x1dd7   :  { %v1095_v49 = vadd.f32 %v1094_v0, %v1093_v39 }
0x1dd9   :  { %v1096_v62 = vrot.slane %v1095_v49, 1 }
0x1ddb   :  { %v1097_v55 = vadd.f32 %v1096_v62, %v1095_v49 }
0x1ddd   :  { %v1098_v13 = vsel %vm20_vm5, %v1097_v55, 1.0 }
0x1dde   :  { %2509 = vrcp.f32 %v1098_v13 }
0x1de8   :  { %v3077_v57 = vpop.eup %2509 }
0x1de9   :  { %v1100_v36 = vmul.f32 %v3077_v57, %v3071_v1 }
0x1deb   :  { %v1101_v10 = vmul.f32 %v1100_v36, %v3064_v52 }
0x1ded   :  { %1102 = vadd.xlane.f32.xlu1 %v1101_v10 }
0x1e7a   :  { %v1103_v15 = vpop.xlane.xlu1 %1102 }
0x1e7b   :  { %2511 = vrcp.f32 %v1103_v15 }
0x1e85   :  { %v2512_v58 = vpop.eup %2511 }
0x1e86   :  { %v1106_v45 = vmul.f32 %v2512_v58, %v1101_v10 }
0x1e88   :  { %v1107_v11 = vrot.slane %v1106_v45, 4 }
0x1e8a   :  { %v1108_v60 = vadd.f32 %v1107_v11, %v1106_v45 }
0x1e8c   :  { %v1109_v63 = vrot.slane %v1108_v60, 2 }
0x1e8e   :  { %v1110_v42 = vadd.f32 %v1109_v63, %v1108_v60 }
0x1e90   :  { %v1111_v53 = vrot.slane %v1110_v42, 1 }
0x1e92   :  { %v1112_v61 = vadd.f32 %v1111_v53, %v1110_v42 }
0x1e94   :  { %v1113_v7 = vsel %vm20_vm5, %v1112_v61, 1.0 }
0x1e95   :  { %2513 = vrcp.f32 %v1113_v7 }
0x1e9f   :  { %v2514_v56 = vpop.eup %2513 }
0x1ea0   :  { %v1115_v51 = vmul.f32 %v2514_v56, %v1106_v45 }
0x1ea2   :  { %v1116_v19 = vmul.f32 %v1115_v51, %v3064_v52 }
0x1ea4   :  { %1117 = vadd.xlane.f32.xlu0 %v1116_v19 }
0x1f31   :  { %v1118_v2 = vpop.xlane.xlu0 %1117 }
0x1f32   :  { %2515 = vrcp.f32 %v1118_v2 }
0x1f3c   :  { %v2516_v39 = vpop.eup %2515 }
0x1f3d   :  { %v3085_v0 = vmul.f32 %v2516_v39, %v1116_v19 }
0x1f3f   :  { %3851 = vst [vmem:[#allocation15_spill] sm:$0xff] %v3085_v0  ;;  %v1144_v49 = vmul.f32 %v3085_v0, %v2766_v8 }
0x1f41   :  { %1145 = vadd.xlane.f32.xlu1 %v1144_v49 }
0x1fce   :  { %v1146_v62 = vpop.xlane.xlu1 %1145 }
0x1fcf   :  { %v1147_v55 = vsub.f32 %v2766_v8, %v1146_v62 }
0x1fd1   :  { %v1148_v13 = vmul.f32 %v2516_v39, %v1147_v55 }
0x1fd3   :  { %v1157_v10 = vmul.f32 %v1148_v13, %v3064_v52  ;;  %v1149_v21 = vmul.f32 %v1148_v13, %v1115_v51 }
0x1fd5   :  { %v1158_v15 = vmul.f32 %v1157_v10, %v1115_v51  ;;  %v1150_v3 = vrot.slane %v1149_v21, 4 }
0x1fd7   :  { %v1159_v11 = vrot.slane %v1158_v15, 4  ;;  %v1151_v48 = vadd.f32 %v1150_v3, %v1149_v21 }
0x1fd9   :  { %v1160_v60 = vadd.f32 %v1159_v11, %v1158_v15  ;;  %v1152_v39 = vrot.slane %v1151_v48, 2 }
0x1fdb   :  { %v1161_v63 = vrot.slane %v1160_v60, 2  ;;  %v1153_v11 = vadd.f32 %v1152_v39, %v1151_v48 }
0x1fdd   :  { %v1162_v42 = vadd.f32 %v1161_v63, %v1160_v60 }
0x1fdf   :  { %v1163_v53 = vrot.slane %v1162_v42, 1 }
0x1fe1   :  { %v1164_v61 = vadd.f32 %v1163_v53, %v1162_v42  ;;  %v1154_v53 = vrot.slane %v1153_v11, 1 }
0x1fe3   :  { %v1165_v7 = vsub.f32 %v1157_v10, %v1164_v61  ;;  %v1155_v21 = vadd.f32 %v1154_v53, %v1153_v11 }
0x1fe5   :  { %v1166_v19 = vmul.f32 %v2514_v56, %v1165_v7 }
0x1fe7   :  { %v1167_v2 = vmul.f32 %v1166_v19, %v1106_v45 }
0x1fe9   :  { %1168 = vadd.xlane.f32.xlu0 %v1167_v2 }
0x2076   :  { %v1169_v49 = vpop.xlane.xlu0 %1168 }
0x2077   :  { %v1170_v0 = vsub.f32 %v1166_v19, %v1169_v49 }
0x2079   :  { %v1171_v62 = vmul.f32 %v2512_v58, %v1170_v0 }
0x207b   :  { %v1172_v55 = vmul.f32 %v1171_v62, %v1100_v36  ;;  %v1180_v22 = vmul.f32 %v1171_v62, %v3064_v52 }
0x207d   :  { %v1173_v9 = vrot.slane %v1172_v55, 4  ;;  %v1181_v15 = vmul.f32 %v1180_v22, %v1100_v36 }
0x207f   :  { %v1174_v60 = vadd.f32 %v1173_v9, %v1172_v55  ;;  %v1182_v63 = vrot.slane %v1181_v15, 4 }
0x2081   :  { %v1175_v42 = vrot.slane %v1174_v60, 2  ;;  %v1183_v10 = vadd.f32 %v1182_v63, %v1181_v15  ;;  %v849_v15 = vmul.f32 %v2955_v5, %v2898_v43  ;;  %v1209_v43 = vsub.f32 %v3060_v25, %v2796_v37 }
0x2083   :  { %v1176_v56 = vadd.f32 %v1175_v42, %v1174_v60  ;;  %v1184_v45 = vrot.slane %v1183_v10, 2 }
0x2085   :  { %v1185_v51 = vadd.f32 %v1184_v45, %v1183_v10  ;;  %v1177_v13 = vrot.slane %v1176_v56, 1 }
0x2087   :  { %v1186_v61 = vrot.slane %v1185_v51, 1  ;;  %v1178_v3 = vadd.f32 %v1177_v13, %v1176_v56 }
0x2089   :  { %v1187_v58 = vadd.f32 %v1186_v61, %v1185_v51  ;;  %v1179_v0 = vadd.f32 %v1178_v3, %v1155_v21 }
0x208b   :  { %v1188_v7 = vsub.f32 %v1180_v22, %v1187_v58  ;;  %v848_v22 = vmul.f32 %v2948_v44, %v3013_v29  ;;  %v1210_v29 = vmul.f32 0.05, %v1209_v43 }
0x208d   :  { %v1189_v52 = vmul.f32 %v3077_v57, %v1188_v7  ;;  %v1211_v51 = vmul.f32 0.33333334, %v1210_v29 }
0x208f   :  { %v1190_v36 = vmul.f32 %v1189_v52, %v3071_v1  ;;  %v3100_v1 = vadd.f32 %v849_v15, %v848_v22  ;;  %v1060_v15 = vmul.f32 %v3042_v26, %v3037_v23  ;;  %v1059_v22 = vmul.f32 %v3035_v14, %v3030_v4 }
0x2091   :  { %1191 = vadd.xlane.f32.xlu1 %v1190_v36 }
0x211e   :  { %v1192_v9 = vpop.xlane.xlu1 %1191 }
0x211f   :  { %v1193_v48 = vsub.f32 %v1189_v52, %v1192_v9 }
0x2121   :  { %v1194_v19 = vmul.f32 %v3068_v41, %v1193_v48  ;;  %v1020_v41 = vsub.f32 %v2973_v31, %v3100_v1 }
0x2123   :  { %v1195_v2 = vmul.f32 %v1194_v19, %v2733_v27  ;;  %v1021_v10 = vmul.f32 %v1020_v41, %v1020_v41 }
0x2125   :  { %v1196_v49 = vrot.slane %v1195_v2, 4  ;;  %v1022_v56 = vsel %vm200_vm4, %v1021_v10, 0.0 }
0x2127   :  { %v1197_v62 = vadd.f32 %v1196_v49, %v1195_v2 }
0x2129   :  { %v1198_v39 = vrot.slane %v1197_v62, 2 }
0x212b   :  { %v1199_v55 = vadd.f32 %v1198_v39, %v1197_v62 }
0x212d   :  { %v1200_v11 = vrot.slane %v1199_v55, 1 }
0x212f   :  { %v1201_v57 = vadd.f32 %v1200_v11, %v1199_v55 }
0x2131   :  { %v1202_v60 = vadd.f32 %v1201_v57, %v1179_v0  ;;  %v3117_v57 = vadd.f32 %v1060_v15, %v1059_v22 }
0x2133   :  { %v1203_v63 = vmul.f32 %v1202_v60, %v3060_v25  ;;  %v1230_v10 = vmul.f32 0.9, %v3117_v57 }
0x2135   :  { %v1204_v42 = vsel %vm200_vm4, %v1203_v63, 0.0 }
0x2136   :  { %1205 = vadd.xlane.f32.xlu0 %v1204_v42 }
0x213a   :  { %1023 = vadd.xlane.f32.xlu0 %v1022_v56 }
0x21c3   :  { %v1206_v45 = vpop.xlane.xlu0 %1205 }
0x21c4   :  { %v1207_v53 = vsub.f32 %v1202_v60, %v1206_v45 }
0x21c6   :  { %v1208_v13 = vmul.f32 %v1207_v53, %v3060_v25 }
0x21c7   :  { %v1024_v7 = vpop.xlane.xlu0 %1023 }
0x21c8   :  { %v1212_v61 = vadd.f32 %v1211_v51, %v1208_v13  ;;  %vm1027_vm15 = vcmp.eq.f32.partialorder %v1024_v7, inf  ;;  %v1030_v55 = vand.u32 2147483648, %v1024_v7  ;;  %vm1029_vm0 = vcmp.eq.f32.partialorder %v1024_v7, 0.0 }
0x21ca   :  { %v1213_v21 = vsel %vm20_vm5, %v1212_v61, 0.0 }
0x21cb   :  { %v1214_v3 = vmul.f32 %v1213_v21, %v1213_v21 }
0x21cd   :  { %v1215_v58 = vsel %vm200_vm4, %v1214_v3, 0.0 }
0x21ce   :  { %1216 = vadd.xlane.f32.xlu1 %v1215_v58 }
0x225b   :  { %v1217_v0 = vpop.xlane.xlu1 %1216 }
0x225c   :  { %2517 = vrsqrt.f32 %v1217_v0  ;;  %vm1220_vm13 = vcmp.eq.f32.partialorder %v1217_v0, inf  ;;  %v1223_v9 = vand.u32 2147483648, %v1217_v0  ;;  %vm1222_vm14 = vcmp.eq.f32.partialorder %v1217_v0, 0.0 }
0x225d   :  { %2519 = vrsqrt.f32 %v1024_v7 }
0x2266   :  { %v2518_v52 = vpop.eup %2517 }
0x2267   :  { %v1219_v36 = vmul.f32 %v2518_v52, %v1217_v0  ;;  %v2520_v48 = vpop.eup %2519 }
0x2268   :  { %v1026_v62 = vmul.f32 %v2520_v48, %v1024_v7 }
0x2269   :  { %v1221_v19 = vsel %vm1220_vm13, %v1217_v0, %v1219_v36 }
0x226a   :  { %v1224_v2 = vsel %vm1222_vm14, %v1223_v9, %v1221_v19  ;;  %v1028_v39 = vsel %vm1027_vm15, %v1024_v7, %v1026_v62 }
0x226b   :  { %v1225_v49 = vadd.f32 1e-06, %v1224_v2  ;;  %v1031_v11 = vsel %vm1029_vm0, %v1030_v55, %v1028_v39 }
0x226c   :  { %vm1032_vm1 = vcmp.lt.f32.partialorder %v1031_v11, 0.0001 }
0x226d   :  { %2521 = vrcp.f32 %v1225_v49  ;;  %v2370_v63 = vsel %vm1032_vm1, 1.0, %v3848_v46 }
0x226e   :  { %v3122_v56 = vmax.f32 %v3035_v14, %v2370_v63 }
0x2270   :  { %3852 = vst [vmem:[#allocation16_spill] sm:$0xff] %v3122_v56  ;;  %v3129_v4 = vsub.f32 1.0, %v3122_v56  ;;  %v1270_v45 = vmul.f32 %v3122_v56, %v3047_v38 }
0x2272   :  { %3853 = vst [vmem:[#allocation17_spill] sm:$0xff] %v3129_v4 }
0x2277   :  { %v2522_v60 = vpop.eup %2521 }
0x2278   :  { %v1228_v41 = vmin.f32 %v2522_v60, 1.0 }
0x227a   :  { %v1229_v42 = vmul.f32 %v1228_v41, %v1213_v21 }
0x227c   :  { %v3124_v43 = vadd.f32 %v1230_v10, %v1229_v42 }
0x227e   :  { %v1232_v23 = vmul.f32 0.01, %v3124_v43 }
0x2280   :  { %v1233_v29 = vsub.f32 %v3047_v38, %v1232_v23 }
0x2282   :  { %v1271_v53 = vmul.f32 %v3129_v4, %v1233_v29 }
0x2284   :  { %v3134_v51 = vadd.f32 %v1271_v53, %v1270_v45 }
0x2286   :  { %v1280_v13 = vsel %vm20_vm5, %v3134_v51, -1e+30 }
0x2287   :  { %v1281_v61 = vsel %vm200_vm4, %v1280_v13, -inf }
0x2288   :  { %1282 = vmax.xlane.f32.xlu1 %v1281_v61 }
0x2315   :  { %v1283_v21 = vpop.xlane.xlu1 %1282 }
0x2316   :  { %v3140_v3 = vsub.f32 %v1280_v13, %v1283_v21 }
0x2318   :  { %v1285_v58 = vmul.f32 1.442695, %v3140_v3 }
0x231a   :  { %2523 = vpow2.f32 %v1285_v58 }
0x2324   :  { %v2524_v0 = vpop.eup %2523 }
0x2325   :  { %v1287_v38 = vsel %vm200_vm4, %v2524_v0, 0.0 }
0x2326   :  { %1288 = vadd.xlane.f32.xlu0 %v1287_v38 }
0x23b3   :  { %v3144_v7 = vpop.xlane.xlu0 %1288 }
0x23b4   :  { %2525 = vrcp.f32 %v3144_v7 }
0x23be   :  { %v2526_v52 = vpop.eup %2525 }
0x23bf   :  { %v3147_v36 = vmul.f32 %v2526_v52, %v2524_v0 }
0x23c1   :  { %v3151_v9 = vrot.slane %v3147_v36, %v2731_v24 }
0x23c3   :  { %v1300_v48 = vmul.f32 %v3151_v9, %v2733_v27 }
0x23c5   :  { %1301 = vadd.xlane.f32.xlu1 %v1300_v48 }
0x2452   :  { %v1302_v19 = vpop.xlane.xlu1 %1301 }
0x2453   :  { %2527 = vrcp.f32 %v1302_v19 }
0x245d   :  { %v3155_v2 = vpop.eup %2527 }
0x245e   :  { %v3158_v49 = vmul.f32 %v3155_v2, %v1300_v48 }
0x2460   :  { %v1306_v62 = vrot.slane %v3158_v49, 4 }
0x2462   :  { %v1307_v39 = vadd.f32 %v1306_v62, %v3158_v49 }
0x2464   :  { %v1308_v55 = vrot.slane %v1307_v39, 2 }
0x2466   :  { %v1309_v15 = vadd.f32 %v1308_v55, %v1307_v39 }
0x2468   :  { %v1310_v11 = vrot.slane %v1309_v15, 1 }
0x246a   :  { %v1311_v22 = vadd.f32 %v1310_v11, %v1309_v15 }
0x246c   :  { %v1312_v60 = vsel %vm20_vm5, %v1311_v22, 1.0 }
0x246d   :  { %2529 = vrcp.f32 %v1312_v60 }
0x2477   :  { %v3164_v41 = vpop.eup %2529 }
0x2478   :  { %v1314_v63 = vmul.f32 %v3164_v41, %v3158_v49 }
0x247a   :  { %v1315_v42 = vmul.f32 %v1314_v63, %v3151_v9 }
0x247c   :  { %1316 = vadd.xlane.f32.xlu0 %v1315_v42 }
0x2509   :  { %v1317_v10 = vpop.xlane.xlu0 %1316 }
0x250a   :  { %2531 = vrcp.f32 %v1317_v10 }
0x2514   :  { %v2532_v23 = vpop.eup %2531 }
0x2515   :  { %v1320_v29 = vmul.f32 %v2532_v23, %v1315_v42 }
0x2517   :  { %v1321_v45 = vrot.slane %v1320_v29, 4 }
0x2519   :  { %v1322_v53 = vadd.f32 %v1321_v45, %v1320_v29 }
0x251b   :  { %v1323_v13 = vrot.slane %v1322_v53, 2 }
0x251d   :  { %v1324_v61 = vadd.f32 %v1323_v13, %v1322_v53 }
0x251f   :  { %v1325_v21 = vrot.slane %v1324_v61, 1 }
0x2521   :  { %v1326_v58 = vadd.f32 %v1325_v21, %v1324_v61 }
0x2523   :  { %v1327_v0 = vsel %vm20_vm5, %v1326_v58, 1.0 }
0x2524   :  { %2533 = vrcp.f32 %v1327_v0 }
0x252e   :  { %v2534_v38 = vpop.eup %2533 }
0x252f   :  { %v1329_v52 = vmul.f32 %v2534_v38, %v1320_v29 }
0x2531   :  { %v1330_v48 = vmul.f32 %v1329_v52, %v3151_v9 }
0x2533   :  { %1331 = vadd.xlane.f32.xlu1 %v1330_v48 }
0x25c0   :  { %v1332_v19 = vpop.xlane.xlu1 %1331 }
0x25c1   :  { %2535 = vrcp.f32 %v1332_v19 }
0x25cb   :  { %v2536_v62 = vpop.eup %2535 }
0x25cc   :  { %v3172_v39 = vmul.f32 %v2536_v62, %v1330_v48 }
0x25ce   :  { %3854 = vst [vmem:[#allocation18_spill] sm:$0xff] %v3172_v39  ;;  %v1358_v55 = vmul.f32 %v3172_v39, %v2766_v8 }
0x25d0   :  { %1359 = vadd.xlane.f32.xlu0 %v1358_v55 }
0x265d   :  { %v1360_v15 = vpop.xlane.xlu0 %1359 }
0x265e   :  { %v1361_v11 = vsub.f32 %v2766_v8, %v1360_v15 }
0x2660   :  { %v1362_v22 = vmul.f32 %v2536_v62, %v1361_v11 }
0x2662   :  { %v1371_v60 = vmul.f32 %v1362_v22, %v3151_v9  ;;  %v1363_v19 = vmul.f32 %v1362_v22, %v1329_v52 }
0x2664   :  { %v1372_v42 = vmul.f32 %v1371_v60, %v1329_v52  ;;  %v1364_v44 = vrot.slane %v1363_v19, 4 }
0x2666   :  { %v1373_v10 = vrot.slane %v1372_v42, 4  ;;  %v1365_v5 = vadd.f32 %v1364_v44, %v1363_v19 }
0x2668   :  { %v1374_v45 = vadd.f32 %v1373_v10, %v1372_v42  ;;  %v1366_v62 = vrot.slane %v1365_v5, 2 }
0x266a   :  { %v1375_v53 = vrot.slane %v1374_v45, 2  ;;  %v1367_v10 = vadd.f32 %v1366_v62, %v1365_v5 }
0x266c   :  { %v1376_v13 = vadd.f32 %v1375_v53, %v1374_v45 }
0x266e   :  { %v1377_v61 = vrot.slane %v1376_v13, 1 }
0x2670   :  { %v1378_v21 = vadd.f32 %v1377_v61, %v1376_v13  ;;  %v1368_v61 = vrot.slane %v1367_v10, 1 }
0x2672   :  { %v1379_v58 = vsub.f32 %v1371_v60, %v1378_v21  ;;  %v1369_v44 = vadd.f32 %v1368_v61, %v1367_v10 }
0x2674   :  { %v1380_v0 = vmul.f32 %v2534_v38, %v1379_v58 }
0x2676   :  { %v1381_v48 = vmul.f32 %v1380_v0, %v1320_v29 }
0x2678   :  { %1382 = vadd.xlane.f32.xlu1 %v1381_v48 }
0x2705   :  { %v1383_v55 = vpop.xlane.xlu1 %1382 }
0x2706   :  { %v1384_v39 = vsub.f32 %v1380_v0, %v1383_v55 }
0x2708   :  { %v1385_v15 = vmul.f32 %v2532_v23, %v1384_v39 }
0x270a   :  { %v1386_v11 = vmul.f32 %v1385_v15, %v1314_v63  ;;  %v1394_v17 = vmul.f32 %v1385_v15, %v3151_v9 }
0x270c   :  { %v1387_v28 = vrot.slane %v1386_v11, 4  ;;  %v1395_v42 = vmul.f32 %v1394_v17, %v1314_v63 }
0x270e   :  { %v1388_v45 = vadd.f32 %v1387_v28, %v1386_v11  ;;  %v1396_v53 = vrot.slane %v1395_v42, 4 }
0x2710   :  { %v1389_v13 = vrot.slane %v1388_v45, 2  ;;  %v1397_v60 = vadd.f32 %v1396_v53, %v1395_v42  ;;  %v1063_v42 = vmul.f32 %v3042_v26, %v2973_v31  ;;  %v1423_v31 = vsub.f32 %v3147_v36, %v2796_v37 }
0x2712   :  { %v1390_v38 = vadd.f32 %v1389_v13, %v1388_v45  ;;  %v1398_v29 = vrot.slane %v1397_v60, 2 }
0x2714   :  { %v1399_v52 = vadd.f32 %v1398_v29, %v1397_v60  ;;  %v1391_v22 = vrot.slane %v1390_v38, 1 }
0x2716   :  { %v1400_v21 = vrot.slane %v1399_v52, 1  ;;  %v1392_v58 = vadd.f32 %v1391_v22, %v1390_v38 }
0x2718   :  { %v1401_v23 = vadd.f32 %v1400_v21, %v1399_v52  ;;  %v1393_v39 = vadd.f32 %v1392_v58, %v1369_v44 }
0x271a   :  { %v1402_v0 = vsub.f32 %v1394_v17, %v1401_v23  ;;  %v1062_v17 = vmul.f32 %v3035_v14, %v3100_v1  ;;  %v1424_v1 = vmul.f32 0.05, %v1423_v31 }
0x271c   :  { %v1403_v9 = vmul.f32 %v3164_v41, %v1402_v0  ;;  %v1425_v52 = vmul.f32 0.33333334, %v1424_v1 }
0x271e   :  { %v1404_v63 = vmul.f32 %v1403_v9, %v3158_v49  ;;  %v3187_v49 = vadd.f32 %v1063_v42, %v1062_v17  ;;  %v1274_v42 = vmul.f32 %v3129_v4, %v3124_v43  ;;  %v1273_v17 = vmul.f32 %v3122_v56, %v3117_v57 }
0x2720   :  { %1405 = vadd.xlane.f32.xlu0 %v1404_v63 }
0x27ad   :  { %v1406_v28 = vpop.xlane.xlu0 %1405 }
0x27ae   :  { %v1407_v5 = vsub.f32 %v1403_v9, %v1406_v28 }
0x27b0   :  { %v1408_v48 = vmul.f32 %v3155_v2, %v1407_v5  ;;  %v1234_v2 = vsub.f32 %v3060_v25, %v3187_v49 }
0x27b2   :  { %v1409_v19 = vmul.f32 %v1408_v48, %v2733_v27  ;;  %v1235_v60 = vmul.f32 %v1234_v2, %v1234_v2 }
0x27b4   :  { %v1410_v55 = vrot.slane %v1409_v19, 4  ;;  %v1236_v38 = vsel %vm200_vm4, %v1235_v60, 0.0 }
0x27b6   :  { %v1411_v15 = vadd.f32 %v1410_v55, %v1409_v19 }
0x27b8   :  { %v1412_v62 = vrot.slane %v1411_v15, 2 }
0x27ba   :  { %v1413_v11 = vadd.f32 %v1412_v62, %v1411_v15 }
0x27bc   :  { %v1414_v10 = vrot.slane %v1413_v11, 1 }
0x27be   :  { %v1415_v41 = vadd.f32 %v1414_v10, %v1413_v11 }
0x27c0   :  { %v1416_v45 = vadd.f32 %v1415_v41, %v1393_v39  ;;  %v3204_v41 = vadd.f32 %v1274_v42, %v1273_v17 }
0x27c2   :  { %v1417_v53 = vmul.f32 %v1416_v45, %v3147_v36  ;;  %v1444_v60 = vmul.f32 0.9, %v3204_v41 }
0x27c4   :  { %v1418_v13 = vsel %vm200_vm4, %v1417_v53, 0.0 }
0x27c5   :  { %1419 = vadd.xlane.f32.xlu1 %v1418_v13 }
0x27c9   :  { %1237 = vadd.xlane.f32.xlu1 %v1236_v38 }
0x2852   :  { %v1420_v29 = vpop.xlane.xlu1 %1419 }
0x2853   :  { %v1421_v61 = vsub.f32 %v1416_v45, %v1420_v29 }
0x2855   :  { %v1422_v22 = vmul.f32 %v1421_v61, %v3147_v36 }
0x2856   :  { %v1238_v0 = vpop.xlane.xlu1 %1237 }
0x2857   :  { %v1426_v21 = vadd.f32 %v1425_v52, %v1422_v22  ;;  %vm1241_vm6 = vcmp.eq.f32.partialorder %v1238_v0, inf  ;;  %v1244_v11 = vand.u32 2147483648, %v1238_v0  ;;  %vm1243_vm7 = vcmp.eq.f32.partialorder %v1238_v0, 0.0 }
0x2859   :  { %v1427_v44 = vsel %vm20_vm5, %v1426_v21, 0.0 }
0x285a   :  { %v1428_v58 = vmul.f32 %v1427_v44, %v1427_v44 }
0x285c   :  { %v1429_v23 = vsel %vm200_vm4, %v1428_v58, 0.0 }
0x285d   :  { %1430 = vadd.xlane.f32.xlu0 %v1429_v23 }
0x28ea   :  { %v1431_v39 = vpop.xlane.xlu0 %1430 }
0x28eb   :  { %2537 = vrsqrt.f32 %v1431_v39  ;;  %vm1434_vm2 = vcmp.eq.f32.partialorder %v1431_v39, inf  ;;  %v1437_v28 = vand.u32 2147483648, %v1431_v39  ;;  %vm1436_vm3 = vcmp.eq.f32.partialorder %v1431_v39, 0.0 }
0x28ec   :  { %2539 = vrsqrt.f32 %v1238_v0 }
0x28f5   :  { %v2538_v9 = vpop.eup %2537 }
0x28f6   :  { %v1433_v63 = vmul.f32 %v2538_v9, %v1431_v39  ;;  %v2540_v5 = vpop.eup %2539 }
0x28f7   :  { %v1240_v15 = vmul.f32 %v2540_v5, %v1238_v0 }
0x28f8   :  { %v1435_v48 = vsel %vm1434_vm2, %v1431_v39, %v1433_v63 }
0x28f9   :  { %v1438_v19 = vsel %vm1436_vm3, %v1437_v28, %v1435_v48  ;;  %v1242_v62 = vsel %vm1241_vm6, %v1238_v0, %v1240_v15 }
0x28fa   :  { %v1439_v55 = vadd.f32 1e-06, %v1438_v19  ;;  %v1245_v10 = vsel %vm1243_vm7, %v1244_v11, %v1242_v62 }
0x28fb   :  { %vm1246_vm9 = vcmp.lt.f32.partialorder %v1245_v10, 0.0001 }
0x28fc   :  { %2541 = vrcp.f32 %v1439_v55  ;;  %v2371_v53 = vsel %vm1246_vm9, 1.0, %v3848_v46 }
0x28fd   :  { %v3209_v38 = vmax.f32 %v3122_v56, %v2371_v53 }
0x28ff   :  { %3855 = vst [vmem:[#allocation19_spill] sm:$0xff] %v3209_v38  ;;  %v3216_v57 = vsub.f32 1.0, %v3209_v38  ;;  %v1484_v29 = vmul.f32 %v3209_v38, %v3134_v51 }
0x2901   :  { %3856 = vst [vmem:[#allocation20_spill] sm:$0xff] %v3216_v57 }
0x2906   :  { %v2542_v45 = vpop.eup %2541 }
0x2907   :  { %v1442_v2 = vmin.f32 %v2542_v45, 1.0 }
0x2909   :  { %v1443_v13 = vmul.f32 %v1442_v2, %v1427_v44 }
0x290b   :  { %v3211_v31 = vadd.f32 %v1444_v60, %v1443_v13 }
0x290d   :  { %v1446_v43 = vmul.f32 0.01, %v3211_v31 }
0x290f   :  { %v1447_v1 = vsub.f32 %v3134_v51, %v1446_v43 }
0x2911   :  { %v1485_v61 = vmul.f32 %v3216_v57, %v1447_v1 }
0x2913   :  { %v3221_v52 = vadd.f32 %v1485_v61, %v1484_v29 }
0x2915   :  { %v1494_v22 = vsel %vm20_vm5, %v3221_v52, -1e+30 }
0x2916   :  { %v1495_v21 = vsel %vm200_vm4, %v1494_v22, -inf }
0x2917   :  { %1496 = vmax.xlane.f32.xlu0 %v1495_v21 }
0x29a4   :  { %v1497_v44 = vpop.xlane.xlu0 %1496 }
0x29a5   :  { %v3227_v58 = vsub.f32 %v1494_v22, %v1497_v44 }
0x29a7   :  { %3857 = vst [vmem:[#allocation21_spill] sm:$0xff] %v3227_v58  ;;  %v1499_v23 = vmul.f32 1.442695, %v3227_v58 }
0x29a9   :  { %2543 = vpow2.f32 %v1499_v23 }
0x29b3   :  { %v2544_v39 = vpop.eup %2543 }
0x29b4   :  { %v1501_v51 = vsel %vm200_vm4, %v2544_v39, 0.0 }
0x29b5   :  { %1502 = vadd.xlane.f32.xlu1 %v1501_v51 }
0x2a42   :  { %v3231_v0 = vpop.xlane.xlu1 %1502 }
0x2a43   :  { %3858 = vst [vmem:[#allocation22_spill] sm:$0xff] %v3231_v0  ;;  %2545 = vrcp.f32 %v3231_v0 }
0x2a4d   :  { %v2546_v9 = vpop.eup %2545 }
0x2a4e   :  { %v3234_v63 = vmul.f32 %v2546_v9, %v2544_v39 }
0x2a50   :  { %v3238_v28 = vrot.slane %v3234_v63, %v2731_v24 }
0x2a52   :  { %v1514_v5 = vmul.f32 %v3238_v28, %v2733_v27 }
0x2a54   :  { %1515 = vadd.xlane.f32.xlu0 %v1514_v5 }
0x2ae1   :  { %v1516_v48 = vpop.xlane.xlu0 %1515 }
0x2ae2   :  { %2547 = vrcp.f32 %v1516_v48 }
0x2aec   :  { %v3242_v19 = vpop.eup %2547 }
0x2aed   :  { %v3245_v55 = vmul.f32 %v3242_v19, %v1514_v5 }
0x2aef   :  { %v1520_v15 = vrot.slane %v3245_v55, 4 }
0x2af1   :  { %v1521_v62 = vadd.f32 %v1520_v15, %v3245_v55 }
0x2af3   :  { %v1522_v11 = vrot.slane %v1521_v62, 2 }
0x2af5   :  { %v1523_v42 = vadd.f32 %v1522_v11, %v1521_v62 }
0x2af7   :  { %v1524_v10 = vrot.slane %v1523_v42, 1 }
0x2af9   :  { %v1525_v17 = vadd.f32 %v1524_v10, %v1523_v42 }
0x2afb   :  { %v1526_v45 = vsel %vm20_vm5, %v1525_v17, 1.0 }
0x2afc   :  { %2549 = vrcp.f32 %v1526_v45 }
0x2b06   :  { %v3251_v2 = vpop.eup %2549 }
0x2b07   :  { %v1528_v53 = vmul.f32 %v3251_v2, %v3245_v55 }
0x2b09   :  { %v1529_v13 = vmul.f32 %v1528_v53, %v3238_v28 }
0x2b0b   :  { %1530 = vadd.xlane.f32.xlu1 %v1529_v13 }
0x2b98   :  { %v1531_v60 = vpop.xlane.xlu1 %1530 }
0x2b99   :  { %2551 = vrcp.f32 %v1531_v60 }
0x2ba3   :  { %v2552_v43 = vpop.eup %2551 }
0x2ba4   :  { %v1534_v1 = vmul.f32 %v2552_v43, %v1529_v13 }
0x2ba6   :  { %v1535_v29 = vrot.slane %v1534_v1, 4 }
0x2ba8   :  { %v1536_v61 = vadd.f32 %v1535_v29, %v1534_v1 }
0x2baa   :  { %v1537_v22 = vrot.slane %v1536_v61, 2 }
0x2bac   :  { %v1538_v21 = vadd.f32 %v1537_v22, %v1536_v61 }
0x2bae   :  { %v1539_v44 = vrot.slane %v1538_v21, 1 }
0x2bb0   :  { %v1540_v23 = vadd.f32 %v1539_v44, %v1538_v21 }
0x2bb2   :  { %v1541_v39 = vsel %vm20_vm5, %v1540_v23, 1.0 }
0x2bb3   :  { %2553 = vrcp.f32 %v1541_v39 }
0x2bbd   :  { %v2554_v51 = vpop.eup %2553 }
0x2bbe   :  { %v1543_v9 = vmul.f32 %v2554_v51, %v1534_v1 }
0x2bc0   :  { %v1544_v5 = vmul.f32 %v1543_v9, %v3238_v28 }
0x2bc2   :  { %1545 = vadd.xlane.f32.xlu0 %v1544_v5 }
0x2c4f   :  { %v1546_v48 = vpop.xlane.xlu0 %1545 }
0x2c50   :  { %2555 = vrcp.f32 %v1546_v48 }
0x2c5a   :  { %v2556_v15 = vpop.eup %2555 }
0x2c5b   :  { %v3259_v62 = vmul.f32 %v2556_v15, %v1544_v5 }
0x2c5d   :  { %3859 = vst [vmem:[#allocation23_spill] sm:$0xff] %v3259_v62  ;;  %v1572_v11 = vmul.f32 %v3259_v62, %v2766_v8 }
0x2c5f   :  { %1573 = vadd.xlane.f32.xlu1 %v1572_v11 }
0x2cec   :  { %v1574_v42 = vpop.xlane.xlu1 %1573 }
0x2ced   :  { %v1575_v10 = vsub.f32 %v2766_v8, %v1574_v42 }
0x2cef   :  { %v1576_v17 = vmul.f32 %v2556_v15, %v1575_v10 }
0x2cf1   :  { %v1585_v45 = vmul.f32 %v1576_v17, %v3238_v28  ;;  %v1577_v48 = vmul.f32 %v1576_v17, %v1543_v9 }
0x2cf3   :  { %v1586_v13 = vmul.f32 %v1585_v45, %v1543_v9  ;;  %v1578_v62 = vrot.slane %v1577_v48, 4 }
0x2cf5   :  { %v1587_v60 = vrot.slane %v1586_v13, 4  ;;  %v1579_v14 = vadd.f32 %v1578_v62, %v1577_v48 }
0x2cf7   :  { %v1588_v29 = vadd.f32 %v1587_v60, %v1586_v13  ;;  %v1580_v15 = vrot.slane %v1579_v14, 2 }
0x2cf9   :  { %v1589_v61 = vrot.slane %v1588_v29, 2  ;;  %v1581_v60 = vadd.f32 %v1580_v15, %v1579_v14 }
0x2cfb   :  { %v1590_v22 = vadd.f32 %v1589_v61, %v1588_v29 }
0x2cfd   :  { %v1591_v21 = vrot.slane %v1590_v22, 1 }
0x2cff   :  { %v1592_v44 = vadd.f32 %v1591_v21, %v1590_v22  ;;  %v1582_v21 = vrot.slane %v1581_v60, 1 }
0x2d01   :  { %v1593_v23 = vsub.f32 %v1585_v45, %v1592_v44  ;;  %v1583_v62 = vadd.f32 %v1582_v21, %v1581_v60 }
0x2d03   :  { %v1594_v39 = vmul.f32 %v2554_v51, %v1593_v23 }
0x2d05   :  { %v1595_v5 = vmul.f32 %v1594_v39, %v1534_v1 }
0x2d07   :  { %1596 = vadd.xlane.f32.xlu0 %v1595_v5 }
0x2d94   :  { %v1597_v11 = vpop.xlane.xlu0 %1596 }
0x2d95   :  { %v1598_v26 = vsub.f32 %v1594_v39, %v1597_v11 }
0x2d97   :  { %v1599_v42 = vmul.f32 %v2552_v43, %v1598_v26 }
0x2d99   :  { %v1600_v10 = vmul.f32 %v1599_v42, %v1528_v53  ;;  %v1608_v58 = vmul.f32 %v1599_v42, %v3238_v28 }
0x2d9b   :  { %v1601_v0 = vrot.slane %v1600_v10, 4  ;;  %v1609_v13 = vmul.f32 %v1608_v58, %v1528_v53 }
0x2d9d   :  { %v1602_v29 = vadd.f32 %v1601_v0, %v1600_v10  ;;  %v1610_v61 = vrot.slane %v1609_v13, 4 }
0x2d9f   :  { %v1603_v22 = vrot.slane %v1602_v29, 2  ;;  %v1611_v45 = vadd.f32 %v1610_v61, %v1609_v13  ;;  %v1277_v13 = vmul.f32 %v3129_v4, %v3060_v25  ;;  %v1637_v25 = vsub.f32 %v3234_v63, %v2796_v37 }
0x2da1   :  { %v1604_v51 = vadd.f32 %v1603_v22, %v1602_v29  ;;  %v1612_v1 = vrot.slane %v1611_v45, 2 }
0x2da3   :  { %v1613_v9 = vadd.f32 %v1612_v1, %v1611_v45  ;;  %v1605_v17 = vrot.slane %v1604_v51, 1 }
0x2da5   :  { %v1614_v44 = vrot.slane %v1613_v9, 1  ;;  %v1606_v23 = vadd.f32 %v1605_v17, %v1604_v51 }
0x2da7   :  { %v1615_v26 = vadd.f32 %v1614_v44, %v1613_v9  ;;  %v1607_v43 = vadd.f32 %v1606_v23, %v1583_v62 }
0x2da9   :  { %v1616_v39 = vsub.f32 %v1608_v58, %v1615_v26  ;;  %v1276_v58 = vmul.f32 %v3122_v56, %v3187_v49  ;;  %v1638_v49 = vmul.f32 0.05, %v1637_v25 }
0x2dab   :  { %v1617_v28 = vmul.f32 %v3251_v2, %v1616_v39  ;;  %v1639_v9 = vmul.f32 0.33333334, %v1638_v49 }
0x2dad   :  { %v1618_v53 = vmul.f32 %v1617_v28, %v3245_v55  ;;  %v3274_v55 = vadd.f32 %v1277_v13, %v1276_v58  ;;  %v1488_v13 = vmul.f32 %v3216_v57, %v3211_v31  ;;  %v1487_v58 = vmul.f32 %v3209_v38, %v3204_v41 }
0x2daf   :  { %1619 = vadd.xlane.f32.xlu1 %v1618_v53 }
0x2e3c   :  { %v1620_v14 = vpop.xlane.xlu1 %1619 }
0x2e3d   :  { %v1621_v0 = vsub.f32 %v1617_v28, %v1620_v14 }
0x2e3f   :  { %v1622_v5 = vmul.f32 %v3242_v19, %v1621_v0  ;;  %v1448_v19 = vsub.f32 %v3147_v36, %v3274_v55 }
0x2e41   :  { %v1623_v48 = vmul.f32 %v1622_v5, %v2733_v27  ;;  %v1449_v45 = vmul.f32 %v1448_v19, %v1448_v19 }
0x2e43   :  { %v1624_v11 = vrot.slane %v1623_v48, 4  ;;  %v1450_v51 = vsel %vm200_vm4, %v1449_v45, 0.0 }
0x2e45   :  { %v1625_v42 = vadd.f32 %v1624_v11, %v1623_v48 }
0x2e47   :  { %v1626_v15 = vrot.slane %v1625_v42, 2 }
0x2e49   :  { %v1627_v10 = vadd.f32 %v1626_v15, %v1625_v42 }
0x2e4b   :  { %v1628_v60 = vrot.slane %v1627_v10, 1 }
0x2e4d   :  { %v1629_v2 = vadd.f32 %v1628_v60, %v1627_v10 }
0x2e4f   :  { %v1630_v29 = vadd.f32 %v1629_v2, %v1607_v43  ;;  %v3291_v2 = vadd.f32 %v1488_v13, %v1487_v58 }
0x2e51   :  { %v1631_v61 = vmul.f32 %v1630_v29, %v3234_v63  ;;  %v1658_v45 = vmul.f32 0.9, %v3291_v2 }
0x2e53   :  { %v1632_v22 = vsel %vm200_vm4, %v1631_v61, 0.0 }
0x2e54   :  { %1633 = vadd.xlane.f32.xlu0 %v1632_v22 }
0x2e58   :  { %1451 = vadd.xlane.f32.xlu0 %v1450_v51 }
0x2ee1   :  { %v1634_v1 = vpop.xlane.xlu0 %1633 }
0x2ee2   :  { %v1635_v21 = vsub.f32 %v1630_v29, %v1634_v1 }
0x2ee4   :  { %v1636_v17 = vmul.f32 %v1635_v21, %v3234_v63 }
0x2ee5   :  { %v1452_v39 = vpop.xlane.xlu0 %1451 }
0x2ee6   :  { %v1640_v44 = vadd.f32 %v1639_v9, %v1636_v17  ;;  %vm1455_vm12 = vcmp.eq.f32.partialorder %v1452_v39, inf  ;;  %v1458_v10 = vand.u32 2147483648, %v1452_v39  ;;  %vm1457_vm13 = vcmp.eq.f32.partialorder %v1452_v39, 0.0 }
0x2ee8   :  { %v1641_v62 = vsel %vm20_vm5, %v1640_v44, 0.0 }
0x2ee9   :  { %v1642_v23 = vmul.f32 %v1641_v62, %v1641_v62 }
0x2eeb   :  { %v1643_v26 = vsel %vm200_vm4, %v1642_v23, 0.0 }
0x2eec   :  { %1644 = vadd.xlane.f32.xlu1 %v1643_v26 }
0x2f79   :  { %v1645_v43 = vpop.xlane.xlu1 %1644 }
0x2f7a   :  { %2557 = vrsqrt.f32 %v1645_v43  ;;  %vm1648_vm10 = vcmp.eq.f32.partialorder %v1645_v43, inf  ;;  %v1651_v14 = vand.u32 2147483648, %v1645_v43  ;;  %vm1650_vm11 = vcmp.eq.f32.partialorder %v1645_v43, 0.0 }
0x2f7b   :  { %2559 = vrsqrt.f32 %v1452_v39 }
0x2f84   :  { %v2558_v28 = vpop.eup %2557 }
0x2f85   :  { %v1647_v53 = vmul.f32 %v2558_v28, %v1645_v43  ;;  %v2560_v0 = vpop.eup %2559 }
0x2f86   :  { %v1454_v42 = vmul.f32 %v2560_v0, %v1452_v39 }
0x2f87   :  { %v1649_v5 = vsel %vm1648_vm10, %v1645_v43, %v1647_v53 }
0x2f88   :  { %v1652_v48 = vsel %vm1650_vm11, %v1651_v14, %v1649_v5  ;;  %v1456_v15 = vsel %vm1455_vm12, %v1452_v39, %v1454_v42 }
0x2f89   :  { %v1653_v11 = vadd.f32 1e-06, %v1652_v48  ;;  %v1459_v60 = vsel %vm1457_vm13, %v1458_v10, %v1456_v15 }
0x2f8a   :  { %vm1460_vm14 = vcmp.lt.f32.partialorder %v1459_v60, 0.0001 }
0x2f8b   :  { %2561 = vrcp.f32 %v1653_v11  ;;  %v2372_v61 = vsel %vm1460_vm14, 1.0, %v3848_v46  ;;  %vm2329_vm14 = vcmp.eq.s32.totalorder %v2696_v34, 0 }
0x2f8c   :  { %v3296_v51 = vmax.f32 %v3209_v38, %v2372_v61 }
0x2f8e   :  { %v3303_v41 = vsub.f32 1.0, %v3296_v51  ;;  %v1698_v1 = vmul.f32 %v3296_v51, %v3221_v52 }
0x2f95   :  { %v2562_v29 = vpop.eup %2561 }
0x2f96   :  { %v1656_v19 = vmin.f32 %v2562_v29, 1.0 }
0x2f98   :  { %v1657_v22 = vmul.f32 %v1656_v19, %v1641_v62 }
0x2f9a   :  { %v3298_v25 = vadd.f32 %v1658_v45, %v1657_v22 }
0x2f9c   :  { %v1660_v31 = vmul.f32 0.01, %v3298_v25 }
0x2f9e   :  { %v1661_v49 = vsub.f32 %v3221_v52, %v1660_v31 }
0x2fa0   :  { %v1699_v21 = vmul.f32 %v3303_v41, %v1661_v49 }
0x2fa2   :  { %v3308_v9 = vadd.f32 %v1699_v21, %v1698_v1 }
0x2fa4   :  { %v1708_v17 = vsel %vm20_vm5, %v3308_v9, -1e+30 }
0x2fa5   :  { %v1709_v44 = vsel %vm200_vm4, %v1708_v17, -inf }
0x2fa6   :  { %1710 = vmax.xlane.f32.xlu1 %v1709_v44 }
0x3033   :  { %v1711_v62 = vpop.xlane.xlu1 %1710 }
0x3034   :  { %v3314_v23 = vsub.f32 %v1708_v17, %v1711_v62 }
0x3036   :  { %v1713_v26 = vmul.f32 1.442695, %v3314_v23 }
0x3038   :  { %2563 = vpow2.f32 %v1713_v26 }
0x3042   :  { %v2564_v43 = vpop.eup %2563 }
0x3043   :  { %v1715_v52 = vsel %vm200_vm4, %v2564_v43, 0.0 }
0x3044   :  { %1716 = vadd.xlane.f32.xlu0 %v1715_v52 }
0x30d1   :  { %v3318_v39 = vpop.xlane.xlu0 %1716 }
0x30d2   :  { %2565 = vrcp.f32 %v3318_v39 }
0x30dc   :  { %v2566_v28 = vpop.eup %2565 }
0x30dd   :  { %v3321_v53 = vmul.f32 %v2566_v28, %v2564_v43 }
0x30df   :  { %v3325_v14 = vrot.slane %v3321_v53, %v2731_v24 }
0x30e1   :  { %v1728_v0 = vmul.f32 %v3325_v14, %v2733_v27 }
0x30e3   :  { %1729 = vadd.xlane.f32.xlu1 %v1728_v0 }
0x3170   :  { %v1730_v5 = vpop.xlane.xlu1 %1729 }
0x3171   :  { %2567 = vrcp.f32 %v1730_v5 }
0x317b   :  { %v3329_v48 = vpop.eup %2567 }
0x317c   :  { %v3332_v11 = vmul.f32 %v3329_v48, %v1728_v0 }
0x317e   :  { %v1734_v42 = vrot.slane %v3332_v11, 4 }
0x3180   :  { %v1735_v15 = vadd.f32 %v1734_v42, %v3332_v11 }
0x3182   :  { %v1736_v10 = vrot.slane %v1735_v15, 2 }
0x3184   :  { %v1737_v13 = vadd.f32 %v1736_v10, %v1735_v15 }
0x3186   :  { %v1738_v60 = vrot.slane %v1737_v13, 1 }
0x3188   :  { %v1739_v58 = vadd.f32 %v1738_v60, %v1737_v13 }
0x318a   :  { %v1740_v29 = vsel %vm20_vm5, %v1739_v58, 1.0 }
0x318b   :  { %2569 = vrcp.f32 %v1740_v29 }
0x3195   :  { %v3338_v19 = vpop.eup %2569 }
0x3196   :  { %v1742_v61 = vmul.f32 %v3338_v19, %v3332_v11 }
0x3198   :  { %v1743_v22 = vmul.f32 %v1742_v61, %v3325_v14 }
0x319a   :  { %1744 = vadd.xlane.f32.xlu0 %v1743_v22 }
0x3227   :  { %v1745_v45 = vpop.xlane.xlu0 %1744 }
0x3228   :  { %2571 = vrcp.f32 %v1745_v45 }
0x3232   :  { %v2572_v31 = vpop.eup %2571 }
0x3233   :  { %v1748_v49 = vmul.f32 %v2572_v31, %v1743_v22 }
0x3235   :  { %v1749_v1 = vrot.slane %v1748_v49, 4 }
0x3237   :  { %v1750_v21 = vadd.f32 %v1749_v1, %v1748_v49 }
0x3239   :  { %v1751_v17 = vrot.slane %v1750_v21, 2 }
0x323b   :  { %v1752_v44 = vadd.f32 %v1751_v17, %v1750_v21 }
0x323d   :  { %v1753_v62 = vrot.slane %v1752_v44, 1 }
0x323f   :  { %v1754_v26 = vadd.f32 %v1753_v62, %v1752_v44 }
0x3241   :  { %v1755_v43 = vsel %vm20_vm5, %v1754_v26, 1.0 }
0x3242   :  { %2573 = vrcp.f32 %v1755_v43 }
0x324c   :  { %v2574_v52 = vpop.eup %2573 }
0x324d   :  { %v1757_v28 = vmul.f32 %v2574_v52, %v1748_v49 }
0x324f   :  { %v1758_v0 = vmul.f32 %v1757_v28, %v3325_v14 }
0x3251   :  { %1759 = vadd.xlane.f32.xlu1 %v1758_v0 }
0x32de   :  { %v1760_v5 = vpop.xlane.xlu1 %1759 }
0x32df   :  { %2575 = vrcp.f32 %v1760_v5 }
0x32e9   :  { %v2576_v42 = vpop.eup %2575 }
0x32ea   :  { %v3346_v15 = vmul.f32 %v2576_v42, %v1758_v0 }
0x32ec   :  { %3860 = vst [vmem:[#allocation24_spill] sm:$0xff] %v3346_v15  ;;  %v1786_v10 = vmul.f32 %v3346_v15, %v2766_v8 }
0x32ee   :  { %1787 = vadd.xlane.f32.xlu0 %v1786_v10 }
0x337b   :  { %v1788_v13 = vpop.xlane.xlu0 %1787 }
0x337c   :  { %v1789_v60 = vsub.f32 %v2766_v8, %v1788_v13 }
0x337e   :  { %v1790_v58 = vmul.f32 %v2576_v42, %v1789_v60 }
0x3380   :  { %v1799_v29 = vmul.f32 %v1790_v58, %v3325_v14  ;;  %v1791_v5 = vmul.f32 %v1790_v58, %v1757_v28 }
0x3382   :  { %v1800_v22 = vmul.f32 %v1799_v29, %v1757_v28  ;;  %v1792_v56 = vrot.slane %v1791_v5, 4 }
0x3384   :  { %v1801_v45 = vrot.slane %v1800_v22, 4  ;;  %v1793_v4 = vadd.f32 %v1792_v56, %v1791_v5 }
0x3386   :  { %v1802_v1 = vadd.f32 %v1801_v45, %v1800_v22  ;;  %v1794_v42 = vrot.slane %v1793_v4, 2 }
0x3388   :  { %v1803_v21 = vrot.slane %v1802_v1, 2  ;;  %v1795_v45 = vadd.f32 %v1794_v42, %v1793_v4 }
0x338a   :  { %v1804_v17 = vadd.f32 %v1803_v21, %v1802_v1 }
0x338c   :  { %v1805_v44 = vrot.slane %v1804_v17, 1 }
0x338e   :  { %v1806_v62 = vadd.f32 %v1805_v44, %v1804_v17  ;;  %v1796_v44 = vrot.slane %v1795_v45, 1 }
0x3390   :  { %v1807_v26 = vsub.f32 %v1799_v29, %v1806_v62  ;;  %v1797_v56 = vadd.f32 %v1796_v44, %v1795_v45 }
0x3392   :  { %v1808_v43 = vmul.f32 %v2574_v52, %v1807_v26 }
0x3394   :  { %v1809_v0 = vmul.f32 %v1808_v43, %v1748_v49 }
0x3396   :  { %1810 = vadd.xlane.f32.xlu1 %v1809_v0 }
0x3423   :  { %v1811_v10 = vpop.xlane.xlu1 %1810 }
0x3424   :  { %v1812_v15 = vsub.f32 %v1808_v43, %v1811_v10 }
0x3426   :  { %v1813_v13 = vmul.f32 %v2572_v31, %v1812_v15 }
0x3428   :  { %v1814_v60 = vmul.f32 %v1813_v13, %v1742_v61  ;;  %v1822_v30 = vmul.f32 %v1813_v13, %v3325_v14 }
0x342a   :  { %v1815_v35 = vrot.slane %v1814_v60, 4  ;;  %v1823_v22 = vmul.f32 %v1822_v30, %v1742_v61 }
0x342c   :  { %v1816_v1 = vadd.f32 %v1815_v35, %v1814_v60  ;;  %v1824_v21 = vrot.slane %v1823_v22, 4 }
0x342e   :  { %v1817_v17 = vrot.slane %v1816_v1, 2  ;;  %v1825_v29 = vadd.f32 %v1824_v21, %v1823_v22  ;;  %v1491_v22 = vmul.f32 %v3216_v57, %v3147_v36  ;;  %v1851_v36 = vsub.f32 %v3321_v53, %v2796_v37 }
0x3430   :  { %v1818_v52 = vadd.f32 %v1817_v17, %v1816_v1  ;;  %v1826_v49 = vrot.slane %v1825_v29, 2 }
0x3432   :  { %v1827_v28 = vadd.f32 %v1826_v49, %v1825_v29  ;;  %v1819_v58 = vrot.slane %v1818_v52, 1 }
0x3434   :  { %v1828_v62 = vrot.slane %v1827_v28, 1  ;;  %v1820_v26 = vadd.f32 %v1819_v58, %v1818_v52 }
0x3436   :  { %v1829_v31 = vadd.f32 %v1828_v62, %v1827_v28  ;;  %v1821_v15 = vadd.f32 %v1820_v26, %v1797_v56 }
0x3438   :  { %v1830_v43 = vsub.f32 %v1822_v30, %v1829_v31  ;;  %v1490_v30 = vmul.f32 %v3209_v38, %v3274_v55  ;;  %v1852_v55 = vmul.f32 0.05, %v1851_v36 }
0x343a   :  { %v1831_v14 = vmul.f32 %v3338_v19, %v1830_v43  ;;  %v1853_v28 = vmul.f32 0.33333334, %v1852_v55 }
0x343c   :  { %v1832_v61 = vmul.f32 %v1831_v14, %v3332_v11  ;;  %v3361_v11 = vadd.f32 %v1491_v22, %v1490_v30  ;;  %v1702_v22 = vmul.f32 %v3303_v41, %v3298_v25  ;;  %v1701_v30 = vmul.f32 %v3296_v51, %v3291_v2 }
0x343e   :  { %1833 = vadd.xlane.f32.xlu0 %v1832_v61 }
0x34cb   :  { %v1834_v35 = vpop.xlane.xlu0 %1833 }
0x34cc   :  { %v1835_v4 = vsub.f32 %v1831_v14, %v1834_v35 }
0x34ce   :  { %v1836_v0 = vmul.f32 %v3329_v48, %v1835_v4  ;;  %v1662_v48 = vsub.f32 %v3234_v63, %v3361_v11 }
0x34d0   :  { %v1837_v5 = vmul.f32 %v1836_v0, %v2733_v27  ;;  %v1663_v29 = vmul.f32 %v1662_v48, %v1662_v48 }
0x34d2   :  { %v1838_v10 = vrot.slane %v1837_v5, 4  ;;  %v1664_v52 = vsel %vm200_vm4, %v1663_v29, 0.0 }
0x34d4   :  { %v1839_v13 = vadd.f32 %v1838_v10, %v1837_v5 }
0x34d6   :  { %v1840_v42 = vrot.slane %v1839_v13, 2 }
0x34d8   :  { %v1841_v60 = vadd.f32 %v1840_v42, %v1839_v13 }
0x34da   :  { %v1842_v45 = vrot.slane %v1841_v60, 1 }
0x34dc   :  { %v1843_v19 = vadd.f32 %v1842_v45, %v1841_v60 }
0x34de   :  { %v1844_v1 = vadd.f32 %v1843_v19, %v1821_v15  ;;  %v3378_v19 = vadd.f32 %v1702_v22, %v1701_v30 }
0x34e0   :  { %v1845_v21 = vmul.f32 %v1844_v1, %v3321_v53  ;;  %v1872_v29 = vmul.f32 0.9, %v3378_v19 }
0x34e2   :  { %v1846_v17 = vsel %vm200_vm4, %v1845_v21, 0.0 }
0x34e3   :  { %1847 = vadd.xlane.f32.xlu1 %v1846_v17 }
0x34e7   :  { %1665 = vadd.xlane.f32.xlu1 %v1664_v52 }
0x3570   :  { %v1848_v49 = vpop.xlane.xlu1 %1847 }
0x3571   :  { %v1849_v44 = vsub.f32 %v1844_v1, %v1848_v49 }
0x3573   :  { %v1850_v58 = vmul.f32 %v1849_v44, %v3321_v53 }
0x3574   :  { %v1666_v43 = vpop.xlane.xlu1 %1665 }
0x3575   :  { %v1854_v62 = vadd.f32 %v1853_v28, %v1850_v58  ;;  %vm1669_vm1 = vcmp.eq.f32.partialorder %v1666_v43, inf  ;;  %v1672_v60 = vand.u32 2147483648, %v1666_v43  ;;  %vm1671_vm2 = vcmp.eq.f32.partialorder %v1666_v43, 0.0 }
0x3577   :  { %v1855_v56 = vsel %vm20_vm5, %v1854_v62, 0.0 }
0x3578   :  { %v1856_v26 = vmul.f32 %v1855_v56, %v1855_v56 }
0x357a   :  { %v1857_v31 = vsel %vm200_vm4, %v1856_v26, 0.0 }
0x357b   :  { %1858 = vadd.xlane.f32.xlu0 %v1857_v31 }
0x3608   :  { %v1859_v15 = vpop.xlane.xlu0 %1858 }
0x3609   :  { %2577 = vrsqrt.f32 %v1859_v15  ;;  %vm1862_vm15 = vcmp.eq.f32.partialorder %v1859_v15, inf  ;;  %v1865_v35 = vand.u32 2147483648, %v1859_v15  ;;  %vm1864_vm0 = vcmp.eq.f32.partialorder %v1859_v15, 0.0 }
0x360a   :  { %2579 = vrsqrt.f32 %v1666_v43 }
0x3613   :  { %v2578_v14 = vpop.eup %2577 }
0x3614   :  { %v1861_v61 = vmul.f32 %v2578_v14, %v1859_v15  ;;  %v2580_v4 = vpop.eup %2579 }
0x3615   :  { %v1668_v13 = vmul.f32 %v2580_v4, %v1666_v43 }
0x3616   :  { %v1863_v0 = vsel %vm1862_vm15, %v1859_v15, %v1861_v61  ;;  %vm2331_vm15 = vcmp.eq.s32.totalorder %v2696_v34, 1 }
0x3617   :  { %v1866_v5 = vsel %vm1864_vm0, %v1865_v35, %v1863_v0  ;;  %v1670_v42 = vsel %vm1669_vm1, %v1666_v43, %v1668_v13 }
0x3618   :  { %v1867_v10 = vadd.f32 1e-06, %v1866_v5  ;;  %v1673_v45 = vsel %vm1671_vm2, %v1672_v60, %v1670_v42 }
0x3619   :  { %vm1674_vm3 = vcmp.lt.f32.partialorder %v1673_v45, 0.0001 }
0x361a   :  { %2581 = vrcp.f32 %v1867_v10  ;;  %v2373_v21 = vsel %vm1674_vm3, 1.0, %v3848_v46 }
0x361b   :  { %v3383_v52 = vmax.f32 %v3296_v51, %v2373_v21 }
0x361d   :  { %v3390_v2 = vsub.f32 1.0, %v3383_v52  ;;  %v1912_v49 = vmul.f32 %v3383_v52, %v3308_v9 }
0x3624   :  { %v2582_v1 = vpop.eup %2581 }
0x3625   :  { %v1870_v48 = vmin.f32 %v2582_v1, 1.0 }
0x3627   :  { %v1871_v17 = vmul.f32 %v1870_v48, %v1855_v56 }
0x3629   :  { %v3385_v36 = vadd.f32 %v1872_v29, %v1871_v17 }
0x362b   :  { %v1874_v25 = vmul.f32 0.01, %v3385_v36 }
0x362d   :  { %v1875_v55 = vsub.f32 %v3308_v9, %v1874_v25 }
0x362f   :  { %v1913_v44 = vmul.f32 %v3390_v2, %v1875_v55 }
0x3631   :  { %v3395_v28 = vadd.f32 %v1913_v44, %v1912_v49 }
0x3633   :  { %v1922_v58 = vsel %vm20_vm5, %v3395_v28, -1e+30 }
0x3634   :  { %v1923_v62 = vsel %vm200_vm4, %v1922_v58, -inf }
0x3635   :  { %1924 = vmax.xlane.f32.xlu0 %v1923_v62 }
0x36c2   :  { %v1925_v56 = vpop.xlane.xlu0 %1924 }
0x36c3   :  { %v3401_v26 = vsub.f32 %v1922_v58, %v1925_v56 }
0x36c5   :  { %3861 = vst [vmem:[#allocation25_spill] sm:$0xff] %v3401_v26  ;;  %v1927_v31 = vmul.f32 1.442695, %v3401_v26 }
0x36c7   :  { %2583 = vpow2.f32 %v1927_v31 }
0x36d1   :  { %v2584_v15 = vpop.eup %2583 }
0x36d2   :  { %v1929_v9 = vsel %vm200_vm4, %v2584_v15, 0.0 }
0x36d3   :  { %1930 = vadd.xlane.f32.xlu1 %v1929_v9 }
0x3760   :  { %v3405_v43 = vpop.xlane.xlu1 %1930 }
0x3761   :  { %3862 = vst [vmem:[#allocation26_spill] sm:$0xff] %v3405_v43  ;;  %2585 = vrcp.f32 %v3405_v43 }
0x376b   :  { %v2586_v14 = vpop.eup %2585 }
0x376c   :  { %v3408_v61 = vmul.f32 %v2586_v14, %v2584_v15 }
0x376e   :  { %v3412_v35 = vrot.slane %v3408_v61, %v2731_v24 }
0x3770   :  { %v1942_v4 = vmul.f32 %v3412_v35, %v2733_v27 }
0x3772   :  { %1943 = vadd.xlane.f32.xlu0 %v1942_v4 }
0x37ff   :  { %v1944_v0 = vpop.xlane.xlu0 %1943 }
0x3800   :  { %2587 = vrcp.f32 %v1944_v0 }
0x380a   :  { %v3416_v5 = vpop.eup %2587 }
0x380b   :  { %v3419_v10 = vmul.f32 %v3416_v5, %v1942_v4 }
0x380d   :  { %v1948_v13 = vrot.slane %v3419_v10, 4 }
0x380f   :  { %v1949_v42 = vadd.f32 %v1948_v13, %v3419_v10 }
0x3811   :  { %v1950_v60 = vrot.slane %v1949_v42, 2 }
0x3813   :  { %v1951_v22 = vadd.f32 %v1950_v60, %v1949_v42 }
0x3815   :  { %v1952_v45 = vrot.slane %v1951_v22, 1 }
0x3817   :  { %v1953_v30 = vadd.f32 %v1952_v45, %v1951_v22 }
0x3819   :  { %v1954_v1 = vsel %vm20_vm5, %v1953_v30, 1.0 }
0x381a   :  { %2589 = vrcp.f32 %v1954_v1 }
0x3824   :  { %v3425_v48 = vpop.eup %2589 }
0x3825   :  { %v1956_v21 = vmul.f32 %v3425_v48, %v3419_v10 }
0x3827   :  { %v1957_v17 = vmul.f32 %v1956_v21, %v3412_v35 }
0x3829   :  { %1958 = vadd.xlane.f32.xlu1 %v1957_v17 }
0x38b6   :  { %v1959_v29 = vpop.xlane.xlu1 %1958 }
0x38b7   :  { %2591 = vrcp.f32 %v1959_v29 }
0x38c1   :  { %v2592_v25 = vpop.eup %2591 }
0x38c2   :  { %v1962_v55 = vmul.f32 %v2592_v25, %v1957_v17 }
0x38c4   :  { %v1963_v49 = vrot.slane %v1962_v55, 4 }
0x38c6   :  { %v1964_v44 = vadd.f32 %v1963_v49, %v1962_v55 }
0x38c8   :  { %v1965_v58 = vrot.slane %v1964_v44, 2 }
0x38ca   :  { %v1966_v62 = vadd.f32 %v1965_v58, %v1964_v44 }
0x38cc   :  { %v1967_v56 = vrot.slane %v1966_v62, 1 }
0x38ce   :  { %v1968_v31 = vadd.f32 %v1967_v56, %v1966_v62 }
0x38d0   :  { %v1969_v15 = vsel %vm20_vm5, %v1968_v31, 1.0 }
0x38d1   :  { %2593 = vrcp.f32 %v1969_v15 }
0x38db   :  { %v2594_v9 = vpop.eup %2593 }
0x38dc   :  { %v1971_v14 = vmul.f32 %v2594_v9, %v1962_v55 }
0x38de   :  { %v1972_v4 = vmul.f32 %v1971_v14, %v3412_v35 }
0x38e0   :  { %1973 = vadd.xlane.f32.xlu0 %v1972_v4 }
0x396d   :  { %v1974_v0 = vpop.xlane.xlu0 %1973 }
0x396e   :  { %2595 = vrcp.f32 %v1974_v0 }
0x3978   :  { %v2596_v13 = vpop.eup %2595 }
0x3979   :  { %v3433_v42 = vmul.f32 %v2596_v13, %v1972_v4 }
0x397b   :  { %3863 = vst [vmem:[#allocation27_spill] sm:$0xff] %v3433_v42  ;;  %v2000_v60 = vmul.f32 %v3433_v42, %v2766_v8 }
0x397d   :  { %2001 = vadd.xlane.f32.xlu1 %v2000_v60 }
0x3a0a   :  { %v2002_v22 = vpop.xlane.xlu1 %2001 }
0x3a0b   :  { %v2003_v45 = vsub.f32 %v2766_v8, %v2002_v22 }
0x3a0d   :  { %v2004_v30 = vmul.f32 %v2596_v13, %v2003_v45 }
0x3a0f   :  { %v2013_v1 = vmul.f32 %v2004_v30, %v3412_v35  ;;  %v2005_v0 = vmul.f32 %v2004_v30, %v1971_v14 }
0x3a11   :  { %v2014_v17 = vmul.f32 %v2013_v1, %v1971_v14  ;;  %v2006_v42 = vrot.slane %v2005_v0, 4 }
0x3a13   :  { %v2015_v29 = vrot.slane %v2014_v17, 4  ;;  %v2007_v38 = vadd.f32 %v2006_v42, %v2005_v0 }
0x3a15   :  { %v2016_v49 = vadd.f32 %v2015_v29, %v2014_v17  ;;  %v2008_v13 = vrot.slane %v2007_v38, 2 }
0x3a17   :  { %v2017_v44 = vrot.slane %v2016_v49, 2  ;;  %v2009_v29 = vadd.f32 %v2008_v13, %v2007_v38 }
0x3a19   :  { %v2018_v58 = vadd.f32 %v2017_v44, %v2016_v49 }
0x3a1b   :  { %v2019_v62 = vrot.slane %v2018_v58, 1 }
0x3a1d   :  { %v2020_v56 = vadd.f32 %v2019_v62, %v2018_v58 }
0x3a1f   :  { %v2021_v31 = vsub.f32 %v2013_v1, %v2020_v56 }
0x3a21   :  { %v2022_v15 = vmul.f32 %v2594_v9, %v2021_v31  ;;  %v2010_v9 = vrot.slane %v2009_v29, 1 }
0x3a23   :  { %v2023_v4 = vmul.f32 %v2022_v15, %v1962_v55  ;;  %v2011_v42 = vadd.f32 %v2010_v9, %v2009_v29 }
0x3a25   :  { %2024 = vadd.xlane.f32.xlu0 %v2023_v4 }
0x3ab2   :  { %v2025_v60 = vpop.xlane.xlu0 %2024 }
0x3ab3   :  { %v2026_v57 = vsub.f32 %v2022_v15, %v2025_v60 }
0x3ab5   :  { %v2027_v22 = vmul.f32 %v2592_v25, %v2026_v57 }
0x3ab7   :  { %v2028_v45 = vmul.f32 %v2027_v22, %v1956_v21  ;;  %v2036_v26 = vmul.f32 %v2027_v22, %v3412_v35 }
0x3ab9   :  { %v2029_v43 = vrot.slane %v2028_v45, 4  ;;  %v2037_v17 = vmul.f32 %v2036_v26, %v1956_v21 }
0x3abb   :  { %v2030_v49 = vadd.f32 %v2029_v43, %v2028_v45  ;;  %v2038_v44 = vrot.slane %v2037_v17, 4 }
0x3abd   :  { %v2031_v58 = vrot.slane %v2030_v49, 2  ;;  %v2039_v1 = vadd.f32 %v2038_v44, %v2037_v17  ;;  %v1705_v17 = vmul.f32 %v3303_v41, %v3234_v63  ;;  %v2065_v63 = vsub.f32 %v3408_v61, %v2796_v37 }
0x3abf   :  { %v2032_v55 = vadd.f32 %v2031_v58, %v2030_v49  ;;  %v2040_v62 = vrot.slane %v2039_v1, 2 }
0x3ac1   :  { %v2033_v14 = vrot.slane %v2032_v55, 1  ;;  %v2041_v30 = vadd.f32 %v2040_v62, %v2039_v1 }
0x3ac3   :  { %v2042_v56 = vrot.slane %v2041_v30, 1  ;;  %v2034_v31 = vadd.f32 %v2033_v14, %v2032_v55 }
0x3ac5   :  { %v2043_v57 = vadd.f32 %v2042_v56, %v2041_v30  ;;  %v2035_v25 = vadd.f32 %v2034_v31, %v2011_v42 }
0x3ac7   :  { %v2044_v15 = vsub.f32 %v2036_v26, %v2043_v57  ;;  %v1704_v26 = vmul.f32 %v3296_v51, %v3361_v11  ;;  %v2066_v11 = vmul.f32 0.05, %v2065_v63 }
0x3ac9   :  { %v2045_v35 = vmul.f32 %v3425_v48, %v2044_v15  ;;  %v2067_v14 = vmul.f32 0.33333334, %v2066_v11 }
0x3acb   :  { %v2046_v21 = vmul.f32 %v2045_v35, %v3419_v10  ;;  %v3448_v10 = vadd.f32 %v1705_v17, %v1704_v26  ;;  %v1916_v17 = vmul.f32 %v3390_v2, %v3385_v36 }
0x3acd   :  { %2047 = vadd.xlane.f32.xlu1 %v2046_v21 }
0x3b5a   :  { %v2048_v38 = vpop.xlane.xlu1 %2047 }
0x3b5b   :  { %v2049_v43 = vsub.f32 %v2045_v35, %v2048_v38 }
0x3b5d   :  { %v2050_v4 = vmul.f32 %v3416_v5, %v2049_v43  ;;  %v1876_v5 = vsub.f32 %v3321_v53, %v3448_v10 }
0x3b5f   :  { %v2051_v0 = vmul.f32 %v2050_v4, %v2733_v27  ;;  %v1877_v1 = vmul.f32 %v1876_v5, %v1876_v5 }
0x3b61   :  { %v2052_v60 = vrot.slane %v2051_v0, 4  ;;  %v1878_v9 = vsel %vm200_vm4, %v1877_v1, 0.0 }
0x3b63   :  { %v2053_v22 = vadd.f32 %v2052_v60, %v2051_v0 }
0x3b65   :  { %v2054_v13 = vrot.slane %v2053_v22, 2 }
0x3b67   :  { %v2055_v45 = vadd.f32 %v2054_v13, %v2053_v22 }
0x3b69   :  { %v2056_v48 = vrot.slane %v2055_v45, 1 }
0x3b6b   :  { %v2057_v29 = vadd.f32 %v2056_v48, %v2055_v45  ;;  %v1915_v48 = vmul.f32 %v3383_v52, %v3378_v19 }
0x3b6d   :  { %v2058_v49 = vadd.f32 %v2057_v29, %v2035_v25  ;;  %v3465_v29 = vadd.f32 %v1916_v17, %v1915_v48 }
0x3b6f   :  { %v2059_v44 = vmul.f32 %v2058_v49, %v3408_v61  ;;  %v2086_v1 = vmul.f32 0.9, %v3465_v29 }
0x3b71   :  { %v2060_v58 = vsel %vm200_vm4, %v2059_v44, 0.0 }
0x3b72   :  { %2061 = vadd.xlane.f32.xlu0 %v2060_v58 }
0x3b76   :  { %1879 = vadd.xlane.f32.xlu0 %v1878_v9 }
0x3bff   :  { %v2062_v55 = vpop.xlane.xlu0 %2061 }
0x3c00   :  { %v2063_v62 = vsub.f32 %v2058_v49, %v2062_v55 }
0x3c02   :  { %v2064_v30 = vmul.f32 %v2063_v62, %v3408_v61 }
0x3c03   :  { %v1880_v15 = vpop.xlane.xlu0 %1879 }
0x3c04   :  { %v2068_v56 = vadd.f32 %v2067_v14, %v2064_v30  ;;  %vm1883_vm9 = vcmp.eq.f32.partialorder %v1880_v15, inf  ;;  %v1886_v45 = vand.u32 2147483648, %v1880_v15  ;;  %vm1885_vm10 = vcmp.eq.f32.partialorder %v1880_v15, 0.0 }
0x3c06   :  { %v2069_v42 = vsel %vm20_vm5, %v2068_v56, 0.0 }
0x3c07   :  { %v2070_v31 = vmul.f32 %v2069_v42, %v2069_v42 }
0x3c09   :  { %v2071_v57 = vsel %vm200_vm4, %v2070_v31, 0.0 }
0x3c0a   :  { %2072 = vadd.xlane.f32.xlu1 %v2071_v57 }
0x3c97   :  { %v2073_v25 = vpop.xlane.xlu1 %2072 }
0x3c98   :  { %2597 = vrsqrt.f32 %v2073_v25  ;;  %vm2076_vm6 = vcmp.eq.f32.partialorder %v2073_v25, inf  ;;  %v2079_v38 = vand.u32 2147483648, %v2073_v25  ;;  %vm2078_vm7 = vcmp.eq.f32.partialorder %v2073_v25, 0.0 }
0x3c99   :  { %2599 = vrsqrt.f32 %v1880_v15 }
0x3ca2   :  { %v2598_v35 = vpop.eup %2597 }
0x3ca3   :  { %v2075_v21 = vmul.f32 %v2598_v35, %v2073_v25  ;;  %v2600_v43 = vpop.eup %2599 }
0x3ca4   :  { %v1882_v22 = vmul.f32 %v2600_v43, %v1880_v15 }
0x3ca5   :  { %v2077_v4 = vsel %vm2076_vm6, %v2073_v25, %v2075_v21 }
0x3ca6   :  { %v2080_v0 = vsel %vm2078_vm7, %v2079_v38, %v2077_v4  ;;  %v1884_v13 = vsel %vm1883_vm9, %v1880_v15, %v1882_v22 }
0x3ca7   :  { %v2081_v60 = vadd.f32 1e-06, %v2080_v0  ;;  %v1887_v26 = vsel %vm1885_vm10, %v1886_v45, %v1884_v13 }
0x3ca8   :  { %vm1888_vm11 = vcmp.lt.f32.partialorder %v1887_v26, 0.0001 }
0x3ca9   :  { %2601 = vrcp.f32 %v2081_v60  ;;  %v2374_v44 = vsel %vm1888_vm11, 1.0, %v3848_v46 }
0x3caa   :  { %v3470_v9 = vmax.f32 %v3383_v52, %v2374_v44 }
0x3cac   :  { %v3477_v19 = vsub.f32 1.0, %v3470_v9  ;;  %v2126_v55 = vmul.f32 %v3470_v9, %v3395_v28 }
0x3cb3   :  { %v2602_v49 = vpop.eup %2601 }
0x3cb4   :  { %v2084_v5 = vmin.f32 %v2602_v49, 1.0 }
0x3cb6   :  { %v2085_v58 = vmul.f32 %v2084_v5, %v2069_v42 }
0x3cb8   :  { %v3472_v63 = vadd.f32 %v2086_v1, %v2085_v58 }
0x3cba   :  { %v2088_v36 = vmul.f32 0.01, %v3472_v63 }
0x3cbc   :  { %v2089_v11 = vsub.f32 %v3395_v28, %v2088_v36 }
0x3cbe   :  { %v2127_v62 = vmul.f32 %v3477_v19, %v2089_v11 }
0x3cc0   :  { %v3482_v14 = vadd.f32 %v2127_v62, %v2126_v55 }
0x3cc2   :  { %v2133_v30 = vsel %vm20_vm5, %v3482_v14, -1e+30 }
0x3cc3   :  { %v2134_v56 = vsel %vm200_vm4, %v2133_v30, -inf }
0x3cc4   :  { %2135 = vmax.xlane.f32.xlu1 %v2134_v56 }
0x3d51   :  { %v2136_v42 = vpop.xlane.xlu1 %2135 }
0x3d52   :  { %v3488_v31 = vsub.f32 %v2133_v30, %v2136_v42 }
0x3d54   :  { %v2138_v57 = vmul.f32 1.442695, %v3488_v31 }
0x3d56   :  { %2603 = vpow2.f32 %v2138_v57 }
0x3d60   :  { %v2604_v25 = vpop.eup %2603 }
0x3d61   :  { %v2140_v28 = vsel %vm200_vm4, %v2604_v25, 0.0 }
0x3d62   :  { %2141 = vadd.xlane.f32.xlu0 %v2140_v28 }
0x3def   :  { %v3492_v15 = vpop.xlane.xlu0 %2141 }
0x3df0   :  { %2605 = vrcp.f32 %v3492_v15 }
0x3dfa   :  { %v2606_v35 = vpop.eup %2605 }
0x3dfb   :  { %v3495_v21 = vmul.f32 %v2606_v35, %v2604_v25 }
0x3dfd   :  { %v3499_v38 = vrot.slane %v3495_v21, %v2731_v24 }
0x3dff   :  { %v2153_v43 = vmul.f32 %v3499_v38, %v2733_v27 }
0x3e01   :  { %2154 = vadd.xlane.f32.xlu1 %v2153_v43 }
0x3e8e   :  { %v2155_v4 = vpop.xlane.xlu1 %2154 }
0x3e8f   :  { %2607 = vrcp.f32 %v2155_v4 }
0x3e99   :  { %v3503_v0 = vpop.eup %2607 }
0x3e9a   :  { %v3506_v60 = vmul.f32 %v3503_v0, %v2153_v43 }
0x3e9c   :  { %v2159_v22 = vrot.slane %v3506_v60, 4 }
0x3e9e   :  { %v2160_v13 = vadd.f32 %v2159_v22, %v3506_v60 }
0x3ea0   :  { %v2161_v45 = vrot.slane %v2160_v13, 2 }
0x3ea2   :  { %v2162_v17 = vadd.f32 %v2161_v45, %v2160_v13 }
0x3ea4   :  { %v2163_v26 = vrot.slane %v2162_v17, 1 }
0x3ea6   :  { %v2164_v48 = vadd.f32 %v2163_v26, %v2162_v17 }
0x3ea8   :  { %v2165_v49 = vsel %vm20_vm5, %v2164_v48, 1.0 }
0x3ea9   :  { %2609 = vrcp.f32 %v2165_v49 }
0x3eb3   :  { %v3512_v5 = vpop.eup %2609 }
0x3eb4   :  { %v2167_v44 = vmul.f32 %v3512_v5, %v3506_v60 }
0x3eb6   :  { %v2168_v58 = vmul.f32 %v2167_v44, %v3499_v38 }
0x3eb8   :  { %2169 = vadd.xlane.f32.xlu0 %v2168_v58 }
0x3f45   :  { %v2170_v1 = vpop.xlane.xlu0 %2169 }
0x3f46   :  { %2611 = vrcp.f32 %v2170_v1 }
0x3f50   :  { %v2612_v36 = vpop.eup %2611 }
0x3f51   :  { %v2173_v11 = vmul.f32 %v2612_v36, %v2168_v58 }
0x3f53   :  { %v2174_v55 = vrot.slane %v2173_v11, 4 }
0x3f55   :  { %v2175_v62 = vadd.f32 %v2174_v55, %v2173_v11 }
0x3f57   :  { %v2176_v30 = vrot.slane %v2175_v62, 2 }
0x3f59   :  { %v2177_v56 = vadd.f32 %v2176_v30, %v2175_v62 }
0x3f5b   :  { %v2178_v42 = vrot.slane %v2177_v56, 1 }
0x3f5d   :  { %v2179_v57 = vadd.f32 %v2178_v42, %v2177_v56 }
0x3f5f   :  { %v2180_v25 = vsel %vm20_vm5, %v2179_v57, 1.0 }
0x3f60   :  { %2613 = vrcp.f32 %v2180_v25 }
0x3f6a   :  { %v2614_v28 = vpop.eup %2613 }
0x3f6b   :  { %v2182_v35 = vmul.f32 %v2614_v28, %v2173_v11 }
0x3f6d   :  { %v2183_v43 = vmul.f32 %v2182_v35, %v3499_v38 }
0x3f6f   :  { %2184 = vadd.xlane.f32.xlu1 %v2183_v43 }
0x3ffc   :  { %v2185_v4 = vpop.xlane.xlu1 %2184 }
0x3ffd   :  { %2615 = vrcp.f32 %v2185_v4 }
0x3ffe   :  { %2617 = vlog2.f32 %v2720_v16 }
0x3fff   :  { %2619 = vlog2.f32 %v2790_v33 }
0x4000   :  { %2621 = vlog2.f32 %v2895_v40 }
0x4001   :  { %2623 = vlog2.f32 %v3057_v12 }
0x4002   :  { %2625 = vlog2.f32 %v3144_v7 }
0x4003   :  { %2627 = vlog2.f32 %v3318_v39 }
0x4004   :  { %2629 = vlog2.f32 %v3492_v15 }
0x4007   :  { %v2616_v22 = vpop.eup %2615 }
0x4008   :  { %v3520_v13 = vmul.f32 %v2616_v22, %v2183_v43 }
0x400a   :  { %v2211_v45 = vmul.f32 %v3520_v13, %v2766_v8 }
0x400c   :  { %2212 = vadd.xlane.f32.xlu0 %v2211_v45 }
0x4099   :  { %v2213_v17 = vpop.xlane.xlu0 %2212 }
0x409a   :  { %v2214_v26 = vsub.f32 %v2766_v8, %v2213_v17 }
0x409c   :  { %v2215_v48 = vmul.f32 %v2616_v22, %v2214_v26  ;;  %v2618_v26 = vpop.eup %2617 }
0x409e   :  { %v2224_v49 = vmul.f32 %v2215_v48, %v3499_v38  ;;  %v2216_v4 = vmul.f32 %v2215_v48, %v2182_v35 }
0x40a0   :  { %v2225_v58 = vmul.f32 %v2224_v49, %v2182_v35  ;;  %v2217_v8 = vrot.slane %v2216_v4, 4  ;;  %v213_v35 = vmul.f32 0.6931472, %v2618_v26 }
0x40a2   :  { %v2226_v1 = vrot.slane %v2225_v58, 4  ;;  %v2218_v45 = vadd.f32 %v2217_v8, %v2216_v4  ;;  %v214_v7 = vsub.f32 %v2714_v50, %v213_v35 }
0x40a4   :  { %v2227_v55 = vadd.f32 %v2226_v1, %v2225_v58  ;;  %v2219_v58 = vrot.slane %v2218_v45, 2  ;;  %v215_v8 = vsel %vm20_vm5, %v214_v7, 0.0 }
0x40a6   :  { %v2228_v62 = vrot.slane %v2227_v55, 2 }
0x40a8   :  { %v2229_v30 = vadd.f32 %v2228_v62, %v2227_v55  ;;  %v2220_v62 = vadd.f32 %v2219_v58, %v2218_v45 }
0x40aa   :  { %v2230_v56 = vrot.slane %v2229_v30, 1 }
0x40ac   :  { %v2231_v42 = vadd.f32 %v2230_v56, %v2229_v30 }
0x40ae   :  { %v2232_v57 = vsub.f32 %v2224_v49, %v2231_v42 }
0x40b0   :  { %v2233_v25 = vmul.f32 %v2614_v28, %v2232_v57  ;;  %v2620_v28 = vpop.eup %2619 }
0x40b1   :  { %v197_v48 = vmul.f32 0.6931472, %v2620_v28 }
0x40b2   :  { %v2234_v43 = vmul.f32 %v2233_v25, %v2173_v11  ;;  %v2622_v11 = vpop.eup %2621 }
0x40b3   :  { %v651_v12 = vmul.f32 0.6931472, %v2622_v11  ;;  %v2624_v55 = vpop.eup %2623  ;;  %v198_v57 = vsub.f32 %v2777_v18, %v197_v48 }
0x40b4   :  { %2235 = vadd.xlane.f32.xlu1 %v2234_v43  ;;  %v2626_v39 = vpop.eup %2625  ;;  %v2221_v43 = vrot.slane %v2220_v62, 1 }
0x40b5   :  { %v3541_v50 = vsel %vm20_vm5, %v198_v57, 0.0 }
0x40b6   :  { %v2222_v28 = vadd.f32 %v2221_v43, %v2220_v62 }
0x4141   :  { %v2236_v22 = vpop.xlane.xlu1 %2235 }
0x4142   :  { %v2237_v17 = vsub.f32 %v2233_v25, %v2236_v22  ;;  %v1079_v25 = vmul.f32 0.6931472, %v2624_v55 }
0x4144   :  { %v2238_v49 = vmul.f32 %v2612_v36, %v2237_v17  ;;  %v1080_v15 = vsub.f32 %v3053_v59, %v1079_v25  ;;  %v1293_v17 = vmul.f32 0.6931472, %v2626_v39 }
0x4146   :  { %v2239_v1 = vmul.f32 %v2238_v49, %v2167_v44  ;;  %v2247_v16 = vmul.f32 %v2238_v49, %v3499_v38  ;;  %v652_v38 = vsub.f32 %v2891_v47, %v651_v12  ;;  %v2628_v47 = vpop.eup %2627  ;;  %v278_v49 = vrot.slane %v215_v8, 7 }
0x4147   :  { %v1294_v59 = vsub.f32 %v3140_v3, %v1293_v17  ;;  %v1721_v48 = vmul.f32 0.6931472, %v2628_v47  ;;  %v2630_v12 = vpop.eup %2629 }
0x4148   :  { %v2240_v33 = vrot.slane %v2239_v1, 4  ;;  %v2248_v40 = vmul.f32 %v2247_v16, %v2167_v44  ;;  %v653_v18 = vsel %vm20_vm5, %v652_v38, 0.0  ;;  %v2146_v57 = vmul.f32 0.6931472, %v2630_v12 }
0x4149   :  { %v707_v35 = vrot.slane %v653_v18, 7  ;;  %v909_v12 = vmul.f32 %v2998_v20, %v2763_v6 }
0x414a   :  { %v2241_v30 = vadd.f32 %v2240_v33, %v2239_v1  ;;  %v2249_v56 = vrot.slane %v2248_v40, 4  ;;  %v280_v1 = vsub.f32 %v3541_v50, %v278_v49  ;;  %v2147_v43 = vsub.f32 %v3488_v31, %v2146_v57 }
0x414b   :  { %v709_v62 = vsub.f32 %v3541_v50, %v707_v35 }
0x414c   :  { %v2242_v36 = vrot.slane %v2241_v30, 2  ;;  %v2250_v42 = vadd.f32 %v2249_v56, %v2248_v40  ;;  %v1081_v40 = vsel %vm20_vm5, %v1080_v15, 0.0  ;;  %v281_v56 = vmul.f32 %v280_v1, %v2793_v32 }
0x414d   :  { %v1135_v7 = vrot.slane %v1081_v40, 7 }
0x414e   :  { %v2243_v44 = vadd.f32 %v2242_v36, %v2241_v30  ;;  %v2251_v4 = vrot.slane %v2250_v42, 2  ;;  %v1295_v36 = vsel %vm20_vm5, %v1294_v59, 0.0  ;;  %v282_v3 = vsel %vm20_vm5, %v281_v56, 0.0  ;;  %v3865_v56 = vld [vmem:[#allocation12_spill] sm:$0xff] }
0x414f   :  { %v1349_v25 = vrot.slane %v1295_v36, 7 }
0x4150   :  { %v2244_v22 = vrot.slane %v2243_v44, 1  ;;  %v2252_v45 = vadd.f32 %v2251_v4, %v2250_v42  ;;  %v1722_v42 = vsub.f32 %v3314_v23, %v1721_v48  ;;  %v466_v48 = vmul.f32 %v2847_v54, %v2763_v6 }
0x4151   :  { %v1351_v4 = vsub.f32 %v3541_v50, %v1349_v25 }
0x4152   :  { %v2253_v26 = vrot.slane %v2252_v45, 1  ;;  %v2245_v11 = vadd.f32 %v2244_v22, %v2243_v44  ;;  %v1723_v39 = vsel %vm20_vm5, %v1722_v42, 0.0  ;;  %v283_v44 = vsel %vm184_vm8, %v282_v3, 0.0 }
0x4153   :  { %v1777_v8 = vrot.slane %v1723_v39, 7  ;;  %v2148_v22 = vsel %vm20_vm5, %v2147_v43, 0.0  ;;  %v1352_v15 = vmul.f32 %v1351_v4, %v2793_v32 }
0x4154   :  { %v2254_v58 = vadd.f32 %v2253_v26, %v2252_v45  ;;  %v3547_v33 = vadd.f32 %v2245_v11, %v2222_v28  ;;  %v2202_v18 = vrot.slane %v2148_v22, 7 }
0x4155   :  { %v1779_v17 = vsub.f32 %v3541_v50, %v1777_v8  ;;  %v1353_v26 = vsel %vm20_vm5, %v1352_v15, 0.0 }
0x4156   :  { %v2255_v55 = vsub.f32 %v2247_v16, %v2254_v58  ;;  %v710_v16 = vmul.f32 %v709_v62, %v2793_v32  ;;  %v2204_v28 = vsub.f32 %v3541_v50, %v2202_v18  ;;  %v1354_v11 = vsel %vm184_vm8, %v1353_v26, 0.0  ;;  %v3870_v26 = vld [vmem:[#allocation21_spill] sm:$0xff] }
0x4157   :  { %v1780_v49 = vmul.f32 %v1779_v17, %v2793_v32 }
0x4158   :  { %v2256_v30 = vmul.f32 %v3512_v5, %v2255_v55  ;;  %v1137_v5 = vsub.f32 %v3541_v50, %v1135_v7  ;;  %v711_v23 = vsel %vm20_vm5, %v710_v16, 0.0  ;;  %v2205_v1 = vmul.f32 %v2204_v28, %v2793_v32  ;;  %v3864_v55 = vld [vmem:[#allocation5_spill] sm:$0xff]  ;;  %v3866_v7 = vld [vmem:[#allocation22_spill] sm:$0xff] }
0x4159   :  { %v712_v45 = vsel %vm184_vm8, %v711_v23, 0.0  ;;  %v1781_v58 = vsel %vm20_vm5, %v1780_v49, 0.0  ;;  %2631 = vlog2.f32 %v3864_v55  ;;  %v3867_v16 = vld [vmem:[#allocation26_spill] sm:$0xff]  ;;  %v3869_v23 = vld [vmem:[#allocation11_spill] sm:$0xff]  ;;  %v1919_v55 = vmul.f32 %v3390_v2, %v3321_v53 }
0x415a   :  { %v2257_v38 = vmul.f32 %v2256_v30, %v3506_v60  ;;  %v1138_v60 = vmul.f32 %v1137_v5, %v2793_v32  ;;  %v1782_v35 = vsel %vm184_vm8, %v1781_v58, 0.0  ;;  %v2206_v40 = vsel %vm20_vm5, %v2205_v1, 0.0  ;;  %v3868_v5 = vld [vmem:[#allocation4_spill] sm:$0xff] }
0x415b   :  { %v2207_v59 = vsel %vm184_vm8, %v2206_v40, 0.0  ;;  %2633 = vlog2.f32 %v3865_v56 }
0x415c   :  { %2258 = vadd.xlane.f32.xlu0 %v2257_v38  ;;  %v1139_v31 = vsel %vm20_vm5, %v1138_v60, 0.0  ;;  %2635 = vlog2.f32 %v3866_v7 }
0x415d   :  { %v1140_v47 = vsel %vm184_vm8, %v1139_v31, 0.0  ;;  %2637 = vlog2.f32 %v3867_v16 }
0x4160   :  { %284 = vadd.xlane.f32.xlu0 %v283_v44 }
0x4163   :  { %v2632_v62 = vpop.eup %2631 }
0x4164   :  { %713 = vadd.xlane.f32.xlu0 %v712_v45  ;;  %v422_v42 = vmul.f32 0.6931472, %v2632_v62 }
0x4165   :  { %v2634_v38 = vpop.eup %2633 }
0x4166   :  { %v423_v25 = vsub.f32 %v3868_v5, %v422_v42  ;;  %v865_v39 = vmul.f32 0.6931472, %v2634_v38  ;;  %v2636_v22 = vpop.eup %2635 }
0x4167   :  { %v1507_v31 = vmul.f32 0.6931472, %v2636_v22  ;;  %v2638_v17 = vpop.eup %2637  ;;  %v3872_v22 = vld [vmem:[#allocation3_spill] sm:$0xff] }
0x4168   :  { %1141 = vadd.xlane.f32.xlu0 %v1140_v47  ;;  %v866_v60 = vsub.f32 %v3869_v23, %v865_v39  ;;  %v424_v8 = vsel %vm20_vm5, %v423_v25, 0.0  ;;  %v1935_v28 = vmul.f32 0.6931472, %v2638_v17  ;;  %v3876_v17 = vld [vmem:[#allocation24_spill] sm:$0xff] }
0x4169   :  { %v1508_v49 = vsub.f32 %v3870_v26, %v1507_v31  ;;  %v3875_v31 = vld [vmem:[#allocation18_spill] sm:$0xff]  ;;  %v3877_v26 = vld [vmem:[#allocation7_spill] sm:$0xff] }
0x416b   :  { %v1509_v40 = vsel %vm20_vm5, %v1508_v49, 0.0  ;;  %v607_v49 = vrot.slane %v3877_v26, %v2731_v24 }
0x416c   :  { %1355 = vadd.xlane.f32.xlu0 %v1354_v11 }
0x4170   :  { %1783 = vadd.xlane.f32.xlu0 %v1782_v35 }
0x4174   :  { %2208 = vadd.xlane.f32.xlu0 %v2207_v59  ;;  %v3871_v59 = vld [vmem:[#allocation25_spill] sm:$0xff] }
0x4178   :  { %467 = vadd.xlane.f32.xlu0 %v466_v48  ;;  %v1936_v48 = vsub.f32 %v3871_v59, %v1935_v28  ;;  %v3879_v59 = vld [vmem:[#allocation10_spill] sm:$0xff] }
0x417a   :  { %v1937_v42 = vsel %vm20_vm5, %v1936_v48, 0.0  ;;  %v830_v48 = vrot.slane %v3879_v59, %v2731_v24 }
0x417b   :  { %v1991_v16 = vrot.slane %v1937_v42, 7 }
0x417c   :  { %910 = vadd.xlane.f32.xlu0 %v909_v12 }
0x41e9   :  { %v2259_v36 = vpop.xlane.xlu0 %2258 }
0x41ea   :  { %v2260_v57 = vsub.f32 %v2256_v30, %v2259_v36  ;;  %v478_v30 = vrot.slane %v424_v8, 7  ;;  %v1563_v36 = vrot.slane %v1509_v40, 7  ;;  %v608_v40 = vmul.f32 %v607_v49, %v2847_v54 }
0x41ec   :  { %v2261_v3 = vmul.f32 %v3503_v0, %v2260_v57  ;;  %v867_v0 = vsel %vm20_vm5, %v866_v60, 0.0  ;;  %v480_v47 = vsub.f32 %v3541_v50, %v478_v30 }
0x41ed   :  { %v285_v28 = vpop.xlane.xlu0 %284 }
0x41ee   :  { %v2262_v43 = vmul.f32 %v2261_v3, %v2733_v27  ;;  %v921_v27 = vrot.slane %v867_v0, 7  ;;  %v481_v1 = vmul.f32 %v480_v47, %v2793_v32  ;;  %v3874_v0 = vld [vmem:[#allocation15_spill] sm:$0xff]  ;;  %v2190_v47 = vmul.f32 %v3520_v13, %v2763_v6 }
0x41f0   :  { %v2263_v44 = vrot.slane %v2262_v43, 4  ;;  %v923_v35 = vsub.f32 %v3541_v50, %v921_v27  ;;  %v482_v62 = vsel %vm20_vm5, %v481_v1, 0.0  ;;  %v2648_v27 = vmov 0   ;;  %v3878_v1 = vld [vmem:[#allocation6_spill] sm:$0xff] }
0x41f1   :  { %v483_v38 = vsel %vm184_vm8, %v482_v62, 0.0  ;;  %2402 = vset.pattern.permute.xlu0 %v2648_v27 }
0x41f2   :  { %v2264_v4 = vadd.f32 %v2263_v44, %v2262_v43  ;;  %v924_v7 = vmul.f32 %v923_v35, %v2793_v32  ;;  %v1993_v43 = vsub.f32 %v3541_v50, %v1991_v16  ;;  %v602_v35 = vrot.slane %v3878_v1, %v2731_v24  ;;  %v3882_v16 = vld [vmem:[#allocation13_spill] sm:$0xff] }
0x41f4   :  { %v2265_v45 = vrot.slane %v2264_v4, 2  ;;  %v925_v3 = vsel %vm20_vm5, %v924_v7, 0.0  ;;  %v1994_v23 = vmul.f32 %v1993_v43, %v2793_v32  ;;  %v286_v7 = vmul.f32 0.33333334, %v285_v28 }
0x41f5   :  { %v926_v5 = vsel %vm184_vm8, %v925_v3, 0.0 }
0x41f6   :  { %v2266_v15 = vadd.f32 %v2265_v45, %v2264_v4  ;;  %v1995_v4 = vsel %vm20_vm5, %v1994_v23, 0.0  ;;  %v3873_v45 = vld [vmem:[#allocation8_spill] sm:$0xff]  ;;  %v614_v43 = vrot.slane %v286_v7, 1 }
0x41f7   :  { %v1996_v8 = vsel %vm184_vm8, %v1995_v4, 0.0  ;;  %v695_v30 = vmul.f32 %v3873_v45, %v2763_v6 }
0x41f8   :  { %v2267_v18 = vrot.slane %v2266_v15, 1 }
0x41fa   :  { %v2268_v11 = vadd.f32 %v2267_v18, %v2266_v15  ;;  %v1337_v15 = vmul.f32 %v3875_v31, %v2763_v6  ;;  %v1765_v18 = vmul.f32 %v3876_v17, %v2763_v6 }
0x41fc   :  { %v3610_v58 = vadd.f32 %v2268_v11, %v3547_v33  ;;  %v1918_v33 = vmul.f32 %v3383_v52, %v3448_v10  ;;  %v1565_v10 = vsub.f32 %v3541_v50, %v1563_v36  ;;  %v266_v50 = vmul.f32 %v3872_v22, %v2763_v6  ;;  %v714_v36 = vpop.xlane.xlu0 %713 }
0x41fd   :  { %v2276_v11 = vsub.f32 %v3495_v21, %v2796_v37 }
0x41fe   :  { %v2270_v12 = vmul.f32 %v3610_v58, %v3495_v21  ;;  %v1920_v57 = vadd.f32 %v1919_v55, %v1918_v33  ;;  %v1566_v39 = vmul.f32 %v1565_v10, %v2793_v32  ;;  %v1123_v32 = vmul.f32 %v3874_v0, %v2763_v6 }
0x41ff   :  { %v603_v55 = vmul.f32 %v602_v35, %v3872_v22  ;;  %v3885_v35 = vld [vmem:[#allocation20_spill] sm:$0xff] }
0x4200   :  { %v2271_v56 = vsel %vm200_vm4, %v2270_v12, 0.0  ;;  %v2090_v53 = vsub.f32 %v3408_v61, %v1920_v57  ;;  %v1567_v61 = vsel %vm20_vm5, %v1566_v39, 0.0  ;;  %v2277_v12 = vmul.f32 0.05, %v2276_v11 }
0x4201   :  { %2272 = vadd.xlane.f32.xlu1 %v2271_v56  ;;  %v1568_v60 = vsel %vm184_vm8, %v1567_v61, 0.0  ;;  %v3880_v56 = vld [vmem:[#allocation9_spill] sm:$0xff]  ;;  %v609_v37 = vadd.f32 %v608_v40, %v603_v55  ;;  %v831_v57 = vmul.f32 %v830_v48, %v3873_v45  ;;  %v3884_v45 = vld [vmem:[#allocation16_spill] sm:$0xff]  ;;  %v1472_v40 = vrot.slane %v3885_v35, %v2731_v24  ;;  %v3886_v55 = vld [vmem:[#allocation19_spill] sm:$0xff] }
0x4202   :  { %v2091_v25 = vmul.f32 %v2090_v53, %v2090_v53  ;;  %v825_v33 = vrot.slane %v3880_v56, %v2731_v24  ;;  %v2278_v53 = vmul.f32 0.33333334, %v2277_v12 }
0x4204   :  { %v2092_v44 = vsel %vm200_vm4, %v2091_v25, 0.0  ;;  %v826_v10 = vmul.f32 %v825_v33, %v609_v37  ;;  %v715_v25 = vmul.f32 0.33333334, %v714_v36  ;;  %v1467_v33 = vrot.slane %v3886_v55, %v2731_v24  ;;  %v3887_v36 = vld [vmem:[#allocation23_spill] sm:$0xff] }
0x4205   :  { %484 = vadd.xlane.f32.xlu1 %v483_v38  ;;  %v3881_v38 = vld [vmem:[#allocation14_spill] sm:$0xff] }
0x4206   :  { %v1044_v54 = vrot.slane %v3881_v38, %v2731_v24  ;;  %v832_v23 = vadd.f32 %v831_v57, %v826_v10  ;;  %v1686_v10 = vrot.slane %v3303_v41, %v2731_v24 }
0x4209   :  { %927 = vadd.xlane.f32.xlu1 %v926_v5  ;;  %v1039_v5 = vrot.slane %v3882_v16, %v2731_v24 }
0x420d   :  { %2093 = vadd.xlane.f32.xlu1 %v2092_v44 }
0x4211   :  { %1569 = vadd.xlane.f32.xlu1 %v1568_v60  ;;  %v3883_v60 = vld [vmem:[#allocation17_spill] sm:$0xff] }
0x4212   :  { %v1258_v4 = vrot.slane %v3883_v60, %v2731_v24 }
0x4214   :  { %v1259_v28 = vmul.f32 %v1258_v4, %v3874_v0 }
0x4215   :  { %1997 = vadd.xlane.f32.xlu1 %v1996_v8  ;;  %v1142_v8 = vpop.xlane.xlu0 %1141 }
0x4216   :  { %v1143_v37 = vmul.f32 0.33333334, %v1142_v8 }
0x4219   :  { %267 = vadd.xlane.f32.xlu1 %v266_v50  ;;  %v1040_v50 = vmul.f32 %v1039_v5, %v832_v23  ;;  %v1356_v57 = vpop.xlane.xlu0 %1355 }
0x421d   :  { %696 = vadd.xlane.f32.xlu1 %v695_v30  ;;  %v1253_v30 = vrot.slane %v3884_v45, %v2731_v24 }
0x4221   :  { %1124 = vadd.xlane.f32.xlu1 %v1123_v32  ;;  %v838_v32 = vrot.slane %v715_v25, 1 }
0x4225   :  { %1338 = vadd.xlane.f32.xlu1 %v1337_v15 }
0x4229   :  { %1766 = vadd.xlane.f32.xlu1 %v1765_v18 }
0x422d   :  { %2191 = vadd.xlane.f32.xlu1 %v2190_v47 }
0x428e   :  { %v2273_v62 = vpop.xlane.xlu1 %2272 }
0x428f   :  { %v2274_v42 = vsub.f32 %v3610_v58, %v2273_v62  ;;  %v1045_v58 = vmul.f32 %v1044_v54, %v2998_v20  ;;  %v616_v20 = vmul.f32 %v614_v43, %v3878_v1  ;;  %v840_v62 = vmul.f32 %v838_v32, %v3879_v59 }
0x4290   :  { %v1357_v43 = vmul.f32 0.33333334, %v1356_v57 }
0x4291   :  { %v2275_v3 = vmul.f32 %v2274_v42, %v3495_v21  ;;  %v1046_v49 = vadd.f32 %v1045_v58, %v1040_v50  ;;  %v1551_v42 = vmul.f32 %v3887_v36, %v2763_v6  ;;  %v3888_v58 = vld [vmem:[#allocation27_spill] sm:$0xff] }
0x4292   :  { %v485_v39 = vpop.xlane.xlu1 %484  ;;  %v1979_v4 = vmul.f32 %v3888_v58, %v2763_v6 }
0x4293   :  { %v2279_v44 = vadd.f32 %v2278_v53, %v2275_v3  ;;  %v486_v61 = vmul.f32 0.33333334, %v485_v39  ;;  %v1254_v12 = vmul.f32 %v1253_v30, %v1046_v49  ;;  %v1473_v3 = vmul.f32 %v1472_v40, %v3875_v31 }
0x4294   :  { %v1681_v39 = vrot.slane %v3296_v51, %v2731_v24  ;;  %v1480_v30 = vrot.slane %v1357_v43, 1 }
0x4295   :  { %v618_v22 = vrot.slane %v486_v61, 1  ;;  %v3681_v21 = vsel %vm20_vm5, %v2279_v44, 0.0  ;;  %v1260_v53 = vadd.f32 %v1259_v28, %v1254_v12  ;;  %v1266_v44 = vrot.slane %v1143_v37, 1 }
0x4296   :  { %v928_v15 = vpop.xlane.xlu1 %927  ;;  %v2281_v18 = vmul.f32 %v3681_v21, %v3681_v21 }
0x4297   :  { %v620_v47 = vmul.f32 %v618_v22, %v3877_v26  ;;  %v929_v27 = vmul.f32 0.33333334, %v928_v15  ;;  %v1468_v25 = vmul.f32 %v1467_v33, %v1260_v53  ;;  %v1687_v22 = vmul.f32 %v1686_v10, %v3887_v36  ;;  %v1784_v15 = vpop.xlane.xlu0 %1783 }
0x4298   :  { %v2282_v11 = vsel %vm200_vm4, %v2281_v18, 0.0  ;;  %v1268_v32 = vmul.f32 %v1266_v44, %v3883_v60  ;;  %v1785_v40 = vmul.f32 0.33333334, %v1784_v15 }
0x4299   :  { %v621_v48 = vadd.f32 %v620_v47, %v616_v20  ;;  %2283 = vadd.xlane.f32.xlu0 %v2282_v11  ;;  %v1052_v54 = vrot.slane %v929_v27, 1  ;;  %v1474_v31 = vadd.f32 %v1473_v3, %v1468_v25  ;;  %v1900_v27 = vrot.slane %v3390_v2, %v2731_v24 }
0x429a   :  { %v2094_v7 = vpop.xlane.xlu1 %2093  ;;  %v1482_v11 = vmul.f32 %v1480_v30, %v3885_v35  ;;  %v2109_v3 = vrot.slane %v3470_v9, %v2731_v24  ;;  %v1908_v10 = vrot.slane %v1785_v40, 1 }
0x429b   :  { %v836_v0 = vmul.f32 %v3880_v56, %v621_v48  ;;  %2639 = vrsqrt.f32 %v2094_v7  ;;  %v1054_v23 = vmul.f32 %v1052_v54, %v3881_v38  ;;  %v1682_v20 = vmul.f32 %v1681_v39, %v1474_v31 }
0x429c   :  { %v1895_v48 = vrot.slane %v3383_v52, %v2731_v24  ;;  %vm2097_vm4 = vcmp.eq.f32.partialorder %v2094_v7, inf  ;;  %v2100_v33 = vand.u32 2147483648, %v2094_v7  ;;  %v1901_v37 = vmul.f32 %v1900_v27, %v3876_v17 }
0x429d   :  { %v841_v5 = vadd.f32 %v840_v62, %v836_v0  ;;  %1552 = vadd.xlane.f32.xlu0 %v1551_v42  ;;  %v1688_v6 = vadd.f32 %v1687_v22, %v1682_v20  ;;  %v2114_v42 = vrot.slane %v3477_v19, %v2731_v24  ;;  %vm2099_vm5 = vcmp.eq.f32.partialorder %v2094_v7, 0.0 }
0x429e   :  { %v1570_v8 = vpop.xlane.xlu1 %1569 }
0x429f   :  { %v1050_v61 = vmul.f32 %v3882_v16, %v841_v5  ;;  %v1571_v47 = vmul.f32 0.33333334, %v1570_v8  ;;  %v1896_v5 = vmul.f32 %v1895_v48, %v1688_v6  ;;  %v2115_v17 = vmul.f32 %v2114_v42, %v3888_v58 }
0x42a1   :  { %v1055_v50 = vadd.f32 %v1054_v23, %v1050_v61  ;;  %1980 = vadd.xlane.f32.xlu0 %v1979_v4  ;;  %v1694_v36 = vrot.slane %v1571_v47, 1  ;;  %v1902_v61 = vadd.f32 %v1901_v37, %v1896_v5  ;;  %v2209_v4 = vpop.xlane.xlu0 %2208 }
0x42a2   :  { %v1998_v0 = vpop.xlane.xlu1 %1997  ;;  %v2210_v15 = vmul.f32 0.33333334, %v2209_v4 }
0x42a3   :  { %v1264_v18 = vmul.f32 %v3884_v45, %v1055_v50  ;;  %v1696_v43 = vmul.f32 %v1694_v36, %v3303_v41  ;;  %v1999_v44 = vmul.f32 0.33333334, %v1998_v0  ;;  %v2110_v8 = vmul.f32 %v2109_v3, %v1902_v61 }
0x42a4   :  { %v2318_v6 = vrot.slane %v2210_v15, 1 }
0x42a5   :  { %v2640_v49 = vpop.eup %2639  ;;  %v1269_v28 = vadd.f32 %v1268_v32, %v1264_v18  ;;  %v2122_v30 = vrot.slane %v1999_v44, 1  ;;  %v2116_v32 = vadd.f32 %v2115_v17, %v2110_v8 }
0x42a6   :  { %v2096_v12 = vmul.f32 %v2640_v49, %v2094_v7 }
0x42a7   :  { %v1478_v62 = vmul.f32 %v3886_v55, %v1269_v28  ;;  %v2124_v49 = vmul.f32 %v2122_v30, %v3477_v19 }
0x42a8   :  { %v2098_v57 = vsel %vm2097_vm4, %v2094_v7, %v2096_v12 }
0x42a9   :  { %v2101_v54 = vsel %vm2099_vm5, %v2100_v33, %v2098_v57  ;;  %v1483_v53 = vadd.f32 %v1482_v11, %v1478_v62  ;;  %v268_v33 = vpop.xlane.xlu1 %267  ;;  %v468_v62 = vpop.xlane.xlu0 %467 }
0x42aa   :  { %vm2102_vm8 = vcmp.lt.f32.partialorder %v2101_v54, 0.0001  ;;  %v469_v36 = vrot.slane %v468_v62, 4 }
0x42ab   :  { %v2375_v25 = vsel %vm2102_vm8, 1.0, %v3848_v46  ;;  %v1692_v39 = vmul.f32 %v3296_v51, %v1483_v53  ;;  %v1910_v46 = vmul.f32 %v1908_v10, %v3390_v2 }
0x42ac   :  { %v3727_v7 = vmax.f32 %v3470_v9, %v2375_v25  ;;  %v470_v57 = vadd.f32 %v469_v36, %v468_v62 }
0x42ad   :  { %v1697_v23 = vadd.f32 %v1696_v43, %v1692_v39  ;;  %v697_v37 = vpop.xlane.xlu1 %696  ;;  %v911_v25 = vpop.xlane.xlu0 %910 }
0x42ae   :  { %v2305_v31 = vrot.slane %v3727_v7, %v2731_v24  ;;  %v3732_v22 = vsub.f32 1.0, %v3727_v7  ;;  %v698_v54 = vrot.slane %v697_v37, 4  ;;  %v471_v53 = vrot.slane %v470_v57, 2 }
0x42af   :  { %v1906_v50 = vmul.f32 %v3383_v52, %v1697_v23  ;;  %v912_v17 = vrot.slane %v911_v25, 4 }
0x42b0   :  { %v2310_v58 = vrot.slane %v3732_v22, %v2731_v24  ;;  %v2306_v20 = vmul.f32 %v2305_v31, %v2116_v32  ;;  %v2320_v48 = vmul.f32 %v2318_v6, %v3732_v22  ;;  %v699_v10 = vadd.f32 %v698_v54, %v697_v37 }
0x42b1   :  { %v1911_v18 = vadd.f32 %v1910_v46, %v1906_v50  ;;  %v472_v5 = vadd.f32 %v471_v53, %v470_v57  ;;  %v913_v8 = vadd.f32 %v912_v17, %v911_v25  ;;  %v1125_v31 = vpop.xlane.xlu1 %1124 }
0x42b2   :  { %v2311_v47 = vmul.f32 %v2310_v58, %v3520_v13  ;;  %v269_v13 = vrot.slane %v268_v33, 4  ;;  %v700_v43 = vrot.slane %v699_v10, 2  ;;  %v1126_v58 = vrot.slane %v1125_v31, 4 }
0x42b3   :  { %v2120_v27 = vmul.f32 %v3470_v9, %v1911_v18  ;;  %v473_v44 = vrot.slane %v472_v5, 1  ;;  %v914_v32 = vrot.slane %v913_v8, 2 }
0x42b4   :  { %v2312_v28 = vadd.f32 %v2311_v47, %v2306_v20  ;;  %v270_v42 = vadd.f32 %v269_v13, %v268_v33  ;;  %v701_v23 = vadd.f32 %v700_v43, %v699_v10 }
0x42b5   :  { %v2125_v11 = vadd.f32 %v2124_v49, %v2120_v27  ;;  %v474_v4 = vadd.f32 %v473_v44, %v472_v5  ;;  %v915_v47 = vadd.f32 %v914_v32, %v913_v8  ;;  %v1127_v27 = vadd.f32 %v1126_v58, %v1125_v31  ;;  %v1339_v6 = vpop.xlane.xlu1 %1338 }
0x42b6   :  { %2328 = vst [vmem:[%s3789_s3] sm:$0xff] %v2312_v28  ;;  %v271_v0 = vrot.slane %v270_v42, 2  ;;  %v702_v50 = vrot.slane %v701_v23, 1 }
0x42b7   :  { %v2316_v40 = vmul.f32 %v3727_v7, %v2125_v11  ;;  %v475_v30 = vsub.f32 0.0, %v474_v4 }
0x42b8   :  { %v272_v3 = vadd.f32 %v271_v0, %v270_v42  ;;  %v703_v18 = vadd.f32 %v702_v50, %v701_v23 }
0x42b9   :  { %v2321_v12 = vadd.f32 %v2320_v48, %v2316_v40  ;;  %v476_v20 = vmul.f32 0.125, %v475_v30  ;;  %v916_v40 = vrot.slane %v915_v47, 1  ;;  %v1128_v48 = vrot.slane %v1127_v27, 2  ;;  %v1767_v0 = vpop.xlane.xlu1 %1766 }
0x42ba   :  { %v273_v39 = vrot.slane %v272_v3, 1  ;;  %v704_v28 = vsub.f32 0.0, %v703_v18  ;;  %v1768_v10 = vrot.slane %v1767_v0, 4 }
0x42bb   :  { %2334 = vperm.xlu0 %2402, %v2321_v12   ;;  %v611_v11 = vmul.f32 %v3877_v26, %v476_v20  ;;  %v1340_v12 = vrot.slane %v1339_v6, 4  ;;  %v917_v13 = vadd.f32 %v916_v40, %v915_v47  ;;  %v1129_v36 = vadd.f32 %v1128_v48, %v1127_v27 }
0x42bc   :  { %v274_v61 = vadd.f32 %v273_v39, %v272_v3  ;;  %v705_v62 = vmul.f32 0.125, %v704_v28  ;;  %v1769_v43 = vadd.f32 %v1768_v10, %v1767_v0 }
0x42bd   :  { %v1341_v42 = vadd.f32 %v1340_v12, %v1339_v6  ;;  %v918_v54 = vsub.f32 0.0, %v917_v13  ;;  %v1130_v53 = vrot.slane %v1129_v36, 1  ;;  %v2192_v44 = vpop.xlane.xlu1 %2191 }
0x42be   :  { %v275_v46 = vsub.f32 0.0, %v274_v61  ;;  %v834_v57 = vmul.f32 %v3879_v59, %v705_v62  ;;  %v1770_v4 = vrot.slane %v1769_v43, 2  ;;  %v2193_v59 = vrot.slane %v2192_v44, 4 }
0x42bf   :  { %v919_v5 = vmul.f32 0.125, %v918_v54  ;;  %v1131_v26 = vadd.f32 %v1130_v53, %v1129_v36 }
0x42c0   :  { %v276_v15 = vmul.f32 0.125, %v275_v46  ;;  %v1771_v30 = vadd.f32 %v1770_v4, %v1769_v43  ;;  %v2194_v32 = vadd.f32 %v2193_v59, %v2192_v44  ;;  %v2129_v4 = vmul.f32 %v3470_v9, %v3465_v29 }
0x42c1   :  { %v1048_v17 = vmul.f32 %v3881_v38, %v919_v5  ;;  %v1132_v61 = vsub.f32 0.0, %v1131_v26 }
0x42c2   :  { %v610_v49 = vmul.f32 %v3878_v1, %v276_v15  ;;  %v1342_v1 = vrot.slane %v1341_v42, 2  ;;  %v1772_v47 = vrot.slane %v1771_v30, 1  ;;  %v2195_v27 = vrot.slane %v2194_v32, 2 }
0x42c3   :  { %v1133_v31 = vmul.f32 0.125, %v1132_v61 }
0x42c4   :  { %v612_v33 = vadd.f32 %v611_v11, %v610_v49  ;;  %v1343_v25 = vadd.f32 %v1342_v1, %v1341_v42  ;;  %v2196_v62 = vadd.f32 %v2195_v27, %v2194_v32 }
0x42c6   :  { %v833_v37 = vmul.f32 %v3880_v56, %v612_v33  ;;  %v1344_v23 = vrot.slane %v1343_v25, 1  ;;  %v1773_v33 = vadd.f32 %v1772_v47, %v1771_v30  ;;  %v2197_v1 = vrot.slane %v2196_v62, 1 }
0x42c8   :  { %v835_v3 = vadd.f32 %v834_v57, %v833_v37  ;;  %v1345_v46 = vadd.f32 %v1344_v23, %v1343_v25  ;;  %v1774_v5 = vsub.f32 0.0, %v1773_v33  ;;  %v2198_v43 = vadd.f32 %v2197_v1, %v2196_v62 }
0x42ca   :  { %v1047_v39 = vmul.f32 %v3882_v16, %v835_v3  ;;  %v1262_v16 = vmul.f32 %v3883_v60, %v1133_v31  ;;  %v1346_v18 = vsub.f32 0.0, %v1345_v46  ;;  %v1775_v44 = vmul.f32 0.125, %v1774_v5 }
0x42cc   :  { %v1049_v56 = vadd.f32 %v1048_v17, %v1047_v39  ;;  %v1347_v40 = vmul.f32 0.125, %v1346_v18  ;;  %v1904_v59 = vmul.f32 %v3390_v2, %v1775_v44 }
0x42ce   :  { %v1261_v50 = vmul.f32 %v3884_v45, %v1049_v56  ;;  %v1476_v57 = vmul.f32 %v3885_v35, %v1347_v40  ;;  %v2130_v35 = vmul.f32 %v3477_v19, %v3472_v63 }
0x42d0   :  { %v1263_v38 = vadd.f32 %v1262_v16, %v1261_v50  ;;  %v2131_v50 = vadd.f32 %v2130_v35, %v2129_v4 }
0x42d2   :  { %v1475_v45 = vmul.f32 %v3886_v55, %v1263_v38  ;;  %v2297_v16 = vmul.f32 0.9, %v2131_v50  ;;  %v2325_v47 = vmul.f32 %v3727_v7, %v2131_v50 }
0x42d4   :  { %v1477_v10 = vadd.f32 %v1476_v57, %v1475_v45 }
0x42d6   :  { %v1689_v17 = vmul.f32 %v3296_v51, %v1477_v10 }
0x4326   :  { %v2284_v8 = vpop.xlane.xlu0 %2283 }
0x4327   :  { %2641 = vrsqrt.f32 %v2284_v8  ;;  %vm2287_vm12 = vcmp.eq.f32.partialorder %v2284_v8, inf  ;;  %v2290_v36 = vand.u32 2147483648, %v2284_v8  ;;  %vm2289_vm13 = vcmp.eq.f32.partialorder %v2284_v8, 0.0 }
0x432a   :  { %v1553_v58 = vpop.xlane.xlu0 %1552 }
0x432b   :  { %v1554_v15 = vrot.slane %v1553_v58, 4 }
0x432d   :  { %v1555_v20 = vadd.f32 %v1554_v15, %v1553_v58 }
0x432e   :  { %v1981_v49 = vpop.xlane.xlu0 %1980 }
0x432f   :  { %v1556_v28 = vrot.slane %v1555_v20, 2  ;;  %v1982_v6 = vrot.slane %v1981_v49, 4 }
0x4331   :  { %v2642_v11 = vpop.eup %2641  ;;  %v1557_v48 = vadd.f32 %v1556_v28, %v1555_v20  ;;  %v1983_v12 = vadd.f32 %v1982_v6, %v1981_v49 }
0x4332   :  { %v2286_v13 = vmul.f32 %v2642_v11, %v2284_v8  ;;  %v2322_v11 = vmul.f32 %v3727_v7, %v3482_v14 }
0x4333   :  { %v1558_v60 = vrot.slane %v1557_v48, 1  ;;  %v1984_v42 = vrot.slane %v1983_v12, 2 }
0x4334   :  { %v2288_v37 = vsel %vm2287_vm12, %v2284_v8, %v2286_v13  ;;  %v2199_v8 = vsub.f32 0.0, %v2198_v43 }
0x4335   :  { %v2291_v0 = vsel %vm2289_vm13, %v2290_v36, %v2288_v37  ;;  %v1559_v54 = vadd.f32 %v1558_v60, %v1557_v48  ;;  %v1985_v53 = vadd.f32 %v1984_v42, %v1983_v12  ;;  %v3889_v48 = vld [vmem:[#allocation2_spill] sm:$0xff] }
0x4336   :  { %v2292_v3 = vadd.f32 1e-06, %v2291_v0  ;;  %v2200_v51 = vmul.f32 0.125, %v2199_v8  ;;  %vm2341_vm0 = vcmp.eq.s32.totalorder %v3889_v48, 2  ;;  %vm2340_vm1 = vcmp.eq.s32.totalorder %v3889_v48, 1 }
0x4337   :  { %v1560_v26 = vsub.f32 0.0, %v1559_v54  ;;  %v1986_v55 = vrot.slane %v1985_v53, 1  ;;  %vm2339_vm2 = vcmp.eq.s32.totalorder %v3889_v48, 0 }
0x4338   :  { %2643 = vrcp.f32 %v2292_v3  ;;  %v2314_v20 = vmul.f32 %v3732_v22, %v2200_v51 }
0x4339   :  { %v1561_v25 = vmul.f32 0.125, %v1560_v26  ;;  %v1987_v39 = vadd.f32 %v1986_v55, %v1985_v53 }
0x433b   :  { %v1690_v61 = vmul.f32 %v3303_v41, %v1561_v25  ;;  %v1988_v23 = vsub.f32 0.0, %v1987_v39 }
0x433d   :  { %v1691_v56 = vadd.f32 %v1690_v61, %v1689_v17  ;;  %v1989_v46 = vmul.f32 0.125, %v1988_v23 }
0x433f   :  { %v1903_v31 = vmul.f32 %v3383_v52, %v1691_v56  ;;  %v2118_v41 = vmul.f32 %v3477_v19, %v1989_v46  ;;  %v2335_v52 = vpop.permute.xlu0 %2334 }
0x4340   :  { %v2337_v28 = vsel %vm2331_vm15, %v2335_v52, 0.0 }
0x4341   :  { %v1905_v30 = vadd.f32 %v1904_v59, %v1903_v31 }
0x4342   :  { %v2644_v32 = vpop.eup %2643 }
0x4343   :  { %v2295_v58 = vmin.f32 %v2644_v32, 1.0  ;;  %v2117_v15 = vmul.f32 %v3470_v9, %v1905_v30 }
0x4345   :  { %v2296_v63 = vmul.f32 %v2295_v58, %v3681_v21  ;;  %v2119_v18 = vadd.f32 %v2118_v41, %v2117_v15 }
0x4347   :  { %v2298_v29 = vadd.f32 %v2297_v16, %v2296_v63  ;;  %v2313_v2 = vmul.f32 %v3727_v7, %v2119_v18 }
0x4349   :  { %v2299_v38 = vmul.f32 0.01, %v2298_v29  ;;  %v2326_v19 = vmul.f32 %v3732_v22, %v2298_v29  ;;  %v2315_v9 = vadd.f32 %v2314_v20, %v2313_v2 }
0x434b   :  { %v2300_v21 = vsub.f32 %v3482_v14, %v2299_v38  ;;  %v2327_v27 = vadd.f32 %v2326_v19, %v2325_v47  ;;  %v2330_v49 = vsel %vm2329_vm14, %v2315_v9, 0.0 }
0x434c   :  { %v2338_v6 = vadd.f32 %v2337_v28, %v2330_v49 }
0x434d   :  { %v2323_v40 = vmul.f32 %v3732_v22, %v2300_v21  ;;  %v2350_v45 = vrot.slane %v2327_v27, %v2731_v24 }
0x434e   :  { %v2345_v34 = vrot.slane %v2338_v6, %v2731_v24 }
0x434f   :  { %v2324_v12 = vadd.f32 %v2323_v40, %v2322_v11 }
0x4350   :  { %v2346_v33 = vsel %vm2341_vm0, %v2345_v34, 0.0 }
0x4351   :  { %v2355_v62 = vrot.slane %v2324_v12, %v2731_v24  ;;  %v2351_v13 = vsel %vm2340_vm1, %v2350_v45, %v2346_v33 }
0x4353   :  { %v2356_v36 = vsel %vm2339_vm2, %v2355_v62, %v2351_v13 }
0x4354   :  { %2357 = vst [vmem:[%s3790_s4] sm:$0xff] %v2356_v36 }

</bundles_post_ra>
